<compile_context>
chip_gen: v5e
topology: v5e:2x2
jax: 0.10.0
libtpu: 0.0.40
codegen_flags: <defaults>
</compile_context>

<pallas_src>
import functools
import math

import jax
import jax.numpy as jnp
from jax.experimental import pallas as pl
from jax.experimental.pallas import tpu as pltpu

# ----------------------------------------------------------------------------
# Pallas tiled matmul + fused bias (+ReLU)  --  the conv hot path
# ----------------------------------------------------------------------------
TM = 256        # rows per tile  (M = 512 -> 2 "parallel" blocks; good for v7x)
TN = 128        # output-channel lanes per tile (lane-dense stores)
TK_MAX = 2048   # upper bound for the reduction tile; per-layer tk <= this


def _round_up(x, m):
    return (x + m - 1) // m * m


def _cdiv(a, b):
    return -(-a // b)


def _choose_k_tiling(K):
    """Pick (tk, Kp) with tk a multiple of 128, Kp = tk * nk >= K, nk minimal."""
    kp0 = _round_up(K, 128)
    nk = _cdiv(kp0, TK_MAX)
    tk = _cdiv(kp0 // 128, nk) * 128
    return tk, tk * nk


def _mm_bias_kernel(a_ref, b_ref, bias_ref, o_ref, *, relu):
    k = pl.program_id(2)

    @pl.when(k == 0)
    def _init():
        o_ref[...] = jnp.zeros_like(o_ref)

    # bf16 x bf16 -> f32 accumulate, directly into the resident output tile.
    o_ref[...] += jnp.dot(a_ref[...], b_ref[...],
                          preferred_element_type=jnp.float32)

    @pl.when(k == pl.num_programs(2) - 1)
    def _epilogue():
        r = o_ref[...] + bias_ref[...]
        if relu:
            r = jnp.maximum(r, 0.0)
        o_ref[...] = r


def matmul_bias(a, b, bias, *, relu, tk):
    """a: (Mp, Kp) bf16, b: (Kp, Np) bf16, bias: (1, Np) f32 -> (Mp, Np) f32."""
    Mp, Kp = a.shape
    Kp2, Np = b.shape
    assert Kp == Kp2 and Mp % TM == 0 and Np % TN == 0 and Kp % tk == 0
    grid = (Mp // TM, Np // TN, Kp // tk)
    return pl.pallas_call(
        functools.partial(_mm_bias_kernel, relu=relu),
        out_shape=jax.ShapeDtypeStruct((Mp, Np), jnp.float32),
        grid_spec=pltpu.PrefetchScalarGridSpec(
            num_scalar_prefetch=0,
            grid=grid,
            in_specs=[
                pl.BlockSpec((TM, tk), lambda i, j, kk: (i, kk)),
                pl.BlockSpec((tk, TN), lambda i, j, kk: (kk, j)),
                pl.BlockSpec((1, TN), lambda i, j, kk: (0, j)),
            ],
            out_specs=pl.BlockSpec((TM, TN), lambda i, j, kk: (i, j)),
        ),
        compiler_params=pltpu.CompilerParams(
            dimension_semantics=("parallel", "parallel", "arbitrary"),
            vmem_limit_bytes=32 * 1024 * 1024),
    )(a, b, bias)


# ----------------------------------------------------------------------------
# Convolution = im2col (bf16 glue, padding fused) + Pallas matmul
# ----------------------------------------------------------------------------
# TODO(synk): im2col could be folded into the kernel via shifted-window
# BlockSpecs on a (dh,dw) reduction axis to avoid the k^2 activation blow-up.
def conv2d_same_mm(x, w_pad, b_pad, *, k, cout, relu):
    """SAME conv.  x: (N,H,W,Cin) f32;  w_pad: (Kp,Np) bf16 with rows ordered
    (kh, kw, Cin) and zero-padded;  b_pad: (1,Np) f32."""
    n, h, wd, c = x.shape
    K = k * k * c
    tk, Kp = _choose_k_tiling(K)
    assert w_pad.shape[0] == Kp, (w_pad.shape, Kp)

    pad_total = k - 1
    pad_lo = pad_total // 2
    pad_hi = pad_total - pad_lo
    xb = x.astype(jnp.bfloat16)
    xp = jnp.pad(xb, ((0, 0), (pad_lo, pad_hi), (pad_lo, pad_hi), (0, 0)))
    pats = [xp[:, dh:dh + h, dw:dw + wd, :]
            for dh in range(k) for dw in range(k)]
    if Kp > K:                       # fuse K-tail zero pad into the same concat
        pats.append(jnp.zeros((n, h, wd, Kp - K), jnp.bfloat16))
    patches = jnp.concatenate(pats, axis=-1).reshape(n * h * wd, Kp)

    M = n * h * wd
    Mp = _round_up(M, TM)
    if Mp > M:
        patches = jnp.concatenate(
            [patches, jnp.zeros((Mp - M, Kp), jnp.bfloat16)], axis=0)

    out = matmul_bias(patches, w_pad, b_pad, relu=relu, tk=tk)
    return out[:M, :cout].reshape(n, h, wd, cout)


# ----------------------------------------------------------------------------
# Parameter init (deterministic, synthetic) -- padded/bf16-packed ONCE here
# ----------------------------------------------------------------------------
KS = (3, 4, 5)   # kernel sizes of the 3 parallel branches
KMAX = 5
CH = 50          # channels per branch -> fused stage output = 150
GAUSS_SIGMA = 0.1


def _init_branch(key, k, cin, cout):
    fan_in = k * k * cin
    w = jax.random.normal(key, (k, k, cin, cout), jnp.float32) / math.sqrt(fan_in)
    b = jnp.zeros((cout,), jnp.float32)
    return w, b


def _fuse_branches(keys, cin):
    """Fuse the 3 parallel SAME convs (k=3,4,5; 50 ch each) into ONE exact 5x5
    conv by zero-embedding the smaller kernels at offset 2 - (k-1)//2."""
    ws, bs = [], []
    for key, k in zip(keys, KS):
        w, b = _init_branch(key, k, cin, CH)
        off = (KMAX - 1) // 2 - (k - 1) // 2
        w5 = jnp.zeros((KMAX, KMAX, cin, CH), jnp.float32)
        w5 = w5.at[off:off + k, off:off + k].set(w)
        ws.append(w5)
        bs.append(b)
    return jnp.concatenate(ws, axis=-1), jnp.concatenate(bs)


def _pack(w, b, k):
    """(k,k,cin,cout) f32 -> MXU-ready ((Kp,Np) bf16 weight, (1,Np) f32 bias)."""
    _, _, cin, cout = w.shape
    K = k * k * cin
    _, Kp = _choose_k_tiling(K)
    Np = _round_up(cout, TN)
    w2 = jnp.zeros((Kp, Np), jnp.float32).at[:K, :cout].set(w.reshape(K, cout))
    b2 = jnp.zeros((1, Np), jnp.float32).at[0, :cout].set(b)
    return w2.astype(jnp.bfloat16), b2


def _init_two_stage(key, cin1):
    k1, k2 = jax.random.split(key)
    w1, b1 = _fuse_branches(jax.random.split(k1, 3), cin1)
    w2, b2 = _fuse_branches(jax.random.split(k2, 3), 3 * CH)
    return {"s1": _pack(w1, b1, KMAX), "s2": _pack(w2, b2, KMAX)}


def _init_with_final(key, cin1):
    k0, kf = jax.random.split(key)
    p = _init_two_stage(k0, cin1)
    wf, bf = _init_branch(kf, 3, 3 * CH, 3)
    p["final"] = _pack(wf, bf, 3)
    return p


def init_net_params(key):
    k1, k2, k3 = jax.random.split(key, 3)
    return {
        "prep": _init_two_stage(k1, 3),
        "hide": _init_with_final(k2, 3 * CH + 3),   # cat(prep_out, cover)
        "reveal": _init_with_final(k3, 3),
    }


# ----------------------------------------------------------------------------
# Sub-network forwards (one fused 5x5 conv per stage)
# ----------------------------------------------------------------------------
def _two_stage(p, x):
    c1 = conv2d_same_mm(x, *p["s1"], k=KMAX, cout=3 * CH, relu=True)
    c2 = conv2d_same_mm(c1, *p["s2"], k=KMAX, cout=3 * CH, relu=True)
    return c2


def prep_forward(p, x):
    return _two_stage(p, x)


def hiding_like_forward(p, x):
    c2 = _two_stage(p, x)
    # TODO(synk): Cout=3 pads to 128 MXU lanes (~2% utilized); a single tiny call.
    return conv2d_same_mm(c2, *p["final"], k=3, cout=3, relu=False)


# ----------------------------------------------------------------------------
# Noise layers (Gaussian + differentiable-JPEG approximation, plain-JAX glue)
# ----------------------------------------------------------------------------
def gaussian_layer(x, key):
    return x + GAUSS_SIGMA * jax.random.normal(key, x.shape, jnp.float32)


def _dct_matrix(n=8):
    k = jnp.arange(n, dtype=jnp.float32)
    D = jnp.cos((2.0 * k[None, :] + 1.0) * k[:, None] * jnp.pi / (2.0 * n))
    D = D * jnp.sqrt(2.0 / n)
    D = D.at[0, :].set(1.0 / jnp.sqrt(jnp.float32(n)))
    return D


_RGB2YCC = jnp.array([[0.299, 0.587, 0.114],
                      [-0.168736, -0.331264, 0.5],
                      [0.5, -0.418688, -0.081312]], jnp.float32)
_YCC2RGB = jnp.array([[1.0, 0.0, 1.402],
                      [1.0, -0.344136, -0.714136],
                      [1.0, 1.772, 0.0]], jnp.float32)


def jpeg_approx(x):
    """Differentiable JPEG approximation: YCbCr -> 8x8 DCT -> low-freq mask ->
    inverse.  Requires H, W multiples of 8.
    # TODO(synk): original JpegCompression module source unavailable; this is a
    # faithful DCT-mask approximation, not an exact port."""
    ycc = jnp.einsum('nhwc,dc->nhwd', x, _RGB2YCC)
    N, H, W, C = ycc.shape
    blocks = ycc.reshape(N, H // 8, 8, W // 8, 8, C).transpose(0, 1, 3, 5, 2, 4)
    D = _dct_matrix(8)
    coef = jnp.einsum('ij,...jk,lk->...il', D, blocks, D)
    i = jnp.arange(8)[:, None]
    j = jnp.arange(8)[None, :]
    thr = jnp.array([8.0, 4.0, 4.0], jnp.float32)          # keep more Y than chroma
    mask = ((i + j)[None, :, :] < thr[:, None, None]).astype(jnp.float32)
    coef = coef * mask[None, None, None]
    rec = jnp.einsum('ji,...jk,kl->...il', D, coef, D)
    rec = rec.transpose(0, 1, 4, 2, 5, 3).reshape(N, H, W, C)
    return jnp.einsum('nhwc,dc->nhwd', rec, _YCC2RGB)


# ----------------------------------------------------------------------------
# Full Net forward (matches PyTorch Net.forward: returns (Hidden, Recovery))
# ----------------------------------------------------------------------------
@jax.jit
def net_forward(params, secret_nchw, cover_nchw, noise_key):
    # layout: convert NCHW (PyTorch) -> NHWC (kernel) at the boundary.
    secret = jnp.transpose(secret_nchw, (0, 2, 3, 1))
    cover = jnp.transpose(cover_nchw, (0, 2, 3, 1))

    x_1 = prep_forward(params["prep"], secret)                  # m1
    mid = jnp.concatenate([x_1, cover], axis=-1)                # torch.cat(dim=1)
    hidden = hiding_like_forward(params["hide"], mid)           # m2
    x_gaussian = gaussian_layer(hidden, noise_key)              # gaussian
    x_attack = jpeg_approx(x_gaussian)                          # jpeg_layer
    recovery = hiding_like_forward(params["reveal"], x_attack)  # m3
    # (resize_layer is constructed in __init__ but never used in forward)

    return (jnp.transpose(hidden, (0, 3, 1, 2)),
            jnp.transpose(recovery, (0, 3, 1, 2)))


# ----------------------------------------------------------------------------
if __name__ == "__main__":
    key = jax.random.PRNGKey(0)
    ks, kc, kn = jax.random.split(key, 3)
    secret = jax.random.uniform(ks, (2, 3, 16, 16), jnp.float32)
    cover = jax.random.uniform(kc, (2, 3, 16, 16), jnp.float32)

    params = init_net_params(jax.random.PRNGKey(42))

    hidden, recovery = net_forward(params, secret, cover, kn)
    jax.block_until_ready((hidden, recovery))

    assert hidden.shape == (2, 3, 16, 16)
    assert recovery.shape == (2, 3, 16, 16)
    assert hidden.dtype == jnp.float32 and recovery.dtype == jnp.float32
    assert bool(jnp.all(jnp.isfinite(hidden))) and bool(jnp.all(jnp.isfinite(recovery)))
    print("KERNEL_OK")
</pallas_src>

<mosaic_0001>
module attributes {stable_mosaic.version = 11 : i64} {
  func.func @_mm_bias_kernel(%arg0: i32, %arg1: i32, %arg2: i32, %arg3: memref<256x128xbf16, #tpu.memory_space<vmem>>, %arg4: memref<128x128xbf16, #tpu.memory_space<vmem>>, %arg5: memref<1x128xf32, #tpu.memory_space<vmem>>, %arg6: memref<256x128xf32, #tpu.memory_space<vmem>>) attributes {dimension_semantics = [#tpu.dimension_semantics<parallel>, #tpu.dimension_semantics<parallel>, #tpu.dimension_semantics<arbitrary>], iteration_bounds = array<i64: 2, 2, 1>, scalar_prefetch = 0 : i64, scratch_operands = 0 : i64, tpu.core_type = #tpu.core_type<tc>, window_params = [{transform_indices = @transform_0, window_bounds = array<i64: 256, 128>}, {transform_indices = @transform_1, window_bounds = array<i64: 128, 128>}, {transform_indices = @transform_2, window_bounds = array<i64: 1, 128>}, {transform_indices = @transform_3, window_bounds = array<i64: 256, 128>}]} {
    %c0_i32 = arith.constant 0 : i32
    %0 = arith.cmpi eq, %arg2, %c0_i32 : i32
    %1 = arith.extui %0 : i1 to i32
    %c0_i32_0 = arith.constant 0 : i32
    %2 = arith.cmpi ne, %1, %c0_i32_0 : i32
    scf.if %2 {
      %cst_10 = arith.constant 0.000000e+00 : f32
      %12 = vector.broadcast %cst_10 : f32 to vector<256x128xf32>
      %c0_11 = arith.constant 0 : index
      %c0_12 = arith.constant 0 : index
      %13 = vector.load %arg6[%c0_11, %c0_12] : memref<256x128xf32, #tpu.memory_space<vmem>>, vector<256x128xf32>
      tpu.vector_store %arg6[%c0_11, %c0_12], %12 {strides = array<i32>} : memref<256x128xf32, #tpu.memory_space<vmem>>, vector<256x128xf32>,
    } else {
    }
    %c0 = arith.constant 0 : index
    %c0_1 = arith.constant 0 : index
    %3 = vector.load %arg6[%c0, %c0_1] : memref<256x128xf32, #tpu.memory_space<vmem>>, vector<256x128xf32>
    %c0_2 = arith.constant 0 : index
    %c0_3 = arith.constant 0 : index
    %4 = vector.load %arg3[%c0_2, %c0_3] : memref<256x128xbf16, #tpu.memory_space<vmem>>, vector<256x128xbf16>
    %c0_4 = arith.constant 0 : index
    %c0_5 = arith.constant 0 : index
    %5 = vector.load %arg4[%c0_4, %c0_5] : memref<128x128xbf16, #tpu.memory_space<vmem>>, vector<128x128xbf16>
    %cst = arith.constant dense<0.000000e+00> : vector<256x128xf32>
    %6 = tpu.matmul %4, %5, %cst {dimension_numbers = #tpu.dot_dimension_numbers<[1], [0], [0], [1], [0, 0, 1, 1], [], []>} : vector<256x128xbf16>, vector<128x128xbf16>, vector<256x128xf32> -> vector<256x128xf32>
    %7 = arith.addf %3, %6 : vector<256x128xf32>
    %c0_6 = arith.constant 0 : index
    %c0_7 = arith.constant 0 : index
    %8 = vector.load %arg6[%c0_6, %c0_7] : memref<256x128xf32, #tpu.memory_space<vmem>>, vector<256x128xf32>
    tpu.vector_store %arg6[%c0_6, %c0_7], %7 {strides = array<i32>} : memref<256x128xf32, #tpu.memory_space<vmem>>, vector<256x128xf32>,
    %c0_i32_8 = arith.constant 0 : i32
    %9 = arith.cmpi eq, %arg2, %c0_i32_8 : i32
    %10 = arith.extui %9 : i1 to i32
    %c0_i32_9 = arith.constant 0 : i32
    %11 = arith.cmpi ne, %10, %c0_i32_9 : i32
    scf.if %11 {
      %c0_10 = arith.constant 0 : index
      %c0_11 = arith.constant 0 : index
      %12 = vector.load %arg6[%c0_10, %c0_11] : memref<256x128xf32, #tpu.memory_space<vmem>>, vector<256x128xf32>
      %c0_12 = arith.constant 0 : index
      %c0_13 = arith.constant 0 : index
      %13 = vector.load %arg5[%c0_12, %c0_13] : memref<1x128xf32, #tpu.memory_space<vmem>>, vector<1x128xf32>
      %14 = vector.broadcast %13 : vector<1x128xf32> to vector<256x128xf32>
      %15 = arith.addf %12, %14 : vector<256x128xf32>
      %cst_14 = arith.constant 0.000000e+00 : f32
      %16 = vector.broadcast %cst_14 : f32 to vector<256x128xf32>
      %17 = arith.maximumf %15, %16 : vector<256x128xf32>
      %c0_15 = arith.constant 0 : index
      %c0_16 = arith.constant 0 : index
      %18 = vector.load %arg6[%c0_15, %c0_16] : memref<256x128xf32, #tpu.memory_space<vmem>>, vector<256x128xf32>
      tpu.vector_store %arg6[%c0_15, %c0_16], %17 {strides = array<i32>} : memref<256x128xf32, #tpu.memory_space<vmem>>, vector<256x128xf32>,
    } else {
    }
    return
  }
  func.func @transform_0(%arg0: i32, %arg1: i32, %arg2: i32) -> (i32, i32) {
    %c0_i32 = arith.constant 0 : i32
    return %arg0, %arg2 : i32, i32
  }
  func.func @transform_1(%arg0: i32, %arg1: i32, %arg2: i32) -> (i32, i32) {
    %c0_i32 = arith.constant 0 : i32
    return %arg2, %arg1 : i32, i32
  }
  func.func @transform_2(%arg0: i32, %arg1: i32, %arg2: i32) -> (i32, i32) {
    %c0_i32 = arith.constant 0 : i32
    %c0_i32_0 = arith.constant 0 : i32
    return %c0_i32, %arg1 : i32, i32
  }
  func.func @transform_3(%arg0: i32, %arg1: i32, %arg2: i32) -> (i32, i32) {
    %c0_i32 = arith.constant 0 : i32
    return %arg0, %arg1 : i32, i32
  }
}

module attributes {stable_mosaic.version = 11 : i64} {
  func.func @_mm_bias_kernel(%arg0: i32, %arg1: i32, %arg2: i32, %arg3: memref<256x1920xbf16, #tpu.memory_space<vmem>>, %arg4: memref<1920x128xbf16, #tpu.memory_space<vmem>>, %arg5: memref<1x128xf32, #tpu.memory_space<vmem>>, %arg6: memref<256x128xf32, #tpu.memory_space<vmem>>) attributes {dimension_semantics = [#tpu.dimension_semantics<parallel>, #tpu.dimension_semantics<parallel>, #tpu.dimension_semantics<arbitrary>], iteration_bounds = array<i64: 2, 2, 2>, scalar_prefetch = 0 : i64, scratch_operands = 0 : i64, tpu.core_type = #tpu.core_type<tc>, window_params = [{transform_indices = @transform_0, window_bounds = array<i64: 256, 1920>}, {transform_indices = @transform_1, window_bounds = array<i64: 1920, 128>}, {transform_indices = @transform_2, window_bounds = array<i64: 1, 128>}, {transform_indices = @transform_3, window_bounds = array<i64: 256, 128>}]} {
    %c0_i32 = arith.constant 0 : i32
    %0 = arith.cmpi eq, %arg2, %c0_i32 : i32
    %1 = arith.extui %0 : i1 to i32
    %c0_i32_0 = arith.constant 0 : i32
    %2 = arith.cmpi ne, %1, %c0_i32_0 : i32
    scf.if %2 {
      %cst_9 = arith.constant 0.000000e+00 : f32
      %12 = vector.broadcast %cst_9 : f32 to vector<256x128xf32>
      %c0_10 = arith.constant 0 : index
      %c0_11 = arith.constant 0 : index
      %13 = vector.load %arg6[%c0_10, %c0_11] : memref<256x128xf32, #tpu.memory_space<vmem>>, vector<256x128xf32>
      tpu.vector_store %arg6[%c0_10, %c0_11], %12 {strides = array<i32>} : memref<256x128xf32, #tpu.memory_space<vmem>>, vector<256x128xf32>,
    } else {
    }
    %c0 = arith.constant 0 : index
    %c0_1 = arith.constant 0 : index
    %3 = vector.load %arg6[%c0, %c0_1] : memref<256x128xf32, #tpu.memory_space<vmem>>, vector<256x128xf32>
    %c0_2 = arith.constant 0 : index
    %c0_3 = arith.constant 0 : index
    %4 = vector.load %arg3[%c0_2, %c0_3] : memref<256x1920xbf16, #tpu.memory_space<vmem>>, vector<256x1920xbf16>
    %c0_4 = arith.constant 0 : index
    %c0_5 = arith.constant 0 : index
    %5 = vector.load %arg4[%c0_4, %c0_5] : memref<1920x128xbf16, #tpu.memory_space<vmem>>, vector<1920x128xbf16>
    %cst = arith.constant dense<0.000000e+00> : vector<256x128xf32>
    %6 = tpu.matmul %4, %5, %cst {dimension_numbers = #tpu.dot_dimension_numbers<[1], [0], [0], [1], [0, 0, 1, 1], [], []>} : vector<256x1920xbf16>, vector<1920x128xbf16>, vector<256x128xf32> -> vector<256x128xf32>
    %7 = arith.addf %3, %6 : vector<256x128xf32>
    %c0_6 = arith.constant 0 : index
    %c0_7 = arith.constant 0 : index
    %8 = vector.load %arg6[%c0_6, %c0_7] : memref<256x128xf32, #tpu.memory_space<vmem>>, vector<256x128xf32>
    tpu.vector_store %arg6[%c0_6, %c0_7], %7 {strides = array<i32>} : memref<256x128xf32, #tpu.memory_space<vmem>>, vector<256x128xf32>,
    %c1_i32 = arith.constant 1 : i32
    %9 = arith.cmpi eq, %arg2, %c1_i32 : i32
    %10 = arith.extui %9 : i1 to i32
    %c0_i32_8 = arith.constant 0 : i32
    %11 = arith.cmpi ne, %10, %c0_i32_8 : i32
    scf.if %11 {
      %c0_9 = arith.constant 0 : index
      %c0_10 = arith.constant 0 : index
      %12 = vector.load %arg6[%c0_9, %c0_10] : memref<256x128xf32, #tpu.memory_space<vmem>>, vector<256x128xf32>
      %c0_11 = arith.constant 0 : index
      %c0_12 = arith.constant 0 : index
      %13 = vector.load %arg5[%c0_11, %c0_12] : memref<1x128xf32, #tpu.memory_space<vmem>>, vector<1x128xf32>
      %14 = vector.broadcast %13 : vector<1x128xf32> to vector<256x128xf32>
      %15 = arith.addf %12, %14 : vector<256x128xf32>
      %cst_13 = arith.constant 0.000000e+00 : f32
      %16 = vector.broadcast %cst_13 : f32 to vector<256x128xf32>
      %17 = arith.maximumf %15, %16 : vector<256x128xf32>
      %c0_14 = arith.constant 0 : index
      %c0_15 = arith.constant 0 : index
      %18 = vector.load %arg6[%c0_14, %c0_15] : memref<256x128xf32, #tpu.memory_space<vmem>>, vector<256x128xf32>
      tpu.vector_store %arg6[%c0_14, %c0_15], %17 {strides = array<i32>} : memref<256x128xf32, #tpu.memory_space<vmem>>, vector<256x128xf32>,
    } else {
    }
    return
  }
  func.func @transform_0(%arg0: i32, %arg1: i32, %arg2: i32) -> (i32, i32) {
    %c0_i32 = arith.constant 0 : i32
    return %arg0, %arg2 : i32, i32
  }
  func.func @transform_1(%arg0: i32, %arg1: i32, %arg2: i32) -> (i32, i32) {
    %c0_i32 = arith.constant 0 : i32
    return %arg2, %arg1 : i32, i32
  }
  func.func @transform_2(%arg0: i32, %arg1: i32, %arg2: i32) -> (i32, i32) {
    %c0_i32 = arith.constant 0 : i32
    %c0_i32_0 = arith.constant 0 : i32
    return %c0_i32, %arg1 : i32, i32
  }
  func.func @transform_3(%arg0: i32, %arg1: i32, %arg2: i32) -> (i32, i32) {
    %c0_i32 = arith.constant 0 : i32
    return %arg0, %arg1 : i32, i32
  }
}

module attributes {stable_mosaic.version = 11 : i64} {
  func.func @_mm_bias_kernel(%arg0: i32, %arg1: i32, %arg2: i32, %arg3: memref<256x1408xbf16, #tpu.memory_space<vmem>>, %arg4: memref<1408x128xbf16, #tpu.memory_space<vmem>>, %arg5: memref<1x128xf32, #tpu.memory_space<vmem>>, %arg6: memref<256x128xf32, #tpu.memory_space<vmem>>) attributes {dimension_semantics = [#tpu.dimension_semantics<parallel>, #tpu.dimension_semantics<parallel>, #tpu.dimension_semantics<arbitrary>], iteration_bounds = array<i64: 2, 1, 1>, scalar_prefetch = 0 : i64, scratch_operands = 0 : i64, tpu.core_type = #tpu.core_type<tc>, window_params = [{transform_indices = @transform_0, window_bounds = array<i64: 256, 1408>}, {transform_indices = @transform_1, window_bounds = array<i64: 1408, 128>}, {transform_indices = @transform_2, window_bounds = array<i64: 1, 128>}, {transform_indices = @transform_3, window_bounds = array<i64: 256, 128>}]} {
    %c0_i32 = arith.constant 0 : i32
    %0 = arith.cmpi eq, %arg2, %c0_i32 : i32
    %1 = arith.extui %0 : i1 to i32
    %c0_i32_0 = arith.constant 0 : i32
    %2 = arith.cmpi ne, %1, %c0_i32_0 : i32
    scf.if %2 {
      %cst_10 = arith.constant 0.000000e+00 : f32
      %12 = vector.broadcast %cst_10 : f32 to vector<256x128xf32>
      %c0_11 = arith.constant 0 : index
      %c0_12 = arith.constant 0 : index
      %13 = vector.load %arg6[%c0_11, %c0_12] : memref<256x128xf32, #tpu.memory_space<vmem>>, vector<256x128xf32>
      tpu.vector_store %arg6[%c0_11, %c0_12], %12 {strides = array<i32>} : memref<256x128xf32, #tpu.memory_space<vmem>>, vector<256x128xf32>,
    } else {
    }
    %c0 = arith.constant 0 : index
    %c0_1 = arith.constant 0 : index
    %3 = vector.load %arg6[%c0, %c0_1] : memref<256x128xf32, #tpu.memory_space<vmem>>, vector<256x128xf32>
    %c0_2 = arith.constant 0 : index
    %c0_3 = arith.constant 0 : index
    %4 = vector.load %arg3[%c0_2, %c0_3] : memref<256x1408xbf16, #tpu.memory_space<vmem>>, vector<256x1408xbf16>
    %c0_4 = arith.constant 0 : index
    %c0_5 = arith.constant 0 : index
    %5 = vector.load %arg4[%c0_4, %c0_5] : memref<1408x128xbf16, #tpu.memory_space<vmem>>, vector<1408x128xbf16>
    %cst = arith.constant dense<0.000000e+00> : vector<256x128xf32>
    %6 = tpu.matmul %4, %5, %cst {dimension_numbers = #tpu.dot_dimension_numbers<[1], [0], [0], [1], [0, 0, 1, 1], [], []>} : vector<256x1408xbf16>, vector<1408x128xbf16>, vector<256x128xf32> -> vector<256x128xf32>
    %7 = arith.addf %3, %6 : vector<256x128xf32>
    %c0_6 = arith.constant 0 : index
    %c0_7 = arith.constant 0 : index
    %8 = vector.load %arg6[%c0_6, %c0_7] : memref<256x128xf32, #tpu.memory_space<vmem>>, vector<256x128xf32>
    tpu.vector_store %arg6[%c0_6, %c0_7], %7 {strides = array<i32>} : memref<256x128xf32, #tpu.memory_space<vmem>>, vector<256x128xf32>,
    %c0_i32_8 = arith.constant 0 : i32
    %9 = arith.cmpi eq, %arg2, %c0_i32_8 : i32
    %10 = arith.extui %9 : i1 to i32
    %c0_i32_9 = arith.constant 0 : i32
    %11 = arith.cmpi ne, %10, %c0_i32_9 : i32
    scf.if %11 {
      %c0_10 = arith.constant 0 : index
      %c0_11 = arith.constant 0 : index
      %12 = vector.load %arg6[%c0_10, %c0_11] : memref<256x128xf32, #tpu.memory_space<vmem>>, vector<256x128xf32>
      %c0_12 = arith.constant 0 : index
      %c0_13 = arith.constant 0 : index
      %13 = vector.load %arg5[%c0_12, %c0_13] : memref<1x128xf32, #tpu.memory_space<vmem>>, vector<1x128xf32>
      %14 = vector.broadcast %13 : vector<1x128xf32> to vector<256x128xf32>
      %15 = arith.addf %12, %14 : vector<256x128xf32>
      %c0_14 = arith.constant 0 : index
      %c0_15 = arith.constant 0 : index
      %16 = vector.load %arg6[%c0_14, %c0_15] : memref<256x128xf32, #tpu.memory_space<vmem>>, vector<256x128xf32>
      tpu.vector_store %arg6[%c0_14, %c0_15], %15 {strides = array<i32>} : memref<256x128xf32, #tpu.memory_space<vmem>>, vector<256x128xf32>,
    } else {
    }
    return
  }
  func.func @transform_0(%arg0: i32, %arg1: i32, %arg2: i32) -> (i32, i32) {
    %c0_i32 = arith.constant 0 : i32
    return %arg0, %arg2 : i32, i32
  }
  func.func @transform_1(%arg0: i32, %arg1: i32, %arg2: i32) -> (i32, i32) {
    %c0_i32 = arith.constant 0 : i32
    return %arg2, %arg1 : i32, i32
  }
  func.func @transform_2(%arg0: i32, %arg1: i32, %arg2: i32) -> (i32, i32) {
    %c0_i32 = arith.constant 0 : i32
    %c0_i32_0 = arith.constant 0 : i32
    return %c0_i32, %arg1 : i32, i32
  }
  func.func @transform_3(%arg0: i32, %arg1: i32, %arg2: i32) -> (i32, i32) {
    %c0_i32 = arith.constant 0 : i32
    return %arg0, %arg1 : i32, i32
  }
}

</mosaic_0001>

<bundles_post_ra>
// kernel: net_forward.8
= control target key start
LH: loop header
LB: loop body
LE: loop exit
PB: predicated region body
PF: predicated region fallthrough
CT: control target
= control target key end

     0   :  { %s1487_s12 = smov 0   ;;  %s1489_s13 = smov 0   ;;  %s1802_s0 = inlined_call_operand.vmem [shape: bf16[512,128], index: 0, kind: input, shape index: {}]   ;;  %s1803_s1 = inlined_call_operand.vmem [shape: bf16[128,256], index: 1, kind: input, shape index: {}]   ;;  %s1804_s2 = inlined_call_operand.vmem [shape: f32[1,256], index: 2, kind: input, shape index: {}]   ;;  %s1805_s3 = inlined_call_operand.vmem [shape: f32[512,256], index: 3, kind: output, shape index: {}]  }
   0x1   :  { %s1491_s14 = smov 0   ;;  %s1493_s15 = smov 0  }
   0x2   :  { %s1495_s16 = smov 0   ;;  %s1497_s17 = smov 0  }
   0x3   :  { %s1499_s18 = smov 0   ;;  %s1501_s19 = smov 0  }
   0x4   :  { %s1503_s20 = smov 0  }
   0x5 LB: > { %s1159_s21 = sadd.s32 4294967295, %s1465_s20   ;;  %s28_s22 = sadd.s32 1, %s1457_s18  ;;  %s1465_s20 = sphi %s1503_s20, %s13_s20   ;;  %s1461_s19 = sphi %s1501_s19, %s1814_s19   ;;  %s1457_s18 = sphi %s1499_s18, %s1813_s18   ;;  %s1453_s17 = sphi %s1497_s17, %s1812_s17   ;;  %s1449_s16 = sphi %s1495_s16, %s1811_s16   ;;  %s1445_s15 = sphi %s1493_s15, %s1810_s15   ;;  %s1441_s14 = sphi %s1491_s14, %s1809_s14   ;;  %s1437_s13 = sphi %s1489_s13, %s1808_s13   ;;  %s1433_s12 = sphi %s1487_s12, %s1807_s12  }
   0x6   : > { %p30_p0 = scmp.ge.s32.totalorder %s28_s22, 2  ;;  %s32_s23 = sadd.s32 1, %s1461_s19 }
   0x7   : > { %s69_s24 = sadd.s32 1, %s1445_s15  ;;  %p76_p1 = scmp.ne.s32.totalorder %s1445_s15, %s1441_s14 }
   0x8   : > { %s1816_s22 = smov (%p30_p0, %s28_s22), 0  ;;  %s1818_s23 = smov (!%p30_p0, %s32_s23), %s1461_s19 }
   0x9   : > { %s65_s25 = ssub.s32 %s1457_s18, %s1816_s22  ;;  %p77_p2 = scmp.eq.s32.totalorder %s1465_s20, 0 }
   0xa   : > { %p34_p3 = scmp.ge.s32.totalorder %s1818_s23, 2  ;;  %p67_p4 = scmp.eq.s32.totalorder %s65_s25, 0 }
   0xb   : > { %p78_p5 = por %p77_p2, %p76_p1  ;;  %s123_s26 = sadd.s32 1, %s1437_s13 }
   0xc   : > { %s1820_s23 = smov (%p34_p3, %s1818_s23), 0  ;;  %p133_p6 = scmp.ne.s32.totalorder %s1437_s13, %s1433_s12 }
   0xd   : > { %s1548_s27 = scalar_select %p67_p4, %s1445_s15, %s69_s24  }
   0xe   : > { %s118_s28 = ssub.s32 %s1461_s19, %s1820_s23  ;;  %p134_p7 = scmp.eq.s32.totalorder %s1159_s21, 3 }
   0xf   : > { %s120_s29 = sor.u32 %s118_s28, %s65_s25  ;;  %p1162_p10 = scmp.ge.s32.totalorder %s1465_s20, 4 }
  0x10   : > { %p121_p8 = scmp.eq.s32.totalorder %s120_s29, 0  ;;  %p1554_p9 = por %p134_p7, %p133_p6 }
  0x11   : > { %156 = sbr.rel (%p1162_p10) target bundleno = 42 (0x2a), region = 16 }
  0x12   : > { %s1559_s4 = scalar_select %p121_p8, %s1437_s13, %s123_s26  }
  0x16   : > { %171 = sbr.rel (!%p78_p5) target bundleno = 42 (0x2a), region = 24  ;;  %s173_s5 = sand.u32 (%p78_p5), 1, %s1445_s15  }
  0x17   : > { %s1164_s6 = sshll.u32 (%p78_p5), %s1457_s18, 2  ;;  %s1163_s7 = sshll.u32 (%p78_p5), %s173_s5, 6 }
  0x18   : > { %s1567_s10 = scalar_lea.vmem (%p78_p5), %s1803_s1, %s1164_s6  ;;  %s175_s11 = scalar_lea.vmem (%p78_p5), [#allocation2], %s1163_s7 }
  0x19   : > { %v197_v0 = vld [vmem:[%s1567_s10] sm:$0xf] (%p78_p5)  ;;  %v199_v1 = vld [vmem:[%s1567_s10 + $0x8] sm:$0xf] (%p78_p5)  ;;  %v201_v2 = vld [vmem:[%s1567_s10 + $0x10] sm:$0xf] (%p78_p5) }
  0x1a   : > { %198 = vst [vmem:[%s175_s11] sm:$0xf] (%p78_p5), %v197_v0  ;;  %v203_v3 = vld [vmem:[%s1567_s10 + $0x18] sm:$0xf] (%p78_p5)  ;;  %v205_v4 = vld [vmem:[%s1567_s10 + $0x20] sm:$0xf] (%p78_p5) }
  0x1b   : > { %200 = vst [vmem:[%s175_s11 + $0x4] sm:$0xf] %v199_v1  ;;  %v207_v5 = vld [vmem:[%s1567_s10 + $0x28] sm:$0xf]  ;;  %v209_v6 = vld [vmem:[%s1567_s10 + $0x30] sm:$0xf] }
  0x1c   : > { %202 = vst [vmem:[%s175_s11 + $0x8] sm:$0xf] %v201_v2  ;;  %v211_v7 = vld [vmem:[%s1567_s10 + $0x38] sm:$0xf]  ;;  %v213_v8 = vld [vmem:[%s1567_s10 + $0x40] sm:$0xf] }
  0x1d   : > { %204 = vst [vmem:[%s175_s11 + $0xc] sm:$0xf] %v203_v3  ;;  %v215_v9 = vld [vmem:[%s1567_s10 + $0x48] sm:$0xf]  ;;  %v217_v10 = vld [vmem:[%s1567_s10 + $0x50] sm:$0xf] }
  0x1e   : > { %206 = vst [vmem:[%s175_s11 + $0x10] sm:$0xf] %v205_v4  ;;  %v219_v11 = vld [vmem:[%s1567_s10 + $0x58] sm:$0xf]  ;;  %v221_v12 = vld [vmem:[%s1567_s10 + $0x60] sm:$0xf] }
  0x1f   : > { %208 = vst [vmem:[%s175_s11 + $0x14] sm:$0xf] %v207_v5  ;;  %v223_v13 = vld [vmem:[%s1567_s10 + $0x68] sm:$0xf]  ;;  %v225_v14 = vld [vmem:[%s1567_s10 + $0x70] sm:$0xf] }
  0x20   : > { %210 = vst [vmem:[%s175_s11 + $0x18] sm:$0xf] %v209_v6  ;;  %v227_v15 = vld [vmem:[%s1567_s10 + $0x78] sm:$0xf] }
  0x21   : > { %212 = vst [vmem:[%s175_s11 + $0x1c] sm:$0xf] %v211_v7 }
  0x22   : > { %214 = vst [vmem:[%s175_s11 + $0x20] sm:$0xf] %v213_v8 }
  0x23   : > { %216 = vst [vmem:[%s175_s11 + $0x24] sm:$0xf] %v215_v9 }
  0x24   : > { %218 = vst [vmem:[%s175_s11 + $0x28] sm:$0xf] %v217_v10 }
  0x25   : > { %220 = vst [vmem:[%s175_s11 + $0x2c] sm:$0xf] %v219_v11 }
  0x26   : > { %222 = vst [vmem:[%s175_s11 + $0x30] sm:$0xf] %v221_v12 }
  0x27   : > { %224 = vst [vmem:[%s175_s11 + $0x34] sm:$0xf] %v223_v13 }
  0x28   : > { %226 = vst [vmem:[%s175_s11 + $0x38] sm:$0xf] %v225_v14 }
  0x29   : > { %228 = vst [vmem:[%s175_s11 + $0x3c] sm:$0xf] %v227_v15 }
  0x2a PF: > { %p1165_p11 = scmp.ge.s32.totalorder %s1465_s20, 1  ;;  %p289_p12 = scmp.lt.s32.totalorder %s1465_s20, 5 }
  0x2c   : > { %p290_p13 = pnand %p1165_p11, %p289_p12 }
  0x2d   : > { %s296_s21 = sand.u32 (!%p290_p13), 1, %s1441_s14   ;;  %p339_p0 = scmp.lt.s32.totalorder (!%p290_p13), %s1449_s16, 1 }
  0x2e   : > { %293 = sbr.rel (%p290_p13) target bundleno = 289 (0x121), region = 69  ;;  %s1166_s24 = sshll.u32 (!%p290_p13), %s296_s21, 6 }
  0x2f   : > { %s1588_s25 = scalar_lea.vmem (!%p290_p13), [#allocation2], %s1166_s24  ;;  %s1168_s5 = sshll.u32 (!%p290_p13), %s1453_s17, 5 }
  0x30   : > { %p330_p1 = scmp.lt.s32.totalorder (!%p290_p13), %s1168_s5, 63  ;;  %s326_s10 = sand.u32 (!%p290_p13), 1, %s1433_s12  }
  0x31   : > { %s1167_s24 = sshll.u32 (!%p290_p13), %s326_s10, 8 }
  0x33   : > { %v1295_v16 = vld [vmem:[%s1588_s25 + $0x38] sm:$0xff]  ;;  %v1294_v17 = vld [vmem:[%s1588_s25 + $0x30] sm:$0xff]  ;;  %s1594_s26 = scalar_select %p339_p0, %s1449_s16, 1  ;;  %v1293_v18 = vld [vmem:[%s1588_s25 + $0x28] sm:$0xff] }
  0x34   : > { %603 = vmatpush.bf16.msra.mxu0 %v1295_v16  ;;  %1297 = vmatpush.bf16.msra.mxu1 %v1295_v16  ;;  %v1292_v19 = vld [vmem:[%s1588_s25 + $0x20] sm:$0xff]  ;;  %v1291_v20 = vld [vmem:[%s1588_s25 + $0x18] sm:$0xff]  ;;  %v1290_v21 = vld [vmem:[%s1588_s25 + $0x10] sm:$0xff]  ;;  %s1822_s5 = smov (!%p330_p1, %s1168_s5), 63  ;;  %s1296_s12 = sshll.u32 (%p1554_p9), %s1453_s17, 6 }
  0x35   : > { %1298 = vmatpush.bf16.msra.mxu2 %v1295_v16  ;;  %1299 = vmatpush.bf16.msra.mxu3 %v1295_v16  ;;  %s341_s29 = scalar_lea.vmem %s1804_s2, %s1594_s26  ;;  %v1289_v22 = vld [vmem:[%s1588_s25 + $0x8] sm:$0xff]  ;;  %s1169_s6 = sshll.u32 %s1822_s5, 2  ;;  %v1288_v23 = vld [vmem:[%s1588_s25] sm:$0xff] }
  0x36   : > { %s1610_s9 = scalar_lea.vmem %s1802_s0, %s1169_s6  ;;  %v1634_v40 = vld [vmem:[%s341_s29] ss:$0 sm:$0xff]  ;;  %s1638_s25 = scalar_lea.vmem [#allocation3], %s1167_s24 }
  0x37   : > { %v1272_v24 = vld [vmem:[%s1610_s9] sm:$0xff]  ;;  %v1273_v28 = vld [vmem:[%s1610_s9 + $0x8] sm:$0xff]  ;;  %v1274_v32 = vld [vmem:[%s1610_s9 + $0x10] sm:$0xff]  ;;  %s900_s26 = sadd.s32 (%p1554_p9), %s1449_s16, %s1296_s12 }
  0x38   : > { %604 = vmatpush.bf16.msra.mxu0 %v1294_v17  ;;  %1300 = vmatpush.bf16.msra.mxu1 %v1294_v17  ;;  %v1276_v25 = vld [vmem:[%s1610_s9 + $0x20] sm:$0xff]  ;;  %v1277_v29 = vld [vmem:[%s1610_s9 + $0x28] sm:$0xff]  ;;  %v1278_v33 = vld [vmem:[%s1610_s9 + $0x30] sm:$0xff]  ;;  %s1269_s14 = sshll.u32 (%p1554_p9), %s900_s26, 3 }
  0x39   : > { %1301 = vmatpush.bf16.msra.mxu2 %v1294_v17  ;;  %1302 = vmatpush.bf16.msra.mxu3 %v1294_v17  ;;  %v1280_v26 = vld [vmem:[%s1610_s9 + $0x40] sm:$0xff]  ;;  %v1281_v30 = vld [vmem:[%s1610_s9 + $0x48] sm:$0xff]  ;;  %v1282_v34 = vld [vmem:[%s1610_s9 + $0x50] sm:$0xff]  ;;  %s1711_s30 = scalar_lea.vmem (%p1554_p9), %s1805_s3, %s1269_s14 }
  0x3a   : > { %v1284_v27 = vld [vmem:[%s1610_s9 + $0x60] sm:$0xff]  ;;  %v1285_v31 = vld [vmem:[%s1610_s9 + $0x68] sm:$0xff]  ;;  %v1286_v35 = vld [vmem:[%s1610_s9 + $0x70] sm:$0xff] }
  0x3b   : > { %v1275_v36 = vld [vmem:[%s1610_s9 + $0x18] sm:$0xff] }
  0x3c   : > { %605 = vmatpush.bf16.msra.mxu0 %v1293_v18  ;;  %1303 = vmatpush.bf16.msra.mxu1 %v1293_v18  ;;  %v1279_v37 = vld [vmem:[%s1610_s9 + $0x38] sm:$0xff] }
  0x3d   : > { %1304 = vmatpush.bf16.msra.mxu2 %v1293_v18  ;;  %1305 = vmatpush.bf16.msra.mxu3 %v1293_v18  ;;  %v1283_v38 = vld [vmem:[%s1610_s9 + $0x58] sm:$0xff] }
  0x3e   : > { %v1287_v39 = vld [vmem:[%s1610_s9 + $0x78] sm:$0xff] }
  0x40   : > { %606 = vmatpush.bf16.msra.mxu0 %v1292_v19  ;;  %1306 = vmatpush.bf16.msra.mxu1 %v1292_v19 }
  0x41   : > { %1307 = vmatpush.bf16.msra.mxu2 %v1292_v19  ;;  %1308 = vmatpush.bf16.msra.mxu3 %v1292_v19 }
  0x44   : > { %607 = vmatpush.bf16.msra.mxu0 %v1291_v20  ;;  %1309 = vmatpush.bf16.msra.mxu1 %v1291_v20 }
  0x45   : > { %1310 = vmatpush.bf16.msra.mxu2 %v1291_v20  ;;  %1311 = vmatpush.bf16.msra.mxu3 %v1291_v20 }
  0x48   : > { %608 = vmatpush.bf16.msra.mxu0 %v1290_v21  ;;  %1312 = vmatpush.bf16.msra.mxu1 %v1290_v21 }
  0x49   : > { %1313 = vmatpush.bf16.msra.mxu2 %v1290_v21  ;;  %1314 = vmatpush.bf16.msra.mxu3 %v1290_v21 }
  0x4c   : > { %609 = vmatpush.bf16.msra.mxu0 %v1289_v22  ;;  %1315 = vmatpush.bf16.msra.mxu1 %v1289_v22 }
  0x4d   : > { %1316 = vmatpush.bf16.msra.mxu2 %v1289_v22  ;;  %1317 = vmatpush.bf16.msra.mxu3 %v1289_v22 }
  0x50   : > { %610 = vmatpush.bf16.msra.mxu0 %v1288_v23  ;;  %1318 = vmatpush.bf16.msra.mxu1 %v1288_v23 }
  0x51   : > { %1319 = vmatpush.bf16.msra.mxu2 %v1288_v23  ;;  %1320 = vmatpush.bf16.msra.mxu3 %v1288_v23 }
  0x53   : > { %611 = vmatmul.bf16.vlgmr.msra.gmra.mxu0 %v1272_v24  ;;  %631 = vmatmul.bf16.vlgmr.msra.gmra.mxu1 %v1276_v25 }
  0x54   : > { %651 = vmatmul.bf16.vlgmr.msra.gmra.mxu2 %v1280_v26  ;;  %671 = vmatmul.bf16.vlgmr.msra.gmra.mxu3 %v1284_v27 }
  0x63   : > { %616 = vmatmul.bf16.gmra.mxu0 %v1273_v28  ;;  %636 = vmatmul.bf16.gmra.mxu1 %v1277_v29 }
  0x64   : > { %656 = vmatmul.bf16.gmra.mxu2 %v1281_v30  ;;  %676 = vmatmul.bf16.gmra.mxu3 %v1285_v31 }
  0x73   : > { %621 = vmatmul.bf16.gmra.mxu0 %v1274_v32  ;;  %641 = vmatmul.bf16.gmra.mxu1 %v1278_v33 }
  0x74   : > { %661 = vmatmul.bf16.gmra.mxu2 %v1282_v34  ;;  %681 = vmatmul.bf16.gmra.mxu3 %v1286_v35 }
  0x83   : > { %626 = vmatmul.bf16.gmra.mxu0 %v1275_v36  ;;  %646 = vmatmul.bf16.gmra.mxu1 %v1279_v37 }
  0x84   : > { %666 = vmatmul.bf16.gmra.mxu2 %v1283_v38  ;;  %686 = vmatmul.bf16.gmra.mxu3 %v1287_v39 }
  0xd0   : > { %v612_v41 = vpop.f32.mrf.mxu0  ;;  %v632_v42 = vpop.f32.mrf.mxu1 }
  0xd1   : > { %v795_v43 = vadd.f32 %v1634_v40, %v612_v41  ;;  %v803_v44 = vadd.f32 %v1634_v40, %v632_v42 }
  0xd3   : > { %v827_v45 = vmax.f32 %v795_v43, 0.0  ;;  %v835_v46 = vmax.f32 %v803_v44, 0.0 }
  0xd5   : > { %859 = vst [vmem:[%s1638_s25] sm:$0xff] %v827_v45 }
  0xd6   : > { %867 = vst [vmem:[%s1638_s25 + $0x40] sm:$0xff] %v835_v46 }
  0xd7   : > { %v652_v47 = vpop.f32.mrf.mxu2  ;;  %v672_v48 = vpop.f32.mrf.mxu3 }
  0xd8   : > { %v614_v49 = vpop.f32.mrf.mxu0  ;;  %v634_v50 = vpop.f32.mrf.mxu1  ;;  %v811_v51 = vadd.f32 %v1634_v40, %v652_v47  ;;  %v819_v52 = vadd.f32 %v1634_v40, %v672_v48 }
  0xd9   : > { %v796_v53 = vadd.f32 %v1634_v40, %v614_v49  ;;  %v804_v54 = vadd.f32 %v1634_v40, %v634_v50 }
  0xda   : > { %v843_v55 = vmax.f32 %v811_v51, 0.0  ;;  %v851_v56 = vmax.f32 %v819_v52, 0.0 }
  0xdb   : > { %v828_v57 = vmax.f32 %v796_v53, 0.0  ;;  %v836_v58 = vmax.f32 %v804_v54, 0.0 }
  0xdc   : > { %875 = vst [vmem:[%s1638_s25 + $0x80] sm:$0xff] %v843_v55 }
  0xdd   : > { %883 = vst [vmem:[%s1638_s25 + $0xc0] sm:$0xff] %v851_v56 }
  0xde   : > { %860 = vst [vmem:[%s1638_s25 + $0x8] sm:$0xff] %v828_v57 }
  0xdf   : > { %v654_v59 = vpop.f32.mrf.mxu2  ;;  %v674_v60 = vpop.f32.mrf.mxu3  ;;  %868 = vst [vmem:[%s1638_s25 + $0x48] sm:$0xff] %v836_v58 }
  0xe0   : > { %v617_v61 = vpop.f32.mrf.mxu0  ;;  %v637_v62 = vpop.f32.mrf.mxu1  ;;  %v812_v63 = vadd.f32 %v1634_v40, %v654_v59  ;;  %v820_v0 = vadd.f32 %v1634_v40, %v674_v60 }
  0xe1   : > { %v797_v1 = vadd.f32 %v1634_v40, %v617_v61  ;;  %v805_v2 = vadd.f32 %v1634_v40, %v637_v62 }
  0xe2   : > { %v844_v3 = vmax.f32 %v812_v63, 0.0  ;;  %v852_v4 = vmax.f32 %v820_v0, 0.0 }
  0xe3   : > { %v829_v5 = vmax.f32 %v797_v1, 0.0  ;;  %v837_v6 = vmax.f32 %v805_v2, 0.0 }
  0xe4   : > { %876 = vst [vmem:[%s1638_s25 + $0x88] sm:$0xff] %v844_v3 }
  0xe5   : > { %884 = vst [vmem:[%s1638_s25 + $0xc8] sm:$0xff] %v852_v4 }
  0xe6   : > { %861 = vst [vmem:[%s1638_s25 + $0x10] sm:$0xff] %v829_v5 }
  0xe7   : > { %v657_v7 = vpop.f32.mrf.mxu2  ;;  %v677_v8 = vpop.f32.mrf.mxu3  ;;  %869 = vst [vmem:[%s1638_s25 + $0x50] sm:$0xff] %v837_v6 }
  0xe8   : > { %v619_v9 = vpop.f32.mrf.mxu0  ;;  %v639_v10 = vpop.f32.mrf.mxu1  ;;  %v813_v11 = vadd.f32 %v1634_v40, %v657_v7  ;;  %v821_v12 = vadd.f32 %v1634_v40, %v677_v8 }
  0xe9   : > { %v798_v13 = vadd.f32 %v1634_v40, %v619_v9  ;;  %v806_v14 = vadd.f32 %v1634_v40, %v639_v10  ;;  %v995_v10 = vld [vmem:[%s1638_s25 + $0x8] sm:$0xff] (%p1554_p9) }
  0xea   : > { %v845_v15 = vmax.f32 %v813_v11, 0.0  ;;  %v853_v16 = vmax.f32 %v821_v12, 0.0  ;;  %996 = vst [vmem:[%s1711_s30 + $0x10] sm:$0xff] (%p1554_p9), %v995_v10 }
  0xeb   : > { %v830_v17 = vmax.f32 %v798_v13, 0.0  ;;  %v838_v18 = vmax.f32 %v806_v14, 0.0 }
  0xec   : > { %877 = vst [vmem:[%s1638_s25 + $0x90] sm:$0xff] %v845_v15 }
  0xed   : > { %885 = vst [vmem:[%s1638_s25 + $0xd0] sm:$0xff] %v853_v16  ;;  %v997_v11 = vld [vmem:[%s1638_s25 + $0x10] sm:$0xff] (%p1554_p9) }
  0xee   : > { %862 = vst [vmem:[%s1638_s25 + $0x18] sm:$0xff] %v830_v17  ;;  %v1009_v17 = vld [vmem:[%s1638_s25 + $0x40] sm:$0xff] (%p1554_p9) }
  0xef   : > { %v659_v19 = vpop.f32.mrf.mxu2  ;;  %v679_v20 = vpop.f32.mrf.mxu3  ;;  %870 = vst [vmem:[%s1638_s25 + $0x58] sm:$0xff] %v838_v18  ;;  %v1011_v18 = vld [vmem:[%s1638_s25 + $0x48] sm:$0xff] (%p1554_p9) }
  0xf0   : > { %v622_v21 = vpop.f32.mrf.mxu0  ;;  %v642_v22 = vpop.f32.mrf.mxu1  ;;  %v814_v23 = vadd.f32 %v1634_v40, %v659_v19  ;;  %v822_v24 = vadd.f32 %v1634_v40, %v679_v20  ;;  %998 = vst [vmem:[%s1711_s30 + $0x20] sm:$0xff] (%p1554_p9), %v997_v11  ;;  %v1013_v19 = vld [vmem:[%s1638_s25 + $0x50] sm:$0xff] (%p1554_p9) }
  0xf1   : > { %v799_v25 = vadd.f32 %v1634_v40, %v622_v21  ;;  %v807_v26 = vadd.f32 %v1634_v40, %v642_v22  ;;  %1010 = vst [vmem:[%s1711_s30 + $0x80] sm:$0xff] (%p1554_p9), %v1009_v17 }
  0xf2   : > { %v846_v27 = vmax.f32 %v814_v23, 0.0  ;;  %v854_v28 = vmax.f32 %v822_v24, 0.0  ;;  %1012 = vst [vmem:[%s1711_s30 + $0x90] sm:$0xff] (%p1554_p9), %v1011_v18 }
  0xf3   : > { %v831_v29 = vmax.f32 %v799_v25, 0.0  ;;  %v839_v30 = vmax.f32 %v807_v26, 0.0  ;;  %1014 = vst [vmem:[%s1711_s30 + $0xa0] sm:$0xff] (%p1554_p9), %v1013_v19  ;;  %v1025_v25 = vld [vmem:[%s1638_s25 + $0x80] sm:$0xff] (%p1554_p9)  ;;  %v1027_v26 = vld [vmem:[%s1638_s25 + $0x88] sm:$0xff] (%p1554_p9) }
  0xf4   : > { %878 = vst [vmem:[%s1638_s25 + $0x98] sm:$0xff] %v846_v27  ;;  %v1029_v27 = vld [vmem:[%s1638_s25 + $0x90] sm:$0xff] (%p1554_p9) }
  0xf5   : > { %886 = vst [vmem:[%s1638_s25 + $0xd8] sm:$0xff] %v854_v28  ;;  %v999_v12 = vld [vmem:[%s1638_s25 + $0x18] sm:$0xff] (%p1554_p9) }
  0xf6   : > { %863 = vst [vmem:[%s1638_s25 + $0x20] sm:$0xff] %v831_v29  ;;  %v1015_v20 = vld [vmem:[%s1638_s25 + $0x58] sm:$0xff] (%p1554_p9) }
  0xf7   : > { %v662_v31 = vpop.f32.mrf.mxu2  ;;  %v682_v32 = vpop.f32.mrf.mxu3  ;;  %871 = vst [vmem:[%s1638_s25 + $0x60] sm:$0xff] %v839_v30 }
  0xf8   : > { %v624_v33 = vpop.f32.mrf.mxu0  ;;  %v644_v34 = vpop.f32.mrf.mxu1  ;;  %v815_v35 = vadd.f32 %v1634_v40, %v662_v31  ;;  %v823_v36 = vadd.f32 %v1634_v40, %v682_v32  ;;  %1000 = vst [vmem:[%s1711_s30 + $0x30] sm:$0xff] (%p1554_p9), %v999_v12 }
  0xf9   : > { %v800_v37 = vadd.f32 %v1634_v40, %v624_v33  ;;  %v808_v38 = vadd.f32 %v1634_v40, %v644_v34  ;;  %1016 = vst [vmem:[%s1711_s30 + $0xb0] sm:$0xff] (%p1554_p9), %v1015_v20  ;;  %v1041_v33 = vld [vmem:[%s1638_s25 + $0xc0] sm:$0xff] (%p1554_p9)  ;;  %v1043_v34 = vld [vmem:[%s1638_s25 + $0xc8] sm:$0xff] (%p1554_p9) }
  0xfa   : > { %v847_v39 = vmax.f32 %v815_v35, 0.0  ;;  %v855_v41 = vmax.f32 %v823_v36, 0.0  ;;  %1026 = vst [vmem:[%s1711_s30 + $0x100] sm:$0xff] (%p1554_p9), %v1025_v25  ;;  %v1045_v35 = vld [vmem:[%s1638_s25 + $0xd0] sm:$0xff] (%p1554_p9) }
  0xfb   : > { %v832_v42 = vmax.f32 %v800_v37, 0.0  ;;  %v840_v43 = vmax.f32 %v808_v38, 0.0  ;;  %v1031_v28 = vld [vmem:[%s1638_s25 + $0x98] sm:$0xff] (%p1554_p9)  ;;  %1028 = vst [vmem:[%s1711_s30 + $0x110] sm:$0xff] (%p1554_p9), %v1027_v26 }
  0xfc   : > { %879 = vst [vmem:[%s1638_s25 + $0xa0] sm:$0xff] %v847_v39  ;;  %v1047_v36 = vld [vmem:[%s1638_s25 + $0xd8] sm:$0xff] (%p1554_p9) }
  0xfd   : > { %887 = vst [vmem:[%s1638_s25 + $0xe0] sm:$0xff] %v855_v41  ;;  %v1001_v13 = vld [vmem:[%s1638_s25 + $0x20] sm:$0xff] (%p1554_p9) }
  0xfe   : > { %864 = vst [vmem:[%s1638_s25 + $0x28] sm:$0xff] %v832_v42  ;;  %v1017_v21 = vld [vmem:[%s1638_s25 + $0x60] sm:$0xff] (%p1554_p9) }
  0xff   : > { %v664_v44 = vpop.f32.mrf.mxu2  ;;  %v684_v45 = vpop.f32.mrf.mxu3  ;;  %872 = vst [vmem:[%s1638_s25 + $0x68] sm:$0xff] %v840_v43 }
 0x100   : > { %v627_v46 = vpop.f32.mrf.mxu0  ;;  %v647_v47 = vpop.f32.mrf.mxu1  ;;  %v816_v48 = vadd.f32 %v1634_v40, %v664_v44  ;;  %v824_v49 = vadd.f32 %v1634_v40, %v684_v45  ;;  %1002 = vst [vmem:[%s1711_s30 + $0x40] sm:$0xff] (%p1554_p9), %v1001_v13 }
 0x101   : > { %v801_v50 = vadd.f32 %v1634_v40, %v627_v46  ;;  %v809_v51 = vadd.f32 %v1634_v40, %v647_v47  ;;  %1018 = vst [vmem:[%s1711_s30 + $0xc0] sm:$0xff] (%p1554_p9), %v1017_v21 }
 0x102   : > { %v848_v52 = vmax.f32 %v816_v48, 0.0  ;;  %v856_v53 = vmax.f32 %v824_v49, 0.0  ;;  %1030 = vst [vmem:[%s1711_s30 + $0x120] sm:$0xff] (%p1554_p9), %v1029_v27 }
 0x103   : > { %v833_v54 = vmax.f32 %v801_v50, 0.0  ;;  %v841_v55 = vmax.f32 %v809_v51, 0.0  ;;  %v1033_v29 = vld [vmem:[%s1638_s25 + $0xa0] sm:$0xff] (%p1554_p9)  ;;  %1032 = vst [vmem:[%s1711_s30 + $0x130] sm:$0xff] (%p1554_p9), %v1031_v28 }
 0x104   : > { %880 = vst [vmem:[%s1638_s25 + $0xa8] sm:$0xff] %v848_v52  ;;  %v1049_v37 = vld [vmem:[%s1638_s25 + $0xe0] sm:$0xff] (%p1554_p9) }
 0x105   : > { %888 = vst [vmem:[%s1638_s25 + $0xe8] sm:$0xff] %v856_v53  ;;  %v1003_v14 = vld [vmem:[%s1638_s25 + $0x28] sm:$0xff] (%p1554_p9) }
 0x106   : > { %865 = vst [vmem:[%s1638_s25 + $0x30] sm:$0xff] %v833_v54  ;;  %v1019_v22 = vld [vmem:[%s1638_s25 + $0x68] sm:$0xff] (%p1554_p9) }
 0x107   : > { %v667_v56 = vpop.f32.mrf.mxu2  ;;  %v687_v57 = vpop.f32.mrf.mxu3  ;;  %873 = vst [vmem:[%s1638_s25 + $0x70] sm:$0xff] %v841_v55 }
 0x108   : > { %v629_v58 = vpop.f32.mrf.mxu0  ;;  %v649_v59 = vpop.f32.mrf.mxu1  ;;  %v817_v60 = vadd.f32 %v1634_v40, %v667_v56  ;;  %v825_v61 = vadd.f32 %v1634_v40, %v687_v57  ;;  %1004 = vst [vmem:[%s1711_s30 + $0x50] sm:$0xff] (%p1554_p9), %v1003_v14 }
 0x109   : > { %v802_v62 = vadd.f32 %v1634_v40, %v629_v58  ;;  %v810_v63 = vadd.f32 %v1634_v40, %v649_v59  ;;  %1020 = vst [vmem:[%s1711_s30 + $0xd0] sm:$0xff] (%p1554_p9), %v1019_v22 }
 0x10a   : > { %v849_v0 = vmax.f32 %v817_v60, 0.0  ;;  %v857_v1 = vmax.f32 %v825_v61, 0.0  ;;  %1034 = vst [vmem:[%s1711_s30 + $0x140] sm:$0xff] (%p1554_p9), %v1033_v29 }
 0x10b   : > { %v834_v2 = vmax.f32 %v802_v62, 0.0  ;;  %v842_v3 = vmax.f32 %v810_v63, 0.0  ;;  %v1035_v30 = vld [vmem:[%s1638_s25 + $0xa8] sm:$0xff] (%p1554_p9)  ;;  %1042 = vst [vmem:[%s1711_s30 + $0x180] sm:$0xff] (%p1554_p9), %v1041_v33 }
 0x10c   : > { %881 = vst [vmem:[%s1638_s25 + $0xb0] sm:$0xff] %v849_v0  ;;  %v1051_v38 = vld [vmem:[%s1638_s25 + $0xe8] sm:$0xff] (%p1554_p9) }
 0x10d   : > { %889 = vst [vmem:[%s1638_s25 + $0xf0] sm:$0xff] %v857_v1  ;;  %v1005_v15 = vld [vmem:[%s1638_s25 + $0x30] sm:$0xff] (%p1554_p9) }
 0x10e   : > { %866 = vst [vmem:[%s1638_s25 + $0x38] sm:$0xff] %v834_v2  ;;  %v1021_v23 = vld [vmem:[%s1638_s25 + $0x70] sm:$0xff] (%p1554_p9) }
 0x10f   : > { %v669_v4 = vpop.f32.mrf.mxu2  ;;  %v689_v5 = vpop.f32.mrf.mxu3  ;;  %874 = vst [vmem:[%s1638_s25 + $0x78] sm:$0xff] %v842_v3 }
 0x110   : > { %v818_v6 = vadd.f32 %v1634_v40, %v669_v4  ;;  %v826_v7 = vadd.f32 %v1634_v40, %v689_v5  ;;  %v993_v40 = vld [vmem:[%s1638_s25] sm:$0xff] (%p1554_p9)  ;;  %1006 = vst [vmem:[%s1711_s30 + $0x60] sm:$0xff] (%p1554_p9), %v1005_v15 }
 0x111   : > { %897 = sbr.rel (!%p1554_p9) target bundleno = 289 (0x121), region = 85  ;;  %994 = vst [vmem:[%s1711_s30] sm:$0xff] (%p1554_p9), %v993_v40 }
 0x112   : > { %v850_v8 = vmax.f32 %v818_v6, 0.0  ;;  %v858_v9 = vmax.f32 %v826_v7, 0.0  ;;  %1022 = vst [vmem:[%s1711_s30 + $0xe0] sm:$0xff] (%p1554_p9), %v1021_v23 }
 0x113   : > { %v1037_v31 = vld [vmem:[%s1638_s25 + $0xb0] sm:$0xff] (%p1554_p9)  ;;  %1036 = vst [vmem:[%s1711_s30 + $0x150] sm:$0xff] (%p1554_p9), %v1035_v30 }
 0x114   : > { %882 = vst [vmem:[%s1638_s25 + $0xb8] sm:$0xff] %v850_v8  ;;  %v1053_v39 = vld [vmem:[%s1638_s25 + $0xf0] sm:$0xff] (%p1554_p9) }
 0x115   : > { %890 = vst [vmem:[%s1638_s25 + $0xf8] sm:$0xff] %v858_v9  ;;  %v1007_v16 = vld [vmem:[%s1638_s25 + $0x38] sm:$0xff] (%p1554_p9) }
 0x116   : > { %1008 = vst [vmem:[%s1711_s30 + $0x70] sm:$0xff] %v1007_v16  ;;  %v1023_v24 = vld [vmem:[%s1638_s25 + $0x78] sm:$0xff] }
 0x117   : > { %1024 = vst [vmem:[%s1711_s30 + $0xf0] sm:$0xff] %v1023_v24 }
 0x118   : > { %1038 = vst [vmem:[%s1711_s30 + $0x160] sm:$0xff] %v1037_v31 }
 0x119   : > { %1044 = vst [vmem:[%s1711_s30 + $0x190] sm:$0xff] %v1043_v34 }
 0x11a   : > { %1046 = vst [vmem:[%s1711_s30 + $0x1a0] sm:$0xff] %v1045_v35 }
 0x11b   : > { %v1039_v32 = vld [vmem:[%s1638_s25 + $0xb8] sm:$0xff]  ;;  %1048 = vst [vmem:[%s1711_s30 + $0x1b0] sm:$0xff] %v1047_v36 }
 0x11c   : > { %1040 = vst [vmem:[%s1711_s30 + $0x170] sm:$0xff] %v1039_v32  ;;  %v1055_v41 = vld [vmem:[%s1638_s25 + $0xf8] sm:$0xff] }
 0x11d   : > { %1050 = vst [vmem:[%s1711_s30 + $0x1c0] sm:$0xff] %v1049_v37 }
 0x11e   : > { %1052 = vst [vmem:[%s1711_s30 + $0x1d0] sm:$0xff] %v1051_v38 }
 0x11f   : > { %1054 = vst [vmem:[%s1711_s30 + $0x1e0] sm:$0xff] %v1053_v39 }
 0x120   : > { %1056 = vst [vmem:[%s1711_s30 + $0x1f0] sm:$0xff] %v1055_v41 }
 0x121 PF: > { %s13_s20 = sadd.s32 1, %s1465_s20   ;;  %s1807_s12 = smov %s1437_s13 }
 0x122   : > { %p10_p2 = scmp.ge.s32.totalorder %s13_s20, 6   ;;  %s1808_s13 = smov %s1559_s4 }
 0x123   : > { %s1809_s14 = smov %s1445_s15  ;;  %s1810_s15 = smov %s1548_s27 }
 0x124   : > { %s1811_s16 = smov %s1457_s18  ;;  %s1812_s17 = smov %s1461_s19 }
 0x125   : > { %s1813_s18 = smov %s1816_s22  ;;  %s1814_s19 = smov %s1820_s23 }
 0x126   :  { %12 = sbr.rel (!%p10_p2) target bundleno = 5 (0x5), region = 160 }

// kernel: net_forward.9
= control target key start
LH: loop header
LB: loop body
LE: loop exit
PB: predicated region body
PF: predicated region fallthrough
CT: control target
= control target key end

     0   :  { %s10705_s0 = inlined_call_operand.vmem [shape: bf16[512,3840], index: 0, kind: input, shape index: {}]   ;;  %s10706_s1 = inlined_call_operand.vmem [shape: bf16[3840,256], index: 1, kind: input, shape index: {}]   ;;  %s10707_s2 = inlined_call_operand.vmem [shape: f32[1,256], index: 2, kind: input, shape index: {}]   ;;  %s10708_s3 = inlined_call_operand.vmem [shape: f32[512,256], index: 3, kind: output, shape index: {}]  }
   0x1   :  { %10711 = sst [smem:[#allocation8_spill]] %s10705_s0 }
   0x2   :  { %10712 = sst [smem:[#allocation9_spill]] %s10706_s1 }
   0x3   :  { %10713 = sst [smem:[#allocation10_spill]] %s10708_s3 }
   0x4   :  { %s8234_s12 = smov 0   ;;  %s8236_s13 = smov 0  }
   0x5   :  { %s8238_s14 = smov 0   ;;  %s8240_s15 = smov 0  }
   0x6   :  { %s8242_s16 = smov 0   ;;  %s8244_s17 = smov 0  }
   0x7   :  { %s8246_s18 = smov 0   ;;  %s8248_s19 = smov 0  }
   0x8   :  { %s8250_s20 = smov 0   ;;  %s8252_s21 = smov 0  }
   0x9   :  { %s8254_s22 = smov 0   ;;  %s8256_s23 = smov 0  }
   0xa   :  { %s8258_s24 = smov 0  }
   0xb LB: > { %10714 = sst [smem:[#allocation5_spill]] %s8195_s20  ;;  %s25_s26 = sadd.s32 1, %s8199_s21  ;;  %s8211_s24 = sphi %s8258_s24, %s13_s24   ;;  %s8207_s23 = sphi %s8256_s23, %s10740_s23   ;;  %s8203_s22 = sphi %s8254_s22, %s10739_s22   ;;  %s8199_s21 = sphi %s8252_s21, %s10738_s21   ;;  %s8195_s20 = sphi %s8250_s20, %s10737_s20   ;;  %s8191_s19 = sphi %s8248_s19, %s10736_s19   ;;  %s8187_s18 = sphi %s8246_s18, %s10735_s18   ;;  %s8183_s17 = sphi %s8244_s17, %s10734_s17   ;;  %s8179_s16 = sphi %s8242_s16, %s10733_s16   ;;  %s8175_s15 = sphi %s8240_s15, %s10732_s15   ;;  %s8171_s14 = sphi %s8238_s14, %s10731_s14   ;;  %s8167_s13 = sphi %s8236_s13, %s10730_s13   ;;  %s8163_s12 = sphi %s8234_s12, %s10729_s12  }
   0xc   : > { %p26_p0 = scmp.ge.s32.totalorder %s25_s26, 2  ;;  %s28_s27 = sadd.s32 1, %s8203_s22 }
   0xd   : > { %s32_s28 = sadd.s32 1, %s8207_s23  ;;  %s41_s29 = sadd.s32 1, %s8183_s17 }
   0xe   : > { %s10742_s26 = smov (%p26_p0, %s25_s26), 0  ;;  %s10744_s27 = smov (!%p26_p0, %s28_s27), %s8203_s22 }
   0xf   : > { %10715 = sst [smem:[#allocation6_spill]] %s10742_s26  ;;  %s37_s30 = ssub.s32 %s8199_s21, %s10742_s26 }
  0x10   : > { %p48_p1 = scmp.ne.s32.totalorder %s8183_s17, %s8179_s16  ;;  %p30_p2 = scmp.ge.s32.totalorder %s10744_s27, 2 }
  0x11   : > { %p49_p3 = scmp.eq.s32.totalorder %s8211_s24, 0  ;;  %s69_s4 = sadd.s32 1, %s8175_s15 }
  0x12   : > { %p76_p4 = scmp.ne.s32.totalorder %s8175_s15, %s8171_s14  ;;  %s10746_s27 = smov (%p30_p2, %s10744_s27), 0 }
  0x13   : > { %10716 = sst [smem:[#allocation7_spill]] %s10746_s27  ;;  %s10748_s28 = smov (!%p30_p2, %s32_s28), %s8207_s23 }
  0x14   : > { %p8318_p5 = por %p49_p3, %p48_p1  ;;  %s65_s6 = ssub.s32 %s8203_s22, %s10746_s27 }
  0x15   : > { %p34_p6 = scmp.ge.s32.totalorder %s10748_s28, 2  ;;  %s66_s7 = sor.u32 %s65_s6, %s37_s30 }
  0x16   : > { %p67_p7 = scmp.eq.s32.totalorder %s66_s7, 0  ;;  %p8324_p8 = por %p76_p4, %p49_p3 }
  0x17   : > { %s10750_s28 = smov (%p34_p6, %s10748_s28), 0  ;;  %s123_s11 = sadd.s32 1, %s8167_s13 }
  0x18   : > { %s8331_s9 = scalar_select %p67_p7, %s8175_s15, %s69_s4  }
  0x19   : > { %s36_s10 = ssub.s32 %s8207_s23, %s10750_s28  ;;  %p133_p11 = scmp.ne.s32.totalorder %s8167_s13, %s8163_s12 }
  0x1a   : > { %s38_s25 = sor.u32 %s37_s30, %s36_s10  ;;  %s120_s26 = sor.u32 %s65_s6, %s36_s10 }
  0x1b   : > { %p39_p9 = scmp.eq.s32.totalorder %s38_s25, 0  ;;  %p121_p10 = scmp.eq.s32.totalorder %s120_s26, 0 }
  0x1c   : > { %s10719_s27 = sadd.s32 4294967295, %s8211_s24   ;;  %p6092_p0 = scmp.ge.s32.totalorder %s8211_s24, 8 }
  0x1d   : > { %p134_p12 = scmp.eq.s32.totalorder %s10719_s27, 7 }
  0x1e   : > { %s8341_s3 = scalar_select %p39_p9, %s8183_s17, %s41_s29  }
  0x1f   : > { %s8344_s7 = scalar_select %p121_p10, %s8167_s13, %s123_s11  }
  0x20   : > { %p8346_p13 = por %p134_p12, %p133_p11  ;;  %156 = sbr.rel (%p6092_p0) target bundleno = 551 (0x227), region = 16 }
  0x25   : > { %159 = sbr.rel (!%p8318_p5) target bundleno = 302 (0x12e), region = 20  ;;  %s161_s25 = sand.u32 (%p8318_p5), 1, %s8183_s17  }
  0x26   : > { %s165_s26 = smul.u32 (%p8318_p5), 15, %s8199_s21  ;;  %s10721_s0 = sld [smem:[#allocation8_spill]] (%p8318_p5) }
  0x27   : > { %s7998_s27 = smul.u32 (%p8318_p5), 1920, %s161_s25 }
  0x28   : > { %s7999_s29 = smul.u32 (%p8318_p5), 960, %s8207_s23 }
  0x29   : > { %s8364_s5 = scalar_lea.vmem (%p8318_p5), [#allocation2], %s7998_s27 }
  0x2a   : > { %s167_s30 = sadd.s32 %s7999_s29, %s165_s26 }
  0x2b   : > { %s6095_s4 = sshll.u32 %s167_s30, 2 }
  0x2c   : > { %s8359_s11 = scalar_lea.vmem %s10721_s0, %s6095_s4 }
  0x2d   : > { %v184_v0 = vld [vmem:[%s8359_s11] sm:$0xff]  ;;  %v186_v1 = vld [vmem:[%s8359_s11 + $0x8] sm:$0xff]  ;;  %v188_v2 = vld [vmem:[%s8359_s11 + $0x10] sm:$0xff] }
  0x2e   : > { %185 = vst [vmem:[%s8364_s5] sm:$0xff] %v184_v0  ;;  %v190_v3 = vld [vmem:[%s8359_s11 + $0x18] sm:$0xff]  ;;  %v192_v4 = vld [vmem:[%s8359_s11 + $0x20] sm:$0xff]  ;;  %v194_v5 = vld [vmem:[%s8359_s11 + $0x28] sm:$0xff] }
  0x2f   : > { %187 = vst [vmem:[%s8364_s5 + $0x8] sm:$0xff] %v186_v1  ;;  %v196_v6 = vld [vmem:[%s8359_s11 + $0x30] sm:$0xff]  ;;  %v198_v7 = vld [vmem:[%s8359_s11 + $0x78] sm:$0xff]  ;;  %v200_v8 = vld [vmem:[%s8359_s11 + $0x80] sm:$0xff] }
  0x30   : > { %189 = vst [vmem:[%s8364_s5 + $0x10] sm:$0xff] %v188_v2  ;;  %v202_v9 = vld [vmem:[%s8359_s11 + $0x88] sm:$0xff]  ;;  %v204_v10 = vld [vmem:[%s8359_s11 + $0x90] sm:$0xff]  ;;  %v206_v11 = vld [vmem:[%s8359_s11 + $0x98] sm:$0xff] }
  0x31   : > { %191 = vst [vmem:[%s8364_s5 + $0x18] sm:$0xff] %v190_v3  ;;  %v208_v12 = vld [vmem:[%s8359_s11 + $0xa0] sm:$0xff]  ;;  %v210_v13 = vld [vmem:[%s8359_s11 + $0xa8] sm:$0xff]  ;;  %v212_v14 = vld [vmem:[%s8359_s11 + $0xf0] sm:$0xff] }
  0x32   : > { %193 = vst [vmem:[%s8364_s5 + $0x20] sm:$0xff] %v192_v4  ;;  %v214_v15 = vld [vmem:[%s8359_s11 + $0xf8] sm:$0xff]  ;;  %v216_v16 = vld [vmem:[%s8359_s11 + $0x100] sm:$0xff]  ;;  %v218_v17 = vld [vmem:[%s8359_s11 + $0x108] sm:$0xff] }
  0x33   : > { %195 = vst [vmem:[%s8364_s5 + $0x28] sm:$0xff] %v194_v5  ;;  %v220_v18 = vld [vmem:[%s8359_s11 + $0x110] sm:$0xff]  ;;  %v222_v19 = vld [vmem:[%s8359_s11 + $0x118] sm:$0xff]  ;;  %v224_v20 = vld [vmem:[%s8359_s11 + $0x120] sm:$0xff] }
  0x34   : > { %197 = vst [vmem:[%s8364_s5 + $0x30] sm:$0xff] %v196_v6  ;;  %v226_v21 = vld [vmem:[%s8359_s11 + $0x168] sm:$0xff]  ;;  %v228_v22 = vld [vmem:[%s8359_s11 + $0x170] sm:$0xff]  ;;  %v230_v23 = vld [vmem:[%s8359_s11 + $0x178] sm:$0xff] }
  0x35   : > { %199 = vst [vmem:[%s8364_s5 + $0x3c] sm:$0xff] %v198_v7  ;;  %v232_v24 = vld [vmem:[%s8359_s11 + $0x180] sm:$0xff]  ;;  %v234_v25 = vld [vmem:[%s8359_s11 + $0x188] sm:$0xff]  ;;  %v236_v26 = vld [vmem:[%s8359_s11 + $0x190] sm:$0xff] }
  0x36   : > { %201 = vst [vmem:[%s8364_s5 + $0x44] sm:$0xff] %v200_v8  ;;  %v238_v27 = vld [vmem:[%s8359_s11 + $0x198] sm:$0xff]  ;;  %v240_v28 = vld [vmem:[%s8359_s11 + $0x1e0] sm:$0xff]  ;;  %v242_v29 = vld [vmem:[%s8359_s11 + $0x1e8] sm:$0xff] }
  0x37   : > { %203 = vst [vmem:[%s8364_s5 + $0x4c] sm:$0xff] %v202_v9  ;;  %v244_v30 = vld [vmem:[%s8359_s11 + $0x1f0] sm:$0xff]  ;;  %v246_v31 = vld [vmem:[%s8359_s11 + $0x1f8] sm:$0xff]  ;;  %v248_v32 = vld [vmem:[%s8359_s11 + $0x200] sm:$0xff] }
  0x38   : > { %205 = vst [vmem:[%s8364_s5 + $0x54] sm:$0xff] %v204_v10  ;;  %v250_v33 = vld [vmem:[%s8359_s11 + $0x208] sm:$0xff]  ;;  %v252_v34 = vld [vmem:[%s8359_s11 + $0x210] sm:$0xff]  ;;  %v254_v35 = vld [vmem:[%s8359_s11 + $0x258] sm:$0xff] }
  0x39   : > { %207 = vst [vmem:[%s8364_s5 + $0x5c] sm:$0xff] %v206_v11  ;;  %v256_v36 = vld [vmem:[%s8359_s11 + $0x260] sm:$0xff]  ;;  %v258_v37 = vld [vmem:[%s8359_s11 + $0x268] sm:$0xff]  ;;  %v260_v38 = vld [vmem:[%s8359_s11 + $0x270] sm:$0xff] }
  0x3a   : > { %209 = vst [vmem:[%s8364_s5 + $0x64] sm:$0xff] %v208_v12  ;;  %v262_v39 = vld [vmem:[%s8359_s11 + $0x278] sm:$0xff]  ;;  %v264_v40 = vld [vmem:[%s8359_s11 + $0x280] sm:$0xff]  ;;  %v266_v41 = vld [vmem:[%s8359_s11 + $0x288] sm:$0xff] }
  0x3b   : > { %211 = vst [vmem:[%s8364_s5 + $0x6c] sm:$0xff] %v210_v13  ;;  %v268_v42 = vld [vmem:[%s8359_s11 + $0x2d0] sm:$0xff]  ;;  %v270_v43 = vld [vmem:[%s8359_s11 + $0x2d8] sm:$0xff]  ;;  %v272_v44 = vld [vmem:[%s8359_s11 + $0x2e0] sm:$0xff] }
  0x3c   : > { %213 = vst [vmem:[%s8364_s5 + $0x78] sm:$0xff] %v212_v14  ;;  %v274_v45 = vld [vmem:[%s8359_s11 + $0x2e8] sm:$0xff]  ;;  %v276_v46 = vld [vmem:[%s8359_s11 + $0x2f0] sm:$0xff]  ;;  %v278_v47 = vld [vmem:[%s8359_s11 + $0x2f8] sm:$0xff] }
  0x3d   : > { %215 = vst [vmem:[%s8364_s5 + $0x80] sm:$0xff] %v214_v15  ;;  %v280_v48 = vld [vmem:[%s8359_s11 + $0x300] sm:$0xff]  ;;  %v282_v49 = vld [vmem:[%s8359_s11 + $0x348] sm:$0xff]  ;;  %v284_v50 = vld [vmem:[%s8359_s11 + $0x350] sm:$0xff] }
  0x3e   : > { %217 = vst [vmem:[%s8364_s5 + $0x88] sm:$0xff] %v216_v16  ;;  %v286_v51 = vld [vmem:[%s8359_s11 + $0x358] sm:$0xff]  ;;  %v288_v52 = vld [vmem:[%s8359_s11 + $0x360] sm:$0xff]  ;;  %v290_v53 = vld [vmem:[%s8359_s11 + $0x368] sm:$0xff] }
  0x3f   : > { %219 = vst [vmem:[%s8364_s5 + $0x90] sm:$0xff] %v218_v17  ;;  %v292_v54 = vld [vmem:[%s8359_s11 + $0x370] sm:$0xff]  ;;  %v294_v55 = vld [vmem:[%s8359_s11 + $0x378] sm:$0xff]  ;;  %v296_v56 = vld [vmem:[%s8359_s11 + $0x3c0] sm:$0xff] }
  0x40   : > { %221 = vst [vmem:[%s8364_s5 + $0x98] sm:$0xff] %v220_v18  ;;  %v298_v57 = vld [vmem:[%s8359_s11 + $0x3c8] sm:$0xff]  ;;  %v300_v58 = vld [vmem:[%s8359_s11 + $0x3d0] sm:$0xff]  ;;  %v302_v59 = vld [vmem:[%s8359_s11 + $0x3d8] sm:$0xff] }
  0x41   : > { %223 = vst [vmem:[%s8364_s5 + $0xa0] sm:$0xff] %v222_v19  ;;  %v304_v60 = vld [vmem:[%s8359_s11 + $0x3e0] sm:$0xff]  ;;  %v306_v61 = vld [vmem:[%s8359_s11 + $0x3e8] sm:$0xff]  ;;  %v308_v62 = vld [vmem:[%s8359_s11 + $0x3f0] sm:$0xff] }
  0x42   : > { %225 = vst [vmem:[%s8364_s5 + $0xa8] sm:$0xff] %v224_v20  ;;  %v310_v63 = vld [vmem:[%s8359_s11 + $0x438] sm:$0xff]  ;;  %v312_v0 = vld [vmem:[%s8359_s11 + $0x440] sm:$0xff]  ;;  %v314_v1 = vld [vmem:[%s8359_s11 + $0x448] sm:$0xff] }
  0x43   : > { %227 = vst [vmem:[%s8364_s5 + $0xb4] sm:$0xff] %v226_v21  ;;  %v316_v2 = vld [vmem:[%s8359_s11 + $0x450] sm:$0xff]  ;;  %v318_v3 = vld [vmem:[%s8359_s11 + $0x458] sm:$0xff]  ;;  %v320_v4 = vld [vmem:[%s8359_s11 + $0x460] sm:$0xff] }
  0x44   : > { %229 = vst [vmem:[%s8364_s5 + $0xbc] sm:$0xff] %v228_v22  ;;  %v322_v5 = vld [vmem:[%s8359_s11 + $0x468] sm:$0xff]  ;;  %v324_v6 = vld [vmem:[%s8359_s11 + $0x4b0] sm:$0xff]  ;;  %v326_v7 = vld [vmem:[%s8359_s11 + $0x4b8] sm:$0xff] }
  0x45   : > { %231 = vst [vmem:[%s8364_s5 + $0xc4] sm:$0xff] %v230_v23  ;;  %v328_v8 = vld [vmem:[%s8359_s11 + $0x4c0] sm:$0xff]  ;;  %v330_v9 = vld [vmem:[%s8359_s11 + $0x4c8] sm:$0xff]  ;;  %v332_v10 = vld [vmem:[%s8359_s11 + $0x4d0] sm:$0xff] }
  0x46   : > { %233 = vst [vmem:[%s8364_s5 + $0xcc] sm:$0xff] %v232_v24  ;;  %v334_v11 = vld [vmem:[%s8359_s11 + $0x4d8] sm:$0xff]  ;;  %v336_v12 = vld [vmem:[%s8359_s11 + $0x4e0] sm:$0xff]  ;;  %v338_v13 = vld [vmem:[%s8359_s11 + $0x528] sm:$0xff] }
  0x47   : > { %235 = vst [vmem:[%s8364_s5 + $0xd4] sm:$0xff] %v234_v25  ;;  %v340_v14 = vld [vmem:[%s8359_s11 + $0x530] sm:$0xff]  ;;  %v342_v15 = vld [vmem:[%s8359_s11 + $0x538] sm:$0xff]  ;;  %v344_v16 = vld [vmem:[%s8359_s11 + $0x540] sm:$0xff] }
  0x48   : > { %237 = vst [vmem:[%s8364_s5 + $0xdc] sm:$0xff] %v236_v26  ;;  %v346_v17 = vld [vmem:[%s8359_s11 + $0x548] sm:$0xff]  ;;  %v348_v18 = vld [vmem:[%s8359_s11 + $0x550] sm:$0xff]  ;;  %v350_v19 = vld [vmem:[%s8359_s11 + $0x558] sm:$0xff] }
  0x49   : > { %239 = vst [vmem:[%s8364_s5 + $0xe4] sm:$0xff] %v238_v27  ;;  %v352_v20 = vld [vmem:[%s8359_s11 + $0x5a0] sm:$0xff]  ;;  %v354_v21 = vld [vmem:[%s8359_s11 + $0x5a8] sm:$0xff]  ;;  %v356_v22 = vld [vmem:[%s8359_s11 + $0x5b0] sm:$0xff] }
  0x4a   : > { %241 = vst [vmem:[%s8364_s5 + $0xf0] sm:$0xff] %v240_v28  ;;  %v358_v23 = vld [vmem:[%s8359_s11 + $0x5b8] sm:$0xff]  ;;  %v360_v24 = vld [vmem:[%s8359_s11 + $0x5c0] sm:$0xff]  ;;  %v362_v25 = vld [vmem:[%s8359_s11 + $0x5c8] sm:$0xff] }
  0x4b   : > { %243 = vst [vmem:[%s8364_s5 + $0xf8] sm:$0xff] %v242_v29  ;;  %v364_v26 = vld [vmem:[%s8359_s11 + $0x5d0] sm:$0xff]  ;;  %v366_v27 = vld [vmem:[%s8359_s11 + $0x618] sm:$0xff]  ;;  %v368_v28 = vld [vmem:[%s8359_s11 + $0x620] sm:$0xff] }
  0x4c   : > { %245 = vst [vmem:[%s8364_s5 + $0x100] sm:$0xff] %v244_v30  ;;  %v370_v29 = vld [vmem:[%s8359_s11 + $0x628] sm:$0xff]  ;;  %v372_v30 = vld [vmem:[%s8359_s11 + $0x630] sm:$0xff] }
  0x4d   : > { %247 = vst [vmem:[%s8364_s5 + $0x108] sm:$0xff] %v246_v31  ;;  %v374_v31 = vld [vmem:[%s8359_s11 + $0x638] sm:$0xff] }
  0x4e   : > { %249 = vst [vmem:[%s8364_s5 + $0x110] sm:$0xff] %v248_v32  ;;  %v376_v32 = vld [vmem:[%s8359_s11 + $0x640] sm:$0xff] }
  0x4f   : > { %251 = vst [vmem:[%s8364_s5 + $0x118] sm:$0xff] %v250_v33  ;;  %v378_v33 = vld [vmem:[%s8359_s11 + $0x648] sm:$0xff] }
  0x50   : > { %253 = vst [vmem:[%s8364_s5 + $0x120] sm:$0xff] %v252_v34  ;;  %v380_v34 = vld [vmem:[%s8359_s11 + $0x690] sm:$0xff] }
  0x51   : > { %255 = vst [vmem:[%s8364_s5 + $0x12c] sm:$0xff] %v254_v35  ;;  %v382_v35 = vld [vmem:[%s8359_s11 + $0x698] sm:$0xff] }
  0x52   : > { %257 = vst [vmem:[%s8364_s5 + $0x134] sm:$0xff] %v256_v36  ;;  %v384_v36 = vld [vmem:[%s8359_s11 + $0x6a0] sm:$0xff] }
  0x53   : > { %259 = vst [vmem:[%s8364_s5 + $0x13c] sm:$0xff] %v258_v37  ;;  %v386_v37 = vld [vmem:[%s8359_s11 + $0x6a8] sm:$0xff] }
  0x54   : > { %261 = vst [vmem:[%s8364_s5 + $0x144] sm:$0xff] %v260_v38  ;;  %v388_v38 = vld [vmem:[%s8359_s11 + $0x6b0] sm:$0xff] }
  0x55   : > { %263 = vst [vmem:[%s8364_s5 + $0x14c] sm:$0xff] %v262_v39  ;;  %v390_v39 = vld [vmem:[%s8359_s11 + $0x6b8] sm:$0xff] }
  0x56   : > { %265 = vst [vmem:[%s8364_s5 + $0x154] sm:$0xff] %v264_v40  ;;  %v392_v40 = vld [vmem:[%s8359_s11 + $0x6c0] sm:$0xff] }
  0x57   : > { %267 = vst [vmem:[%s8364_s5 + $0x15c] sm:$0xff] %v266_v41  ;;  %v394_v41 = vld [vmem:[%s8359_s11 + $0x708] sm:$0xff] }
  0x58   : > { %269 = vst [vmem:[%s8364_s5 + $0x168] sm:$0xff] %v268_v42  ;;  %v396_v42 = vld [vmem:[%s8359_s11 + $0x710] sm:$0xff] }
  0x59   : > { %271 = vst [vmem:[%s8364_s5 + $0x170] sm:$0xff] %v270_v43  ;;  %v398_v43 = vld [vmem:[%s8359_s11 + $0x718] sm:$0xff] }
  0x5a   : > { %273 = vst [vmem:[%s8364_s5 + $0x178] sm:$0xff] %v272_v44  ;;  %v400_v44 = vld [vmem:[%s8359_s11 + $0x720] sm:$0xff] }
  0x5b   : > { %275 = vst [vmem:[%s8364_s5 + $0x180] sm:$0xff] %v274_v45  ;;  %v402_v45 = vld [vmem:[%s8359_s11 + $0x728] sm:$0xff] }
  0x5c   : > { %277 = vst [vmem:[%s8364_s5 + $0x188] sm:$0xff] %v276_v46  ;;  %v404_v46 = vld [vmem:[%s8359_s11 + $0x730] sm:$0xff] }
  0x5d   : > { %279 = vst [vmem:[%s8364_s5 + $0x190] sm:$0xff] %v278_v47  ;;  %v406_v47 = vld [vmem:[%s8359_s11 + $0x738] sm:$0xff] }
  0x5e   : > { %281 = vst [vmem:[%s8364_s5 + $0x198] sm:$0xff] %v280_v48  ;;  %v408_v48 = vld [vmem:[%s8359_s11 + $0x780] sm:$0xff] }
  0x5f   : > { %283 = vst [vmem:[%s8364_s5 + $0x1a4] sm:$0xff] %v282_v49  ;;  %v410_v49 = vld [vmem:[%s8359_s11 + $0x788] sm:$0xff] }
  0x60   : > { %285 = vst [vmem:[%s8364_s5 + $0x1ac] sm:$0xff] %v284_v50  ;;  %v412_v50 = vld [vmem:[%s8359_s11 + $0x790] sm:$0xff] }
  0x61   : > { %287 = vst [vmem:[%s8364_s5 + $0x1b4] sm:$0xff] %v286_v51  ;;  %v414_v51 = vld [vmem:[%s8359_s11 + $0x798] sm:$0xff] }
  0x62   : > { %289 = vst [vmem:[%s8364_s5 + $0x1bc] sm:$0xff] %v288_v52  ;;  %v416_v52 = vld [vmem:[%s8359_s11 + $0x7a0] sm:$0xff] }
  0x63   : > { %291 = vst [vmem:[%s8364_s5 + $0x1c4] sm:$0xff] %v290_v53  ;;  %v418_v53 = vld [vmem:[%s8359_s11 + $0x7a8] sm:$0xff] }
  0x64   : > { %293 = vst [vmem:[%s8364_s5 + $0x1cc] sm:$0xff] %v292_v54  ;;  %v420_v54 = vld [vmem:[%s8359_s11 + $0x7b0] sm:$0xff] }
  0x65   : > { %295 = vst [vmem:[%s8364_s5 + $0x1d4] sm:$0xff] %v294_v55  ;;  %v422_v55 = vld [vmem:[%s8359_s11 + $0x7f8] sm:$0xff] }
  0x66   : > { %297 = vst [vmem:[%s8364_s5 + $0x1e0] sm:$0xff] %v296_v56  ;;  %v424_v56 = vld [vmem:[%s8359_s11 + $0x800] sm:$0xff] }
  0x67   : > { %299 = vst [vmem:[%s8364_s5 + $0x1e8] sm:$0xff] %v298_v57  ;;  %v426_v57 = vld [vmem:[%s8359_s11 + $0x808] sm:$0xff] }
  0x68   : > { %301 = vst [vmem:[%s8364_s5 + $0x1f0] sm:$0xff] %v300_v58  ;;  %v428_v58 = vld [vmem:[%s8359_s11 + $0x810] sm:$0xff] }
  0x69   : > { %303 = vst [vmem:[%s8364_s5 + $0x1f8] sm:$0xff] %v302_v59  ;;  %v430_v59 = vld [vmem:[%s8359_s11 + $0x818] sm:$0xff] }
  0x6a   : > { %305 = vst [vmem:[%s8364_s5 + $0x200] sm:$0xff] %v304_v60  ;;  %v432_v60 = vld [vmem:[%s8359_s11 + $0x820] sm:$0xff] }
  0x6b   : > { %307 = vst [vmem:[%s8364_s5 + $0x208] sm:$0xff] %v306_v61  ;;  %v434_v61 = vld [vmem:[%s8359_s11 + $0x828] sm:$0xff] }
  0x6c   : > { %309 = vst [vmem:[%s8364_s5 + $0x210] sm:$0xff] %v308_v62  ;;  %v436_v62 = vld [vmem:[%s8359_s11 + $0x870] sm:$0xff] }
  0x6d   : > { %311 = vst [vmem:[%s8364_s5 + $0x21c] sm:$0xff] %v310_v63  ;;  %v438_v63 = vld [vmem:[%s8359_s11 + $0x878] sm:$0xff] }
  0x6e   : > { %313 = vst [vmem:[%s8364_s5 + $0x224] sm:$0xff] %v312_v0  ;;  %v440_v0 = vld [vmem:[%s8359_s11 + $0x880] sm:$0xff] }
  0x6f   : > { %315 = vst [vmem:[%s8364_s5 + $0x22c] sm:$0xff] %v314_v1  ;;  %v442_v1 = vld [vmem:[%s8359_s11 + $0x888] sm:$0xff] }
  0x70   : > { %317 = vst [vmem:[%s8364_s5 + $0x234] sm:$0xff] %v316_v2  ;;  %v444_v2 = vld [vmem:[%s8359_s11 + $0x890] sm:$0xff] }
  0x71   : > { %319 = vst [vmem:[%s8364_s5 + $0x23c] sm:$0xff] %v318_v3  ;;  %v446_v3 = vld [vmem:[%s8359_s11 + $0x898] sm:$0xff] }
  0x72   : > { %321 = vst [vmem:[%s8364_s5 + $0x244] sm:$0xff] %v320_v4  ;;  %v448_v4 = vld [vmem:[%s8359_s11 + $0x8a0] sm:$0xff] }
  0x73   : > { %323 = vst [vmem:[%s8364_s5 + $0x24c] sm:$0xff] %v322_v5  ;;  %v450_v5 = vld [vmem:[%s8359_s11 + $0x8e8] sm:$0xff] }
  0x74   : > { %325 = vst [vmem:[%s8364_s5 + $0x258] sm:$0xff] %v324_v6  ;;  %v452_v6 = vld [vmem:[%s8359_s11 + $0x8f0] sm:$0xff] }
  0x75   : > { %327 = vst [vmem:[%s8364_s5 + $0x260] sm:$0xff] %v326_v7  ;;  %v454_v7 = vld [vmem:[%s8359_s11 + $0x8f8] sm:$0xff] }
  0x76   : > { %329 = vst [vmem:[%s8364_s5 + $0x268] sm:$0xff] %v328_v8  ;;  %v456_v8 = vld [vmem:[%s8359_s11 + $0x900] sm:$0xff] }
  0x77   : > { %331 = vst [vmem:[%s8364_s5 + $0x270] sm:$0xff] %v330_v9  ;;  %v458_v9 = vld [vmem:[%s8359_s11 + $0x908] sm:$0xff] }
  0x78   : > { %333 = vst [vmem:[%s8364_s5 + $0x278] sm:$0xff] %v332_v10  ;;  %v460_v10 = vld [vmem:[%s8359_s11 + $0x910] sm:$0xff] }
  0x79   : > { %335 = vst [vmem:[%s8364_s5 + $0x280] sm:$0xff] %v334_v11  ;;  %v462_v11 = vld [vmem:[%s8359_s11 + $0x918] sm:$0xff] }
  0x7a   : > { %337 = vst [vmem:[%s8364_s5 + $0x288] sm:$0xff] %v336_v12  ;;  %v464_v12 = vld [vmem:[%s8359_s11 + $0x960] sm:$0xff] }
  0x7b   : > { %339 = vst [vmem:[%s8364_s5 + $0x294] sm:$0xff] %v338_v13  ;;  %v466_v13 = vld [vmem:[%s8359_s11 + $0x968] sm:$0xff] }
  0x7c   : > { %341 = vst [vmem:[%s8364_s5 + $0x29c] sm:$0xff] %v340_v14  ;;  %v468_v14 = vld [vmem:[%s8359_s11 + $0x970] sm:$0xff] }
  0x7d   : > { %343 = vst [vmem:[%s8364_s5 + $0x2a4] sm:$0xff] %v342_v15  ;;  %v470_v15 = vld [vmem:[%s8359_s11 + $0x978] sm:$0xff] }
  0x7e   : > { %345 = vst [vmem:[%s8364_s5 + $0x2ac] sm:$0xff] %v344_v16  ;;  %v472_v16 = vld [vmem:[%s8359_s11 + $0x980] sm:$0xff] }
  0x7f   : > { %347 = vst [vmem:[%s8364_s5 + $0x2b4] sm:$0xff] %v346_v17  ;;  %v474_v17 = vld [vmem:[%s8359_s11 + $0x988] sm:$0xff] }
  0x80   : > { %349 = vst [vmem:[%s8364_s5 + $0x2bc] sm:$0xff] %v348_v18  ;;  %v476_v18 = vld [vmem:[%s8359_s11 + $0x990] sm:$0xff] }
  0x81   : > { %351 = vst [vmem:[%s8364_s5 + $0x2c4] sm:$0xff] %v350_v19  ;;  %v478_v19 = vld [vmem:[%s8359_s11 + $0x9d8] sm:$0xff] }
  0x82   : > { %353 = vst [vmem:[%s8364_s5 + $0x2d0] sm:$0xff] %v352_v20  ;;  %v480_v20 = vld [vmem:[%s8359_s11 + $0x9e0] sm:$0xff] }
  0x83   : > { %355 = vst [vmem:[%s8364_s5 + $0x2d8] sm:$0xff] %v354_v21  ;;  %v482_v21 = vld [vmem:[%s8359_s11 + $0x9e8] sm:$0xff] }
  0x84   : > { %357 = vst [vmem:[%s8364_s5 + $0x2e0] sm:$0xff] %v356_v22  ;;  %v484_v22 = vld [vmem:[%s8359_s11 + $0x9f0] sm:$0xff] }
  0x85   : > { %359 = vst [vmem:[%s8364_s5 + $0x2e8] sm:$0xff] %v358_v23  ;;  %v486_v23 = vld [vmem:[%s8359_s11 + $0x9f8] sm:$0xff] }
  0x86   : > { %361 = vst [vmem:[%s8364_s5 + $0x2f0] sm:$0xff] %v360_v24  ;;  %v488_v24 = vld [vmem:[%s8359_s11 + $0xa00] sm:$0xff] }
  0x87   : > { %363 = vst [vmem:[%s8364_s5 + $0x2f8] sm:$0xff] %v362_v25  ;;  %v490_v25 = vld [vmem:[%s8359_s11 + $0xa08] sm:$0xff] }
  0x88   : > { %365 = vst [vmem:[%s8364_s5 + $0x300] sm:$0xff] %v364_v26  ;;  %v492_v26 = vld [vmem:[%s8359_s11 + $0xa50] sm:$0xff] }
  0x89   : > { %367 = vst [vmem:[%s8364_s5 + $0x30c] sm:$0xff] %v366_v27  ;;  %v494_v27 = vld [vmem:[%s8359_s11 + $0xa58] sm:$0xff] }
  0x8a   : > { %369 = vst [vmem:[%s8364_s5 + $0x314] sm:$0xff] %v368_v28  ;;  %v496_v28 = vld [vmem:[%s8359_s11 + $0xa60] sm:$0xff] }
  0x8b   : > { %371 = vst [vmem:[%s8364_s5 + $0x31c] sm:$0xff] %v370_v29  ;;  %v498_v29 = vld [vmem:[%s8359_s11 + $0xa68] sm:$0xff] }
  0x8c   : > { %373 = vst [vmem:[%s8364_s5 + $0x324] sm:$0xff] %v372_v30  ;;  %v500_v30 = vld [vmem:[%s8359_s11 + $0xa70] sm:$0xff] }
  0x8d   : > { %375 = vst [vmem:[%s8364_s5 + $0x32c] sm:$0xff] %v374_v31  ;;  %v502_v31 = vld [vmem:[%s8359_s11 + $0xa78] sm:$0xff] }
  0x8e   : > { %377 = vst [vmem:[%s8364_s5 + $0x334] sm:$0xff] %v376_v32  ;;  %v504_v32 = vld [vmem:[%s8359_s11 + $0xa80] sm:$0xff] }
  0x8f   : > { %379 = vst [vmem:[%s8364_s5 + $0x33c] sm:$0xff] %v378_v33  ;;  %v506_v33 = vld [vmem:[%s8359_s11 + $0xac8] sm:$0xff] }
  0x90   : > { %381 = vst [vmem:[%s8364_s5 + $0x348] sm:$0xff] %v380_v34  ;;  %v508_v34 = vld [vmem:[%s8359_s11 + $0xad0] sm:$0xff] }
  0x91   : > { %383 = vst [vmem:[%s8364_s5 + $0x350] sm:$0xff] %v382_v35  ;;  %v510_v35 = vld [vmem:[%s8359_s11 + $0xad8] sm:$0xff] }
  0x92   : > { %385 = vst [vmem:[%s8364_s5 + $0x358] sm:$0xff] %v384_v36  ;;  %v512_v36 = vld [vmem:[%s8359_s11 + $0xae0] sm:$0xff] }
  0x93   : > { %387 = vst [vmem:[%s8364_s5 + $0x360] sm:$0xff] %v386_v37  ;;  %v514_v37 = vld [vmem:[%s8359_s11 + $0xae8] sm:$0xff] }
  0x94   : > { %389 = vst [vmem:[%s8364_s5 + $0x368] sm:$0xff] %v388_v38  ;;  %v516_v38 = vld [vmem:[%s8359_s11 + $0xaf0] sm:$0xff] }
  0x95   : > { %391 = vst [vmem:[%s8364_s5 + $0x370] sm:$0xff] %v390_v39  ;;  %v518_v39 = vld [vmem:[%s8359_s11 + $0xaf8] sm:$0xff] }
  0x96   : > { %393 = vst [vmem:[%s8364_s5 + $0x378] sm:$0xff] %v392_v40  ;;  %v520_v40 = vld [vmem:[%s8359_s11 + $0xb40] sm:$0xff] }
  0x97   : > { %395 = vst [vmem:[%s8364_s5 + $0x384] sm:$0xff] %v394_v41  ;;  %v522_v41 = vld [vmem:[%s8359_s11 + $0xb48] sm:$0xff] }
  0x98   : > { %397 = vst [vmem:[%s8364_s5 + $0x38c] sm:$0xff] %v396_v42  ;;  %v524_v42 = vld [vmem:[%s8359_s11 + $0xb50] sm:$0xff] }
  0x99   : > { %399 = vst [vmem:[%s8364_s5 + $0x394] sm:$0xff] %v398_v43  ;;  %v526_v43 = vld [vmem:[%s8359_s11 + $0xb58] sm:$0xff] }
  0x9a   : > { %401 = vst [vmem:[%s8364_s5 + $0x39c] sm:$0xff] %v400_v44  ;;  %v528_v44 = vld [vmem:[%s8359_s11 + $0xb60] sm:$0xff] }
  0x9b   : > { %403 = vst [vmem:[%s8364_s5 + $0x3a4] sm:$0xff] %v402_v45  ;;  %v530_v45 = vld [vmem:[%s8359_s11 + $0xb68] sm:$0xff] }
  0x9c   : > { %405 = vst [vmem:[%s8364_s5 + $0x3ac] sm:$0xff] %v404_v46  ;;  %v532_v46 = vld [vmem:[%s8359_s11 + $0xb70] sm:$0xff] }
  0x9d   : > { %407 = vst [vmem:[%s8364_s5 + $0x3b4] sm:$0xff] %v406_v47  ;;  %v534_v47 = vld [vmem:[%s8359_s11 + $0xbb8] sm:$0xff] }
  0x9e   : > { %409 = vst [vmem:[%s8364_s5 + $0x3c0] sm:$0xff] %v408_v48  ;;  %v536_v48 = vld [vmem:[%s8359_s11 + $0xbc0] sm:$0xff] }
  0x9f   : > { %411 = vst [vmem:[%s8364_s5 + $0x3c8] sm:$0xff] %v410_v49  ;;  %v538_v49 = vld [vmem:[%s8359_s11 + $0xbc8] sm:$0xff] }
  0xa0   : > { %413 = vst [vmem:[%s8364_s5 + $0x3d0] sm:$0xff] %v412_v50  ;;  %v540_v50 = vld [vmem:[%s8359_s11 + $0xbd0] sm:$0xff] }
  0xa1   : > { %415 = vst [vmem:[%s8364_s5 + $0x3d8] sm:$0xff] %v414_v51  ;;  %v542_v51 = vld [vmem:[%s8359_s11 + $0xbd8] sm:$0xff] }
  0xa2   : > { %417 = vst [vmem:[%s8364_s5 + $0x3e0] sm:$0xff] %v416_v52  ;;  %v544_v52 = vld [vmem:[%s8359_s11 + $0xbe0] sm:$0xff] }
  0xa3   : > { %419 = vst [vmem:[%s8364_s5 + $0x3e8] sm:$0xff] %v418_v53  ;;  %v546_v53 = vld [vmem:[%s8359_s11 + $0xbe8] sm:$0xff] }
  0xa4   : > { %421 = vst [vmem:[%s8364_s5 + $0x3f0] sm:$0xff] %v420_v54  ;;  %v548_v54 = vld [vmem:[%s8359_s11 + $0xc30] sm:$0xff] }
  0xa5   : > { %423 = vst [vmem:[%s8364_s5 + $0x3fc] sm:$0xff] %v422_v55  ;;  %v550_v55 = vld [vmem:[%s8359_s11 + $0xc38] sm:$0xff] }
  0xa6   : > { %425 = vst [vmem:[%s8364_s5 + $0x404] sm:$0xff] %v424_v56  ;;  %v552_v56 = vld [vmem:[%s8359_s11 + $0xc40] sm:$0xff] }
  0xa7   : > { %427 = vst [vmem:[%s8364_s5 + $0x40c] sm:$0xff] %v426_v57  ;;  %v554_v57 = vld [vmem:[%s8359_s11 + $0xc48] sm:$0xff] }
  0xa8   : > { %429 = vst [vmem:[%s8364_s5 + $0x414] sm:$0xff] %v428_v58  ;;  %v556_v58 = vld [vmem:[%s8359_s11 + $0xc50] sm:$0xff] }
  0xa9   : > { %431 = vst [vmem:[%s8364_s5 + $0x41c] sm:$0xff] %v430_v59  ;;  %v558_v59 = vld [vmem:[%s8359_s11 + $0xc58] sm:$0xff] }
  0xaa   : > { %433 = vst [vmem:[%s8364_s5 + $0x424] sm:$0xff] %v432_v60  ;;  %v560_v60 = vld [vmem:[%s8359_s11 + $0xc60] sm:$0xff] }
  0xab   : > { %435 = vst [vmem:[%s8364_s5 + $0x42c] sm:$0xff] %v434_v61  ;;  %v562_v61 = vld [vmem:[%s8359_s11 + $0xca8] sm:$0xff] }
  0xac   : > { %437 = vst [vmem:[%s8364_s5 + $0x438] sm:$0xff] %v436_v62  ;;  %v564_v62 = vld [vmem:[%s8359_s11 + $0xcb0] sm:$0xff] }
  0xad   : > { %439 = vst [vmem:[%s8364_s5 + $0x440] sm:$0xff] %v438_v63  ;;  %v566_v63 = vld [vmem:[%s8359_s11 + $0xcb8] sm:$0xff] }
  0xae   : > { %441 = vst [vmem:[%s8364_s5 + $0x448] sm:$0xff] %v440_v0  ;;  %v568_v0 = vld [vmem:[%s8359_s11 + $0xcc0] sm:$0xff] }
  0xaf   : > { %443 = vst [vmem:[%s8364_s5 + $0x450] sm:$0xff] %v442_v1  ;;  %v570_v1 = vld [vmem:[%s8359_s11 + $0xcc8] sm:$0xff] }
  0xb0   : > { %445 = vst [vmem:[%s8364_s5 + $0x458] sm:$0xff] %v444_v2  ;;  %v572_v2 = vld [vmem:[%s8359_s11 + $0xcd0] sm:$0xff] }
  0xb1   : > { %447 = vst [vmem:[%s8364_s5 + $0x460] sm:$0xff] %v446_v3  ;;  %v574_v3 = vld [vmem:[%s8359_s11 + $0xcd8] sm:$0xff] }
  0xb2   : > { %449 = vst [vmem:[%s8364_s5 + $0x468] sm:$0xff] %v448_v4  ;;  %v576_v4 = vld [vmem:[%s8359_s11 + $0xd20] sm:$0xff] }
  0xb3   : > { %451 = vst [vmem:[%s8364_s5 + $0x474] sm:$0xff] %v450_v5  ;;  %v578_v5 = vld [vmem:[%s8359_s11 + $0xd28] sm:$0xff] }
  0xb4   : > { %453 = vst [vmem:[%s8364_s5 + $0x47c] sm:$0xff] %v452_v6  ;;  %v580_v6 = vld [vmem:[%s8359_s11 + $0xd30] sm:$0xff] }
  0xb5   : > { %455 = vst [vmem:[%s8364_s5 + $0x484] sm:$0xff] %v454_v7  ;;  %v582_v7 = vld [vmem:[%s8359_s11 + $0xd38] sm:$0xff] }
  0xb6   : > { %457 = vst [vmem:[%s8364_s5 + $0x48c] sm:$0xff] %v456_v8  ;;  %v584_v8 = vld [vmem:[%s8359_s11 + $0xd40] sm:$0xff] }
  0xb7   : > { %459 = vst [vmem:[%s8364_s5 + $0x494] sm:$0xff] %v458_v9  ;;  %v586_v9 = vld [vmem:[%s8359_s11 + $0xd48] sm:$0xff] }
  0xb8   : > { %461 = vst [vmem:[%s8364_s5 + $0x49c] sm:$0xff] %v460_v10  ;;  %v588_v10 = vld [vmem:[%s8359_s11 + $0xd50] sm:$0xff] }
  0xb9   : > { %463 = vst [vmem:[%s8364_s5 + $0x4a4] sm:$0xff] %v462_v11  ;;  %v590_v11 = vld [vmem:[%s8359_s11 + $0xd98] sm:$0xff] }
  0xba   : > { %465 = vst [vmem:[%s8364_s5 + $0x4b0] sm:$0xff] %v464_v12  ;;  %v592_v12 = vld [vmem:[%s8359_s11 + $0xda0] sm:$0xff] }
  0xbb   : > { %467 = vst [vmem:[%s8364_s5 + $0x4b8] sm:$0xff] %v466_v13  ;;  %v594_v13 = vld [vmem:[%s8359_s11 + $0xda8] sm:$0xff] }
  0xbc   : > { %469 = vst [vmem:[%s8364_s5 + $0x4c0] sm:$0xff] %v468_v14  ;;  %v596_v14 = vld [vmem:[%s8359_s11 + $0xdb0] sm:$0xff] }
  0xbd   : > { %471 = vst [vmem:[%s8364_s5 + $0x4c8] sm:$0xff] %v470_v15  ;;  %v598_v15 = vld [vmem:[%s8359_s11 + $0xdb8] sm:$0xff] }
  0xbe   : > { %473 = vst [vmem:[%s8364_s5 + $0x4d0] sm:$0xff] %v472_v16  ;;  %v600_v16 = vld [vmem:[%s8359_s11 + $0xdc0] sm:$0xff] }
  0xbf   : > { %475 = vst [vmem:[%s8364_s5 + $0x4d8] sm:$0xff] %v474_v17  ;;  %v602_v17 = vld [vmem:[%s8359_s11 + $0xdc8] sm:$0xff] }
  0xc0   : > { %477 = vst [vmem:[%s8364_s5 + $0x4e0] sm:$0xff] %v476_v18  ;;  %v604_v18 = vld [vmem:[%s8359_s11 + $0xe10] sm:$0xff] }
  0xc1   : > { %479 = vst [vmem:[%s8364_s5 + $0x4ec] sm:$0xff] %v478_v19  ;;  %v606_v19 = vld [vmem:[%s8359_s11 + $0xe18] sm:$0xff] }
  0xc2   : > { %481 = vst [vmem:[%s8364_s5 + $0x4f4] sm:$0xff] %v480_v20  ;;  %v608_v20 = vld [vmem:[%s8359_s11 + $0xe20] sm:$0xff] }
  0xc3   : > { %483 = vst [vmem:[%s8364_s5 + $0x4fc] sm:$0xff] %v482_v21  ;;  %v610_v21 = vld [vmem:[%s8359_s11 + $0xe28] sm:$0xff] }
  0xc4   : > { %485 = vst [vmem:[%s8364_s5 + $0x504] sm:$0xff] %v484_v22  ;;  %v612_v22 = vld [vmem:[%s8359_s11 + $0xe30] sm:$0xff] }
  0xc5   : > { %487 = vst [vmem:[%s8364_s5 + $0x50c] sm:$0xff] %v486_v23  ;;  %v614_v23 = vld [vmem:[%s8359_s11 + $0xe38] sm:$0xff] }
  0xc6   : > { %489 = vst [vmem:[%s8364_s5 + $0x514] sm:$0xff] %v488_v24  ;;  %v616_v24 = vld [vmem:[%s8359_s11 + $0xe40] sm:$0xff] }
  0xc7   : > { %491 = vst [vmem:[%s8364_s5 + $0x51c] sm:$0xff] %v490_v25  ;;  %v618_v25 = vld [vmem:[%s8359_s11 + $0xe88] sm:$0xff] }
  0xc8   : > { %493 = vst [vmem:[%s8364_s5 + $0x528] sm:$0xff] %v492_v26  ;;  %v620_v26 = vld [vmem:[%s8359_s11 + $0xe90] sm:$0xff] }
  0xc9   : > { %495 = vst [vmem:[%s8364_s5 + $0x530] sm:$0xff] %v494_v27  ;;  %v622_v27 = vld [vmem:[%s8359_s11 + $0xe98] sm:$0xff] }
  0xca   : > { %497 = vst [vmem:[%s8364_s5 + $0x538] sm:$0xff] %v496_v28  ;;  %v624_v28 = vld [vmem:[%s8359_s11 + $0xea0] sm:$0xff] }
  0xcb   : > { %499 = vst [vmem:[%s8364_s5 + $0x540] sm:$0xff] %v498_v29  ;;  %v626_v29 = vld [vmem:[%s8359_s11 + $0xea8] sm:$0xff] }
  0xcc   : > { %501 = vst [vmem:[%s8364_s5 + $0x548] sm:$0xff] %v500_v30  ;;  %v628_v30 = vld [vmem:[%s8359_s11 + $0xeb0] sm:$0xff] }
  0xcd   : > { %503 = vst [vmem:[%s8364_s5 + $0x550] sm:$0xff] %v502_v31  ;;  %v630_v31 = vld [vmem:[%s8359_s11 + $0xeb8] sm:$0xff] }
  0xce   : > { %505 = vst [vmem:[%s8364_s5 + $0x558] sm:$0xff] %v504_v32  ;;  %v6096_v32 = vld [vmem:[%s8359_s11 + $0x38] sm:$0xf] }
  0xcf   : > { %507 = vst [vmem:[%s8364_s5 + $0x564] sm:$0xff] %v506_v33  ;;  %v6098_v33 = vld [vmem:[%s8359_s11 + $0xb0] sm:$0xf] }
  0xd0   : > { %509 = vst [vmem:[%s8364_s5 + $0x56c] sm:$0xff] %v508_v34  ;;  %v6100_v34 = vld [vmem:[%s8359_s11 + $0x128] sm:$0xf] }
  0xd1   : > { %511 = vst [vmem:[%s8364_s5 + $0x574] sm:$0xff] %v510_v35  ;;  %v6102_v35 = vld [vmem:[%s8359_s11 + $0x1a0] sm:$0xf] }
  0xd2   : > { %513 = vst [vmem:[%s8364_s5 + $0x57c] sm:$0xff] %v512_v36  ;;  %v6104_v36 = vld [vmem:[%s8359_s11 + $0x218] sm:$0xf] }
  0xd3   : > { %515 = vst [vmem:[%s8364_s5 + $0x584] sm:$0xff] %v514_v37  ;;  %v6106_v37 = vld [vmem:[%s8359_s11 + $0x290] sm:$0xf] }
  0xd4   : > { %517 = vst [vmem:[%s8364_s5 + $0x58c] sm:$0xff] %v516_v38  ;;  %v6108_v38 = vld [vmem:[%s8359_s11 + $0x308] sm:$0xf] }
  0xd5   : > { %519 = vst [vmem:[%s8364_s5 + $0x594] sm:$0xff] %v518_v39  ;;  %v6110_v39 = vld [vmem:[%s8359_s11 + $0x380] sm:$0xf] }
  0xd6   : > { %521 = vst [vmem:[%s8364_s5 + $0x5a0] sm:$0xff] %v520_v40  ;;  %v6112_v40 = vld [vmem:[%s8359_s11 + $0x3f8] sm:$0xf] }
  0xd7   : > { %523 = vst [vmem:[%s8364_s5 + $0x5a8] sm:$0xff] %v522_v41  ;;  %v6114_v41 = vld [vmem:[%s8359_s11 + $0x470] sm:$0xf] }
  0xd8   : > { %525 = vst [vmem:[%s8364_s5 + $0x5b0] sm:$0xff] %v524_v42  ;;  %v6116_v42 = vld [vmem:[%s8359_s11 + $0x4e8] sm:$0xf] }
  0xd9   : > { %527 = vst [vmem:[%s8364_s5 + $0x5b8] sm:$0xff] %v526_v43  ;;  %v6118_v43 = vld [vmem:[%s8359_s11 + $0x560] sm:$0xf] }
  0xda   : > { %529 = vst [vmem:[%s8364_s5 + $0x5c0] sm:$0xff] %v528_v44  ;;  %v6120_v44 = vld [vmem:[%s8359_s11 + $0x5d8] sm:$0xf] }
  0xdb   : > { %531 = vst [vmem:[%s8364_s5 + $0x5c8] sm:$0xff] %v530_v45  ;;  %v6122_v45 = vld [vmem:[%s8359_s11 + $0x650] sm:$0xf] }
  0xdc   : > { %533 = vst [vmem:[%s8364_s5 + $0x5d0] sm:$0xff] %v532_v46  ;;  %v6124_v46 = vld [vmem:[%s8359_s11 + $0x6c8] sm:$0xf] }
  0xdd   : > { %535 = vst [vmem:[%s8364_s5 + $0x5dc] sm:$0xff] %v534_v47  ;;  %v6126_v47 = vld [vmem:[%s8359_s11 + $0x740] sm:$0xf] }
  0xde   : > { %537 = vst [vmem:[%s8364_s5 + $0x5e4] sm:$0xff] %v536_v48  ;;  %v6128_v48 = vld [vmem:[%s8359_s11 + $0x7b8] sm:$0xf] }
  0xdf   : > { %539 = vst [vmem:[%s8364_s5 + $0x5ec] sm:$0xff] %v538_v49  ;;  %v6130_v49 = vld [vmem:[%s8359_s11 + $0x830] sm:$0xf] }
  0xe0   : > { %541 = vst [vmem:[%s8364_s5 + $0x5f4] sm:$0xff] %v540_v50  ;;  %v6132_v50 = vld [vmem:[%s8359_s11 + $0x8a8] sm:$0xf] }
  0xe1   : > { %543 = vst [vmem:[%s8364_s5 + $0x5fc] sm:$0xff] %v542_v51  ;;  %v6134_v51 = vld [vmem:[%s8359_s11 + $0x920] sm:$0xf] }
  0xe2   : > { %545 = vst [vmem:[%s8364_s5 + $0x604] sm:$0xff] %v544_v52  ;;  %v6136_v52 = vld [vmem:[%s8359_s11 + $0x998] sm:$0xf] }
  0xe3   : > { %547 = vst [vmem:[%s8364_s5 + $0x60c] sm:$0xff] %v546_v53  ;;  %v6138_v53 = vld [vmem:[%s8359_s11 + $0xa10] sm:$0xf] }
  0xe4   : > { %549 = vst [vmem:[%s8364_s5 + $0x618] sm:$0xff] %v548_v54  ;;  %v6140_v54 = vld [vmem:[%s8359_s11 + $0xa88] sm:$0xf] }
  0xe5   : > { %551 = vst [vmem:[%s8364_s5 + $0x620] sm:$0xff] %v550_v55  ;;  %v6142_v55 = vld [vmem:[%s8359_s11 + $0xb00] sm:$0xf] }
  0xe6   : > { %553 = vst [vmem:[%s8364_s5 + $0x628] sm:$0xff] %v552_v56  ;;  %v6144_v56 = vld [vmem:[%s8359_s11 + $0xb78] sm:$0xf] }
  0xe7   : > { %555 = vst [vmem:[%s8364_s5 + $0x630] sm:$0xff] %v554_v57  ;;  %v6146_v57 = vld [vmem:[%s8359_s11 + $0xbf0] sm:$0xf] }
  0xe8   : > { %557 = vst [vmem:[%s8364_s5 + $0x638] sm:$0xff] %v556_v58  ;;  %v6148_v58 = vld [vmem:[%s8359_s11 + $0xc68] sm:$0xf] }
  0xe9   : > { %559 = vst [vmem:[%s8364_s5 + $0x640] sm:$0xff] %v558_v59  ;;  %v6150_v59 = vld [vmem:[%s8359_s11 + $0xce0] sm:$0xf] }
  0xea   : > { %561 = vst [vmem:[%s8364_s5 + $0x648] sm:$0xff] %v560_v60  ;;  %v6152_v60 = vld [vmem:[%s8359_s11 + $0xd58] sm:$0xf] }
  0xeb   : > { %563 = vst [vmem:[%s8364_s5 + $0x654] sm:$0xff] %v562_v61  ;;  %v6154_v61 = vld [vmem:[%s8359_s11 + $0xdd0] sm:$0xf] }
  0xec   : > { %565 = vst [vmem:[%s8364_s5 + $0x65c] sm:$0xff] %v564_v62  ;;  %v6156_v62 = vld [vmem:[%s8359_s11 + $0xe48] sm:$0xf] }
  0xed   : > { %567 = vst [vmem:[%s8364_s5 + $0x664] sm:$0xff] %v566_v63  ;;  %v6158_v63 = vld [vmem:[%s8359_s11 + $0xec0] sm:$0xf] }
  0xee   : > { %569 = vst [vmem:[%s8364_s5 + $0x66c] sm:$0xff] %v568_v0 }
  0xef   : > { %571 = vst [vmem:[%s8364_s5 + $0x674] sm:$0xff] %v570_v1 }
  0xf0   : > { %573 = vst [vmem:[%s8364_s5 + $0x67c] sm:$0xff] %v572_v2 }
  0xf1   : > { %575 = vst [vmem:[%s8364_s5 + $0x684] sm:$0xff] %v574_v3 }
  0xf2   : > { %577 = vst [vmem:[%s8364_s5 + $0x690] sm:$0xff] %v576_v4 }
  0xf3   : > { %579 = vst [vmem:[%s8364_s5 + $0x698] sm:$0xff] %v578_v5 }
  0xf4   : > { %581 = vst [vmem:[%s8364_s5 + $0x6a0] sm:$0xff] %v580_v6 }
  0xf5   : > { %583 = vst [vmem:[%s8364_s5 + $0x6a8] sm:$0xff] %v582_v7 }
  0xf6   : > { %585 = vst [vmem:[%s8364_s5 + $0x6b0] sm:$0xff] %v584_v8 }
  0xf7   : > { %587 = vst [vmem:[%s8364_s5 + $0x6b8] sm:$0xff] %v586_v9 }
  0xf8   : > { %589 = vst [vmem:[%s8364_s5 + $0x6c0] sm:$0xff] %v588_v10 }
  0xf9   : > { %591 = vst [vmem:[%s8364_s5 + $0x6cc] sm:$0xff] %v590_v11 }
  0xfa   : > { %593 = vst [vmem:[%s8364_s5 + $0x6d4] sm:$0xff] %v592_v12 }
  0xfb   : > { %595 = vst [vmem:[%s8364_s5 + $0x6dc] sm:$0xff] %v594_v13 }
  0xfc   : > { %597 = vst [vmem:[%s8364_s5 + $0x6e4] sm:$0xff] %v596_v14 }
  0xfd   : > { %599 = vst [vmem:[%s8364_s5 + $0x6ec] sm:$0xff] %v598_v15 }
  0xfe   : > { %601 = vst [vmem:[%s8364_s5 + $0x6f4] sm:$0xff] %v600_v16 }
  0xff   : > { %603 = vst [vmem:[%s8364_s5 + $0x6fc] sm:$0xff] %v602_v17 }
 0x100   : > { %605 = vst [vmem:[%s8364_s5 + $0x708] sm:$0xff] %v604_v18 }
 0x101   : > { %607 = vst [vmem:[%s8364_s5 + $0x710] sm:$0xff] %v606_v19 }
 0x102   : > { %609 = vst [vmem:[%s8364_s5 + $0x718] sm:$0xff] %v608_v20 }
 0x103   : > { %611 = vst [vmem:[%s8364_s5 + $0x720] sm:$0xff] %v610_v21 }
 0x104   : > { %613 = vst [vmem:[%s8364_s5 + $0x728] sm:$0xff] %v612_v22 }
 0x105   : > { %615 = vst [vmem:[%s8364_s5 + $0x730] sm:$0xff] %v614_v23 }
 0x106   : > { %617 = vst [vmem:[%s8364_s5 + $0x738] sm:$0xff] %v616_v24 }
 0x107   : > { %619 = vst [vmem:[%s8364_s5 + $0x744] sm:$0xff] %v618_v25 }
 0x108   : > { %621 = vst [vmem:[%s8364_s5 + $0x74c] sm:$0xff] %v620_v26 }
 0x109   : > { %623 = vst [vmem:[%s8364_s5 + $0x754] sm:$0xff] %v622_v27 }
 0x10a   : > { %625 = vst [vmem:[%s8364_s5 + $0x75c] sm:$0xff] %v624_v28 }
 0x10b   : > { %627 = vst [vmem:[%s8364_s5 + $0x764] sm:$0xff] %v626_v29 }
 0x10c   : > { %629 = vst [vmem:[%s8364_s5 + $0x76c] sm:$0xff] %v628_v30 }
 0x10d   : > { %631 = vst [vmem:[%s8364_s5 + $0x774] sm:$0xff] %v630_v31 }
 0x10e   : > { %6097 = vst [vmem:[%s8364_s5 + $0x38] sm:$0xf] %v6096_v32 }
 0x10f   : > { %6099 = vst [vmem:[%s8364_s5 + $0x74] sm:$0xf] %v6098_v33 }
 0x110   : > { %6101 = vst [vmem:[%s8364_s5 + $0xb0] sm:$0xf] %v6100_v34 }
 0x111   : > { %6103 = vst [vmem:[%s8364_s5 + $0xec] sm:$0xf] %v6102_v35 }
 0x112   : > { %6105 = vst [vmem:[%s8364_s5 + $0x128] sm:$0xf] %v6104_v36 }
 0x113   : > { %6107 = vst [vmem:[%s8364_s5 + $0x164] sm:$0xf] %v6106_v37 }
 0x114   : > { %6109 = vst [vmem:[%s8364_s5 + $0x1a0] sm:$0xf] %v6108_v38 }
 0x115   : > { %6111 = vst [vmem:[%s8364_s5 + $0x1dc] sm:$0xf] %v6110_v39 }
 0x116   : > { %6113 = vst [vmem:[%s8364_s5 + $0x218] sm:$0xf] %v6112_v40 }
 0x117   : > { %6115 = vst [vmem:[%s8364_s5 + $0x254] sm:$0xf] %v6114_v41 }
 0x118   : > { %6117 = vst [vmem:[%s8364_s5 + $0x290] sm:$0xf] %v6116_v42 }
 0x119   : > { %6119 = vst [vmem:[%s8364_s5 + $0x2cc] sm:$0xf] %v6118_v43 }
 0x11a   : > { %6121 = vst [vmem:[%s8364_s5 + $0x308] sm:$0xf] %v6120_v44 }
 0x11b   : > { %6123 = vst [vmem:[%s8364_s5 + $0x344] sm:$0xf] %v6122_v45 }
 0x11c   : > { %6125 = vst [vmem:[%s8364_s5 + $0x380] sm:$0xf] %v6124_v46 }
 0x11d   : > { %6127 = vst [vmem:[%s8364_s5 + $0x3bc] sm:$0xf] %v6126_v47 }
 0x11e   : > { %6129 = vst [vmem:[%s8364_s5 + $0x3f8] sm:$0xf] %v6128_v48 }
 0x11f   : > { %6131 = vst [vmem:[%s8364_s5 + $0x434] sm:$0xf] %v6130_v49 }
 0x120   : > { %6133 = vst [vmem:[%s8364_s5 + $0x470] sm:$0xf] %v6132_v50 }
 0x121   : > { %6135 = vst [vmem:[%s8364_s5 + $0x4ac] sm:$0xf] %v6134_v51 }
 0x122   : > { %6137 = vst [vmem:[%s8364_s5 + $0x4e8] sm:$0xf] %v6136_v52 }
 0x123   : > { %6139 = vst [vmem:[%s8364_s5 + $0x524] sm:$0xf] %v6138_v53 }
 0x124   : > { %6141 = vst [vmem:[%s8364_s5 + $0x560] sm:$0xf] %v6140_v54 }
 0x125   : > { %6143 = vst [vmem:[%s8364_s5 + $0x59c] sm:$0xf] %v6142_v55 }
 0x126   : > { %6145 = vst [vmem:[%s8364_s5 + $0x5d8] sm:$0xf] %v6144_v56 }
 0x127   : > { %6147 = vst [vmem:[%s8364_s5 + $0x614] sm:$0xf] %v6146_v57 }
 0x128   : > { %6149 = vst [vmem:[%s8364_s5 + $0x650] sm:$0xf] %v6148_v58 }
 0x129   : > { %6151 = vst [vmem:[%s8364_s5 + $0x68c] sm:$0xf] %v6150_v59 }
 0x12a   : > { %6153 = vst [vmem:[%s8364_s5 + $0x6c8] sm:$0xf] %v6152_v60 }
 0x12b   : > { %6155 = vst [vmem:[%s8364_s5 + $0x704] sm:$0xf] %v6154_v61 }
 0x12c   : > { %6157 = vst [vmem:[%s8364_s5 + $0x740] sm:$0xf] %v6156_v62 }
 0x12d   : > { %6159 = vst [vmem:[%s8364_s5 + $0x77c] sm:$0xf] %v6158_v63 }
 0x12e PF: > { %709 = sbr.rel (!%p8324_p8) target bundleno = 551 (0x227), region = 46  ;;  %s711_s25 = sand.u32 (%p8324_p8), 1, %s8175_s15  }
 0x12f   : > { %s7612_s26 = smul.u32 (%p8324_p8), 480, %s8199_s21  ;;  %s10722_s1 = sld [smem:[#allocation9_spill]] (%p8324_p8) }
 0x130   : > { %s8000_s27 = smul.u32 (%p8324_p8), 960, %s711_s25 }
 0x131   : > { %s716_s29 = sadd.s32 (%p8324_p8), %s8203_s22, %s7612_s26 }
 0x132   : > { %s6161_s30 = sshll.u32 (%p8324_p8), %s716_s29, 2  ;;  %s8888_s8 = scalar_lea.vmem (%p8324_p8), [#allocation3], %s8000_s27 }
 0x135   : > { %s8883_s10 = scalar_lea.vmem %s10722_s1, %s6161_s30 }
 0x136   : > { %v735_v0 = vld [vmem:[%s8883_s10] sm:$0xf]  ;;  %v737_v1 = vld [vmem:[%s8883_s10 + $0x8] sm:$0xf]  ;;  %v739_v2 = vld [vmem:[%s8883_s10 + $0x10] sm:$0xf] }
 0x137   : > { %736 = vst [vmem:[%s8888_s8] sm:$0xf] %v735_v0  ;;  %v741_v3 = vld [vmem:[%s8883_s10 + $0x18] sm:$0xf]  ;;  %v743_v4 = vld [vmem:[%s8883_s10 + $0x20] sm:$0xf] }
 0x138   : > { %738 = vst [vmem:[%s8888_s8 + $0x4] sm:$0xf] %v737_v1  ;;  %v745_v5 = vld [vmem:[%s8883_s10 + $0x28] sm:$0xf]  ;;  %v747_v6 = vld [vmem:[%s8883_s10 + $0x30] sm:$0xf] }
 0x139   : > { %740 = vst [vmem:[%s8888_s8 + $0x8] sm:$0xf] %v739_v2  ;;  %v749_v7 = vld [vmem:[%s8883_s10 + $0x38] sm:$0xf]  ;;  %v751_v8 = vld [vmem:[%s8883_s10 + $0x40] sm:$0xf] }
 0x13a   : > { %742 = vst [vmem:[%s8888_s8 + $0xc] sm:$0xf] %v741_v3  ;;  %v753_v9 = vld [vmem:[%s8883_s10 + $0x48] sm:$0xf]  ;;  %v755_v10 = vld [vmem:[%s8883_s10 + $0x50] sm:$0xf] }
 0x13b   : > { %744 = vst [vmem:[%s8888_s8 + $0x10] sm:$0xf] %v743_v4  ;;  %v757_v11 = vld [vmem:[%s8883_s10 + $0x58] sm:$0xf]  ;;  %v759_v12 = vld [vmem:[%s8883_s10 + $0x60] sm:$0xf] }
 0x13c   : > { %746 = vst [vmem:[%s8888_s8 + $0x14] sm:$0xf] %v745_v5  ;;  %v761_v13 = vld [vmem:[%s8883_s10 + $0x68] sm:$0xf]  ;;  %v763_v14 = vld [vmem:[%s8883_s10 + $0x70] sm:$0xf] }
 0x13d   : > { %748 = vst [vmem:[%s8888_s8 + $0x18] sm:$0xf] %v747_v6  ;;  %v765_v15 = vld [vmem:[%s8883_s10 + $0x78] sm:$0xf]  ;;  %v767_v16 = vld [vmem:[%s8883_s10 + $0x80] sm:$0xf] }
 0x13e   : > { %750 = vst [vmem:[%s8888_s8 + $0x1c] sm:$0xf] %v749_v7  ;;  %v769_v17 = vld [vmem:[%s8883_s10 + $0x88] sm:$0xf]  ;;  %v771_v18 = vld [vmem:[%s8883_s10 + $0x90] sm:$0xf] }
 0x13f   : > { %752 = vst [vmem:[%s8888_s8 + $0x20] sm:$0xf] %v751_v8  ;;  %v773_v19 = vld [vmem:[%s8883_s10 + $0x98] sm:$0xf]  ;;  %v775_v20 = vld [vmem:[%s8883_s10 + $0xa0] sm:$0xf] }
 0x140   : > { %754 = vst [vmem:[%s8888_s8 + $0x24] sm:$0xf] %v753_v9  ;;  %v777_v21 = vld [vmem:[%s8883_s10 + $0xa8] sm:$0xf]  ;;  %v779_v22 = vld [vmem:[%s8883_s10 + $0xb0] sm:$0xf] }
 0x141   : > { %756 = vst [vmem:[%s8888_s8 + $0x28] sm:$0xf] %v755_v10  ;;  %v781_v23 = vld [vmem:[%s8883_s10 + $0xb8] sm:$0xf]  ;;  %v783_v24 = vld [vmem:[%s8883_s10 + $0xc0] sm:$0xf] }
 0x142   : > { %758 = vst [vmem:[%s8888_s8 + $0x2c] sm:$0xf] %v757_v11  ;;  %v785_v25 = vld [vmem:[%s8883_s10 + $0xc8] sm:$0xf]  ;;  %v787_v26 = vld [vmem:[%s8883_s10 + $0xd0] sm:$0xf] }
 0x143   : > { %760 = vst [vmem:[%s8888_s8 + $0x30] sm:$0xf] %v759_v12  ;;  %v789_v27 = vld [vmem:[%s8883_s10 + $0xd8] sm:$0xf]  ;;  %v791_v28 = vld [vmem:[%s8883_s10 + $0xe0] sm:$0xf] }
 0x144   : > { %762 = vst [vmem:[%s8888_s8 + $0x34] sm:$0xf] %v761_v13  ;;  %v793_v29 = vld [vmem:[%s8883_s10 + $0xe8] sm:$0xf]  ;;  %v795_v30 = vld [vmem:[%s8883_s10 + $0xf0] sm:$0xf] }
 0x145   : > { %764 = vst [vmem:[%s8888_s8 + $0x38] sm:$0xf] %v763_v14  ;;  %v797_v31 = vld [vmem:[%s8883_s10 + $0xf8] sm:$0xf]  ;;  %v799_v32 = vld [vmem:[%s8883_s10 + $0x100] sm:$0xf] }
 0x146   : > { %766 = vst [vmem:[%s8888_s8 + $0x3c] sm:$0xf] %v765_v15  ;;  %v801_v33 = vld [vmem:[%s8883_s10 + $0x108] sm:$0xf]  ;;  %v803_v34 = vld [vmem:[%s8883_s10 + $0x110] sm:$0xf] }
 0x147   : > { %768 = vst [vmem:[%s8888_s8 + $0x40] sm:$0xf] %v767_v16  ;;  %v805_v35 = vld [vmem:[%s8883_s10 + $0x118] sm:$0xf]  ;;  %v807_v36 = vld [vmem:[%s8883_s10 + $0x120] sm:$0xf] }
 0x148   : > { %770 = vst [vmem:[%s8888_s8 + $0x44] sm:$0xf] %v769_v17  ;;  %v809_v37 = vld [vmem:[%s8883_s10 + $0x128] sm:$0xf]  ;;  %v811_v38 = vld [vmem:[%s8883_s10 + $0x130] sm:$0xf] }
 0x149   : > { %772 = vst [vmem:[%s8888_s8 + $0x48] sm:$0xf] %v771_v18  ;;  %v813_v39 = vld [vmem:[%s8883_s10 + $0x138] sm:$0xf]  ;;  %v815_v40 = vld [vmem:[%s8883_s10 + $0x140] sm:$0xf] }
 0x14a   : > { %774 = vst [vmem:[%s8888_s8 + $0x4c] sm:$0xf] %v773_v19  ;;  %v817_v41 = vld [vmem:[%s8883_s10 + $0x148] sm:$0xf]  ;;  %v819_v42 = vld [vmem:[%s8883_s10 + $0x150] sm:$0xf] }
 0x14b   : > { %776 = vst [vmem:[%s8888_s8 + $0x50] sm:$0xf] %v775_v20  ;;  %v821_v43 = vld [vmem:[%s8883_s10 + $0x158] sm:$0xf]  ;;  %v823_v44 = vld [vmem:[%s8883_s10 + $0x160] sm:$0xf] }
 0x14c   : > { %778 = vst [vmem:[%s8888_s8 + $0x54] sm:$0xf] %v777_v21  ;;  %v825_v45 = vld [vmem:[%s8883_s10 + $0x168] sm:$0xf]  ;;  %v827_v46 = vld [vmem:[%s8883_s10 + $0x170] sm:$0xf] }
 0x14d   : > { %780 = vst [vmem:[%s8888_s8 + $0x58] sm:$0xf] %v779_v22  ;;  %v829_v47 = vld [vmem:[%s8883_s10 + $0x178] sm:$0xf]  ;;  %v831_v48 = vld [vmem:[%s8883_s10 + $0x180] sm:$0xf] }
 0x14e   : > { %782 = vst [vmem:[%s8888_s8 + $0x5c] sm:$0xf] %v781_v23  ;;  %v833_v49 = vld [vmem:[%s8883_s10 + $0x188] sm:$0xf]  ;;  %v835_v50 = vld [vmem:[%s8883_s10 + $0x190] sm:$0xf] }
 0x14f   : > { %784 = vst [vmem:[%s8888_s8 + $0x60] sm:$0xf] %v783_v24  ;;  %v837_v51 = vld [vmem:[%s8883_s10 + $0x198] sm:$0xf]  ;;  %v839_v52 = vld [vmem:[%s8883_s10 + $0x1a0] sm:$0xf] }
 0x150   : > { %786 = vst [vmem:[%s8888_s8 + $0x64] sm:$0xf] %v785_v25  ;;  %v841_v53 = vld [vmem:[%s8883_s10 + $0x1a8] sm:$0xf]  ;;  %v843_v54 = vld [vmem:[%s8883_s10 + $0x1b0] sm:$0xf] }
 0x151   : > { %788 = vst [vmem:[%s8888_s8 + $0x68] sm:$0xf] %v787_v26  ;;  %v845_v55 = vld [vmem:[%s8883_s10 + $0x1b8] sm:$0xf]  ;;  %v847_v56 = vld [vmem:[%s8883_s10 + $0x1c0] sm:$0xf] }
 0x152   : > { %790 = vst [vmem:[%s8888_s8 + $0x6c] sm:$0xf] %v789_v27  ;;  %v849_v57 = vld [vmem:[%s8883_s10 + $0x1c8] sm:$0xf]  ;;  %v851_v58 = vld [vmem:[%s8883_s10 + $0x1d0] sm:$0xf] }
 0x153   : > { %792 = vst [vmem:[%s8888_s8 + $0x70] sm:$0xf] %v791_v28  ;;  %v853_v59 = vld [vmem:[%s8883_s10 + $0x1d8] sm:$0xf]  ;;  %v855_v60 = vld [vmem:[%s8883_s10 + $0x1e0] sm:$0xf] }
 0x154   : > { %794 = vst [vmem:[%s8888_s8 + $0x74] sm:$0xf] %v793_v29  ;;  %v857_v61 = vld [vmem:[%s8883_s10 + $0x1e8] sm:$0xf]  ;;  %v859_v62 = vld [vmem:[%s8883_s10 + $0x1f0] sm:$0xf] }
 0x155   : > { %796 = vst [vmem:[%s8888_s8 + $0x78] sm:$0xf] %v795_v30  ;;  %v861_v63 = vld [vmem:[%s8883_s10 + $0x1f8] sm:$0xf]  ;;  %v863_v0 = vld [vmem:[%s8883_s10 + $0x200] sm:$0xf] }
 0x156   : > { %798 = vst [vmem:[%s8888_s8 + $0x7c] sm:$0xf] %v797_v31  ;;  %v865_v1 = vld [vmem:[%s8883_s10 + $0x208] sm:$0xf]  ;;  %v867_v2 = vld [vmem:[%s8883_s10 + $0x210] sm:$0xf] }
 0x157   : > { %800 = vst [vmem:[%s8888_s8 + $0x80] sm:$0xf] %v799_v32  ;;  %v869_v3 = vld [vmem:[%s8883_s10 + $0x218] sm:$0xf]  ;;  %v871_v4 = vld [vmem:[%s8883_s10 + $0x220] sm:$0xf] }
 0x158   : > { %802 = vst [vmem:[%s8888_s8 + $0x84] sm:$0xf] %v801_v33  ;;  %v873_v5 = vld [vmem:[%s8883_s10 + $0x228] sm:$0xf]  ;;  %v875_v6 = vld [vmem:[%s8883_s10 + $0x230] sm:$0xf] }
 0x159   : > { %804 = vst [vmem:[%s8888_s8 + $0x88] sm:$0xf] %v803_v34  ;;  %v877_v7 = vld [vmem:[%s8883_s10 + $0x238] sm:$0xf]  ;;  %v879_v8 = vld [vmem:[%s8883_s10 + $0x240] sm:$0xf] }
 0x15a   : > { %806 = vst [vmem:[%s8888_s8 + $0x8c] sm:$0xf] %v805_v35  ;;  %v881_v9 = vld [vmem:[%s8883_s10 + $0x248] sm:$0xf]  ;;  %v883_v10 = vld [vmem:[%s8883_s10 + $0x250] sm:$0xf] }
 0x15b   : > { %808 = vst [vmem:[%s8888_s8 + $0x90] sm:$0xf] %v807_v36  ;;  %v885_v11 = vld [vmem:[%s8883_s10 + $0x258] sm:$0xf]  ;;  %v887_v12 = vld [vmem:[%s8883_s10 + $0x260] sm:$0xf] }
 0x15c   : > { %810 = vst [vmem:[%s8888_s8 + $0x94] sm:$0xf] %v809_v37  ;;  %v889_v13 = vld [vmem:[%s8883_s10 + $0x268] sm:$0xf]  ;;  %v891_v14 = vld [vmem:[%s8883_s10 + $0x270] sm:$0xf] }
 0x15d   : > { %812 = vst [vmem:[%s8888_s8 + $0x98] sm:$0xf] %v811_v38  ;;  %v893_v15 = vld [vmem:[%s8883_s10 + $0x278] sm:$0xf]  ;;  %v895_v16 = vld [vmem:[%s8883_s10 + $0x280] sm:$0xf] }
 0x15e   : > { %814 = vst [vmem:[%s8888_s8 + $0x9c] sm:$0xf] %v813_v39  ;;  %v897_v17 = vld [vmem:[%s8883_s10 + $0x288] sm:$0xf]  ;;  %v899_v18 = vld [vmem:[%s8883_s10 + $0x290] sm:$0xf] }
 0x15f   : > { %816 = vst [vmem:[%s8888_s8 + $0xa0] sm:$0xf] %v815_v40  ;;  %v901_v19 = vld [vmem:[%s8883_s10 + $0x298] sm:$0xf]  ;;  %v903_v20 = vld [vmem:[%s8883_s10 + $0x2a0] sm:$0xf] }
 0x160   : > { %818 = vst [vmem:[%s8888_s8 + $0xa4] sm:$0xf] %v817_v41  ;;  %v905_v21 = vld [vmem:[%s8883_s10 + $0x2a8] sm:$0xf]  ;;  %v907_v22 = vld [vmem:[%s8883_s10 + $0x2b0] sm:$0xf] }
 0x161   : > { %820 = vst [vmem:[%s8888_s8 + $0xa8] sm:$0xf] %v819_v42  ;;  %v909_v23 = vld [vmem:[%s8883_s10 + $0x2b8] sm:$0xf]  ;;  %v911_v24 = vld [vmem:[%s8883_s10 + $0x2c0] sm:$0xf] }
 0x162   : > { %822 = vst [vmem:[%s8888_s8 + $0xac] sm:$0xf] %v821_v43  ;;  %v913_v25 = vld [vmem:[%s8883_s10 + $0x2c8] sm:$0xf]  ;;  %v915_v26 = vld [vmem:[%s8883_s10 + $0x2d0] sm:$0xf] }
 0x163   : > { %824 = vst [vmem:[%s8888_s8 + $0xb0] sm:$0xf] %v823_v44  ;;  %v917_v27 = vld [vmem:[%s8883_s10 + $0x2d8] sm:$0xf]  ;;  %v919_v28 = vld [vmem:[%s8883_s10 + $0x2e0] sm:$0xf] }
 0x164   : > { %826 = vst [vmem:[%s8888_s8 + $0xb4] sm:$0xf] %v825_v45  ;;  %v921_v29 = vld [vmem:[%s8883_s10 + $0x2e8] sm:$0xf]  ;;  %v923_v30 = vld [vmem:[%s8883_s10 + $0x2f0] sm:$0xf] }
 0x165   : > { %828 = vst [vmem:[%s8888_s8 + $0xb8] sm:$0xf] %v827_v46  ;;  %v925_v31 = vld [vmem:[%s8883_s10 + $0x2f8] sm:$0xf]  ;;  %v927_v32 = vld [vmem:[%s8883_s10 + $0x300] sm:$0xf] }
 0x166   : > { %830 = vst [vmem:[%s8888_s8 + $0xbc] sm:$0xf] %v829_v47  ;;  %v929_v33 = vld [vmem:[%s8883_s10 + $0x308] sm:$0xf]  ;;  %v931_v34 = vld [vmem:[%s8883_s10 + $0x310] sm:$0xf] }
 0x167   : > { %832 = vst [vmem:[%s8888_s8 + $0xc0] sm:$0xf] %v831_v48  ;;  %v933_v35 = vld [vmem:[%s8883_s10 + $0x318] sm:$0xf]  ;;  %v935_v36 = vld [vmem:[%s8883_s10 + $0x320] sm:$0xf] }
 0x168   : > { %834 = vst [vmem:[%s8888_s8 + $0xc4] sm:$0xf] %v833_v49  ;;  %v937_v37 = vld [vmem:[%s8883_s10 + $0x328] sm:$0xf]  ;;  %v939_v38 = vld [vmem:[%s8883_s10 + $0x330] sm:$0xf] }
 0x169   : > { %836 = vst [vmem:[%s8888_s8 + $0xc8] sm:$0xf] %v835_v50  ;;  %v941_v39 = vld [vmem:[%s8883_s10 + $0x338] sm:$0xf]  ;;  %v943_v40 = vld [vmem:[%s8883_s10 + $0x340] sm:$0xf] }
 0x16a   : > { %838 = vst [vmem:[%s8888_s8 + $0xcc] sm:$0xf] %v837_v51  ;;  %v945_v41 = vld [vmem:[%s8883_s10 + $0x348] sm:$0xf]  ;;  %v947_v42 = vld [vmem:[%s8883_s10 + $0x350] sm:$0xf] }
 0x16b   : > { %840 = vst [vmem:[%s8888_s8 + $0xd0] sm:$0xf] %v839_v52  ;;  %v949_v43 = vld [vmem:[%s8883_s10 + $0x358] sm:$0xf]  ;;  %v951_v44 = vld [vmem:[%s8883_s10 + $0x360] sm:$0xf] }
 0x16c   : > { %842 = vst [vmem:[%s8888_s8 + $0xd4] sm:$0xf] %v841_v53  ;;  %v953_v45 = vld [vmem:[%s8883_s10 + $0x368] sm:$0xf]  ;;  %v955_v46 = vld [vmem:[%s8883_s10 + $0x370] sm:$0xf] }
 0x16d   : > { %844 = vst [vmem:[%s8888_s8 + $0xd8] sm:$0xf] %v843_v54  ;;  %v957_v47 = vld [vmem:[%s8883_s10 + $0x378] sm:$0xf]  ;;  %v959_v48 = vld [vmem:[%s8883_s10 + $0x380] sm:$0xf] }
 0x16e   : > { %846 = vst [vmem:[%s8888_s8 + $0xdc] sm:$0xf] %v845_v55  ;;  %v961_v49 = vld [vmem:[%s8883_s10 + $0x388] sm:$0xf]  ;;  %v963_v50 = vld [vmem:[%s8883_s10 + $0x390] sm:$0xf] }
 0x16f   : > { %848 = vst [vmem:[%s8888_s8 + $0xe0] sm:$0xf] %v847_v56  ;;  %v965_v51 = vld [vmem:[%s8883_s10 + $0x398] sm:$0xf]  ;;  %v967_v52 = vld [vmem:[%s8883_s10 + $0x3a0] sm:$0xf] }
 0x170   : > { %850 = vst [vmem:[%s8888_s8 + $0xe4] sm:$0xf] %v849_v57  ;;  %v969_v53 = vld [vmem:[%s8883_s10 + $0x3a8] sm:$0xf]  ;;  %v971_v54 = vld [vmem:[%s8883_s10 + $0x3b0] sm:$0xf] }
 0x171   : > { %852 = vst [vmem:[%s8888_s8 + $0xe8] sm:$0xf] %v851_v58  ;;  %v973_v55 = vld [vmem:[%s8883_s10 + $0x3b8] sm:$0xf]  ;;  %v975_v56 = vld [vmem:[%s8883_s10 + $0x3c0] sm:$0xf] }
 0x172   : > { %854 = vst [vmem:[%s8888_s8 + $0xec] sm:$0xf] %v853_v59  ;;  %v977_v57 = vld [vmem:[%s8883_s10 + $0x3c8] sm:$0xf]  ;;  %v979_v58 = vld [vmem:[%s8883_s10 + $0x3d0] sm:$0xf] }
 0x173   : > { %856 = vst [vmem:[%s8888_s8 + $0xf0] sm:$0xf] %v855_v60  ;;  %v981_v59 = vld [vmem:[%s8883_s10 + $0x3d8] sm:$0xf]  ;;  %v983_v60 = vld [vmem:[%s8883_s10 + $0x3e0] sm:$0xf] }
 0x174   : > { %858 = vst [vmem:[%s8888_s8 + $0xf4] sm:$0xf] %v857_v61  ;;  %v985_v61 = vld [vmem:[%s8883_s10 + $0x3e8] sm:$0xf] }
 0x175   : > { %860 = vst [vmem:[%s8888_s8 + $0xf8] sm:$0xf] %v859_v62  ;;  %v987_v62 = vld [vmem:[%s8883_s10 + $0x3f0] sm:$0xf] }
 0x176   : > { %862 = vst [vmem:[%s8888_s8 + $0xfc] sm:$0xf] %v861_v63  ;;  %v989_v63 = vld [vmem:[%s8883_s10 + $0x3f8] sm:$0xf] }
 0x177   : > { %864 = vst [vmem:[%s8888_s8 + $0x100] sm:$0xf] %v863_v0  ;;  %v991_v0 = vld [vmem:[%s8883_s10 + $0x400] sm:$0xf] }
 0x178   : > { %866 = vst [vmem:[%s8888_s8 + $0x104] sm:$0xf] %v865_v1  ;;  %v993_v1 = vld [vmem:[%s8883_s10 + $0x408] sm:$0xf] }
 0x179   : > { %868 = vst [vmem:[%s8888_s8 + $0x108] sm:$0xf] %v867_v2  ;;  %v995_v2 = vld [vmem:[%s8883_s10 + $0x410] sm:$0xf] }
 0x17a   : > { %870 = vst [vmem:[%s8888_s8 + $0x10c] sm:$0xf] %v869_v3  ;;  %v997_v3 = vld [vmem:[%s8883_s10 + $0x418] sm:$0xf] }
 0x17b   : > { %872 = vst [vmem:[%s8888_s8 + $0x110] sm:$0xf] %v871_v4  ;;  %v999_v4 = vld [vmem:[%s8883_s10 + $0x420] sm:$0xf] }
 0x17c   : > { %874 = vst [vmem:[%s8888_s8 + $0x114] sm:$0xf] %v873_v5  ;;  %v1001_v5 = vld [vmem:[%s8883_s10 + $0x428] sm:$0xf] }
 0x17d   : > { %876 = vst [vmem:[%s8888_s8 + $0x118] sm:$0xf] %v875_v6  ;;  %v1003_v6 = vld [vmem:[%s8883_s10 + $0x430] sm:$0xf] }
 0x17e   : > { %878 = vst [vmem:[%s8888_s8 + $0x11c] sm:$0xf] %v877_v7  ;;  %v1005_v7 = vld [vmem:[%s8883_s10 + $0x438] sm:$0xf] }
 0x17f   : > { %880 = vst [vmem:[%s8888_s8 + $0x120] sm:$0xf] %v879_v8  ;;  %v1007_v8 = vld [vmem:[%s8883_s10 + $0x440] sm:$0xf] }
 0x180   : > { %882 = vst [vmem:[%s8888_s8 + $0x124] sm:$0xf] %v881_v9  ;;  %v1009_v9 = vld [vmem:[%s8883_s10 + $0x448] sm:$0xf] }
 0x181   : > { %884 = vst [vmem:[%s8888_s8 + $0x128] sm:$0xf] %v883_v10  ;;  %v1011_v10 = vld [vmem:[%s8883_s10 + $0x450] sm:$0xf] }
 0x182   : > { %886 = vst [vmem:[%s8888_s8 + $0x12c] sm:$0xf] %v885_v11  ;;  %v1013_v11 = vld [vmem:[%s8883_s10 + $0x458] sm:$0xf] }
 0x183   : > { %888 = vst [vmem:[%s8888_s8 + $0x130] sm:$0xf] %v887_v12  ;;  %v1015_v12 = vld [vmem:[%s8883_s10 + $0x460] sm:$0xf] }
 0x184   : > { %890 = vst [vmem:[%s8888_s8 + $0x134] sm:$0xf] %v889_v13  ;;  %v1017_v13 = vld [vmem:[%s8883_s10 + $0x468] sm:$0xf] }
 0x185   : > { %892 = vst [vmem:[%s8888_s8 + $0x138] sm:$0xf] %v891_v14  ;;  %v1019_v14 = vld [vmem:[%s8883_s10 + $0x470] sm:$0xf] }
 0x186   : > { %894 = vst [vmem:[%s8888_s8 + $0x13c] sm:$0xf] %v893_v15  ;;  %v1021_v15 = vld [vmem:[%s8883_s10 + $0x478] sm:$0xf] }
 0x187   : > { %896 = vst [vmem:[%s8888_s8 + $0x140] sm:$0xf] %v895_v16  ;;  %v1023_v16 = vld [vmem:[%s8883_s10 + $0x480] sm:$0xf] }
 0x188   : > { %898 = vst [vmem:[%s8888_s8 + $0x144] sm:$0xf] %v897_v17  ;;  %v1025_v17 = vld [vmem:[%s8883_s10 + $0x488] sm:$0xf] }
 0x189   : > { %900 = vst [vmem:[%s8888_s8 + $0x148] sm:$0xf] %v899_v18  ;;  %v1027_v18 = vld [vmem:[%s8883_s10 + $0x490] sm:$0xf] }
 0x18a   : > { %902 = vst [vmem:[%s8888_s8 + $0x14c] sm:$0xf] %v901_v19  ;;  %v1029_v19 = vld [vmem:[%s8883_s10 + $0x498] sm:$0xf] }
 0x18b   : > { %904 = vst [vmem:[%s8888_s8 + $0x150] sm:$0xf] %v903_v20  ;;  %v1031_v20 = vld [vmem:[%s8883_s10 + $0x4a0] sm:$0xf] }
 0x18c   : > { %906 = vst [vmem:[%s8888_s8 + $0x154] sm:$0xf] %v905_v21  ;;  %v1033_v21 = vld [vmem:[%s8883_s10 + $0x4a8] sm:$0xf] }
 0x18d   : > { %908 = vst [vmem:[%s8888_s8 + $0x158] sm:$0xf] %v907_v22  ;;  %v1035_v22 = vld [vmem:[%s8883_s10 + $0x4b0] sm:$0xf] }
 0x18e   : > { %910 = vst [vmem:[%s8888_s8 + $0x15c] sm:$0xf] %v909_v23  ;;  %v1037_v23 = vld [vmem:[%s8883_s10 + $0x4b8] sm:$0xf] }
 0x18f   : > { %912 = vst [vmem:[%s8888_s8 + $0x160] sm:$0xf] %v911_v24  ;;  %v1039_v24 = vld [vmem:[%s8883_s10 + $0x4c0] sm:$0xf] }
 0x190   : > { %914 = vst [vmem:[%s8888_s8 + $0x164] sm:$0xf] %v913_v25  ;;  %v1041_v25 = vld [vmem:[%s8883_s10 + $0x4c8] sm:$0xf] }
 0x191   : > { %916 = vst [vmem:[%s8888_s8 + $0x168] sm:$0xf] %v915_v26  ;;  %v1043_v26 = vld [vmem:[%s8883_s10 + $0x4d0] sm:$0xf] }
 0x192   : > { %918 = vst [vmem:[%s8888_s8 + $0x16c] sm:$0xf] %v917_v27  ;;  %v1045_v27 = vld [vmem:[%s8883_s10 + $0x4d8] sm:$0xf] }
 0x193   : > { %920 = vst [vmem:[%s8888_s8 + $0x170] sm:$0xf] %v919_v28  ;;  %v1047_v28 = vld [vmem:[%s8883_s10 + $0x4e0] sm:$0xf] }
 0x194   : > { %922 = vst [vmem:[%s8888_s8 + $0x174] sm:$0xf] %v921_v29  ;;  %v1049_v29 = vld [vmem:[%s8883_s10 + $0x4e8] sm:$0xf] }
 0x195   : > { %924 = vst [vmem:[%s8888_s8 + $0x178] sm:$0xf] %v923_v30  ;;  %v1051_v30 = vld [vmem:[%s8883_s10 + $0x4f0] sm:$0xf] }
 0x196   : > { %926 = vst [vmem:[%s8888_s8 + $0x17c] sm:$0xf] %v925_v31  ;;  %v1053_v31 = vld [vmem:[%s8883_s10 + $0x4f8] sm:$0xf] }
 0x197   : > { %928 = vst [vmem:[%s8888_s8 + $0x180] sm:$0xf] %v927_v32  ;;  %v1055_v32 = vld [vmem:[%s8883_s10 + $0x500] sm:$0xf] }
 0x198   : > { %930 = vst [vmem:[%s8888_s8 + $0x184] sm:$0xf] %v929_v33  ;;  %v1057_v33 = vld [vmem:[%s8883_s10 + $0x508] sm:$0xf] }
 0x199   : > { %932 = vst [vmem:[%s8888_s8 + $0x188] sm:$0xf] %v931_v34  ;;  %v1059_v34 = vld [vmem:[%s8883_s10 + $0x510] sm:$0xf] }
 0x19a   : > { %934 = vst [vmem:[%s8888_s8 + $0x18c] sm:$0xf] %v933_v35  ;;  %v1061_v35 = vld [vmem:[%s8883_s10 + $0x518] sm:$0xf] }
 0x19b   : > { %936 = vst [vmem:[%s8888_s8 + $0x190] sm:$0xf] %v935_v36  ;;  %v1063_v36 = vld [vmem:[%s8883_s10 + $0x520] sm:$0xf] }
 0x19c   : > { %938 = vst [vmem:[%s8888_s8 + $0x194] sm:$0xf] %v937_v37  ;;  %v1065_v37 = vld [vmem:[%s8883_s10 + $0x528] sm:$0xf] }
 0x19d   : > { %940 = vst [vmem:[%s8888_s8 + $0x198] sm:$0xf] %v939_v38  ;;  %v1067_v38 = vld [vmem:[%s8883_s10 + $0x530] sm:$0xf] }
 0x19e   : > { %942 = vst [vmem:[%s8888_s8 + $0x19c] sm:$0xf] %v941_v39  ;;  %v1069_v39 = vld [vmem:[%s8883_s10 + $0x538] sm:$0xf] }
 0x19f   : > { %944 = vst [vmem:[%s8888_s8 + $0x1a0] sm:$0xf] %v943_v40  ;;  %v1071_v40 = vld [vmem:[%s8883_s10 + $0x540] sm:$0xf] }
 0x1a0   : > { %946 = vst [vmem:[%s8888_s8 + $0x1a4] sm:$0xf] %v945_v41  ;;  %v1073_v41 = vld [vmem:[%s8883_s10 + $0x548] sm:$0xf] }
 0x1a1   : > { %948 = vst [vmem:[%s8888_s8 + $0x1a8] sm:$0xf] %v947_v42  ;;  %v1075_v42 = vld [vmem:[%s8883_s10 + $0x550] sm:$0xf] }
 0x1a2   : > { %950 = vst [vmem:[%s8888_s8 + $0x1ac] sm:$0xf] %v949_v43  ;;  %v1077_v43 = vld [vmem:[%s8883_s10 + $0x558] sm:$0xf] }
 0x1a3   : > { %952 = vst [vmem:[%s8888_s8 + $0x1b0] sm:$0xf] %v951_v44  ;;  %v1079_v44 = vld [vmem:[%s8883_s10 + $0x560] sm:$0xf] }
 0x1a4   : > { %954 = vst [vmem:[%s8888_s8 + $0x1b4] sm:$0xf] %v953_v45  ;;  %v1081_v45 = vld [vmem:[%s8883_s10 + $0x568] sm:$0xf] }
 0x1a5   : > { %956 = vst [vmem:[%s8888_s8 + $0x1b8] sm:$0xf] %v955_v46  ;;  %v1083_v46 = vld [vmem:[%s8883_s10 + $0x570] sm:$0xf] }
 0x1a6   : > { %958 = vst [vmem:[%s8888_s8 + $0x1bc] sm:$0xf] %v957_v47  ;;  %v1085_v47 = vld [vmem:[%s8883_s10 + $0x578] sm:$0xf] }
 0x1a7   : > { %960 = vst [vmem:[%s8888_s8 + $0x1c0] sm:$0xf] %v959_v48  ;;  %v1087_v48 = vld [vmem:[%s8883_s10 + $0x580] sm:$0xf] }
 0x1a8   : > { %962 = vst [vmem:[%s8888_s8 + $0x1c4] sm:$0xf] %v961_v49  ;;  %v1089_v49 = vld [vmem:[%s8883_s10 + $0x588] sm:$0xf] }
 0x1a9   : > { %964 = vst [vmem:[%s8888_s8 + $0x1c8] sm:$0xf] %v963_v50  ;;  %v1091_v50 = vld [vmem:[%s8883_s10 + $0x590] sm:$0xf] }
 0x1aa   : > { %966 = vst [vmem:[%s8888_s8 + $0x1cc] sm:$0xf] %v965_v51  ;;  %v1093_v51 = vld [vmem:[%s8883_s10 + $0x598] sm:$0xf] }
 0x1ab   : > { %968 = vst [vmem:[%s8888_s8 + $0x1d0] sm:$0xf] %v967_v52  ;;  %v1095_v52 = vld [vmem:[%s8883_s10 + $0x5a0] sm:$0xf] }
 0x1ac   : > { %970 = vst [vmem:[%s8888_s8 + $0x1d4] sm:$0xf] %v969_v53  ;;  %v1097_v53 = vld [vmem:[%s8883_s10 + $0x5a8] sm:$0xf] }
 0x1ad   : > { %972 = vst [vmem:[%s8888_s8 + $0x1d8] sm:$0xf] %v971_v54  ;;  %v1099_v54 = vld [vmem:[%s8883_s10 + $0x5b0] sm:$0xf] }
 0x1ae   : > { %974 = vst [vmem:[%s8888_s8 + $0x1dc] sm:$0xf] %v973_v55  ;;  %v1101_v55 = vld [vmem:[%s8883_s10 + $0x5b8] sm:$0xf] }
 0x1af   : > { %976 = vst [vmem:[%s8888_s8 + $0x1e0] sm:$0xf] %v975_v56  ;;  %v1103_v56 = vld [vmem:[%s8883_s10 + $0x5c0] sm:$0xf] }
 0x1b0   : > { %978 = vst [vmem:[%s8888_s8 + $0x1e4] sm:$0xf] %v977_v57  ;;  %v1105_v57 = vld [vmem:[%s8883_s10 + $0x5c8] sm:$0xf] }
 0x1b1   : > { %980 = vst [vmem:[%s8888_s8 + $0x1e8] sm:$0xf] %v979_v58  ;;  %v1107_v58 = vld [vmem:[%s8883_s10 + $0x5d0] sm:$0xf] }
 0x1b2   : > { %982 = vst [vmem:[%s8888_s8 + $0x1ec] sm:$0xf] %v981_v59  ;;  %v1109_v59 = vld [vmem:[%s8883_s10 + $0x5d8] sm:$0xf] }
 0x1b3   : > { %984 = vst [vmem:[%s8888_s8 + $0x1f0] sm:$0xf] %v983_v60  ;;  %v1111_v60 = vld [vmem:[%s8883_s10 + $0x5e0] sm:$0xf] }
 0x1b4   : > { %986 = vst [vmem:[%s8888_s8 + $0x1f4] sm:$0xf] %v985_v61  ;;  %v1113_v61 = vld [vmem:[%s8883_s10 + $0x5e8] sm:$0xf] }
 0x1b5   : > { %988 = vst [vmem:[%s8888_s8 + $0x1f8] sm:$0xf] %v987_v62  ;;  %v1115_v62 = vld [vmem:[%s8883_s10 + $0x5f0] sm:$0xf] }
 0x1b6   : > { %990 = vst [vmem:[%s8888_s8 + $0x1fc] sm:$0xf] %v989_v63  ;;  %v1117_v63 = vld [vmem:[%s8883_s10 + $0x5f8] sm:$0xf] }
 0x1b7   : > { %992 = vst [vmem:[%s8888_s8 + $0x200] sm:$0xf] %v991_v0  ;;  %v1119_v0 = vld [vmem:[%s8883_s10 + $0x600] sm:$0xf] }
 0x1b8   : > { %994 = vst [vmem:[%s8888_s8 + $0x204] sm:$0xf] %v993_v1  ;;  %v1121_v1 = vld [vmem:[%s8883_s10 + $0x608] sm:$0xf] }
 0x1b9   : > { %996 = vst [vmem:[%s8888_s8 + $0x208] sm:$0xf] %v995_v2  ;;  %v1123_v2 = vld [vmem:[%s8883_s10 + $0x610] sm:$0xf] }
 0x1ba   : > { %998 = vst [vmem:[%s8888_s8 + $0x20c] sm:$0xf] %v997_v3  ;;  %v1125_v3 = vld [vmem:[%s8883_s10 + $0x618] sm:$0xf] }
 0x1bb   : > { %1000 = vst [vmem:[%s8888_s8 + $0x210] sm:$0xf] %v999_v4  ;;  %v1127_v4 = vld [vmem:[%s8883_s10 + $0x620] sm:$0xf] }
 0x1bc   : > { %1002 = vst [vmem:[%s8888_s8 + $0x214] sm:$0xf] %v1001_v5  ;;  %v1129_v5 = vld [vmem:[%s8883_s10 + $0x628] sm:$0xf] }
 0x1bd   : > { %1004 = vst [vmem:[%s8888_s8 + $0x218] sm:$0xf] %v1003_v6  ;;  %v1131_v6 = vld [vmem:[%s8883_s10 + $0x630] sm:$0xf] }
 0x1be   : > { %1006 = vst [vmem:[%s8888_s8 + $0x21c] sm:$0xf] %v1005_v7  ;;  %v1133_v7 = vld [vmem:[%s8883_s10 + $0x638] sm:$0xf] }
 0x1bf   : > { %1008 = vst [vmem:[%s8888_s8 + $0x220] sm:$0xf] %v1007_v8  ;;  %v1135_v8 = vld [vmem:[%s8883_s10 + $0x640] sm:$0xf] }
 0x1c0   : > { %1010 = vst [vmem:[%s8888_s8 + $0x224] sm:$0xf] %v1009_v9  ;;  %v1137_v9 = vld [vmem:[%s8883_s10 + $0x648] sm:$0xf] }
 0x1c1   : > { %1012 = vst [vmem:[%s8888_s8 + $0x228] sm:$0xf] %v1011_v10  ;;  %v1139_v10 = vld [vmem:[%s8883_s10 + $0x650] sm:$0xf] }
 0x1c2   : > { %1014 = vst [vmem:[%s8888_s8 + $0x22c] sm:$0xf] %v1013_v11  ;;  %v1141_v11 = vld [vmem:[%s8883_s10 + $0x658] sm:$0xf] }
 0x1c3   : > { %1016 = vst [vmem:[%s8888_s8 + $0x230] sm:$0xf] %v1015_v12  ;;  %v1143_v12 = vld [vmem:[%s8883_s10 + $0x660] sm:$0xf] }
 0x1c4   : > { %1018 = vst [vmem:[%s8888_s8 + $0x234] sm:$0xf] %v1017_v13  ;;  %v1145_v13 = vld [vmem:[%s8883_s10 + $0x668] sm:$0xf] }
 0x1c5   : > { %1020 = vst [vmem:[%s8888_s8 + $0x238] sm:$0xf] %v1019_v14  ;;  %v1147_v14 = vld [vmem:[%s8883_s10 + $0x670] sm:$0xf] }
 0x1c6   : > { %1022 = vst [vmem:[%s8888_s8 + $0x23c] sm:$0xf] %v1021_v15  ;;  %v1149_v15 = vld [vmem:[%s8883_s10 + $0x678] sm:$0xf] }
 0x1c7   : > { %1024 = vst [vmem:[%s8888_s8 + $0x240] sm:$0xf] %v1023_v16  ;;  %v1151_v16 = vld [vmem:[%s8883_s10 + $0x680] sm:$0xf] }
 0x1c8   : > { %1026 = vst [vmem:[%s8888_s8 + $0x244] sm:$0xf] %v1025_v17  ;;  %v1153_v17 = vld [vmem:[%s8883_s10 + $0x688] sm:$0xf] }
 0x1c9   : > { %1028 = vst [vmem:[%s8888_s8 + $0x248] sm:$0xf] %v1027_v18  ;;  %v1155_v18 = vld [vmem:[%s8883_s10 + $0x690] sm:$0xf] }
 0x1ca   : > { %1030 = vst [vmem:[%s8888_s8 + $0x24c] sm:$0xf] %v1029_v19  ;;  %v1157_v19 = vld [vmem:[%s8883_s10 + $0x698] sm:$0xf] }
 0x1cb   : > { %1032 = vst [vmem:[%s8888_s8 + $0x250] sm:$0xf] %v1031_v20  ;;  %v1159_v20 = vld [vmem:[%s8883_s10 + $0x6a0] sm:$0xf] }
 0x1cc   : > { %1034 = vst [vmem:[%s8888_s8 + $0x254] sm:$0xf] %v1033_v21  ;;  %v1161_v21 = vld [vmem:[%s8883_s10 + $0x6a8] sm:$0xf] }
 0x1cd   : > { %1036 = vst [vmem:[%s8888_s8 + $0x258] sm:$0xf] %v1035_v22  ;;  %v1163_v22 = vld [vmem:[%s8883_s10 + $0x6b0] sm:$0xf] }
 0x1ce   : > { %1038 = vst [vmem:[%s8888_s8 + $0x25c] sm:$0xf] %v1037_v23  ;;  %v1165_v23 = vld [vmem:[%s8883_s10 + $0x6b8] sm:$0xf] }
 0x1cf   : > { %1040 = vst [vmem:[%s8888_s8 + $0x260] sm:$0xf] %v1039_v24  ;;  %v1167_v24 = vld [vmem:[%s8883_s10 + $0x6c0] sm:$0xf] }
 0x1d0   : > { %1042 = vst [vmem:[%s8888_s8 + $0x264] sm:$0xf] %v1041_v25  ;;  %v1169_v25 = vld [vmem:[%s8883_s10 + $0x6c8] sm:$0xf] }
 0x1d1   : > { %1044 = vst [vmem:[%s8888_s8 + $0x268] sm:$0xf] %v1043_v26  ;;  %v1171_v26 = vld [vmem:[%s8883_s10 + $0x6d0] sm:$0xf] }
 0x1d2   : > { %1046 = vst [vmem:[%s8888_s8 + $0x26c] sm:$0xf] %v1045_v27  ;;  %v1173_v27 = vld [vmem:[%s8883_s10 + $0x6d8] sm:$0xf] }
 0x1d3   : > { %1048 = vst [vmem:[%s8888_s8 + $0x270] sm:$0xf] %v1047_v28  ;;  %v1175_v28 = vld [vmem:[%s8883_s10 + $0x6e0] sm:$0xf] }
 0x1d4   : > { %1050 = vst [vmem:[%s8888_s8 + $0x274] sm:$0xf] %v1049_v29  ;;  %v1177_v29 = vld [vmem:[%s8883_s10 + $0x6e8] sm:$0xf] }
 0x1d5   : > { %1052 = vst [vmem:[%s8888_s8 + $0x278] sm:$0xf] %v1051_v30  ;;  %v1179_v30 = vld [vmem:[%s8883_s10 + $0x6f0] sm:$0xf] }
 0x1d6   : > { %1054 = vst [vmem:[%s8888_s8 + $0x27c] sm:$0xf] %v1053_v31  ;;  %v1181_v31 = vld [vmem:[%s8883_s10 + $0x6f8] sm:$0xf] }
 0x1d7   : > { %1056 = vst [vmem:[%s8888_s8 + $0x280] sm:$0xf] %v1055_v32  ;;  %v1183_v32 = vld [vmem:[%s8883_s10 + $0x700] sm:$0xf] }
 0x1d8   : > { %1058 = vst [vmem:[%s8888_s8 + $0x284] sm:$0xf] %v1057_v33  ;;  %v1185_v33 = vld [vmem:[%s8883_s10 + $0x708] sm:$0xf] }
 0x1d9   : > { %1060 = vst [vmem:[%s8888_s8 + $0x288] sm:$0xf] %v1059_v34  ;;  %v1187_v34 = vld [vmem:[%s8883_s10 + $0x710] sm:$0xf] }
 0x1da   : > { %1062 = vst [vmem:[%s8888_s8 + $0x28c] sm:$0xf] %v1061_v35  ;;  %v1189_v35 = vld [vmem:[%s8883_s10 + $0x718] sm:$0xf] }
 0x1db   : > { %1064 = vst [vmem:[%s8888_s8 + $0x290] sm:$0xf] %v1063_v36  ;;  %v1191_v36 = vld [vmem:[%s8883_s10 + $0x720] sm:$0xf] }
 0x1dc   : > { %1066 = vst [vmem:[%s8888_s8 + $0x294] sm:$0xf] %v1065_v37  ;;  %v1193_v37 = vld [vmem:[%s8883_s10 + $0x728] sm:$0xf] }
 0x1dd   : > { %1068 = vst [vmem:[%s8888_s8 + $0x298] sm:$0xf] %v1067_v38  ;;  %v1195_v38 = vld [vmem:[%s8883_s10 + $0x730] sm:$0xf] }
 0x1de   : > { %1070 = vst [vmem:[%s8888_s8 + $0x29c] sm:$0xf] %v1069_v39  ;;  %v1197_v39 = vld [vmem:[%s8883_s10 + $0x738] sm:$0xf] }
 0x1df   : > { %1072 = vst [vmem:[%s8888_s8 + $0x2a0] sm:$0xf] %v1071_v40  ;;  %v1199_v40 = vld [vmem:[%s8883_s10 + $0x740] sm:$0xf] }
 0x1e0   : > { %1074 = vst [vmem:[%s8888_s8 + $0x2a4] sm:$0xf] %v1073_v41  ;;  %v1201_v41 = vld [vmem:[%s8883_s10 + $0x748] sm:$0xf] }
 0x1e1   : > { %1076 = vst [vmem:[%s8888_s8 + $0x2a8] sm:$0xf] %v1075_v42  ;;  %v1203_v42 = vld [vmem:[%s8883_s10 + $0x750] sm:$0xf] }
 0x1e2   : > { %1078 = vst [vmem:[%s8888_s8 + $0x2ac] sm:$0xf] %v1077_v43  ;;  %v1205_v43 = vld [vmem:[%s8883_s10 + $0x758] sm:$0xf] }
 0x1e3   : > { %1080 = vst [vmem:[%s8888_s8 + $0x2b0] sm:$0xf] %v1079_v44  ;;  %v1207_v44 = vld [vmem:[%s8883_s10 + $0x760] sm:$0xf] }
 0x1e4   : > { %1082 = vst [vmem:[%s8888_s8 + $0x2b4] sm:$0xf] %v1081_v45  ;;  %v1209_v45 = vld [vmem:[%s8883_s10 + $0x768] sm:$0xf] }
 0x1e5   : > { %1084 = vst [vmem:[%s8888_s8 + $0x2b8] sm:$0xf] %v1083_v46  ;;  %v1211_v46 = vld [vmem:[%s8883_s10 + $0x770] sm:$0xf] }
 0x1e6   : > { %1086 = vst [vmem:[%s8888_s8 + $0x2bc] sm:$0xf] %v1085_v47  ;;  %v1213_v47 = vld [vmem:[%s8883_s10 + $0x778] sm:$0xf] }
 0x1e7   : > { %1088 = vst [vmem:[%s8888_s8 + $0x2c0] sm:$0xf] %v1087_v48 }
 0x1e8   : > { %1090 = vst [vmem:[%s8888_s8 + $0x2c4] sm:$0xf] %v1089_v49 }
 0x1e9   : > { %1092 = vst [vmem:[%s8888_s8 + $0x2c8] sm:$0xf] %v1091_v50 }
 0x1ea   : > { %1094 = vst [vmem:[%s8888_s8 + $0x2cc] sm:$0xf] %v1093_v51 }
 0x1eb   : > { %1096 = vst [vmem:[%s8888_s8 + $0x2d0] sm:$0xf] %v1095_v52 }
 0x1ec   : > { %1098 = vst [vmem:[%s8888_s8 + $0x2d4] sm:$0xf] %v1097_v53 }
 0x1ed   : > { %1100 = vst [vmem:[%s8888_s8 + $0x2d8] sm:$0xf] %v1099_v54 }
 0x1ee   : > { %1102 = vst [vmem:[%s8888_s8 + $0x2dc] sm:$0xf] %v1101_v55 }
 0x1ef   : > { %1104 = vst [vmem:[%s8888_s8 + $0x2e0] sm:$0xf] %v1103_v56 }
 0x1f0   : > { %1106 = vst [vmem:[%s8888_s8 + $0x2e4] sm:$0xf] %v1105_v57 }
 0x1f1   : > { %1108 = vst [vmem:[%s8888_s8 + $0x2e8] sm:$0xf] %v1107_v58 }
 0x1f2   : > { %1110 = vst [vmem:[%s8888_s8 + $0x2ec] sm:$0xf] %v1109_v59 }
 0x1f3   : > { %1112 = vst [vmem:[%s8888_s8 + $0x2f0] sm:$0xf] %v1111_v60 }
 0x1f4   : > { %1114 = vst [vmem:[%s8888_s8 + $0x2f4] sm:$0xf] %v1113_v61 }
 0x1f5   : > { %1116 = vst [vmem:[%s8888_s8 + $0x2f8] sm:$0xf] %v1115_v62 }
 0x1f6   : > { %1118 = vst [vmem:[%s8888_s8 + $0x2fc] sm:$0xf] %v1117_v63 }
 0x1f7   : > { %1120 = vst [vmem:[%s8888_s8 + $0x300] sm:$0xf] %v1119_v0 }
 0x1f8   : > { %1122 = vst [vmem:[%s8888_s8 + $0x304] sm:$0xf] %v1121_v1 }
 0x1f9   : > { %1124 = vst [vmem:[%s8888_s8 + $0x308] sm:$0xf] %v1123_v2 }
 0x1fa   : > { %1126 = vst [vmem:[%s8888_s8 + $0x30c] sm:$0xf] %v1125_v3 }
 0x1fb   : > { %1128 = vst [vmem:[%s8888_s8 + $0x310] sm:$0xf] %v1127_v4 }
 0x1fc   : > { %1130 = vst [vmem:[%s8888_s8 + $0x314] sm:$0xf] %v1129_v5 }
 0x1fd   : > { %1132 = vst [vmem:[%s8888_s8 + $0x318] sm:$0xf] %v1131_v6 }
 0x1fe   : > { %1134 = vst [vmem:[%s8888_s8 + $0x31c] sm:$0xf] %v1133_v7 }
 0x1ff   : > { %1136 = vst [vmem:[%s8888_s8 + $0x320] sm:$0xf] %v1135_v8 }
 0x200   : > { %1138 = vst [vmem:[%s8888_s8 + $0x324] sm:$0xf] %v1137_v9 }
 0x201   : > { %1140 = vst [vmem:[%s8888_s8 + $0x328] sm:$0xf] %v1139_v10 }
 0x202   : > { %1142 = vst [vmem:[%s8888_s8 + $0x32c] sm:$0xf] %v1141_v11 }
 0x203   : > { %1144 = vst [vmem:[%s8888_s8 + $0x330] sm:$0xf] %v1143_v12 }
 0x204   : > { %1146 = vst [vmem:[%s8888_s8 + $0x334] sm:$0xf] %v1145_v13 }
 0x205   : > { %1148 = vst [vmem:[%s8888_s8 + $0x338] sm:$0xf] %v1147_v14 }
 0x206   : > { %1150 = vst [vmem:[%s8888_s8 + $0x33c] sm:$0xf] %v1149_v15 }
 0x207   : > { %1152 = vst [vmem:[%s8888_s8 + $0x340] sm:$0xf] %v1151_v16 }
 0x208   : > { %1154 = vst [vmem:[%s8888_s8 + $0x344] sm:$0xf] %v1153_v17 }
 0x209   : > { %1156 = vst [vmem:[%s8888_s8 + $0x348] sm:$0xf] %v1155_v18 }
 0x20a   : > { %1158 = vst [vmem:[%s8888_s8 + $0x34c] sm:$0xf] %v1157_v19 }
 0x20b   : > { %1160 = vst [vmem:[%s8888_s8 + $0x350] sm:$0xf] %v1159_v20 }
 0x20c   : > { %1162 = vst [vmem:[%s8888_s8 + $0x354] sm:$0xf] %v1161_v21 }
 0x20d   : > { %1164 = vst [vmem:[%s8888_s8 + $0x358] sm:$0xf] %v1163_v22 }
 0x20e   : > { %1166 = vst [vmem:[%s8888_s8 + $0x35c] sm:$0xf] %v1165_v23 }
 0x20f   : > { %1168 = vst [vmem:[%s8888_s8 + $0x360] sm:$0xf] %v1167_v24 }
 0x210   : > { %1170 = vst [vmem:[%s8888_s8 + $0x364] sm:$0xf] %v1169_v25 }
 0x211   : > { %1172 = vst [vmem:[%s8888_s8 + $0x368] sm:$0xf] %v1171_v26 }
 0x212   : > { %1174 = vst [vmem:[%s8888_s8 + $0x36c] sm:$0xf] %v1173_v27 }
 0x213   : > { %1176 = vst [vmem:[%s8888_s8 + $0x370] sm:$0xf] %v1175_v28 }
 0x214   : > { %1178 = vst [vmem:[%s8888_s8 + $0x374] sm:$0xf] %v1177_v29 }
 0x215   : > { %1180 = vst [vmem:[%s8888_s8 + $0x378] sm:$0xf] %v1179_v30 }
 0x216   : > { %1182 = vst [vmem:[%s8888_s8 + $0x37c] sm:$0xf] %v1181_v31 }
 0x217   : > { %1184 = vst [vmem:[%s8888_s8 + $0x380] sm:$0xf] %v1183_v32 }
 0x218   : > { %1186 = vst [vmem:[%s8888_s8 + $0x384] sm:$0xf] %v1185_v33 }
 0x219   : > { %1188 = vst [vmem:[%s8888_s8 + $0x388] sm:$0xf] %v1187_v34 }
 0x21a   : > { %1190 = vst [vmem:[%s8888_s8 + $0x38c] sm:$0xf] %v1189_v35 }
 0x21b   : > { %1192 = vst [vmem:[%s8888_s8 + $0x390] sm:$0xf] %v1191_v36 }
 0x21c   : > { %1194 = vst [vmem:[%s8888_s8 + $0x394] sm:$0xf] %v1193_v37 }
 0x21d   : > { %1196 = vst [vmem:[%s8888_s8 + $0x398] sm:$0xf] %v1195_v38 }
 0x21e   : > { %1198 = vst [vmem:[%s8888_s8 + $0x39c] sm:$0xf] %v1197_v39 }
 0x21f   : > { %1200 = vst [vmem:[%s8888_s8 + $0x3a0] sm:$0xf] %v1199_v40 }
 0x220   : > { %1202 = vst [vmem:[%s8888_s8 + $0x3a4] sm:$0xf] %v1201_v41 }
 0x221   : > { %1204 = vst [vmem:[%s8888_s8 + $0x3a8] sm:$0xf] %v1203_v42 }
 0x222   : > { %1206 = vst [vmem:[%s8888_s8 + $0x3ac] sm:$0xf] %v1205_v43 }
 0x223   : > { %1208 = vst [vmem:[%s8888_s8 + $0x3b0] sm:$0xf] %v1207_v44 }
 0x224   : > { %1210 = vst [vmem:[%s8888_s8 + $0x3b4] sm:$0xf] %v1209_v45 }
 0x225   : > { %1212 = vst [vmem:[%s8888_s8 + $0x3b8] sm:$0xf] %v1211_v46 }
 0x226   : > { %1214 = vst [vmem:[%s8888_s8 + $0x3bc] sm:$0xf] %v1213_v47 }
 0x227 PF: > { %p6162_p1 = scmp.ge.s32.totalorder %s8211_s24, 1  ;;  %p1723_p2 = scmp.lt.s32.totalorder %s8211_s24, 9 }
 0x229   : > { %p1724_p3 = pnand %p6162_p1, %p1723_p2 }
 0x22a   : > { %s1730_s11 = sand.u32 (!%p1724_p3), 1, %s8179_s16   ;;  %s1737_s5 = sand.u32 (!%p1724_p3), 1, %s8171_s14  }
 0x22b   : > { %1727 = sbr.rel (%p1724_p3) target bundleno = 1806 (0x70e), region = 91  ;;  %s1763_s26 = sand.u32 (!%p1724_p3), 1, %s8163_s12  }
 0x22c   : > { %s8001_s25 = smul.u32 (!%p1724_p3), 1920, %s1730_s11  ;;  %s6163_s29 = sshll.u32 (!%p1724_p3), %s1763_s26, 8 }
 0x22d   : > { %s8002_s27 = smul.u32 (!%p1724_p3), 960, %s1737_s5  ;;  %p1769_p4 = scmp.lt.s32.totalorder (!%p1724_p3), %s8191_s19, 1 }
 0x22e   : > { %s9380_s8 = scalar_lea.vmem (!%p1724_p3), [#allocation2], %s8001_s25  ;;  %s9384_s1 = scalar_lea.vmem (!%p1724_p3), [#allocation4], %s6163_s29 }
 0x22f   : > { %s9382_s0 = scalar_lea.vmem (!%p1724_p3), [#allocation3], %s8002_s27  ;;  %p6164_p5 = scmp.ne.s32.totalorder (!%p1724_p3), %s8187_s18, 0 }
 0x230   : > { %s9374_s30 = scalar_select %p1769_p4, %s8191_s19, 1 }
 0x231   : > { %1776 = sbr.rel (%p6164_p5) target bundleno = 599 (0x257), region = 103 }
 0x232   : > { %s1771_s10 = scalar_lea.vmem %s10707_s2, %s9374_s30 }
 0x236   : > { %v8213_v48 = vmov 0.0  }
 0x237   : > { %1777 = vst [vmem:[%s9384_s1] sm:$0xff] %v8213_v48 }
 0x238   : > { %1778 = vst [vmem:[%s9384_s1 + $0x8] sm:$0xff] %v8213_v48 }
 0x239   : > { %1779 = vst [vmem:[%s9384_s1 + $0x10] sm:$0xff] %v8213_v48 }
 0x23a   : > { %1780 = vst [vmem:[%s9384_s1 + $0x18] sm:$0xff] %v8213_v48 }
 0x23b   : > { %1781 = vst [vmem:[%s9384_s1 + $0x20] sm:$0xff] %v8213_v48 }
 0x23c   : > { %1782 = vst [vmem:[%s9384_s1 + $0x28] sm:$0xff] %v8213_v48 }
 0x23d   : > { %1783 = vst [vmem:[%s9384_s1 + $0x30] sm:$0xff] %v8213_v48 }
 0x23e   : > { %1784 = vst [vmem:[%s9384_s1 + $0x38] sm:$0xff] %v8213_v48 }
 0x23f   : > { %1785 = vst [vmem:[%s9384_s1 + $0x40] sm:$0xff] %v8213_v48 }
 0x240   : > { %1786 = vst [vmem:[%s9384_s1 + $0x48] sm:$0xff] %v8213_v48 }
 0x241   : > { %1787 = vst [vmem:[%s9384_s1 + $0x50] sm:$0xff] %v8213_v48 }
 0x242   : > { %1788 = vst [vmem:[%s9384_s1 + $0x58] sm:$0xff] %v8213_v48 }
 0x243   : > { %1789 = vst [vmem:[%s9384_s1 + $0x60] sm:$0xff] %v8213_v48 }
 0x244   : > { %1790 = vst [vmem:[%s9384_s1 + $0x68] sm:$0xff] %v8213_v48 }
 0x245   : > { %1791 = vst [vmem:[%s9384_s1 + $0x70] sm:$0xff] %v8213_v48 }
 0x246   : > { %1792 = vst [vmem:[%s9384_s1 + $0x78] sm:$0xff] %v8213_v48 }
 0x247   : > { %1793 = vst [vmem:[%s9384_s1 + $0x80] sm:$0xff] %v8213_v48 }
 0x248   : > { %1794 = vst [vmem:[%s9384_s1 + $0x88] sm:$0xff] %v8213_v48 }
 0x249   : > { %1795 = vst [vmem:[%s9384_s1 + $0x90] sm:$0xff] %v8213_v48 }
 0x24a   : > { %1796 = vst [vmem:[%s9384_s1 + $0x98] sm:$0xff] %v8213_v48 }
 0x24b   : > { %1797 = vst [vmem:[%s9384_s1 + $0xa0] sm:$0xff] %v8213_v48 }
 0x24c   : > { %1798 = vst [vmem:[%s9384_s1 + $0xa8] sm:$0xff] %v8213_v48 }
 0x24d   : > { %1799 = vst [vmem:[%s9384_s1 + $0xb0] sm:$0xff] %v8213_v48 }
 0x24e   : > { %1800 = vst [vmem:[%s9384_s1 + $0xb8] sm:$0xff] %v8213_v48 }
 0x24f   : > { %1801 = vst [vmem:[%s9384_s1 + $0xc0] sm:$0xff] %v8213_v48 }
 0x250   : > { %1802 = vst [vmem:[%s9384_s1 + $0xc8] sm:$0xff] %v8213_v48 }
 0x251   : > { %1803 = vst [vmem:[%s9384_s1 + $0xd0] sm:$0xff] %v8213_v48 }
 0x252   : > { %1804 = vst [vmem:[%s9384_s1 + $0xd8] sm:$0xff] %v8213_v48 }
 0x253   : > { %1805 = vst [vmem:[%s9384_s1 + $0xe0] sm:$0xff] %v8213_v48 }
 0x254   : > { %1806 = vst [vmem:[%s9384_s1 + $0xe8] sm:$0xff] %v8213_v48 }
 0x255   : > { %1807 = vst [vmem:[%s9384_s1 + $0xf0] sm:$0xff] %v8213_v48 }
 0x256   : > { %1808 = vst [vmem:[%s9384_s1 + $0xf8] sm:$0xff] %v8213_v48 }
 0x257 PF: > { %v7860_v49 = vld [vmem:[%s9382_s0 + $0x38] sm:$0xff]  ;;  %v7859_v52 = vld [vmem:[%s9382_s0 + $0x30] sm:$0xff]  ;;  %v7858_v55 = vld [vmem:[%s9382_s0 + $0x28] sm:$0xff]  ;;  %p7605_p6 = scmp.ne.s32.totalorder %s8187_s18, 1 }
 0x258   : > { %v9421_v50 = vld [vmem:[%s9382_s0 + $0x78] sm:$0xff]  ;;  %4273 = vmatpush.bf16.msra.mxu0 %v7860_v49  ;;  %7974 = vmatpush.bf16.msra.mxu3 %v7860_v49  ;;  %v9430_v53 = vld [vmem:[%s9382_s0 + $0x70] sm:$0xff]  ;;  %v9439_v56 = vld [vmem:[%s9382_s0 + $0x68] sm:$0xff] }
 0x259   : > { %v9424_v51 = vld [vmem:[%s9382_s0 + $0xb8] sm:$0xff]  ;;  %4362 = vmatpush.bf16.msra.mxu1 %v9421_v50  ;;  %v9433_v54 = vld [vmem:[%s9382_s0 + $0xb0] sm:$0xff]  ;;  %v9442_v57 = vld [vmem:[%s9382_s0 + $0xa8] sm:$0xff] }
 0x25a   : > { %4451 = vmatpush.bf16.msra.mxu2 %v9424_v51  ;;  %v7857_v58 = vld [vmem:[%s9382_s0 + $0x20] sm:$0xff]  ;;  %v7856_v61 = vld [vmem:[%s9382_s0 + $0x18] sm:$0xff]  ;;  %v7855_v0 = vld [vmem:[%s9382_s0 + $0x10] sm:$0xff] }
 0x25b   : > { %v9448_v59 = vld [vmem:[%s9382_s0 + $0x60] sm:$0xff]  ;;  %v9457_v62 = vld [vmem:[%s9382_s0 + $0x58] sm:$0xff]  ;;  %v9466_v1 = vld [vmem:[%s9382_s0 + $0x50] sm:$0xff] }
 0x25c   : > { %4274 = vmatpush.bf16.msra.mxu0 %v7859_v52  ;;  %7975 = vmatpush.bf16.msra.mxu3 %v7859_v52  ;;  %v9451_v60 = vld [vmem:[%s9382_s0 + $0xa0] sm:$0xff]  ;;  %v9460_v63 = vld [vmem:[%s9382_s0 + $0x98] sm:$0xff]  ;;  %v9469_v2 = vld [vmem:[%s9382_s0 + $0x90] sm:$0xff] }
 0x25d   : > { %4363 = vmatpush.bf16.msra.mxu1 %v9430_v53  ;;  %v7854_v3 = vld [vmem:[%s9382_s0 + $0x8] sm:$0xff]  ;;  %v7853_v6 = vld [vmem:[%s9382_s0] sm:$0xff]  ;;  %v7620_v10 = vld [vmem:[%s9380_s8 + $0x38] sm:$0xf0] }
 0x25e   : > { %4452 = vmatpush.bf16.msra.mxu2 %v9433_v54  ;;  %v9475_v4 = vld [vmem:[%s9382_s0 + $0x48] sm:$0xff]  ;;  %v9482_v7 = vld [vmem:[%s9382_s0 + $0x40] sm:$0xff]  ;;  %v7800_v12 = vld [vmem:[%s9380_s8 + $0x5d8] sm:$0xf0] }
 0x25f   : > { %v9478_v5 = vld [vmem:[%s9382_s0 + $0x88] sm:$0xff]  ;;  %v9485_v8 = vld [vmem:[%s9382_s0 + $0x80] sm:$0xff]  ;;  %v7908_v17 = vld [vmem:[%s9382_s0 + $0x1b8] sm:$0xff] }
 0x260   : > { %4275 = vmatpush.bf16.msra.mxu0 %v7858_v55  ;;  %7976 = vmatpush.bf16.msra.mxu3 %v7858_v55  ;;  %v6167_v9 = vld [vmem:[%s9380_s8] sm:$0xf]  ;;  %v7613_v13 = vld [vmem:[%s9380_s8 + $0x4] sm:$0xf]  ;;  %v6175_v15 = vld [vmem:[%s9380_s8 + $0x8] sm:$0xf] }
 0x261   : > { %4364 = vmatpush.bf16.msra.mxu1 %v9439_v56  ;;  %v6887_v11 = vld [vmem:[%s9380_s8 + $0x5a0] sm:$0xf]  ;;  %v7621_v16 = vld [vmem:[%s9380_s8 + $0x40] sm:$0xf0]  ;;  %v6168_v18 = vor.u32 %v7620_v10, %v6167_v9  ;;  %v7892_v22 = vld [vmem:[%s9382_s0 + $0x138] sm:$0xff] }
 0x262   : > { %4453 = vmatpush.bf16.msra.mxu2 %v9442_v57  ;;  %v6169_v14 = vld [vmem:[%s9380_s8 + $0x3c] sm:$0xf0]  ;;  %v6888_v19 = vor.u32 %v7800_v12, %v6887_v11  ;;  %v6176_v21 = vor.u32 %v7621_v16, %v6175_v15  ;;  %v7900_v23 = vld [vmem:[%s9382_s0 + $0x178] sm:$0xff]  ;;  %v7907_v24 = vld [vmem:[%s9382_s0 + $0x1b0] sm:$0xff] }
 0x263   : > { %v6172_v20 = vor.u32 %v7613_v13, %v6169_v14  ;;  %v7891_v25 = vld [vmem:[%s9382_s0 + $0x130] sm:$0xff]  ;;  %v6227_v27 = vld [vmem:[%s9380_s8 + $0x78] sm:$0xf]  ;;  %v7628_v31 = vld [vmem:[%s9380_s8 + $0x7c] sm:$0xf] }
 0x264   : > { %4276 = vmatpush.bf16.msra.mxu0 %v7857_v58  ;;  %7977 = vmatpush.bf16.msra.mxu3 %v7857_v58  ;;  %v7899_v26 = vld [vmem:[%s9382_s0 + $0x170] sm:$0xff]  ;;  %v6947_v29 = vld [vmem:[%s9380_s8 + $0x618] sm:$0xf]  ;;  %v6235_v33 = vld [vmem:[%s9380_s8 + $0x80] sm:$0xf] }
 0x265   : > { %4365 = vmatpush.bf16.msra.mxu1 %v9448_v59  ;;  %v7635_v28 = vld [vmem:[%s9380_s8 + $0xb0] sm:$0xf0]  ;;  %v6229_v32 = vld [vmem:[%s9380_s8 + $0xb4] sm:$0xf0]  ;;  %v7636_v34 = vld [vmem:[%s9380_s8 + $0xb8] sm:$0xf0] }
 0x266   : > { %4454 = vmatpush.bf16.msra.mxu2 %v9451_v60  ;;  %v7815_v30 = vld [vmem:[%s9380_s8 + $0x650] sm:$0xf0]  ;;  %v6228_v35 = vor.u32 %v7635_v28, %v6227_v27  ;;  %v6232_v37 = vor.u32 %v7628_v31, %v6229_v32  ;;  %v6236_v38 = vor.u32 %v7636_v34, %v6235_v33  ;;  %v7906_v39 = vld [vmem:[%s9382_s0 + $0x1a8] sm:$0xff]  ;;  %v6287_v42 = vld [vmem:[%s9380_s8 + $0xf0] sm:$0xf] }
 0x267   : > { %v6948_v36 = vor.u32 %v7815_v30, %v6947_v29  ;;  %v7890_v40 = vld [vmem:[%s9382_s0 + $0x128] sm:$0xff]  ;;  %v7007_v44 = vld [vmem:[%s9380_s8 + $0x690] sm:$0xf]  ;;  %v7643_v46 = vld [vmem:[%s9380_s8 + $0xf4] sm:$0xf] }
 0x268   : > { %4277 = vmatpush.bf16.msra.mxu0 %v7856_v61  ;;  %7978 = vmatpush.bf16.msra.mxu3 %v7856_v61  ;;  %v7898_v41 = vld [vmem:[%s9382_s0 + $0x168] sm:$0xff]  ;;  %v6289_v47 = vld [vmem:[%s9380_s8 + $0x12c] sm:$0xf0]  ;;  %v6295_v48 = vld [vmem:[%s9380_s8 + $0xf8] sm:$0xf] }
 0x269   : > { %4366 = vmatpush.bf16.msra.mxu1 %v9457_v62  ;;  %v7650_v43 = vld [vmem:[%s9380_s8 + $0x128] sm:$0xf0]  ;;  %v7651_v49 = vld [vmem:[%s9380_s8 + $0x130] sm:$0xf0]  ;;  %v6347_v58 = vld [vmem:[%s9380_s8 + $0x168] sm:$0xf] }
 0x26a   : > { %4455 = vmatpush.bf16.msra.mxu2 %v9460_v63  ;;  %v7830_v45 = vld [vmem:[%s9380_s8 + $0x6c8] sm:$0xf0]  ;;  %v6296_v55 = vor.u32 %v7651_v49, %v6295_v48  ;;  %v7067_v61 = vld [vmem:[%s9380_s8 + $0x708] sm:$0xf]  ;;  %v6407_v9 = vld [vmem:[%s9380_s8 + $0x1e0] sm:$0xf] }
 0x26b   : > { %v7008_v52 = vor.u32 %v7830_v45, %v7007_v44  ;;  %v7680_v10 = vld [vmem:[%s9380_s8 + $0x218] sm:$0xf0]  ;;  %v7673_v11 = vld [vmem:[%s9380_s8 + $0x1e4] sm:$0xf]  ;;  %v6889_v12 = vld [vmem:[%s9380_s8 + $0x5dc] sm:$0xf0] }
 0x26c   : > { %4278 = vmatpush.bf16.msra.mxu0 %v7855_v0  ;;  %7979 = vmatpush.bf16.msra.mxu3 %v7855_v0  ;;  %v6349_v0 = vld [vmem:[%s9380_s8 + $0x1a4] sm:$0xf0]  ;;  %v6409_v13 = vld [vmem:[%s9380_s8 + $0x21c] sm:$0xf0]  ;;  %v7681_v15 = vld [vmem:[%s9380_s8 + $0x220] sm:$0xf0] }
 0x26d   : > { %4367 = vmatpush.bf16.msra.mxu1 %v9466_v1  ;;  %v6415_v14 = vld [vmem:[%s9380_s8 + $0x1e8] sm:$0xf]  ;;  %v7696_v27 = vld [vmem:[%s9380_s8 + $0x298] sm:$0xf0]  ;;  %v6527_v32 = vld [vmem:[%s9380_s8 + $0x2d0] sm:$0xf] }
 0x26e   : > { %4456 = vmatpush.bf16.msra.mxu2 %v9469_v2  ;;  %v7710_v33 = vld [vmem:[%s9380_s8 + $0x308] sm:$0xf0]  ;;  %v7703_v34 = vld [vmem:[%s9380_s8 + $0x2d4] sm:$0xf]  ;;  %v7884_v45 = vld [vmem:[%s9382_s0 + $0xf8] sm:$0xff] }
 0x26f   : > { %v7903_v44 = vld [vmem:[%s9382_s0 + $0x190] sm:$0xff]  ;;  %v6587_v49 = vld [vmem:[%s9380_s8 + $0x348] sm:$0xf] }
 0x270   : > { %4279 = vmatpush.bf16.msra.mxu0 %v7854_v3  ;;  %7980 = vmatpush.bf16.msra.mxu3 %v7854_v3  ;;  %v7666_v3 = vld [vmem:[%s9380_s8 + $0x1a8] sm:$0xf0]  ;;  %v7883_v48 = vld [vmem:[%s9382_s0 + $0xf0] sm:$0xff] }
 0x271   : > { %4368 = vmatpush.bf16.msra.mxu1 %v9475_v4 }
 0x272   : > { %4457 = vmatpush.bf16.msra.mxu2 %v9478_v5 }
 0x274   : > { %4280 = vmatpush.bf16.msra.mxu0 %v7853_v6  ;;  %7981 = vmatpush.bf16.msra.mxu3 %v7853_v6 }
 0x275   : > { %4369 = vmatpush.bf16.msra.mxu1 %v9482_v7 }
 0x276   : > { %4458 = vmatpush.bf16.msra.mxu2 %v9485_v8 }
 0x277   : > { %4281 = vmatmul.bf16.vlgmr.msra.gmra.mxu0 %v6168_v18  ;;  %4341 = vmatmul.bf16.vlgmr.msra.gmra.mxu3 %v6888_v19  ;;  %v7904_v18 = vld [vmem:[%s9382_s0 + $0x198] sm:$0xff] }
 0x278   : > { %7982 = vmatpush.bf16.msrb.mxu3 %v9421_v50  ;;  %4370 = vmatmul.bf16.vlgmr.msra.gmra.mxu1 %v6172_v20  ;;  %v6288_v50 = vor.u32 %v7650_v43, %v6287_v42  ;;  %v7888_v19 = vld [vmem:[%s9382_s0 + $0x118] sm:$0xff] }
 0x279   : > { %4459 = vmatmul.bf16.vlgmr.msra.gmra.mxu2 %v6176_v21  ;;  %4629 = vmatpush.bf16.msrb.mxu0 %v7892_v22  ;;  %v7896_v20 = vld [vmem:[%s9382_s0 + $0x158] sm:$0xff]  ;;  %v7695_v21 = vld [vmem:[%s9380_s8 + $0x290] sm:$0xf0] }
 0x27a   : > { %4807 = vmatpush.bf16.msrb.mxu2 %v7908_v17  ;;  %4718 = vmatpush.bf16.msrb.mxu1 %v7900_v23  ;;  %v6416_v17 = vor.u32 %v7681_v15, %v6415_v14  ;;  %v7688_v22 = vld [vmem:[%s9380_s8 + $0x25c] sm:$0xf] }
 0x27b   : > { %v7808_v23 = vld [vmem:[%s9380_s8 + $0x61c] sm:$0xf] }
 0x27c   : > { %7983 = vmatpush.bf16.msrb.mxu3 %v9430_v53  ;;  %v6292_v53 = vor.u32 %v7643_v46, %v6289_v47  ;;  %v7887_v46 = vld [vmem:[%s9382_s0 + $0x110] sm:$0xff] }
 0x27d   : > { %4630 = vmatpush.bf16.msrb.mxu0 %v7891_v25  ;;  %v6469_v25 = vld [vmem:[%s9380_s8 + $0x294] sm:$0xf0]  ;;  %v7895_v47 = vld [vmem:[%s9382_s0 + $0x150] sm:$0xff] }
 0x27e   : > { %4808 = vmatpush.bf16.msrb.mxu2 %v7907_v24  ;;  %4719 = vmatpush.bf16.msrb.mxu1 %v7899_v26  ;;  %v6949_v24 = vld [vmem:[%s9380_s8 + $0x654] sm:$0xf0]  ;;  %v6475_v26 = vld [vmem:[%s9380_s8 + $0x260] sm:$0xf]  ;;  %v6472_v30 = vor.u32 %v7688_v22, %v6469_v25 }
 0x27f   : > { %v6952_v29 = vor.u32 %v7808_v23, %v6949_v24  ;;  %v6476_v31 = vor.u32 %v7696_v27, %v6475_v26  ;;  %v7879_v24 = vld [vmem:[%s9382_s0 + $0xd0] sm:$0xff]  ;;  %v6707_v25 = vld [vmem:[%s9380_s8 + $0x438] sm:$0xf]  ;;  %v7748_v27 = vld [vmem:[%s9380_s8 + $0x43c] sm:$0xf] }
 0x280   : > { %7984 = vmatpush.bf16.msrb.mxu3 %v9439_v56  ;;  %v7905_v56 = vld [vmem:[%s9382_s0 + $0x1a0] sm:$0xff]  ;;  %v7755_v26 = vld [vmem:[%s9380_s8 + $0x470] sm:$0xf0] }
 0x281   : > { %4631 = vmatpush.bf16.msrb.mxu0 %v7890_v40  ;;  %v6528_v40 = vor.u32 %v7710_v33, %v6527_v32  ;;  %v7756_v32 = vld [vmem:[%s9380_s8 + $0x478] sm:$0xf0] }
 0x282   : > { %4809 = vmatpush.bf16.msrb.mxu2 %v7906_v39  ;;  %4720 = vmatpush.bf16.msrb.mxu1 %v7898_v41  ;;  %v7711_v39 = vld [vmem:[%s9380_s8 + $0x310] sm:$0xf0] }
 0x284   : > { %7985 = vmatpush.bf16.msrb.mxu3 %v9448_v59  ;;  %v7665_v59 = vld [vmem:[%s9380_s8 + $0x1a0] sm:$0xf0] }
 0x286   : > { %4810 = vmatpush.bf16.msrb.mxu2 %v7905_v56  ;;  %v6589_v56 = vld [vmem:[%s9380_s8 + $0x384] sm:$0xf0] }
 0x287   : > { %4286 = vmatmul.bf16.gmra.mxu0 %v6228_v35  ;;  %4346 = vmatmul.bf16.gmra.mxu3 %v6948_v36  ;;  %v7823_v35 = vld [vmem:[%s9380_s8 + $0x694] sm:$0xf]  ;;  %v7009_v36 = vld [vmem:[%s9380_s8 + $0x6cc] sm:$0xf0] }
 0x288   : > { %7986 = vmatpush.bf16.msrb.mxu3 %v9457_v62  ;;  %4375 = vmatmul.bf16.gmra.mxu1 %v6232_v37  ;;  %v7658_v62 = vld [vmem:[%s9380_s8 + $0x16c] sm:$0xf]  ;;  %v6529_v37 = vld [vmem:[%s9380_s8 + $0x30c] sm:$0xf0]  ;;  %v7012_v41 = vor.u32 %v7823_v35, %v7009_v36  ;;  %v6708_v35 = vor.u32 %v7755_v26, %v6707_v25  ;;  %v6829_v25 = vld [vmem:[%s9380_s8 + $0x564] sm:$0xf0] }
 0x289   : > { %4464 = vmatmul.bf16.gmra.mxu2 %v6236_v38  ;;  %v6535_v38 = vld [vmem:[%s9380_s8 + $0x2d8] sm:$0xf]  ;;  %v6532_v42 = vor.u32 %v7703_v34, %v6529_v37  ;;  %v6835_v26 = vld [vmem:[%s9380_s8 + $0x530] sm:$0xf] }
 0x28a   : > { %4811 = vmatpush.bf16.msrb.mxu2 %v7904_v18  ;;  %v6536_v43 = vor.u32 %v7711_v39, %v6535_v38  ;;  %v7880_v18 = vld [vmem:[%s9382_s0 + $0xd8] sm:$0xff] }
 0x28c   : > { %7987 = vmatpush.bf16.msrb.mxu3 %v9466_v1  ;;  %v6355_v1 = vld [vmem:[%s9380_s8 + $0x170] sm:$0xf] }
 0x28e   : > { %4812 = vmatpush.bf16.msrb.mxu2 %v7903_v44  ;;  %v7878_v44 = vld [vmem:[%s9382_s0 + $0xc8] sm:$0xff] }
 0x290   : > { %7988 = vmatpush.bf16.msrb.mxu3 %v9475_v4  ;;  %v6348_v4 = vor.u32 %v7665_v59, %v6347_v58  ;;  %v6595_v58 = vld [vmem:[%s9380_s8 + $0x350] sm:$0xf]  ;;  %v7726_v59 = vld [vmem:[%s9380_s8 + $0x388] sm:$0xf0] }
 0x294   : > { %7989 = vmatpush.bf16.msrb.mxu3 %v9482_v7  ;;  %v7889_v7 = vld [vmem:[%s9382_s0 + $0x120] sm:$0xff] }
 0x295   : > { %4632 = vmatpush.bf16.msrb.mxu0 %v7889_v7  ;;  %v7894_v7 = vld [vmem:[%s9382_s0 + $0x148] sm:$0xff] }
 0x297   : > { %4291 = vmatmul.bf16.gmra.mxu0 %v6288_v50  ;;  %4351 = vmatmul.bf16.gmra.mxu3 %v7008_v52  ;;  %v7725_v50 = vld [vmem:[%s9380_s8 + $0x380] sm:$0xf0]  ;;  %v7718_v52 = vld [vmem:[%s9380_s8 + $0x34c] sm:$0xf] }
 0x298   : > { %7990 = vmatpush.bf16.msra.mxu3 %v9424_v51  ;;  %4380 = vmatmul.bf16.gmra.mxu1 %v6292_v53  ;;  %v7845_v51 = vld [vmem:[%s9380_s8 + $0x740] sm:$0xf0]  ;;  %v7838_v53 = vld [vmem:[%s9380_s8 + $0x70c] sm:$0xf] }
 0x299   : > { %4469 = vmatmul.bf16.gmra.mxu2 %v6296_v55  ;;  %v7068_v6 = vor.u32 %v7845_v51, %v7067_v61  ;;  %4633 = vmatpush.bf16.msrb.mxu0 %v7888_v19  ;;  %v7069_v55 = vld [vmem:[%s9380_s8 + $0x744] sm:$0xf0]  ;;  %v6588_v61 = vor.u32 %v7725_v50, %v6587_v49 }
 0x29a   : > { %v7072_v51 = vor.u32 %v7838_v53, %v7069_v55  ;;  %v7877_v55 = vld [vmem:[%s9382_s0 + $0xc0] sm:$0xff] }
 0x29c   : > { %7991 = vmatpush.bf16.msra.mxu3 %v9433_v54  ;;  %v6352_v54 = vor.u32 %v7658_v62, %v6349_v0  ;;  %v6592_v62 = vor.u32 %v7718_v52, %v6589_v56  ;;  %v6596_v0 = vor.u32 %v7726_v59, %v6595_v58  ;;  %v6767_v56 = vld [vmem:[%s9380_s8 + $0x4b0] sm:$0xf]  ;;  %v7770_v58 = vld [vmem:[%s9380_s8 + $0x4e8] sm:$0xf0]  ;;  %v7763_v59 = vld [vmem:[%s9380_s8 + $0x4b4] sm:$0xf] }
 0x29d   : > { %4634 = vmatpush.bf16.msrb.mxu0 %v7887_v46  ;;  %v7893_v46 = vld [vmem:[%s9382_s0 + $0x140] sm:$0xff] }
 0x2a0   : > { %7992 = vmatpush.bf16.msra.mxu3 %v9442_v57  ;;  %v6356_v57 = vor.u32 %v7666_v3, %v6355_v1  ;;  %v7882_v1 = vld [vmem:[%s9382_s0 + $0xe8] sm:$0xff] }
 0x2a1   : > { %v7902_v3 = vld [vmem:[%s9382_s0 + $0x188] sm:$0xff] }
 0x2a2   : > { %4813 = vmatpush.bf16.msrb.mxu2 %v7902_v3 }
 0x2a4   : > { %7993 = vmatpush.bf16.msra.mxu3 %v9451_v60  ;;  %v7897_v60 = vld [vmem:[%s9382_s0 + $0x160] sm:$0xff] }
 0x2a5   : > { %4721 = vmatpush.bf16.msrb.mxu1 %v7897_v60  ;;  %v7733_v60 = vld [vmem:[%s9380_s8 + $0x3c4] sm:$0xf] }
 0x2a7   : > { %4296 = vmatmul.bf16.gmra.mxu0 %v6348_v4  ;;  %4356 = vmatmul.bf16.gmra.mxu3 %v7068_v6  ;;  %v7881_v4 = vld [vmem:[%s9382_s0 + $0xe0] sm:$0xff]  ;;  %v7886_v6 = vld [vmem:[%s9382_s0 + $0x108] sm:$0xff] }
 0x2a8   : > { %7994 = vmatpush.bf16.msra.mxu3 %v9460_v63  ;;  %4385 = vmatmul.bf16.gmra.mxu1 %v6352_v54  ;;  %v7793_v63 = vld [vmem:[%s9380_s8 + $0x5a4] sm:$0xf]  ;;  %v6647_v54 = vld [vmem:[%s9380_s8 + $0x3c0] sm:$0xf] }
 0x2a9   : > { %4474 = vmatmul.bf16.gmra.mxu2 %v6356_v57  ;;  %v6892_v16 = vor.u32 %v7793_v63, %v6889_v12  ;;  %4722 = vmatpush.bf16.msrb.mxu1 %v7896_v20  ;;  %v7740_v57 = vld [vmem:[%s9380_s8 + $0x3f8] sm:$0xf0]  ;;  %v6655_v63 = vld [vmem:[%s9380_s8 + $0x3c8] sm:$0xf]  ;;  %v7741_v12 = vld [vmem:[%s9380_s8 + $0x400] sm:$0xf0] }
 0x2aa   : > { %4635 = vmatpush.bf16.msrb.mxu0 %v7886_v6  ;;  %v6768_v6 = vor.u32 %v7770_v58, %v6767_v56  ;;  %v7615_v56 = vld [vmem:[%s9380_s8 + $0x14] sm:$0xf]  ;;  %v6185_v58 = vld [vmem:[%s9380_s8 + $0x4c] sm:$0xf0] }
 0x2ac   : > { %7995 = vmatpush.bf16.msra.mxu3 %v9469_v2  ;;  %v6408_v2 = vor.u32 %v7680_v10, %v6407_v9  ;;  %v6895_v9 = vld [vmem:[%s9380_s8 + $0x5a8] sm:$0xf]  ;;  %v7801_v10 = vld [vmem:[%s9380_s8 + $0x5e0] sm:$0xf0] }
 0x2ad   : > { %4723 = vmatpush.bf16.msrb.mxu1 %v7895_v47  ;;  %v6896_v14 = vor.u32 %v7801_v10, %v6895_v9 }
 0x2b0   : > { %7996 = vmatpush.bf16.msra.mxu3 %v9478_v5  ;;  %v6412_v5 = vor.u32 %v7673_v11, %v6409_v13  ;;  %v6649_v11 = vld [vmem:[%s9380_s8 + $0x3fc] sm:$0xf0]  ;;  %v6648_v13 = vor.u32 %v7740_v57, %v6647_v54 }
 0x2b1   : > { %4724 = vmatpush.bf16.msrb.mxu1 %v7894_v7 }
 0x2b4   : > { %7997 = vmatpush.bf16.msra.mxu3 %v9485_v8  ;;  %v6467_v8 = vld [vmem:[%s9380_s8 + $0x258] sm:$0xf] }
 0x2b5   : > { %v6468_v28 = vor.u32 %v7695_v21, %v6467_v8  ;;  %4725 = vmatpush.bf16.msrb.mxu1 %v7893_v46  ;;  %v7614_v46 = vld [vmem:[%s9380_s8 + $0xc] sm:$0xf] }
 0x2b7   : > { %4301 = vmatmul.bf16.gmra.mxu0 %v6408_v2  ;;  %4430 = vmatmul.bf16.vlgmr.msrb.gmra.mxu3 %v6892_v16  ;;  %v6652_v2 = vor.u32 %v7733_v60, %v6649_v11  ;;  %v6656_v16 = vor.u32 %v7741_v12, %v6655_v63  ;;  %v7916_v63 = vld [vmem:[%s9382_s0 + $0x1f8] sm:$0xff] }
 0x2b8   : > { %4390 = vmatmul.bf16.gmra.mxu1 %v6412_v5  ;;  %4540 = vmatpush.bf16.msrb.mxu3 %v7884_v45  ;;  %v7885_v45 = vld [vmem:[%s9382_s0 + $0x100] sm:$0xff] }
 0x2b9   : > { %4479 = vmatmul.bf16.gmra.mxu2 %v6416_v17  ;;  %4636 = vmatpush.bf16.msrb.mxu0 %v7885_v45 }
 0x2bc   : > { %4541 = vmatpush.bf16.msrb.mxu3 %v7883_v48 }
 0x2c0   : > { %4542 = vmatpush.bf16.msrb.mxu3 %v7882_v1  ;;  %v7771_v1 = vld [vmem:[%s9380_s8 + $0x4f0] sm:$0xf0] }
 0x2c4   : > { %4543 = vmatpush.bf16.msrb.mxu3 %v7881_v4 }
 0x2c7   : > { %4306 = vmatmul.bf16.gmra.mxu0 %v6468_v28  ;;  %4435 = vmatmul.bf16.gmra.mxu3 %v6952_v29  ;;  %v6955_v28 = vld [vmem:[%s9380_s8 + $0x620] sm:$0xf]  ;;  %v7816_v29 = vld [vmem:[%s9380_s8 + $0x658] sm:$0xf0] }
 0x2c8   : > { %4395 = vmatmul.bf16.gmra.mxu1 %v6472_v30  ;;  %4544 = vmatpush.bf16.msrb.mxu3 %v7880_v18  ;;  %v6709_v30 = vld [vmem:[%s9380_s8 + $0x474] sm:$0xf0]  ;;  %v6956_v36 = vor.u32 %v7816_v29, %v6955_v28 }
 0x2c9   : > { %4484 = vmatmul.bf16.gmra.mxu2 %v6476_v31  ;;  %v6715_v31 = vld [vmem:[%s9380_s8 + $0x440] sm:$0xf]  ;;  %v6712_v39 = vor.u32 %v7748_v27, %v6709_v30  ;;  %v7932_v18 = vld [vmem:[%s9382_s0 + $0x278] sm:$0xff]  ;;  %v7786_v27 = vld [vmem:[%s9380_s8 + $0x568] sm:$0xf0] }
 0x2ca   : > { %5074 = vmatpush.bf16.msra.mxu1 %v7932_v18  ;;  %v7629_v18 = vld [vmem:[%s9380_s8 + $0x84] sm:$0xf] }
 0x2cc   : > { %4545 = vmatpush.bf16.msrb.mxu3 %v7879_v24  ;;  %v7846_v24 = vld [vmem:[%s9380_s8 + $0x748] sm:$0xf0] }
 0x2d0   : > { %4546 = vmatpush.bf16.msrb.mxu3 %v7878_v44 }
 0x2d4   : > { %4547 = vmatpush.bf16.msrb.mxu3 %v7877_v55  ;;  %v7623_v55 = vld [vmem:[%s9380_s8 + $0x50] sm:$0xf0] }
 0x2d7   : > { %4311 = vmatmul.bf16.gmra.mxu0 %v6528_v40  ;;  %4440 = vmatmul.bf16.gmra.mxu3 %v7012_v41  ;;  %v6716_v40 = vor.u32 %v7756_v32, %v6715_v31 }
 0x2d8   : > { %4400 = vmatmul.bf16.gmra.mxu1 %v6532_v42 }
 0x2d9   : > { %4489 = vmatmul.bf16.gmra.mxu2 %v6536_v43  ;;  %v7901_v43 = vld [vmem:[%s9382_s0 + $0x180] sm:$0xff] }
 0x2da   : > { %4814 = vmatpush.bf16.msrb.mxu2 %v7901_v43 }
 0x2e7   : > { %4316 = vmatmul.bf16.gmra.mxu0 %v6588_v61  ;;  %4445 = vmatmul.bf16.gmra.mxu3 %v7072_v51  ;;  %v7015_v61 = vld [vmem:[%s9380_s8 + $0x698] sm:$0xf]  ;;  %v7831_v51 = vld [vmem:[%s9380_s8 + $0x6d0] sm:$0xf0] }
 0x2e8   : > { %4405 = vmatmul.bf16.gmra.mxu1 %v6592_v62  ;;  %v6769_v62 = vld [vmem:[%s9380_s8 + $0x4ec] sm:$0xf0]  ;;  %v7016_v54 = vor.u32 %v7831_v51, %v7015_v61 }
 0x2e9   : > { %4494 = vmatmul.bf16.gmra.mxu2 %v6596_v0  ;;  %v6775_v0 = vld [vmem:[%s9380_s8 + $0x4b8] sm:$0xf]  ;;  %v6772_v60 = vor.u32 %v7763_v59, %v6769_v62 }
 0x2ea   : > { %v6776_v9 = vor.u32 %v7771_v1, %v6775_v0 }
 0x2f4   : > { %v4282_v15 = vpop.f32.mrf.mxu0 }
 0x2f5   : > { %v4371_v5 = vpop.f32.mrf.mxu1 }
 0x2f6   : > { %v4372_v17 = vadd.f32 %v4371_v5, %v4282_v15  ;;  %v7940_v5 = vld [vmem:[%s9382_s0 + $0x2b8] sm:$0xff] }
 0x2f7   : > { %4321 = vmatmul.bf16.gmra.mxu0 %v6648_v13  ;;  %4519 = vmatmul.bf16.vlgmr.msra.gmra.mxu3 %v6896_v14 }
 0x2f8   : > { %4410 = vmatmul.bf16.gmra.mxu1 %v6652_v2  ;;  %4896 = vmatpush.bf16.msra.mxu3 %v7916_v63 }
 0x2f9   : > { %4499 = vmatmul.bf16.gmra.mxu2 %v6656_v16 }
 0x2fa   : > { %v9605_v19 = vpop.f32.mrf.mxu3  ;;  %5163 = vmatpush.bf16.msra.mxu2 %v7940_v5  ;;  %v7923_v5 = vld [vmem:[%s9382_s0 + $0x230] sm:$0xff] }
 0x2fc   : > { %v4460_v20 = vpop.f32.mrf.mxu2  ;;  %v4284_v21 = vpop.f32.mrf.mxu0 }
 0x2fd   : > { %v9607_v8 = vadd.f32 %v4460_v20, %v4372_v17  ;;  %v4373_v22 = vpop.f32.mrf.mxu1  ;;  %v7924_v17 = vld [vmem:[%s9382_s0 + $0x238] sm:$0xff]  ;;  %v6827_v20 = vld [vmem:[%s9380_s8 + $0x528] sm:$0xf] }
 0x2fe   : > { %v4374_v23 = vadd.f32 %v4373_v22, %v4284_v21  ;;  %v7785_v21 = vld [vmem:[%s9380_s8 + $0x560] sm:$0xf0]  ;;  %v7778_v22 = vld [vmem:[%s9380_s8 + $0x52c] sm:$0xf]  ;;  %4985 = vmatpush.bf16.msra.mxu0 %v7924_v17  ;;  %v7931_v17 = vld [vmem:[%s9382_s0 + $0x270] sm:$0xff] }
 0x2ff   : > { %v6828_v30 = vor.u32 %v7785_v21, %v6827_v20  ;;  %v6237_v20 = vld [vmem:[%s9380_s8 + $0xbc] sm:$0xf0]  ;;  %v6243_v21 = vld [vmem:[%s9380_s8 + $0x88] sm:$0xf]  ;;  %5075 = vmatpush.bf16.msra.mxu1 %v7931_v17 }
 0x302   : > { %v9618_v33 = vpop.f32.mrf.mxu3  ;;  %4986 = vmatpush.bf16.msra.mxu0 %v7923_v5 }
 0x304   : > { %v4462_v34 = vpop.f32.mrf.mxu2  ;;  %v4287_v38 = vpop.f32.mrf.mxu0 }
 0x305   : > { %v9620_v37 = vadd.f32 %v4462_v34, %v4374_v23  ;;  %v4376_v41 = vpop.f32.mrf.mxu1  ;;  %v7075_v23 = vld [vmem:[%s9380_s8 + $0x710] sm:$0xf] }
 0x306   : > { %v4377_v42 = vadd.f32 %v4376_v41, %v4287_v38  ;;  %v7076_v31 = vor.u32 %v7846_v24, %v7075_v23  ;;  %v6251_v23 = vld [vmem:[%s9380_s8 + $0x90] sm:$0xf]  ;;  %v7630_v24 = vld [vmem:[%s9380_s8 + $0x8c] sm:$0xf] }
 0x307   : > { %4326 = vmatmul.bf16.gmra.mxu0 %v6708_v35  ;;  %4524 = vmatmul.bf16.gmra.mxu3 %v6956_v36  ;;  %v6832_v35 = vor.u32 %v7778_v22, %v6829_v25  ;;  %v6836_v36 = vor.u32 %v7786_v27, %v6835_v26  ;;  %v7637_v22 = vld [vmem:[%s9380_s8 + $0xc0] sm:$0xf0]  ;;  %v6245_v25 = vld [vmem:[%s9380_s8 + $0xc4] sm:$0xf0] }
 0x308   : > { %4415 = vmatmul.bf16.gmra.mxu1 %v6712_v39 }
 0x309   : > { %4504 = vmatmul.bf16.gmra.mxu2 %v6716_v40 }
 0x30a   : > { %v9626_v47 = vpop.f32.mrf.mxu3 }
 0x30c   : > { %v4465_v48 = vpop.f32.mrf.mxu2  ;;  %v4289_v50 = vpop.f32.mrf.mxu0 }
 0x30d   : > { %v9628_v49 = vadd.f32 %v4465_v48, %v4377_v42  ;;  %v4378_v52 = vpop.f32.mrf.mxu1  ;;  %v6177_v48 = vld [vmem:[%s9380_s8 + $0x44] sm:$0xf0] }
 0x30e   : > { %v4379_v53 = vadd.f32 %v4378_v52, %v4289_v50  ;;  %v6183_v50 = vld [vmem:[%s9380_s8 + $0x10] sm:$0xf]  ;;  %v7622_v52 = vld [vmem:[%s9380_s8 + $0x48] sm:$0xf0]  ;;  %v6180_v51 = vor.u32 %v7614_v46, %v6177_v48 }
 0x30f   : > { %v6184_v62 = vor.u32 %v7622_v52, %v6183_v50  ;;  %v7644_v52 = vld [vmem:[%s9380_s8 + $0xfc] sm:$0xf] }
 0x312   : > { %v9639_v3 = vpop.f32.mrf.mxu3 }
 0x314   : > { %v4467_v4 = vpop.f32.mrf.mxu2  ;;  %v4292_v7 = vpop.f32.mrf.mxu0 }
 0x315   : > { %v9641_v57 = vadd.f32 %v4467_v4, %v4379_v53  ;;  %v4381_v10 = vpop.f32.mrf.mxu1  ;;  %v6191_v53 = vld [vmem:[%s9380_s8 + $0x18] sm:$0xf] }
 0x316   : > { %v4382_v11 = vadd.f32 %v4381_v10, %v4292_v7  ;;  %v6192_v4 = vor.u32 %v7623_v55, %v6191_v53  ;;  %v6297_v53 = vld [vmem:[%s9380_s8 + $0x134] sm:$0xf0]  ;;  %v6303_v55 = vld [vmem:[%s9380_s8 + $0x100] sm:$0xf] }
 0x317   : > { %4331 = vmatmul.bf16.gmra.mxu0 %v6768_v6  ;;  %4529 = vmatmul.bf16.gmra.mxu3 %v7016_v54  ;;  %v6188_v6 = vor.u32 %v7615_v56, %v6185_v58  ;;  %v7652_v56 = vld [vmem:[%s9380_s8 + $0x138] sm:$0xf0]  ;;  %v6311_v58 = vld [vmem:[%s9380_s8 + $0x108] sm:$0xf] }
 0x318   : > { %4420 = vmatmul.bf16.gmra.mxu1 %v6772_v60  ;;  %v7915_v60 = vld [vmem:[%s9382_s0 + $0x1f0] sm:$0xff] }
 0x319   : > { %4509 = vmatmul.bf16.gmra.mxu2 %v6776_v9  ;;  %4897 = vmatpush.bf16.msra.mxu3 %v7915_v60 }
 0x31a   : > { %v9644_v12 = vpop.f32.mrf.mxu3 }
 0x31c   : > { %v4470_v13 = vpop.f32.mrf.mxu2  ;;  %v4294_v15 = vpop.f32.mrf.mxu0 }
 0x31d   : > { %v9646_v14 = vadd.f32 %v4470_v13, %v4382_v11  ;;  %v4383_v2 = vpop.f32.mrf.mxu1 }
 0x31e   : > { %v4384_v16 = vadd.f32 %v4383_v2, %v4294_v15 }
 0x322   : > { %v9659_v28 = vpop.f32.mrf.mxu3 }
 0x324   : > { %v4472_v29 = vpop.f32.mrf.mxu2  ;;  %v4297_v34 = vpop.f32.mrf.mxu0 }
 0x325   : > { %v9661_v32 = vadd.f32 %v4472_v29, %v4384_v16  ;;  %v4386_v38 = vpop.f32.mrf.mxu1  ;;  %v7939_v16 = vld [vmem:[%s9382_s0 + $0x2b0] sm:$0xff] }
 0x326   : > { %v4387_v39 = vadd.f32 %v4386_v38, %v4297_v34  ;;  %5164 = vmatpush.bf16.msra.mxu2 %v7939_v16  ;;  %v6248_v38 = vor.u32 %v7630_v24, %v6245_v25  ;;  %v7659_v24 = vld [vmem:[%s9380_s8 + $0x174] sm:$0xf]  ;;  %v6357_v25 = vld [vmem:[%s9380_s8 + $0x1ac] sm:$0xf0] }
 0x327   : > { %4336 = vmatmul.bf16.gmra.mxu0 %v6828_v30  ;;  %4534 = vmatmul.bf16.gmra.mxu3 %v7076_v31  ;;  %v6240_v30 = vor.u32 %v7629_v18, %v6237_v20  ;;  %v6244_v31 = vor.u32 %v7637_v22, %v6243_v21  ;;  %v7938_v22 = vld [vmem:[%s9382_s0 + $0x2a8] sm:$0xff] }
 0x328   : > { %4425 = vmatmul.bf16.gmra.mxu1 %v6832_v35 }
 0x329   : > { %4514 = vmatmul.bf16.gmra.mxu2 %v6836_v36 }
 0x32a   : > { %v9663_v40 = vpop.f32.mrf.mxu3  ;;  %5165 = vmatpush.bf16.msra.mxu2 %v7938_v22 }
 0x32c   : > { %v4475_v41 = vpop.f32.mrf.mxu2  ;;  %v4299_v43 = vpop.f32.mrf.mxu0 }
 0x32d   : > { %v9665_v42 = vadd.f32 %v4475_v41, %v4387_v39  ;;  %v4388_v44 = vpop.f32.mrf.mxu1 }
 0x32e   : > { %v4389_v45 = vadd.f32 %v4388_v44, %v4299_v43 }
 0x332   : > { %v9675_v59 = vpop.f32.mrf.mxu3 }
 0x334   : > { %v4477_v61 = vpop.f32.mrf.mxu2  ;;  %v4302_v1 = vpop.f32.mrf.mxu0 }
 0x335   : > { %v9677_v0 = vadd.f32 %v4477_v61, %v4389_v45  ;;  %v4391_v54 = vpop.f32.mrf.mxu1  ;;  %v7653_v61 = vld [vmem:[%s9380_s8 + $0x140] sm:$0xf0] }
 0x336   : > { %v4392_v7 = vadd.f32 %v4391_v54, %v4302_v1  ;;  %v6304_v54 = vor.u32 %v7652_v56, %v6303_v55 }
 0x337   : > { %4548 = vmatmul.bf16.vlgmr.msrb.gmra.mxu3 %v6180_v51  ;;  %4637 = vmatmul.bf16.vlgmr.msrb.gmra.mxu0 %v6184_v62  ;;  %v7645_v51 = vld [vmem:[%s9380_s8 + $0x104] sm:$0xf]  ;;  %v6305_v62 = vld [vmem:[%s9380_s8 + $0x13c] sm:$0xf0] }
 0x338   : > { %4726 = vmatmul.bf16.vlgmr.msrb.gmra.mxu1 %v6188_v6  ;;  %v6300_v6 = vor.u32 %v7644_v52, %v6297_v53 }
 0x339   : > { %4815 = vmatmul.bf16.vlgmr.msrb.gmra.mxu2 %v6192_v4 }
 0x33a   : > { %v4431_v9 = vpop.f32.mrf.mxu3 }
 0x33b   : > { %v9681_v10 = vadd.f32 %v4431_v9, %v9605_v19  ;;  %v7638_v19 = vld [vmem:[%s9380_s8 + $0xc8] sm:$0xf0]  ;;  %v6312_v9 = vor.u32 %v7653_v61, %v6311_v58 }
 0x33c   : > { %v4480_v11 = vpop.f32.mrf.mxu2  ;;  %v4304_v13 = vpop.f32.mrf.mxu0  ;;  %v6252_v36 = vor.u32 %v7638_v19, %v6251_v23  ;;  %v7922_v23 = vld [vmem:[%s9382_s0 + $0x228] sm:$0xff] }
 0x33d   : > { %v9683_v63 = vadd.f32 %v4480_v11, %v4392_v7  ;;  %v4393_v15 = vpop.f32.mrf.mxu1  ;;  %v6308_v11 = vor.u32 %v7645_v51, %v6305_v62  ;;  %v7930_v19 = vld [vmem:[%s9382_s0 + $0x268] sm:$0xff]  ;;  %4987 = vmatpush.bf16.msra.mxu0 %v7922_v23 }
 0x33e   : > { %v4394_v2 = vadd.f32 %v4393_v15, %v4304_v13  ;;  %5076 = vmatpush.bf16.msra.mxu1 %v7930_v19 }
 0x342   : > { %v4433_v26 = vpop.f32.mrf.mxu3 }
 0x343   : > { %v9697_v27 = vadd.f32 %v4433_v26, %v9618_v33  ;;  %v6363_v26 = vld [vmem:[%s9380_s8 + $0x178] sm:$0xf] }
 0x344   : > { %v4482_v29 = vpop.f32.mrf.mxu2  ;;  %v4307_v35 = vpop.f32.mrf.mxu0 }
 0x345   : > { %v9699_v34 = vadd.f32 %v4482_v29, %v4394_v2  ;;  %v4396_v39 = vpop.f32.mrf.mxu1  ;;  %v7667_v29 = vld [vmem:[%s9380_s8 + $0x1b0] sm:$0xf0] }
 0x346   : > { %v4397_v41 = vadd.f32 %v4396_v39, %v4307_v35  ;;  %v6365_v35 = vld [vmem:[%s9380_s8 + $0x1b4] sm:$0xf0] }
 0x347   : > { %4553 = vmatmul.bf16.gmra.mxu3 %v6240_v30  ;;  %4642 = vmatmul.bf16.gmra.mxu0 %v6244_v31  ;;  %v6371_v30 = vld [vmem:[%s9380_s8 + $0x180] sm:$0xf]  ;;  %v7660_v31 = vld [vmem:[%s9380_s8 + $0x17c] sm:$0xf] }
 0x348   : > { %4731 = vmatmul.bf16.gmra.mxu1 %v6248_v38 }
 0x349   : > { %4820 = vmatmul.bf16.gmra.mxu2 %v6252_v36 }
 0x34a   : > { %v4436_v33 = vpop.f32.mrf.mxu3 }
 0x34b   : > { %v9702_v43 = vadd.f32 %v4436_v33, %v9626_v47  ;;  %v6364_v33 = vor.u32 %v7667_v29, %v6363_v26 }
 0x34c   : > { %v4485_v44 = vpop.f32.mrf.mxu2  ;;  %v4309_v46 = vpop.f32.mrf.mxu0 }
 0x34d   : > { %v9704_v45 = vadd.f32 %v4485_v44, %v4397_v41  ;;  %v4398_v48 = vpop.f32.mrf.mxu1  ;;  %v6360_v41 = vor.u32 %v7659_v24, %v6357_v25 }
 0x34e   : > { %v4399_v50 = vadd.f32 %v4398_v48, %v4309_v46 }
 0x352   : > { %v4438_v1 = vpop.f32.mrf.mxu3 }
 0x353   : > { %v9715_v4 = vadd.f32 %v4438_v1, %v9639_v3  ;;  %v7914_v3 = vld [vmem:[%s9382_s0 + $0x1e8] sm:$0xff] }
 0x354   : > { %v4487_v47 = vpop.f32.mrf.mxu2  ;;  %v4312_v60 = vpop.f32.mrf.mxu0  ;;  %4898 = vmatpush.bf16.msra.mxu3 %v7914_v3  ;;  %v7674_v1 = vld [vmem:[%s9380_s8 + $0x1ec] sm:$0xf] }
 0x355   : > { %v9717_v7 = vadd.f32 %v4487_v47, %v4399_v50  ;;  %v4401_v13 = vpop.f32.mrf.mxu1  ;;  %v6368_v50 = vor.u32 %v7660_v31, %v6365_v35  ;;  %v6417_v47 = vld [vmem:[%s9380_s8 + $0x224] sm:$0xf0]  ;;  %v7937_v35 = vld [vmem:[%s9382_s0 + $0x2a0] sm:$0xff] }
 0x356   : > { %v4402_v15 = vadd.f32 %v4401_v13, %v4312_v60  ;;  %v6431_v60 = vld [vmem:[%s9380_s8 + $0x1f8] sm:$0xf]  ;;  %v6425_v13 = vld [vmem:[%s9380_s8 + $0x22c] sm:$0xf0]  ;;  %5166 = vmatpush.bf16.msra.mxu2 %v7937_v35 }
 0x357   : > { %4558 = vmatmul.bf16.gmra.mxu3 %v6300_v6  ;;  %4647 = vmatmul.bf16.gmra.mxu0 %v6304_v54  ;;  %v6423_v6 = vld [vmem:[%s9380_s8 + $0x1f0] sm:$0xf]  ;;  %v7682_v54 = vld [vmem:[%s9380_s8 + $0x228] sm:$0xf0] }
 0x358   : > { %4736 = vmatmul.bf16.gmra.mxu1 %v6308_v11  ;;  %v7675_v11 = vld [vmem:[%s9380_s8 + $0x1f4] sm:$0xf] }
 0x359   : > { %4825 = vmatmul.bf16.gmra.mxu2 %v6312_v9  ;;  %v7683_v9 = vld [vmem:[%s9380_s8 + $0x230] sm:$0xf0]  ;;  %v6428_v22 = vor.u32 %v7675_v11, %v6425_v13 }
 0x35a   : > { %v4441_v2 = vpop.f32.mrf.mxu3 }
 0x35b   : > { %v9721_v16 = vadd.f32 %v4441_v2, %v9644_v12  ;;  %v7668_v12 = vld [vmem:[%s9380_s8 + $0x1b8] sm:$0xf0]  ;;  %v6420_v2 = vor.u32 %v7674_v1, %v6417_v47 }
 0x35c   : > { %v4490_v5 = vpop.f32.mrf.mxu2  ;;  %v4314_v18 = vpop.f32.mrf.mxu0  ;;  %v6372_v48 = vor.u32 %v7668_v12, %v6371_v30 }
 0x35d   : > { %v9723_v17 = vadd.f32 %v4490_v5, %v4402_v15  ;;  %v4403_v20 = vpop.f32.mrf.mxu1  ;;  %v6424_v5 = vor.u32 %v7682_v54, %v6423_v6 }
 0x35e   : > { %v4404_v21 = vadd.f32 %v4403_v20, %v4314_v18 }
 0x362   : > { %v4443_v36 = vpop.f32.mrf.mxu3 }
 0x363   : > { %v9737_v38 = vadd.f32 %v4443_v36, %v9659_v28  ;;  %v7921_v36 = vld [vmem:[%s9382_s0 + $0x220] sm:$0xff] }
 0x364   : > { %v4492_v39 = vpop.f32.mrf.mxu2  ;;  %v4317_v46 = vpop.f32.mrf.mxu0  ;;  %4988 = vmatpush.bf16.msra.mxu0 %v7921_v36 }
 0x365   : > { %v9739_v44 = vadd.f32 %v4492_v39, %v4404_v21  ;;  %v4406_v52 = vpop.f32.mrf.mxu1  ;;  %v6432_v21 = vor.u32 %v7683_v9, %v6431_v60  ;;  %v7929_v39 = vld [vmem:[%s9382_s0 + $0x260] sm:$0xff] }
 0x366   : > { %v4407_v53 = vadd.f32 %v4406_v52, %v4317_v46  ;;  %v6483_v46 = vld [vmem:[%s9380_s8 + $0x268] sm:$0xf]  ;;  %v7698_v52 = vld [vmem:[%s9380_s8 + $0x2a8] sm:$0xf0]  ;;  %5077 = vmatpush.bf16.msra.mxu1 %v7929_v39 }
 0x367   : > { %4563 = vmatmul.bf16.gmra.mxu3 %v6360_v41  ;;  %4652 = vmatmul.bf16.gmra.mxu0 %v6364_v33  ;;  %v7689_v41 = vld [vmem:[%s9380_s8 + $0x264] sm:$0xf]  ;;  %v6477_v33 = vld [vmem:[%s9380_s8 + $0x29c] sm:$0xf0] }
 0x368   : > { %4741 = vmatmul.bf16.gmra.mxu1 %v6368_v50  ;;  %v6491_v50 = vld [vmem:[%s9380_s8 + $0x270] sm:$0xf] }
 0x369   : > { %4830 = vmatmul.bf16.gmra.mxu2 %v6372_v48  ;;  %v7697_v48 = vld [vmem:[%s9380_s8 + $0x2a0] sm:$0xf0]  ;;  %v6492_v6 = vor.u32 %v7698_v52, %v6491_v50 }
 0x36a   : > { %v4446_v28 = vpop.f32.mrf.mxu3 }
 0x36b   : > { %v9742_v55 = vadd.f32 %v4446_v28, %v9663_v40 }
 0x36c   : > { %v4495_v56 = vpop.f32.mrf.mxu2  ;;  %v4319_v61 = vpop.f32.mrf.mxu0 }
 0x36d   : > { %v9744_v58 = vadd.f32 %v4495_v56, %v4407_v53  ;;  %v4408_v51 = vpop.f32.mrf.mxu1  ;;  %v6485_v53 = vld [vmem:[%s9380_s8 + $0x2a4] sm:$0xf0] }
 0x36e   : > { %v4409_v62 = vadd.f32 %v4408_v51, %v4319_v61  ;;  %v6480_v51 = vor.u32 %v7689_v41, %v6477_v33 }
 0x372   : > { %v4448_v15 = vpop.f32.mrf.mxu3 }
 0x373   : > { %v9755_v3 = vadd.f32 %v4448_v15, %v9675_v59  ;;  %v7913_v59 = vld [vmem:[%s9382_s0 + $0x1e0] sm:$0xff] }
 0x374   : > { %v4497_v40 = vpop.f32.mrf.mxu2  ;;  %v4322_v20 = vpop.f32.mrf.mxu0  ;;  %4899 = vmatpush.bf16.msra.mxu3 %v7913_v59  ;;  %v7713_v59 = vld [vmem:[%s9380_s8 + $0x320] sm:$0xf0] }
 0x375   : > { %v9757_v18 = vadd.f32 %v4497_v40, %v4409_v62  ;;  %v4411_v23 = vpop.f32.mrf.mxu1  ;;  %v6484_v62 = vor.u32 %v7697_v48, %v6483_v46 }
 0x376   : > { %v4412_v19 = vadd.f32 %v4411_v23, %v4322_v20  ;;  %v7704_v20 = vld [vmem:[%s9380_s8 + $0x2dc] sm:$0xf] }
 0x377   : > { %4568 = vmatmul.bf16.gmra.mxu3 %v6420_v2  ;;  %4657 = vmatmul.bf16.gmra.mxu0 %v6424_v5  ;;  %v7712_v23 = vld [vmem:[%s9380_s8 + $0x318] sm:$0xf0] }
 0x378   : > { %4746 = vmatmul.bf16.gmra.mxu1 %v6428_v22  ;;  %v6543_v22 = vld [vmem:[%s9380_s8 + $0x2e0] sm:$0xf] }
 0x379   : > { %4835 = vmatmul.bf16.gmra.mxu2 %v6432_v21  ;;  %v6537_v21 = vld [vmem:[%s9380_s8 + $0x314] sm:$0xf0]  ;;  %v6544_v35 = vor.u32 %v7712_v23, %v6543_v22 }
 0x37a   : > { %v4520_v24 = vpop.f32.mrf.mxu3 }
 0x37b   : > { %v9761_v26 = vadd.f32 %v4520_v24, %v9681_v10  ;;  %v7690_v10 = vld [vmem:[%s9380_s8 + $0x26c] sm:$0xf]  ;;  %v7705_v24 = vld [vmem:[%s9380_s8 + $0x2e4] sm:$0xf] }
 0x37c   : > { %v4500_v25 = vpop.f32.mrf.mxu2  ;;  %v4324_v30 = vpop.f32.mrf.mxu0  ;;  %v6488_v54 = vor.u32 %v7690_v10, %v6485_v53 }
 0x37d   : > { %v9763_v29 = vadd.f32 %v4500_v25, %v4412_v19  ;;  %v4413_v12 = vpop.f32.mrf.mxu1  ;;  %v6551_v19 = vld [vmem:[%s9380_s8 + $0x2e8] sm:$0xf]  ;;  %v6545_v25 = vld [vmem:[%s9380_s8 + $0x31c] sm:$0xf0] }
 0x37e   : > { %v4414_v31 = vadd.f32 %v4413_v12, %v4324_v30  ;;  %v6552_v41 = vor.u32 %v7713_v59, %v6551_v19  ;;  %v6548_v33 = vor.u32 %v7705_v24, %v6545_v25 }
 0x382   : > { %v4522_v28 = vpop.f32.mrf.mxu3 }
 0x383   : > { %v9777_v61 = vadd.f32 %v4522_v28, %v9697_v27 }
 0x384   : > { %v4502_v56 = vpop.f32.mrf.mxu2  ;;  %v4327_v47 = vpop.f32.mrf.mxu0 }
 0x385   : > { %v9779_v1 = vadd.f32 %v4502_v56, %v4414_v31  ;;  %v4416_v60 = vpop.f32.mrf.mxu1 }
 0x386   : > { %v4417_v9 = vadd.f32 %v4416_v60, %v4327_v47  ;;  %v6597_v47 = vld [vmem:[%s9380_s8 + $0x38c] sm:$0xf0]  ;;  %v6611_v60 = vld [vmem:[%s9380_s8 + $0x360] sm:$0xf] }
 0x387   : > { %4573 = vmatmul.bf16.gmra.mxu3 %v6480_v51  ;;  %4662 = vmatmul.bf16.gmra.mxu0 %v6484_v62  ;;  %v7719_v62 = vld [vmem:[%s9380_s8 + $0x354] sm:$0xf] }
 0x388   : > { %4751 = vmatmul.bf16.gmra.mxu1 %v6488_v54  ;;  %v7727_v54 = vld [vmem:[%s9380_s8 + $0x390] sm:$0xf0]  ;;  %v6600_v22 = vor.u32 %v7719_v62, %v6597_v47  ;;  %v6665_v62 = vld [vmem:[%s9380_s8 + $0x40c] sm:$0xf0] }
 0x389   : > { %4840 = vmatmul.bf16.gmra.mxu2 %v6492_v6  ;;  %v6603_v6 = vld [vmem:[%s9380_s8 + $0x358] sm:$0xf] }
 0x38a   : > { %v4525_v27 = vpop.f32.mrf.mxu3  ;;  %v6604_v23 = vor.u32 %v7727_v54, %v6603_v6 }
 0x38b   : > { %v9782_v13 = vadd.f32 %v4525_v27, %v9702_v43  ;;  %v6540_v43 = vor.u32 %v7704_v20, %v6537_v21  ;;  %v7720_v27 = vld [vmem:[%s9380_s8 + $0x35c] sm:$0xf] }
 0x38c   : > { %v4505_v11 = vpop.f32.mrf.mxu2  ;;  %v4329_v40 = vpop.f32.mrf.mxu0 }
 0x38d   : > { %v9784_v15 = vadd.f32 %v4505_v11, %v4417_v9  ;;  %v4418_v2 = vpop.f32.mrf.mxu1  ;;  %v7728_v9 = vld [vmem:[%s9380_s8 + $0x398] sm:$0xf0]  ;;  %v6605_v11 = vld [vmem:[%s9380_s8 + $0x394] sm:$0xf0] }
 0x38e   : > { %v4419_v5 = vadd.f32 %v4418_v2, %v4329_v40  ;;  %v7936_v40 = vld [vmem:[%s9382_s0 + $0x298] sm:$0xff]  ;;  %v6612_v24 = vor.u32 %v7728_v9, %v6611_v60  ;;  %v6608_v25 = vor.u32 %v7720_v27, %v6605_v11 }
 0x38f   : > { %v7920_v2 = vld [vmem:[%s9382_s0 + $0x218] sm:$0xff]  ;;  %5167 = vmatpush.bf16.msra.mxu2 %v7936_v40 }
 0x390   : > { %4989 = vmatpush.bf16.msra.mxu0 %v7920_v2 }
 0x392   : > { %v4527_v30 = vpop.f32.mrf.mxu3 }
 0x393   : > { %v9795_v31 = vadd.f32 %v4527_v30, %v9715_v4  ;;  %v7912_v4 = vld [vmem:[%s9382_s0 + $0x1d8] sm:$0xff] }
 0x394   : > { %v4507_v12 = vpop.f32.mrf.mxu2  ;;  %v4332_v39 = vpop.f32.mrf.mxu0  ;;  %4900 = vmatpush.bf16.msra.mxu3 %v7912_v4  ;;  %v6657_v4 = vld [vmem:[%s9380_s8 + $0x404] sm:$0xf0] }
 0x395   : > { %v9797_v36 = vadd.f32 %v4507_v12, %v4419_v5  ;;  %v4421_v46 = vpop.f32.mrf.mxu1  ;;  %v7928_v5 = vld [vmem:[%s9382_s0 + $0x258] sm:$0xff] }
 0x396   : > { %v4422_v48 = vadd.f32 %v4421_v46, %v4332_v39  ;;  %5078 = vmatpush.bf16.msra.mxu1 %v7928_v5 }
 0x397   : > { %4578 = vmatmul.bf16.gmra.mxu3 %v6540_v43  ;;  %4667 = vmatmul.bf16.gmra.mxu0 %v6544_v35 }
 0x398   : > { %4756 = vmatmul.bf16.gmra.mxu1 %v6548_v33 }
 0x399   : > { %4845 = vmatmul.bf16.gmra.mxu2 %v6552_v41 }
 0x39a   : > { %v4530_v50 = vpop.f32.mrf.mxu3 }
 0x39b   : > { %v9801_v10 = vadd.f32 %v4530_v50, %v9721_v16  ;;  %v6663_v50 = vld [vmem:[%s9380_s8 + $0x3d0] sm:$0xf] }
 0x39c   : > { %v4510_v52 = vpop.f32.mrf.mxu2  ;;  %v4334_v28 = vpop.f32.mrf.mxu0 }
 0x39d   : > { %v9803_v53 = vadd.f32 %v4510_v52, %v4422_v48  ;;  %v4423_v56 = vpop.f32.mrf.mxu1  ;;  %v7734_v48 = vld [vmem:[%s9380_s8 + $0x3cc] sm:$0xf] }
 0x39e   : > { %v4424_v51 = vadd.f32 %v4423_v56, %v4334_v28  ;;  %v7742_v52 = vld [vmem:[%s9380_s8 + $0x408] sm:$0xf0]  ;;  %v6671_v28 = vld [vmem:[%s9380_s8 + $0x3d8] sm:$0xf]  ;;  %v7743_v56 = vld [vmem:[%s9380_s8 + $0x410] sm:$0xf0] }
 0x39f   : > { %v6664_v60 = vor.u32 %v7742_v52, %v6663_v50  ;;  %v6672_v11 = vor.u32 %v7743_v56, %v6671_v28  ;;  %v7927_v50 = vld [vmem:[%s9382_s0 + $0x250] sm:$0xff] }
 0x3a0   : > { %5079 = vmatpush.bf16.msra.mxu1 %v7927_v50 }
 0x3a2   : > { %v4532_v20 = vpop.f32.mrf.mxu3 }
 0x3a3   : > { %v9817_v16 = vadd.f32 %v4532_v20, %v9737_v38 }
 0x3a4   : > { %v4512_v21 = vpop.f32.mrf.mxu2  ;;  %v4337_v59 = vpop.f32.mrf.mxu0 }
 0x3a5   : > { %v9819_v19 = vadd.f32 %v4512_v21, %v4424_v51  ;;  %v4426_v30 = vpop.f32.mrf.mxu1  ;;  %v7735_v51 = vld [vmem:[%s9380_s8 + $0x3d4] sm:$0xf] }
 0x3a6   : > { %v4427_v12 = vadd.f32 %v4426_v30, %v4337_v59  ;;  %v6668_v40 = vor.u32 %v7735_v51, %v6665_v62 }
 0x3a7   : > { %4583 = vmatmul.bf16.gmra.mxu3 %v6600_v22  ;;  %4672 = vmatmul.bf16.gmra.mxu0 %v6604_v23 }
 0x3a8   : > { %4761 = vmatmul.bf16.gmra.mxu1 %v6608_v25  ;;  %v6717_v25 = vld [vmem:[%s9380_s8 + $0x47c] sm:$0xf0] }
 0x3a9   : > { %4850 = vmatmul.bf16.gmra.mxu2 %v6612_v24  ;;  %v7749_v24 = vld [vmem:[%s9380_s8 + $0x444] sm:$0xf] }
 0x3aa   : > { %v4535_v38 = vpop.f32.mrf.mxu3  ;;  %v6720_v51 = vor.u32 %v7749_v24, %v6717_v25  ;;  %v6783_v24 = vld [vmem:[%s9380_s8 + $0x4c0] sm:$0xf]  ;;  %v7772_v25 = vld [vmem:[%s9380_s8 + $0x4f8] sm:$0xf0] }
 0x3ab   : > { %v9822_v35 = vadd.f32 %v4535_v38, %v9742_v55  ;;  %v6660_v55 = vor.u32 %v7734_v48, %v6657_v4  ;;  %v7757_v38 = vld [vmem:[%s9380_s8 + $0x480] sm:$0xf0]  ;;  %v7919_v4 = vld [vmem:[%s9382_s0 + $0x210] sm:$0xff] }
 0x3ac   : > { %v4515_v43 = vpop.f32.mrf.mxu2  ;;  %v4339_v41 = vpop.f32.mrf.mxu0  ;;  %4990 = vmatpush.bf16.msra.mxu0 %v7919_v4  ;;  %v6784_v4 = vor.u32 %v7772_v25, %v6783_v24  ;;  %v6845_v24 = vld [vmem:[%s9380_s8 + $0x574] sm:$0xf0] }
 0x3ad   : > { %v9824_v39 = vadd.f32 %v4515_v43, %v4427_v12  ;;  %v4428_v33 = vpop.f32.mrf.mxu1  ;;  %v6723_v12 = vld [vmem:[%s9380_s8 + $0x448] sm:$0xf]  ;;  %v6731_v43 = vld [vmem:[%s9380_s8 + $0x450] sm:$0xf] }
 0x3ae   : > { %v4429_v46 = vadd.f32 %v4428_v33, %v4339_v41  ;;  %v7758_v41 = vld [vmem:[%s9380_s8 + $0x488] sm:$0xf0]  ;;  %v6724_v62 = vor.u32 %v7757_v38, %v6723_v12  ;;  %v7773_v38 = vld [vmem:[%s9380_s8 + $0x500] sm:$0xf0] }
 0x3af   : > { %v7750_v33 = vld [vmem:[%s9380_s8 + $0x44c] sm:$0xf] }
 0x3b2   : > { %v4537_v47 = vpop.f32.mrf.mxu3 }
 0x3b3   : > { %v9835_v54 = vadd.f32 %v4537_v47, %v9755_v3  ;;  %v7911_v3 = vld [vmem:[%s9382_s0 + $0x1d0] sm:$0xff] }
 0x3b4   : > { %v4517_v6 = vpop.f32.mrf.mxu2  ;;  %v4638_v27 = vpop.f32.mrf.mxu0  ;;  %4901 = vmatpush.bf16.msra.mxu3 %v7911_v3 }
 0x3b5   : > { %v9837_v9 = vadd.f32 %v4517_v6, %v4429_v46  ;;  %v4727_v2 = vpop.f32.mrf.mxu1  ;;  %v6725_v46 = vld [vmem:[%s9380_s8 + $0x484] sm:$0xf0]  ;;  %v6732_v6 = vor.u32 %v7758_v41, %v6731_v43  ;;  %v7765_v43 = vld [vmem:[%s9380_s8 + $0x4c4] sm:$0xf]  ;;  %v6785_v41 = vld [vmem:[%s9380_s8 + $0x4fc] sm:$0xf0] }
 0x3b7   : > { %4588 = vmatmul.bf16.gmra.mxu3 %v6660_v55  ;;  %4677 = vmatmul.bf16.gmra.mxu0 %v6664_v60  ;;  %v6728_v55 = vor.u32 %v7750_v33, %v6725_v46 }
 0x3b8   : > { %4766 = vmatmul.bf16.gmra.mxu1 %v6668_v40 }
 0x3b9   : > { %4855 = vmatmul.bf16.gmra.mxu2 %v6672_v11 }
 0x3ba   : > { %v4549_v5 = vpop.f32.mrf.mxu3 }
 0x3bb   : > { %v4550_v20 = vadd.f32 %v4549_v5, %v9607_v8  ;;  %v7935_v8 = vld [vmem:[%s9382_s0 + $0x290] sm:$0xff] }
 0x3bc   : > { %v4816_v21 = vpop.f32.mrf.mxu2  ;;  %v4640_v22 = vpop.f32.mrf.mxu0  ;;  %5168 = vmatpush.bf16.msra.mxu2 %v7935_v8 }
 0x3bd   : > { %v4639_v23 = vadd.f32 %v4638_v27, %v4550_v20  ;;  %v4729_v59 = vpop.f32.mrf.mxu1 }
 0x3bf   : > { %v4728_v30 = vadd.f32 %v4727_v2, %v4639_v23  ;;  %v7764_v23 = vld [vmem:[%s9380_s8 + $0x4bc] sm:$0xf] }
 0x3c1   : > { %v9849_v48 = vadd.f32 %v4816_v21, %v4728_v30  ;;  %v6791_v30 = vld [vmem:[%s9380_s8 + $0x4c8] sm:$0xf] }
 0x3c2   : > { %v4551_v52 = vpop.f32.mrf.mxu3 }
 0x3c3   : > { %v4552_v28 = vadd.f32 %v4551_v52, %v9620_v37  ;;  %v6792_v52 = vor.u32 %v7773_v38, %v6791_v30  ;;  %v7918_v30 = vld [vmem:[%s9382_s0 + $0x208] sm:$0xff] }
 0x3c4   : > { %v4818_v56 = vpop.f32.mrf.mxu2  ;;  %v4643_v47 = vpop.f32.mrf.mxu0  ;;  %v7926_v38 = vld [vmem:[%s9382_s0 + $0x248] sm:$0xff]  ;;  %4991 = vmatpush.bf16.msra.mxu0 %v7918_v30 }
 0x3c5   : > { %v4641_v60 = vadd.f32 %v4640_v22, %v4552_v28  ;;  %v4732_v27 = vpop.f32.mrf.mxu1  ;;  %v6788_v28 = vor.u32 %v7765_v43, %v6785_v41  ;;  %5080 = vmatpush.bf16.msra.mxu1 %v7926_v38 }
 0x3c7   : > { %v4730_v11 = vadd.f32 %v4729_v59, %v4641_v60  ;;  %4593 = vmatmul.bf16.gmra.mxu3 %v6720_v51  ;;  %4682 = vmatmul.bf16.gmra.mxu0 %v6724_v62  ;;  %v6777_v59 = vld [vmem:[%s9380_s8 + $0x4f4] sm:$0xf0] }
 0x3c8   : > { %4771 = vmatmul.bf16.gmra.mxu1 %v6728_v55  ;;  %v6780_v8 = vor.u32 %v7764_v23, %v6777_v59  ;;  %v7788_v23 = vld [vmem:[%s9380_s8 + $0x578] sm:$0xf0] }
 0x3c9   : > { %4860 = vmatmul.bf16.gmra.mxu2 %v6732_v6  ;;  %v9855_v37 = vadd.f32 %v4818_v56, %v4730_v11  ;;  %v7780_v59 = vld [vmem:[%s9380_s8 + $0x53c] sm:$0xf] }
 0x3ca   : > { %v4554_v40 = vpop.f32.mrf.mxu3 }
 0x3cb   : > { %v4555_v2 = vadd.f32 %v4554_v40, %v9628_v49 }
 0x3cc   : > { %v4821_v3 = vpop.f32.mrf.mxu2  ;;  %v4645_v5 = vpop.f32.mrf.mxu0 }
 0x3cd   : > { %v4644_v20 = vadd.f32 %v4643_v47, %v4555_v2  ;;  %v4734_v21 = vpop.f32.mrf.mxu1  ;;  %v7910_v47 = vld [vmem:[%s9382_s0 + $0x1c8] sm:$0xff]  ;;  %v7779_v2 = vld [vmem:[%s9380_s8 + $0x534] sm:$0xf] }
 0x3ce   : > { %4902 = vmatpush.bf16.msra.mxu3 %v7910_v47 }
 0x3cf   : > { %v4733_v22 = vadd.f32 %v4732_v27, %v4644_v20  ;;  %v6843_v20 = vld [vmem:[%s9380_s8 + $0x538] sm:$0xf] }
 0x3d1   : > { %v9863_v12 = vadd.f32 %v4821_v3, %v4733_v22  ;;  %v6837_v3 = vld [vmem:[%s9380_s8 + $0x56c] sm:$0xf0]  ;;  %v6851_v22 = vld [vmem:[%s9380_s8 + $0x540] sm:$0xf] }
 0x3d2   : > { %v4556_v33 = vpop.f32.mrf.mxu3 }
 0x3d3   : > { %v4557_v46 = vadd.f32 %v4556_v33, %v9641_v57 }
 0x3d4   : > { %v4823_v49 = vpop.f32.mrf.mxu2  ;;  %v4648_v50 = vpop.f32.mrf.mxu0 }
 0x3d5   : > { %v4646_v56 = vadd.f32 %v4645_v5, %v4557_v46  ;;  %v4737_v51 = vpop.f32.mrf.mxu1  ;;  %v6840_v46 = vor.u32 %v7779_v2, %v6837_v3  ;;  %v6903_v2 = vld [vmem:[%s9380_s8 + $0x5b0] sm:$0xf]  ;;  %v7802_v3 = vld [vmem:[%s9380_s8 + $0x5e8] sm:$0xf0] }
 0x3d6   : > { %v6904_v30 = vor.u32 %v7802_v3, %v6903_v2  ;;  %v6965_v2 = vld [vmem:[%s9380_s8 + $0x664] sm:$0xf0] }
 0x3d7   : > { %v4735_v62 = vadd.f32 %v4734_v21, %v4646_v56  ;;  %4598 = vmatmul.bf16.gmra.mxu3 %v6780_v8  ;;  %4687 = vmatmul.bf16.gmra.mxu0 %v6784_v4  ;;  %v7787_v21 = vld [vmem:[%s9380_s8 + $0x570] sm:$0xf0]  ;;  %v6852_v4 = vor.u32 %v7788_v23, %v6851_v22  ;;  %v6905_v23 = vld [vmem:[%s9380_s8 + $0x5ec] sm:$0xf0] }
 0x3d8   : > { %4776 = vmatmul.bf16.gmra.mxu1 %v6788_v28  ;;  %v7795_v22 = vld [vmem:[%s9380_s8 + $0x5b4] sm:$0xf] }
 0x3d9   : > { %4865 = vmatmul.bf16.gmra.mxu2 %v6792_v52  ;;  %v9869_v57 = vadd.f32 %v4823_v49, %v4735_v62  ;;  %v6844_v49 = vor.u32 %v7787_v21, %v6843_v20  ;;  %v7803_v21 = vld [vmem:[%s9380_s8 + $0x5f0] sm:$0xf0] }
 0x3da   : > { %v4559_v6 = vpop.f32.mrf.mxu3 }
 0x3db   : > { %v4560_v55 = vadd.f32 %v4559_v6, %v9646_v14  ;;  %v7934_v14 = vld [vmem:[%s9382_s0 + $0x288] sm:$0xff] }
 0x3dc   : > { %v4826_v60 = vpop.f32.mrf.mxu2  ;;  %v4650_v27 = vpop.f32.mrf.mxu0  ;;  %5169 = vmatpush.bf16.msra.mxu2 %v7934_v14 }
 0x3dd   : > { %v4649_v11 = vadd.f32 %v4648_v50, %v4560_v55  ;;  %v4739_v40 = vpop.f32.mrf.mxu1  ;;  %v6848_v50 = vor.u32 %v7780_v59, %v6845_v24 }
 0x3df   : > { %v4738_v5 = vadd.f32 %v4737_v51, %v4649_v11  ;;  %v7794_v11 = vld [vmem:[%s9380_s8 + $0x5ac] sm:$0xf] }
 0x3e1   : > { %v9881_v25 = vadd.f32 %v4826_v60, %v4738_v5  ;;  %v6911_v5 = vld [vmem:[%s9380_s8 + $0x5b8] sm:$0xf] }
 0x3e2   : > { %v4561_v43 = vpop.f32.mrf.mxu3 }
 0x3e3   : > { %v4562_v41 = vadd.f32 %v4561_v43, %v9661_v32  ;;  %v6912_v43 = vor.u32 %v7803_v21, %v6911_v5  ;;  %v7917_v5 = vld [vmem:[%s9382_s0 + $0x200] sm:$0xff] }
 0x3e4   : > { %v4828_v33 = vpop.f32.mrf.mxu2  ;;  %v4653_v8 = vpop.f32.mrf.mxu0  ;;  %v7925_v21 = vld [vmem:[%s9382_s0 + $0x240] sm:$0xff]  ;;  %4992 = vmatpush.bf16.msra.mxu0 %v7917_v5 }
 0x3e5   : > { %v4651_v52 = vadd.f32 %v4650_v27, %v4562_v41  ;;  %v4742_v28 = vpop.f32.mrf.mxu1  ;;  %v6908_v41 = vor.u32 %v7795_v22, %v6905_v23  ;;  %5081 = vmatpush.bf16.msra.mxu1 %v7925_v21 }
 0x3e7   : > { %v4740_v56 = vadd.f32 %v4739_v40, %v4651_v52  ;;  %4603 = vmatmul.bf16.gmra.mxu3 %v6840_v46  ;;  %4692 = vmatmul.bf16.gmra.mxu0 %v6844_v49  ;;  %v6897_v40 = vld [vmem:[%s9380_s8 + $0x5e4] sm:$0xf0] }
 0x3e8   : > { %4781 = vmatmul.bf16.gmra.mxu1 %v6848_v50  ;;  %v6900_v14 = vor.u32 %v7794_v11, %v6897_v40  ;;  %v7818_v11 = vld [vmem:[%s9380_s8 + $0x668] sm:$0xf0] }
 0x3e9   : > { %4870 = vmatmul.bf16.gmra.mxu2 %v6852_v4  ;;  %v9887_v32 = vadd.f32 %v4828_v33, %v4740_v56  ;;  %v7810_v40 = vld [vmem:[%s9380_s8 + $0x62c] sm:$0xf] }
 0x3ea   : > { %v4564_v51 = vpop.f32.mrf.mxu3 }
 0x3eb   : > { %v4565_v62 = vadd.f32 %v4564_v51, %v9665_v42 }
 0x3ec   : > { %v4831_v47 = vpop.f32.mrf.mxu2  ;;  %v4655_v6 = vpop.f32.mrf.mxu0 }
 0x3ed   : > { %v4654_v55 = vadd.f32 %v4653_v8, %v4565_v62  ;;  %v4744_v60 = vpop.f32.mrf.mxu1  ;;  %v7909_v8 = vld [vmem:[%s9382_s0 + $0x1c0] sm:$0xff] }
 0x3ee   : > { %4903 = vmatpush.bf16.msra.mxu3 %v7909_v8  ;;  %v7809_v62 = vld [vmem:[%s9380_s8 + $0x624] sm:$0xf] }
 0x3ef   : > { %v4743_v27 = vadd.f32 %v4742_v28, %v4654_v55  ;;  %v6963_v55 = vld [vmem:[%s9380_s8 + $0x628] sm:$0xf] }
 0x3f1   : > { %v9895_v20 = vadd.f32 %v4831_v47, %v4743_v27  ;;  %v6957_v47 = vld [vmem:[%s9380_s8 + $0x65c] sm:$0xf0]  ;;  %v6971_v27 = vld [vmem:[%s9380_s8 + $0x630] sm:$0xf] }
 0x3f2   : > { %v4566_v59 = vpop.f32.mrf.mxu3 }
 0x3f3   : > { %v4567_v24 = vadd.f32 %v4566_v59, %v9677_v0 }
 0x3f4   : > { %v4833_v42 = vpop.f32.mrf.mxu2  ;;  %v4658_v38 = vpop.f32.mrf.mxu0 }
 0x3f5   : > { %v4656_v33 = vadd.f32 %v4655_v6, %v4567_v24  ;;  %v4747_v46 = vpop.f32.mrf.mxu1  ;;  %v6960_v24 = vor.u32 %v7809_v62, %v6957_v47  ;;  %v7023_v62 = vld [vmem:[%s9380_s8 + $0x6a0] sm:$0xf]  ;;  %v7832_v47 = vld [vmem:[%s9380_s8 + $0x6d8] sm:$0xf0] }
 0x3f6   : > { %v7024_v5 = vor.u32 %v7832_v47, %v7023_v62  ;;  %v7085_v62 = vld [vmem:[%s9380_s8 + $0x754] sm:$0xf0] }
 0x3f7   : > { %v4745_v49 = vadd.f32 %v4744_v60, %v4656_v33  ;;  %4608 = vmatmul.bf16.gmra.mxu3 %v6900_v14  ;;  %4697 = vmatmul.bf16.gmra.mxu0 %v6904_v30  ;;  %v7817_v60 = vld [vmem:[%s9380_s8 + $0x660] sm:$0xf0]  ;;  %v6972_v30 = vor.u32 %v7818_v11, %v6971_v27  ;;  %v7025_v11 = vld [vmem:[%s9380_s8 + $0x6dc] sm:$0xf0] }
 0x3f8   : > { %4786 = vmatmul.bf16.gmra.mxu1 %v6908_v41  ;;  %v7825_v27 = vld [vmem:[%s9380_s8 + $0x6a4] sm:$0xf] }
 0x3f9   : > { %4875 = vmatmul.bf16.gmra.mxu2 %v6912_v43  ;;  %v9901_v0 = vadd.f32 %v4833_v42, %v4745_v49  ;;  %v6964_v42 = vor.u32 %v7817_v60, %v6963_v55  ;;  %v7833_v60 = vld [vmem:[%s9380_s8 + $0x6e0] sm:$0xf0] }
 0x3fa   : > { %v4569_v4 = vpop.f32.mrf.mxu3 }
 0x3fb   : > { %v4570_v50 = vadd.f32 %v4569_v4, %v9683_v63  ;;  %v7933_v63 = vld [vmem:[%s9382_s0 + $0x280] sm:$0xff] }
 0x3fc   : > { %v4836_v52 = vpop.f32.mrf.mxu2  ;;  %v4660_v28 = vpop.f32.mrf.mxu0  ;;  %5170 = vmatpush.bf16.msra.mxu2 %v7933_v63 }
 0x3fd   : > { %v4659_v56 = vadd.f32 %v4658_v38, %v4570_v50  ;;  %v4749_v51 = vpop.f32.mrf.mxu1  ;;  %v6968_v38 = vor.u32 %v7810_v40, %v6965_v2 }
 0x3ff   : > { %v4748_v6 = vadd.f32 %v4747_v46, %v4659_v56  ;;  %v7824_v56 = vld [vmem:[%s9380_s8 + $0x69c] sm:$0xf] }
 0x401   : > { %v9913_v3 = vadd.f32 %v4836_v52, %v4748_v6  ;;  %v7031_v6 = vld [vmem:[%s9380_s8 + $0x6a8] sm:$0xf] }
 0x402   : > { %v4571_v22 = vpop.f32.mrf.mxu3 }
 0x403   : > { %v4572_v23 = vadd.f32 %v4571_v22, %v9699_v34  ;;  %v7032_v22 = vor.u32 %v7833_v60, %v7031_v6  ;;  %v7956_v6 = vld [vmem:[%s9382_s0 + $0x338] sm:$0xff] }
 0x404   : > { %v4838_v59 = vpop.f32.mrf.mxu2  ;;  %v4663_v14 = vpop.f32.mrf.mxu0  ;;  %v7964_v60 = vld [vmem:[%s9382_s0 + $0x378] sm:$0xff]  ;;  %5341 = vmatpush.bf16.msrb.mxu0 %v7956_v6 }
 0x405   : > { %v4661_v43 = vadd.f32 %v4660_v28, %v4572_v23  ;;  %v4752_v41 = vpop.f32.mrf.mxu1  ;;  %v7028_v23 = vor.u32 %v7825_v27, %v7025_v11  ;;  %5430 = vmatpush.bf16.msrb.mxu1 %v7964_v60 }
 0x407   : > { %v4750_v33 = vadd.f32 %v4749_v51, %v4661_v43  ;;  %4613 = vmatmul.bf16.gmra.mxu3 %v6960_v24  ;;  %4702 = vmatmul.bf16.gmra.mxu0 %v6964_v42  ;;  %v7017_v51 = vld [vmem:[%s9380_s8 + $0x6d4] sm:$0xf0] }
 0x408   : > { %4791 = vmatmul.bf16.gmra.mxu1 %v6968_v38  ;;  %v7020_v63 = vor.u32 %v7824_v56, %v7017_v51  ;;  %v7848_v56 = vld [vmem:[%s9380_s8 + $0x758] sm:$0xf0] }
 0x409   : > { %4880 = vmatmul.bf16.gmra.mxu2 %v6972_v30  ;;  %v9919_v34 = vadd.f32 %v4838_v59, %v4750_v33  ;;  %v7840_v51 = vld [vmem:[%s9380_s8 + $0x71c] sm:$0xf] }
 0x40a   : > { %v4574_v46 = vpop.f32.mrf.mxu3 }
 0x40b   : > { %v4575_v49 = vadd.f32 %v4574_v46, %v9704_v45 }
 0x40c   : > { %v4841_v8 = vpop.f32.mrf.mxu2  ;;  %v4665_v4 = vpop.f32.mrf.mxu0 }
 0x40d   : > { %v4664_v50 = vadd.f32 %v4663_v14, %v4575_v49  ;;  %v4754_v52 = vpop.f32.mrf.mxu1  ;;  %v7948_v14 = vld [vmem:[%s9382_s0 + $0x2f8] sm:$0xff]  ;;  %v7839_v49 = vld [vmem:[%s9380_s8 + $0x714] sm:$0xf] }
 0x40e   : > { %5252 = vmatpush.bf16.msrb.mxu3 %v7948_v14 }
 0x40f   : > { %v4753_v28 = vadd.f32 %v4752_v41, %v4664_v50  ;;  %v7083_v50 = vld [vmem:[%s9380_s8 + $0x718] sm:$0xf] }
 0x411   : > { %v9927_v55 = vadd.f32 %v4841_v8, %v4753_v28  ;;  %v7077_v8 = vld [vmem:[%s9380_s8 + $0x74c] sm:$0xf0]  ;;  %v7091_v28 = vld [vmem:[%s9380_s8 + $0x720] sm:$0xf] }
 0x412   : > { %v4576_v40 = vpop.f32.mrf.mxu3 }
 0x413   : > { %v4577_v2 = vadd.f32 %v4576_v40, %v9717_v7 }
 0x414   : > { %v4843_v45 = vpop.f32.mrf.mxu2  ;;  %v4668_v21 = vpop.f32.mrf.mxu0 }
 0x415   : > { %v4666_v59 = vadd.f32 %v4665_v4, %v4577_v2  ;;  %v4757_v24 = vpop.f32.mrf.mxu1  ;;  %v7080_v2 = vor.u32 %v7839_v49, %v7077_v8  ;;  %v6199_v49 = vld [vmem:[%s9380_s8 + $0x20] sm:$0xf]  ;;  %v7624_v8 = vld [vmem:[%s9380_s8 + $0x58] sm:$0xf0] }
 0x416   : > { %v6200_v6 = vor.u32 %v7624_v8, %v6199_v49  ;;  %v6261_v49 = vld [vmem:[%s9380_s8 + $0xd4] sm:$0xf0] }
 0x417   : > { %v4755_v42 = vadd.f32 %v4754_v52, %v4666_v59  ;;  %4618 = vmatmul.bf16.gmra.mxu3 %v7020_v63  ;;  %4707 = vmatmul.bf16.gmra.mxu0 %v7024_v5  ;;  %v7847_v52 = vld [vmem:[%s9380_s8 + $0x750] sm:$0xf0]  ;;  %v7092_v5 = vor.u32 %v7848_v56, %v7091_v28  ;;  %v7617_v28 = vld [vmem:[%s9380_s8 + $0x24] sm:$0xf]  ;;  %v6201_v56 = vld [vmem:[%s9380_s8 + $0x5c] sm:$0xf0] }
 0x418   : > { %4796 = vmatmul.bf16.gmra.mxu1 %v7028_v23 }
 0x419   : > { %4885 = vmatmul.bf16.gmra.mxu2 %v7032_v22  ;;  %v9933_v7 = vadd.f32 %v4843_v45, %v4755_v42  ;;  %v7084_v45 = vor.u32 %v7847_v52, %v7083_v50  ;;  %v7625_v52 = vld [vmem:[%s9380_s8 + $0x60] sm:$0xf0] }
 0x41a   : > { %v4579_v30 = vpop.f32.mrf.mxu3 }
 0x41b   : > { %v4580_v38 = vadd.f32 %v4579_v30, %v9723_v17  ;;  %v7972_v17 = vld [vmem:[%s9382_s0 + $0x3b8] sm:$0xff] }
 0x41c   : > { %v4846_v43 = vpop.f32.mrf.mxu2  ;;  %v4670_v41 = vpop.f32.mrf.mxu0  ;;  %5519 = vmatpush.bf16.msrb.mxu2 %v7972_v17 }
 0x41d   : > { %v4669_v33 = vadd.f32 %v4668_v21, %v4580_v38  ;;  %v4759_v46 = vpop.f32.mrf.mxu1  ;;  %v7088_v21 = vor.u32 %v7840_v51, %v7085_v62 }
 0x41f   : > { %v4758_v4 = vadd.f32 %v4757_v24, %v4669_v33  ;;  %v7616_v33 = vld [vmem:[%s9380_s8 + $0x1c] sm:$0xf] }
 0x421   : > { %v9945_v47 = vadd.f32 %v4846_v43, %v4758_v4  ;;  %v6207_v4 = vld [vmem:[%s9380_s8 + $0x28] sm:$0xf] }
 0x422   : > { %v4581_v27 = vpop.f32.mrf.mxu3 }
 0x423   : > { %v4582_v11 = vadd.f32 %v4581_v27, %v9739_v44  ;;  %v6208_v27 = vor.u32 %v7625_v52, %v6207_v4  ;;  %v7955_v4 = vld [vmem:[%s9382_s0 + $0x330] sm:$0xff] }
 0x424   : > { %v4848_v40 = vpop.f32.mrf.mxu2  ;;  %v4673_v63 = vpop.f32.mrf.mxu0  ;;  %v7963_v52 = vld [vmem:[%s9382_s0 + $0x370] sm:$0xff]  ;;  %5342 = vmatpush.bf16.msrb.mxu0 %v7955_v4 }
 0x425   : > { %v4671_v22 = vadd.f32 %v4670_v41, %v4582_v11  ;;  %v4762_v23 = vpop.f32.mrf.mxu1  ;;  %v6204_v11 = vor.u32 %v7617_v28, %v6201_v56  ;;  %5431 = vmatpush.bf16.msrb.mxu1 %v7963_v52 }
 0x427   : > { %v4760_v59 = vadd.f32 %v4759_v46, %v4671_v22  ;;  %4623 = vmatmul.bf16.gmra.mxu3 %v7080_v2  ;;  %4712 = vmatmul.bf16.gmra.mxu0 %v7084_v45  ;;  %v6193_v46 = vld [vmem:[%s9380_s8 + $0x54] sm:$0xf0] }
 0x428   : > { %4801 = vmatmul.bf16.gmra.mxu1 %v7088_v21  ;;  %v6196_v17 = vor.u32 %v7616_v33, %v6193_v46  ;;  %v7640_v33 = vld [vmem:[%s9380_s8 + $0xd8] sm:$0xf0] }
 0x429   : > { %4890 = vmatmul.bf16.gmra.mxu2 %v7092_v5  ;;  %v9951_v44 = vadd.f32 %v4848_v40, %v4760_v59  ;;  %v7632_v46 = vld [vmem:[%s9380_s8 + $0x9c] sm:$0xf] }
 0x42a   : > { %v4584_v24 = vpop.f32.mrf.mxu3 }
 0x42b   : > { %v4585_v42 = vadd.f32 %v4584_v24, %v9744_v58 }
 0x42c   : > { %v4851_v14 = vpop.f32.mrf.mxu2  ;;  %v4675_v30 = vpop.f32.mrf.mxu0 }
 0x42d   : > { %v4674_v38 = vadd.f32 %v4673_v63, %v4585_v42  ;;  %v4764_v43 = vpop.f32.mrf.mxu1  ;;  %v7947_v63 = vld [vmem:[%s9382_s0 + $0x2f0] sm:$0xff] }
 0x42e   : > { %5253 = vmatpush.bf16.msrb.mxu3 %v7947_v63  ;;  %v7631_v42 = vld [vmem:[%s9380_s8 + $0x94] sm:$0xf] }
 0x42f   : > { %v4763_v41 = vadd.f32 %v4762_v23, %v4674_v38  ;;  %v6259_v38 = vld [vmem:[%s9380_s8 + $0x98] sm:$0xf] }
 0x431   : > { %v9959_v50 = vadd.f32 %v4851_v14, %v4763_v41  ;;  %v6253_v14 = vld [vmem:[%s9380_s8 + $0xcc] sm:$0xf0]  ;;  %v6267_v41 = vld [vmem:[%s9380_s8 + $0xa0] sm:$0xf] }
 0x432   : > { %v4586_v51 = vpop.f32.mrf.mxu3 }
 0x433   : > { %v4587_v62 = vadd.f32 %v4586_v51, %v9757_v18 }
 0x434   : > { %v4853_v58 = vpop.f32.mrf.mxu2  ;;  %v4678_v60 = vpop.f32.mrf.mxu0 }
 0x435   : > { %v4676_v40 = vadd.f32 %v4675_v30, %v4587_v62  ;;  %v4767_v2 = vpop.f32.mrf.mxu1  ;;  %v6256_v62 = vor.u32 %v7631_v42, %v6253_v14  ;;  %v6319_v42 = vld [vmem:[%s9380_s8 + $0x110] sm:$0xf]  ;;  %v7654_v14 = vld [vmem:[%s9380_s8 + $0x148] sm:$0xf0] }
 0x436   : > { %v6320_v4 = vor.u32 %v7654_v14, %v6319_v42  ;;  %v6381_v42 = vld [vmem:[%s9380_s8 + $0x1c4] sm:$0xf0] }
 0x437   : > { %v4765_v45 = vadd.f32 %v4764_v43, %v4676_v40  ;;  %4904 = vmatmul.bf16.vlgmr.msra.gmra.mxu3 %v6196_v17  ;;  %4993 = vmatmul.bf16.vlgmr.msra.gmra.mxu0 %v6200_v6  ;;  %v7639_v43 = vld [vmem:[%s9380_s8 + $0xd0] sm:$0xf0]  ;;  %v6268_v6 = vor.u32 %v7640_v33, %v6267_v41  ;;  %v6321_v33 = vld [vmem:[%s9380_s8 + $0x14c] sm:$0xf0] }
 0x438   : > { %5082 = vmatmul.bf16.vlgmr.msra.gmra.mxu1 %v6204_v11  ;;  %v7647_v41 = vld [vmem:[%s9380_s8 + $0x114] sm:$0xf] }
 0x439   : > { %5171 = vmatmul.bf16.vlgmr.msra.gmra.mxu2 %v6208_v27  ;;  %v9965_v18 = vadd.f32 %v4853_v58, %v4765_v45  ;;  %v6260_v58 = vor.u32 %v7639_v43, %v6259_v38  ;;  %v7655_v43 = vld [vmem:[%s9380_s8 + $0x150] sm:$0xf0] }
 0x43a   : > { %v4589_v5 = vpop.f32.mrf.mxu3 }
 0x43b   : > { %v4590_v21 = vadd.f32 %v4589_v5, %v9763_v29  ;;  %v7971_v29 = vld [vmem:[%s9382_s0 + $0x3b0] sm:$0xff] }
 0x43c   : > { %v4856_v22 = vpop.f32.mrf.mxu2  ;;  %v4680_v23 = vpop.f32.mrf.mxu0  ;;  %5520 = vmatpush.bf16.msrb.mxu2 %v7971_v29 }
 0x43d   : > { %v4679_v59 = vadd.f32 %v4678_v60, %v4590_v21  ;;  %v4769_v24 = vpop.f32.mrf.mxu1  ;;  %v6264_v60 = vor.u32 %v7632_v46, %v6261_v49 }
 0x43f   : > { %v4768_v30 = vadd.f32 %v4767_v2, %v4679_v59  ;;  %v7646_v59 = vld [vmem:[%s9380_s8 + $0x10c] sm:$0xf] }
 0x441   : > { %v9977_v8 = vadd.f32 %v4856_v22, %v4768_v30  ;;  %v6327_v30 = vld [vmem:[%s9380_s8 + $0x118] sm:$0xf] }
 0x442   : > { %v4591_v28 = vpop.f32.mrf.mxu3 }
 0x443   : > { %v4592_v56 = vadd.f32 %v4591_v28, %v9779_v1  ;;  %v6328_v28 = vor.u32 %v7655_v43, %v6327_v30  ;;  %v7954_v30 = vld [vmem:[%s9382_s0 + $0x328] sm:$0xff] }
 0x444   : > { %v4858_v51 = vpop.f32.mrf.mxu2  ;;  %v4683_v17 = vpop.f32.mrf.mxu0  ;;  %v7962_v43 = vld [vmem:[%s9382_s0 + $0x368] sm:$0xff]  ;;  %5343 = vmatpush.bf16.msrb.mxu0 %v7954_v30 }
 0x445   : > { %v4681_v27 = vadd.f32 %v4680_v23, %v4592_v56  ;;  %v4772_v11 = vpop.f32.mrf.mxu1  ;;  %v6324_v56 = vor.u32 %v7647_v41, %v6321_v33  ;;  %5432 = vmatpush.bf16.msrb.mxu1 %v7962_v43 }
 0x447   : > { %v4770_v40 = vadd.f32 %v4769_v24, %v4681_v27  ;;  %4909 = vmatmul.bf16.gmra.mxu3 %v6256_v62  ;;  %4998 = vmatmul.bf16.gmra.mxu0 %v6260_v58  ;;  %v6313_v24 = vld [vmem:[%s9380_s8 + $0x144] sm:$0xf0] }
 0x448   : > { %5087 = vmatmul.bf16.gmra.mxu1 %v6264_v60  ;;  %v6316_v29 = vor.u32 %v7646_v59, %v6313_v24  ;;  %v7670_v59 = vld [vmem:[%s9380_s8 + $0x1c8] sm:$0xf0] }
 0x449   : > { %5176 = vmatmul.bf16.gmra.mxu2 %v6268_v6  ;;  %v9983_v1 = vadd.f32 %v4858_v51, %v4770_v40  ;;  %v7662_v24 = vld [vmem:[%s9380_s8 + $0x18c] sm:$0xf] }
 0x44a   : > { %v4594_v2 = vpop.f32.mrf.mxu3 }
 0x44b   : > { %v4595_v45 = vadd.f32 %v4594_v2, %v9784_v15 }
 0x44c   : > { %v4861_v63 = vpop.f32.mrf.mxu2  ;;  %v4685_v5 = vpop.f32.mrf.mxu0 }
 0x44d   : > { %v4684_v21 = vadd.f32 %v4683_v17, %v4595_v45  ;;  %v4774_v22 = vpop.f32.mrf.mxu1  ;;  %v7946_v17 = vld [vmem:[%s9382_s0 + $0x2e8] sm:$0xff]  ;;  %v7661_v45 = vld [vmem:[%s9380_s8 + $0x184] sm:$0xf] }
 0x44e   : > { %5254 = vmatpush.bf16.msrb.mxu3 %v7946_v17 }
 0x44f   : > { %v4773_v23 = vadd.f32 %v4772_v11, %v4684_v21  ;;  %v6379_v21 = vld [vmem:[%s9380_s8 + $0x188] sm:$0xf] }
 0x451   : > { %v9991_v38 = vadd.f32 %v4861_v63, %v4773_v23  ;;  %v6373_v63 = vld [vmem:[%s9380_s8 + $0x1bc] sm:$0xf0]  ;;  %v6387_v23 = vld [vmem:[%s9380_s8 + $0x190] sm:$0xf] }
 0x452   : > { %v4596_v46 = vpop.f32.mrf.mxu3 }
 0x453   : > { %v4597_v49 = vadd.f32 %v4596_v46, %v9797_v36 }
 0x454   : > { %v4863_v15 = vpop.f32.mrf.mxu2  ;;  %v4688_v52 = vpop.f32.mrf.mxu0 }
 0x455   : > { %v4686_v51 = vadd.f32 %v4685_v5, %v4597_v49  ;;  %v4777_v62 = vpop.f32.mrf.mxu1  ;;  %v6376_v49 = vor.u32 %v7661_v45, %v6373_v63  ;;  %v6439_v45 = vld [vmem:[%s9380_s8 + $0x200] sm:$0xf]  ;;  %v7684_v63 = vld [vmem:[%s9380_s8 + $0x238] sm:$0xf0] }
 0x456   : > { %v6440_v30 = vor.u32 %v7684_v63, %v6439_v45  ;;  %v6501_v45 = vld [vmem:[%s9380_s8 + $0x2b4] sm:$0xf0] }
 0x457   : > { %v4775_v58 = vadd.f32 %v4774_v22, %v4686_v51  ;;  %4914 = vmatmul.bf16.gmra.mxu3 %v6316_v29  ;;  %5003 = vmatmul.bf16.gmra.mxu0 %v6320_v4  ;;  %v7669_v22 = vld [vmem:[%s9380_s8 + $0x1c0] sm:$0xf0]  ;;  %v6388_v4 = vor.u32 %v7670_v59, %v6387_v23  ;;  %v6441_v59 = vld [vmem:[%s9380_s8 + $0x23c] sm:$0xf0] }
 0x458   : > { %5092 = vmatmul.bf16.gmra.mxu1 %v6324_v56  ;;  %v7677_v23 = vld [vmem:[%s9380_s8 + $0x204] sm:$0xf] }
 0x459   : > { %5181 = vmatmul.bf16.gmra.mxu2 %v6328_v28  ;;  %v9997_v36 = vadd.f32 %v4863_v15, %v4775_v58  ;;  %v6380_v15 = vor.u32 %v7669_v22, %v6379_v21  ;;  %v7685_v22 = vld [vmem:[%s9380_s8 + $0x240] sm:$0xf0] }
 0x45a   : > { %v4599_v6 = vpop.f32.mrf.mxu3 }
 0x45b   : > { %v4600_v60 = vadd.f32 %v4599_v6, %v9803_v53  ;;  %v7970_v53 = vld [vmem:[%s9382_s0 + $0x3a8] sm:$0xff] }
 0x45c   : > { %v4866_v27 = vpop.f32.mrf.mxu2  ;;  %v4690_v11 = vpop.f32.mrf.mxu0  ;;  %5521 = vmatpush.bf16.msrb.mxu2 %v7970_v53 }
 0x45d   : > { %v4689_v40 = vadd.f32 %v4688_v52, %v4600_v60  ;;  %v4779_v2 = vpop.f32.mrf.mxu1  ;;  %v6384_v52 = vor.u32 %v7662_v24, %v6381_v42 }
 0x45f   : > { %v4778_v5 = vadd.f32 %v4777_v62, %v4689_v40  ;;  %v7676_v40 = vld [vmem:[%s9380_s8 + $0x1fc] sm:$0xf] }
 0x461   : > { %v10009_v14 = vadd.f32 %v4866_v27, %v4778_v5  ;;  %v6447_v5 = vld [vmem:[%s9380_s8 + $0x208] sm:$0xf] }
 0x462   : > { %v4601_v41 = vpop.f32.mrf.mxu3 }
 0x463   : > { %v4602_v33 = vadd.f32 %v4601_v41, %v9819_v19  ;;  %v6448_v41 = vor.u32 %v7685_v22, %v6447_v5  ;;  %v7953_v5 = vld [vmem:[%s9382_s0 + $0x320] sm:$0xff] }
 0x464   : > { %v4868_v46 = vpop.f32.mrf.mxu2  ;;  %v4693_v29 = vpop.f32.mrf.mxu0  ;;  %v7961_v22 = vld [vmem:[%s9382_s0 + $0x360] sm:$0xff]  ;;  %5344 = vmatpush.bf16.msrb.mxu0 %v7953_v5 }
 0x465   : > { %v4691_v28 = vadd.f32 %v4690_v11, %v4602_v33  ;;  %v4782_v56 = vpop.f32.mrf.mxu1  ;;  %v6444_v33 = vor.u32 %v7677_v23, %v6441_v59  ;;  %5433 = vmatpush.bf16.msrb.mxu1 %v7961_v22 }
 0x467   : > { %v4780_v51 = vadd.f32 %v4779_v2, %v4691_v28  ;;  %4919 = vmatmul.bf16.gmra.mxu3 %v6376_v49  ;;  %5008 = vmatmul.bf16.gmra.mxu0 %v6380_v15  ;;  %v6433_v2 = vld [vmem:[%s9380_s8 + $0x234] sm:$0xf0] }
 0x468   : > { %5097 = vmatmul.bf16.gmra.mxu1 %v6384_v52  ;;  %v6436_v53 = vor.u32 %v7676_v40, %v6433_v2  ;;  %v7700_v40 = vld [vmem:[%s9380_s8 + $0x2b8] sm:$0xf0] }
 0x469   : > { %5186 = vmatmul.bf16.gmra.mxu2 %v6388_v4  ;;  %v10015_v19 = vadd.f32 %v4868_v46, %v4780_v51  ;;  %v7692_v2 = vld [vmem:[%s9380_s8 + $0x27c] sm:$0xf] }
 0x46a   : > { %v4604_v62 = vpop.f32.mrf.mxu3 }
 0x46b   : > { %v4605_v58 = vadd.f32 %v4604_v62, %v9824_v39 }
 0x46c   : > { %v4871_v17 = vpop.f32.mrf.mxu2  ;;  %v4695_v6 = vpop.f32.mrf.mxu0 }
 0x46d   : > { %v4694_v60 = vadd.f32 %v4693_v29, %v4605_v58  ;;  %v4784_v27 = vpop.f32.mrf.mxu1  ;;  %v7945_v29 = vld [vmem:[%s9382_s0 + $0x2e0] sm:$0xff]  ;;  %v7691_v58 = vld [vmem:[%s9380_s8 + $0x274] sm:$0xf] }
 0x46e   : > { %5255 = vmatpush.bf16.msrb.mxu3 %v7945_v29 }
 0x46f   : > { %v4783_v11 = vadd.f32 %v4782_v56, %v4694_v60  ;;  %v6499_v60 = vld [vmem:[%s9380_s8 + $0x278] sm:$0xf] }
 0x471   : > { %v10023_v21 = vadd.f32 %v4871_v17, %v4783_v11  ;;  %v6493_v17 = vld [vmem:[%s9380_s8 + $0x2ac] sm:$0xf0]  ;;  %v6507_v11 = vld [vmem:[%s9380_s8 + $0x280] sm:$0xf] }
 0x472   : > { %v4606_v24 = vpop.f32.mrf.mxu3 }
 0x473   : > { %v4607_v42 = vadd.f32 %v4606_v24, %v9837_v9 }
 0x474   : > { %v4873_v39 = vpop.f32.mrf.mxu2  ;;  %v4698_v43 = vpop.f32.mrf.mxu0 }
 0x475   : > { %v4696_v46 = vadd.f32 %v4695_v6, %v4607_v42  ;;  %v4787_v49 = vpop.f32.mrf.mxu1  ;;  %v6496_v42 = vor.u32 %v7691_v58, %v6493_v17  ;;  %v6559_v58 = vld [vmem:[%s9380_s8 + $0x2f0] sm:$0xf]  ;;  %v7714_v17 = vld [vmem:[%s9380_s8 + $0x328] sm:$0xf0] }
 0x476   : > { %v6560_v5 = vor.u32 %v7714_v17, %v6559_v58  ;;  %v6621_v58 = vld [vmem:[%s9380_s8 + $0x3a4] sm:$0xf0] }
 0x477   : > { %v4785_v15 = vadd.f32 %v4784_v27, %v4696_v46  ;;  %4924 = vmatmul.bf16.gmra.mxu3 %v6436_v53  ;;  %5013 = vmatmul.bf16.gmra.mxu0 %v6440_v30  ;;  %v7699_v27 = vld [vmem:[%s9380_s8 + $0x2b0] sm:$0xf0]  ;;  %v6508_v30 = vor.u32 %v7700_v40, %v6507_v11  ;;  %v6561_v40 = vld [vmem:[%s9380_s8 + $0x32c] sm:$0xf0] }
 0x478   : > { %5102 = vmatmul.bf16.gmra.mxu1 %v6444_v33  ;;  %v7707_v11 = vld [vmem:[%s9380_s8 + $0x2f4] sm:$0xf] }
 0x479   : > { %5191 = vmatmul.bf16.gmra.mxu2 %v6448_v41  ;;  %v10029_v9 = vadd.f32 %v4873_v39, %v4785_v15  ;;  %v6500_v39 = vor.u32 %v7699_v27, %v6499_v60  ;;  %v7715_v27 = vld [vmem:[%s9380_s8 + $0x330] sm:$0xf0] }
 0x47a   : > { %v4609_v4 = vpop.f32.mrf.mxu3 }
 0x47b   : > { %v4610_v52 = vadd.f32 %v4609_v4, %v9761_v26  ;;  %v7969_v26 = vld [vmem:[%s9382_s0 + $0x3a0] sm:$0xff] }
 0x47c   : > { %v4876_v28 = vpop.f32.mrf.mxu2  ;;  %v4700_v56 = vpop.f32.mrf.mxu0  ;;  %5522 = vmatpush.bf16.msrb.mxu2 %v7969_v26 }
 0x47d   : > { %v4699_v51 = vadd.f32 %v4698_v43, %v4610_v52  ;;  %v4789_v62 = vpop.f32.mrf.mxu1  ;;  %v6504_v43 = vor.u32 %v7692_v2, %v6501_v45 }
 0x47f   : > { %v4788_v6 = vadd.f32 %v4787_v49, %v4699_v51  ;;  %v7706_v51 = vld [vmem:[%s9380_s8 + $0x2ec] sm:$0xf] }
 0x481   : > { %v10041_v63 = vadd.f32 %v4876_v28, %v4788_v6  ;;  %v6567_v6 = vld [vmem:[%s9380_s8 + $0x2f8] sm:$0xf] }
 0x482   : > { %v4611_v23 = vpop.f32.mrf.mxu3 }
 0x483   : > { %v4612_v59 = vadd.f32 %v4611_v23, %v9777_v61  ;;  %v6568_v23 = vor.u32 %v7715_v27, %v6567_v6  ;;  %v7952_v6 = vld [vmem:[%s9382_s0 + $0x318] sm:$0xff] }
 0x484   : > { %v4878_v24 = vpop.f32.mrf.mxu2  ;;  %v4703_v53 = vpop.f32.mrf.mxu0  ;;  %v7960_v27 = vld [vmem:[%s9382_s0 + $0x358] sm:$0xff]  ;;  %5345 = vmatpush.bf16.msrb.mxu0 %v7952_v6 }
 0x485   : > { %v4701_v41 = vadd.f32 %v4700_v56, %v4612_v59  ;;  %v4792_v33 = vpop.f32.mrf.mxu1  ;;  %v6564_v59 = vor.u32 %v7707_v11, %v6561_v40  ;;  %5434 = vmatpush.bf16.msrb.mxu1 %v7960_v27 }
 0x487   : > { %v4790_v46 = vadd.f32 %v4789_v62, %v4701_v41  ;;  %4929 = vmatmul.bf16.gmra.mxu3 %v6496_v42  ;;  %5018 = vmatmul.bf16.gmra.mxu0 %v6500_v39  ;;  %v6553_v62 = vld [vmem:[%s9380_s8 + $0x324] sm:$0xf0] }
 0x488   : > { %5107 = vmatmul.bf16.gmra.mxu1 %v6504_v43  ;;  %v6556_v26 = vor.u32 %v7706_v51, %v6553_v62  ;;  %v7730_v51 = vld [vmem:[%s9380_s8 + $0x3a8] sm:$0xf0] }
 0x489   : > { %5196 = vmatmul.bf16.gmra.mxu2 %v6508_v30  ;;  %v10047_v61 = vadd.f32 %v4878_v24, %v4790_v46  ;;  %v7722_v62 = vld [vmem:[%s9380_s8 + $0x36c] sm:$0xf] }
 0x48a   : > { %v4614_v49 = vpop.f32.mrf.mxu3 }
 0x48b   : > { %v4615_v15 = vadd.f32 %v4614_v49, %v9782_v13 }
 0x48c   : > { %v4881_v29 = vpop.f32.mrf.mxu2  ;;  %v4705_v4 = vpop.f32.mrf.mxu0 }
 0x48d   : > { %v4704_v52 = vadd.f32 %v4703_v53, %v4615_v15  ;;  %v4794_v28 = vpop.f32.mrf.mxu1  ;;  %v7944_v53 = vld [vmem:[%s9382_s0 + $0x2d8] sm:$0xff]  ;;  %v7721_v15 = vld [vmem:[%s9380_s8 + $0x364] sm:$0xf] }
 0x48e   : > { %5256 = vmatpush.bf16.msrb.mxu3 %v7944_v53 }
 0x48f   : > { %v4793_v56 = vadd.f32 %v4792_v33, %v4704_v52  ;;  %v6619_v52 = vld [vmem:[%s9380_s8 + $0x368] sm:$0xf] }
 0x491   : > { %v10055_v60 = vadd.f32 %v4881_v29, %v4793_v56  ;;  %v6613_v29 = vld [vmem:[%s9380_s8 + $0x39c] sm:$0xf0]  ;;  %v6627_v56 = vld [vmem:[%s9380_s8 + $0x370] sm:$0xf] }
 0x492   : > { %v4616_v2 = vpop.f32.mrf.mxu3 }
 0x493   : > { %v4617_v45 = vadd.f32 %v4616_v2, %v9795_v31 }
 0x494   : > { %v4883_v13 = vpop.f32.mrf.mxu2  ;;  %v4708_v22 = vpop.f32.mrf.mxu0 }
 0x495   : > { %v4706_v24 = vadd.f32 %v4705_v4, %v4617_v45  ;;  %v4797_v42 = vpop.f32.mrf.mxu1  ;;  %v6616_v45 = vor.u32 %v7721_v15, %v6613_v29  ;;  %v6679_v15 = vld [vmem:[%s9380_s8 + $0x3e0] sm:$0xf]  ;;  %v7744_v29 = vld [vmem:[%s9380_s8 + $0x418] sm:$0xf0] }
 0x496   : > { %v6680_v6 = vor.u32 %v7744_v29, %v6679_v15  ;;  %v6741_v15 = vld [vmem:[%s9380_s8 + $0x494] sm:$0xf0] }
 0x497   : > { %v4795_v39 = vadd.f32 %v4794_v28, %v4706_v24  ;;  %4934 = vmatmul.bf16.gmra.mxu3 %v6556_v26  ;;  %5023 = vmatmul.bf16.gmra.mxu0 %v6560_v5  ;;  %v7729_v28 = vld [vmem:[%s9380_s8 + $0x3a0] sm:$0xf0]  ;;  %v6628_v5 = vor.u32 %v7730_v51, %v6627_v56  ;;  %v6681_v51 = vld [vmem:[%s9380_s8 + $0x41c] sm:$0xf0] }
 0x498   : > { %5112 = vmatmul.bf16.gmra.mxu1 %v6564_v59  ;;  %v7737_v56 = vld [vmem:[%s9380_s8 + $0x3e4] sm:$0xf] }
 0x499   : > { %5201 = vmatmul.bf16.gmra.mxu2 %v6568_v23  ;;  %v10061_v31 = vadd.f32 %v4883_v13, %v4795_v39  ;;  %v6620_v13 = vor.u32 %v7729_v28, %v6619_v52  ;;  %v7745_v28 = vld [vmem:[%s9380_s8 + $0x420] sm:$0xf0] }
 0x49a   : > { %v4619_v30 = vpop.f32.mrf.mxu3 }
 0x49b   : > { %v4620_v43 = vadd.f32 %v4619_v30, %v9801_v10  ;;  %v7968_v10 = vld [vmem:[%s9382_s0 + $0x398] sm:$0xff] }
 0x49c   : > { %v4886_v41 = vpop.f32.mrf.mxu2  ;;  %v4710_v33 = vpop.f32.mrf.mxu0  ;;  %5523 = vmatpush.bf16.msrb.mxu2 %v7968_v10 }
 0x49d   : > { %v4709_v46 = vadd.f32 %v4708_v22, %v4620_v43  ;;  %v4799_v49 = vpop.f32.mrf.mxu1  ;;  %v6624_v22 = vor.u32 %v7722_v62, %v6621_v58 }
 0x49f   : > { %v4798_v4 = vadd.f32 %v4797_v42, %v4709_v46  ;;  %v7736_v46 = vld [vmem:[%s9380_s8 + $0x3dc] sm:$0xf] }
 0x4a1   : > { %v10073_v17 = vadd.f32 %v4886_v41, %v4798_v4  ;;  %v6687_v4 = vld [vmem:[%s9380_s8 + $0x3e8] sm:$0xf] }
 0x4a2   : > { %v4621_v11 = vpop.f32.mrf.mxu3 }
 0x4a3   : > { %v4622_v40 = vadd.f32 %v4621_v11, %v9817_v16  ;;  %v6688_v11 = vor.u32 %v7745_v28, %v6687_v4  ;;  %v7951_v4 = vld [vmem:[%s9382_s0 + $0x310] sm:$0xff] }
 0x4a4   : > { %v4888_v2 = vpop.f32.mrf.mxu2  ;;  %v4713_v26 = vpop.f32.mrf.mxu0  ;;  %v7959_v28 = vld [vmem:[%s9382_s0 + $0x350] sm:$0xff]  ;;  %5346 = vmatpush.bf16.msrb.mxu0 %v7951_v4 }
 0x4a5   : > { %v4711_v23 = vadd.f32 %v4710_v33, %v4622_v40  ;;  %v4802_v59 = vpop.f32.mrf.mxu1  ;;  %v6684_v40 = vor.u32 %v7737_v56, %v6681_v51  ;;  %5435 = vmatpush.bf16.msrb.mxu1 %v7959_v28 }
 0x4a7   : > { %v4800_v24 = vadd.f32 %v4799_v49, %v4711_v23  ;;  %4939 = vmatmul.bf16.gmra.mxu3 %v6616_v45  ;;  %5028 = vmatmul.bf16.gmra.mxu0 %v6620_v13  ;;  %v6673_v49 = vld [vmem:[%s9380_s8 + $0x414] sm:$0xf0] }
 0x4a8   : > { %5117 = vmatmul.bf16.gmra.mxu1 %v6624_v22  ;;  %v6676_v10 = vor.u32 %v7736_v46, %v6673_v49  ;;  %v7760_v46 = vld [vmem:[%s9380_s8 + $0x498] sm:$0xf0] }
 0x4a9   : > { %5206 = vmatmul.bf16.gmra.mxu2 %v6628_v5  ;;  %v10079_v16 = vadd.f32 %v4888_v2, %v4800_v24  ;;  %v7752_v49 = vld [vmem:[%s9380_s8 + $0x45c] sm:$0xf] }
 0x4aa   : > { %v4624_v42 = vpop.f32.mrf.mxu3 }
 0x4ab   : > { %v4625_v39 = vadd.f32 %v4624_v42, %v9822_v35 }
 0x4ac   : > { %v4891_v53 = vpop.f32.mrf.mxu2  ;;  %v4715_v30 = vpop.f32.mrf.mxu0 }
 0x4ad   : > { %v4714_v43 = vadd.f32 %v4713_v26, %v4625_v39  ;;  %v4804_v41 = vpop.f32.mrf.mxu1  ;;  %v7943_v26 = vld [vmem:[%s9382_s0 + $0x2d0] sm:$0xff] }
 0x4ae   : > { %5257 = vmatpush.bf16.msrb.mxu3 %v7943_v26  ;;  %v7751_v39 = vld [vmem:[%s9380_s8 + $0x454] sm:$0xf] }
 0x4af   : > { %v4803_v33 = vadd.f32 %v4802_v59, %v4714_v43  ;;  %v6739_v43 = vld [vmem:[%s9380_s8 + $0x458] sm:$0xf] }
 0x4b1   : > { %v10087_v52 = vadd.f32 %v4891_v53, %v4803_v33  ;;  %v6733_v53 = vld [vmem:[%s9380_s8 + $0x48c] sm:$0xf0]  ;;  %v6747_v33 = vld [vmem:[%s9380_s8 + $0x460] sm:$0xf] }
 0x4b2   : > { %v4626_v62 = vpop.f32.mrf.mxu3 }
 0x4b3   : > { %v4627_v58 = vadd.f32 %v4626_v62, %v9835_v54 }
 0x4b4   : > { %v4893_v35 = vpop.f32.mrf.mxu2  ;;  %v4994_v27 = vpop.f32.mrf.mxu0 }
 0x4b5   : > { %v4716_v2 = vadd.f32 %v4715_v30, %v4627_v58  ;;  %v5083_v45 = vpop.f32.mrf.mxu1  ;;  %v6736_v58 = vor.u32 %v7751_v39, %v6733_v53  ;;  %v6799_v39 = vld [vmem:[%s9380_s8 + $0x4d0] sm:$0xf]  ;;  %v7774_v53 = vld [vmem:[%s9380_s8 + $0x508] sm:$0xf0] }
 0x4b6   : > { %v6800_v4 = vor.u32 %v7774_v53, %v6799_v39  ;;  %v6861_v39 = vld [vmem:[%s9380_s8 + $0x584] sm:$0xf0] }
 0x4b7   : > { %v4805_v13 = vadd.f32 %v4804_v41, %v4716_v2  ;;  %4944 = vmatmul.bf16.gmra.mxu3 %v6676_v10  ;;  %5033 = vmatmul.bf16.gmra.mxu0 %v6680_v6  ;;  %v7759_v41 = vld [vmem:[%s9380_s8 + $0x490] sm:$0xf0]  ;;  %v6748_v6 = vor.u32 %v7760_v46, %v6747_v33  ;;  %v6801_v46 = vld [vmem:[%s9380_s8 + $0x50c] sm:$0xf0] }
 0x4b8   : > { %5122 = vmatmul.bf16.gmra.mxu1 %v6684_v40  ;;  %v7767_v33 = vld [vmem:[%s9380_s8 + $0x4d4] sm:$0xf] }
 0x4b9   : > { %5211 = vmatmul.bf16.gmra.mxu2 %v6688_v11  ;;  %v10093_v54 = vadd.f32 %v4893_v35, %v4805_v13  ;;  %v6740_v35 = vor.u32 %v7759_v41, %v6739_v43  ;;  %v7775_v41 = vld [vmem:[%s9380_s8 + $0x510] sm:$0xf0] }
 0x4ba   : > { %v4905_v5 = vpop.f32.mrf.mxu3 }
 0x4bb   : > { %v4906_v22 = vadd.f32 %v4905_v5, %v9849_v48  ;;  %v7967_v48 = vld [vmem:[%s9382_s0 + $0x390] sm:$0xff] }
 0x4bc   : > { %v5172_v23 = vpop.f32.mrf.mxu2  ;;  %v4996_v59 = vpop.f32.mrf.mxu0  ;;  %5524 = vmatpush.bf16.msrb.mxu2 %v7967_v48 }
 0x4bd   : > { %v4995_v24 = vadd.f32 %v4994_v27, %v4906_v22  ;;  %v5085_v42 = vpop.f32.mrf.mxu1  ;;  %v6744_v27 = vor.u32 %v7752_v49, %v6741_v15 }
 0x4bf   : > { %v5084_v30 = vadd.f32 %v5083_v45, %v4995_v24  ;;  %v7766_v24 = vld [vmem:[%s9380_s8 + $0x4cc] sm:$0xf] }
 0x4c1   : > { %v10105_v29 = vadd.f32 %v5172_v23, %v5084_v30  ;;  %v6807_v30 = vld [vmem:[%s9380_s8 + $0x4d8] sm:$0xf] }
 0x4c2   : > { %v4907_v56 = vpop.f32.mrf.mxu3 }
 0x4c3   : > { %v4908_v51 = vadd.f32 %v4907_v56, %v9855_v37  ;;  %v6808_v56 = vor.u32 %v7775_v41, %v6807_v30  ;;  %v7950_v30 = vld [vmem:[%s9382_s0 + $0x308] sm:$0xff] }
 0x4c4   : > { %v5174_v62 = vpop.f32.mrf.mxu2  ;;  %v4999_v10 = vpop.f32.mrf.mxu0  ;;  %v7958_v41 = vld [vmem:[%s9382_s0 + $0x348] sm:$0xff]  ;;  %5347 = vmatpush.bf16.msrb.mxu0 %v7950_v30 }
 0x4c5   : > { %v4997_v11 = vadd.f32 %v4996_v59, %v4908_v51  ;;  %v5088_v40 = vpop.f32.mrf.mxu1  ;;  %v6804_v51 = vor.u32 %v7767_v33, %v6801_v46  ;;  %5436 = vmatpush.bf16.msrb.mxu1 %v7958_v41 }
 0x4c7   : > { %v5086_v2 = vadd.f32 %v5085_v42, %v4997_v11  ;;  %4949 = vmatmul.bf16.gmra.mxu3 %v6736_v58  ;;  %5038 = vmatmul.bf16.gmra.mxu0 %v6740_v35  ;;  %v6793_v42 = vld [vmem:[%s9380_s8 + $0x504] sm:$0xf0] }
 0x4c8   : > { %5127 = vmatmul.bf16.gmra.mxu1 %v6744_v27  ;;  %v6796_v48 = vor.u32 %v7766_v24, %v6793_v42  ;;  %v7790_v24 = vld [vmem:[%s9380_s8 + $0x588] sm:$0xf0] }
 0x4c9   : > { %5216 = vmatmul.bf16.gmra.mxu2 %v6748_v6  ;;  %v10111_v37 = vadd.f32 %v5174_v62, %v5086_v2  ;;  %v7782_v42 = vld [vmem:[%s9380_s8 + $0x54c] sm:$0xf] }
 0x4ca   : > { %v4910_v45 = vpop.f32.mrf.mxu3 }
 0x4cb   : > { %v4911_v13 = vadd.f32 %v4910_v45, %v9863_v12 }
 0x4cc   : > { %v5177_v26 = vpop.f32.mrf.mxu2  ;;  %v5001_v5 = vpop.f32.mrf.mxu0 }
 0x4cd   : > { %v5000_v22 = vadd.f32 %v4999_v10, %v4911_v13  ;;  %v5090_v23 = vpop.f32.mrf.mxu1  ;;  %v7942_v10 = vld [vmem:[%s9382_s0 + $0x2c8] sm:$0xff]  ;;  %v7781_v13 = vld [vmem:[%s9380_s8 + $0x544] sm:$0xf] }
 0x4ce   : > { %5258 = vmatpush.bf16.msrb.mxu3 %v7942_v10 }
 0x4cf   : > { %v5089_v59 = vadd.f32 %v5088_v40, %v5000_v22  ;;  %v6859_v22 = vld [vmem:[%s9380_s8 + $0x548] sm:$0xf] }
 0x4d1   : > { %v10119_v43 = vadd.f32 %v5177_v26, %v5089_v59  ;;  %v6853_v26 = vld [vmem:[%s9380_s8 + $0x57c] sm:$0xf0]  ;;  %v6867_v59 = vld [vmem:[%s9380_s8 + $0x550] sm:$0xf] }
 0x4d2   : > { %v4912_v49 = vpop.f32.mrf.mxu3 }
 0x4d3   : > { %v4913_v15 = vadd.f32 %v4912_v49, %v9869_v57 }
 0x4d4   : > { %v5179_v12 = vpop.f32.mrf.mxu2  ;;  %v5004_v28 = vpop.f32.mrf.mxu0 }
 0x4d5   : > { %v5002_v62 = vadd.f32 %v5001_v5, %v4913_v15  ;;  %v5093_v58 = vpop.f32.mrf.mxu1  ;;  %v6856_v15 = vor.u32 %v7781_v13, %v6853_v26  ;;  %v6919_v13 = vld [vmem:[%s9380_s8 + $0x5c0] sm:$0xf]  ;;  %v7804_v26 = vld [vmem:[%s9380_s8 + $0x5f8] sm:$0xf0] }
 0x4d6   : > { %v6920_v30 = vor.u32 %v7804_v26, %v6919_v13  ;;  %v6981_v13 = vld [vmem:[%s9380_s8 + $0x674] sm:$0xf0] }
 0x4d7   : > { %v5091_v35 = vadd.f32 %v5090_v23, %v5002_v62  ;;  %4954 = vmatmul.bf16.gmra.mxu3 %v6796_v48  ;;  %5043 = vmatmul.bf16.gmra.mxu0 %v6800_v4  ;;  %v7789_v23 = vld [vmem:[%s9380_s8 + $0x580] sm:$0xf0]  ;;  %v6868_v4 = vor.u32 %v7790_v24, %v6867_v59  ;;  %v6921_v24 = vld [vmem:[%s9380_s8 + $0x5fc] sm:$0xf0] }
 0x4d8   : > { %5132 = vmatmul.bf16.gmra.mxu1 %v6804_v51  ;;  %v7797_v59 = vld [vmem:[%s9380_s8 + $0x5c4] sm:$0xf] }
 0x4d9   : > { %5221 = vmatmul.bf16.gmra.mxu2 %v6808_v56  ;;  %v10125_v57 = vadd.f32 %v5179_v12, %v5091_v35  ;;  %v6860_v12 = vor.u32 %v7789_v23, %v6859_v22  ;;  %v7805_v23 = vld [vmem:[%s9380_s8 + $0x600] sm:$0xf0] }
 0x4da   : > { %v4915_v6 = vpop.f32.mrf.mxu3 }
 0x4db   : > { %v4916_v27 = vadd.f32 %v4915_v6, %v9881_v25  ;;  %v7966_v25 = vld [vmem:[%s9382_s0 + $0x388] sm:$0xff] }
 0x4dc   : > { %v5182_v11 = vpop.f32.mrf.mxu2  ;;  %v5006_v40 = vpop.f32.mrf.mxu0  ;;  %5525 = vmatpush.bf16.msrb.mxu2 %v7966_v25 }
 0x4dd   : > { %v5005_v2 = vadd.f32 %v5004_v28, %v4916_v27  ;;  %v5095_v45 = vpop.f32.mrf.mxu1  ;;  %v6864_v28 = vor.u32 %v7782_v42, %v6861_v39 }
 0x4df   : > { %v5094_v5 = vadd.f32 %v5093_v58, %v5005_v2  ;;  %v7796_v2 = vld [vmem:[%s9380_s8 + $0x5bc] sm:$0xf] }
 0x4e1   : > { %v10137_v53 = vadd.f32 %v5182_v11, %v5094_v5  ;;  %v6927_v5 = vld [vmem:[%s9380_s8 + $0x5c8] sm:$0xf] }
 0x4e2   : > { %v4917_v33 = vpop.f32.mrf.mxu3 }
 0x4e3   : > { %v4918_v46 = vadd.f32 %v4917_v33, %v9887_v32  ;;  %v6928_v33 = vor.u32 %v7805_v23, %v6927_v5  ;;  %v7949_v5 = vld [vmem:[%s9382_s0 + $0x300] sm:$0xff] }
 0x4e4   : > { %v5184_v49 = vpop.f32.mrf.mxu2  ;;  %v5009_v48 = vpop.f32.mrf.mxu0  ;;  %v7957_v23 = vld [vmem:[%s9382_s0 + $0x340] sm:$0xff]  ;;  %5348 = vmatpush.bf16.msrb.mxu0 %v7949_v5 }
 0x4e5   : > { %v5007_v56 = vadd.f32 %v5006_v40, %v4918_v46  ;;  %v5098_v51 = vpop.f32.mrf.mxu1  ;;  %v6924_v46 = vor.u32 %v7797_v59, %v6921_v24  ;;  %5437 = vmatpush.bf16.msrb.mxu1 %v7957_v23 }
 0x4e7   : > { %v5096_v62 = vadd.f32 %v5095_v45, %v5007_v56  ;;  %4959 = vmatmul.bf16.gmra.mxu3 %v6856_v15  ;;  %5048 = vmatmul.bf16.gmra.mxu0 %v6860_v12  ;;  %v6913_v45 = vld [vmem:[%s9380_s8 + $0x5f4] sm:$0xf0] }
 0x4e8   : > { %5137 = vmatmul.bf16.gmra.mxu1 %v6864_v28  ;;  %v6916_v25 = vor.u32 %v7796_v2, %v6913_v45  ;;  %v7820_v2 = vld [vmem:[%s9380_s8 + $0x678] sm:$0xf0] }
 0x4e9   : > { %5226 = vmatmul.bf16.gmra.mxu2 %v6868_v4  ;;  %v10143_v32 = vadd.f32 %v5184_v49, %v5096_v62  ;;  %v7812_v45 = vld [vmem:[%s9380_s8 + $0x63c] sm:$0xf] }
 0x4ea   : > { %v4920_v58 = vpop.f32.mrf.mxu3 }
 0x4eb   : > { %v4921_v35 = vadd.f32 %v4920_v58, %v9895_v20 }
 0x4ec   : > { %v5187_v10 = vpop.f32.mrf.mxu2  ;;  %v5011_v6 = vpop.f32.mrf.mxu0 }
 0x4ed   : > { %v5010_v27 = vadd.f32 %v5009_v48, %v4921_v35  ;;  %v5100_v11 = vpop.f32.mrf.mxu1  ;;  %v7941_v48 = vld [vmem:[%s9382_s0 + $0x2c0] sm:$0xff]  ;;  %v7811_v35 = vld [vmem:[%s9380_s8 + $0x634] sm:$0xf] }
 0x4ee   : > { %5259 = vmatpush.bf16.msrb.mxu3 %v7941_v48 }
 0x4ef   : > { %v5099_v40 = vadd.f32 %v5098_v51, %v5010_v27  ;;  %v6979_v27 = vld [vmem:[%s9380_s8 + $0x638] sm:$0xf] }
 0x4f1   : > { %v10151_v22 = vadd.f32 %v5187_v10, %v5099_v40  ;;  %v6973_v10 = vld [vmem:[%s9380_s8 + $0x66c] sm:$0xf0]  ;;  %v6987_v40 = vld [vmem:[%s9380_s8 + $0x640] sm:$0xf] }
 0x4f2   : > { %v4922_v42 = vpop.f32.mrf.mxu3 }
 0x4f3   : > { %v4923_v39 = vadd.f32 %v4922_v42, %v9901_v0 }
 0x4f4   : > { %v5189_v20 = vpop.f32.mrf.mxu2  ;;  %v5014_v41 = vpop.f32.mrf.mxu0 }
 0x4f5   : > { %v5012_v49 = vadd.f32 %v5011_v6, %v4923_v39  ;;  %v5103_v15 = vpop.f32.mrf.mxu1  ;;  %v6976_v39 = vor.u32 %v7811_v35, %v6973_v10  ;;  %v7039_v35 = vld [vmem:[%s9380_s8 + $0x6b0] sm:$0xf]  ;;  %v7834_v10 = vld [vmem:[%s9380_s8 + $0x6e8] sm:$0xf0] }
 0x4f6   : > { %v7040_v5 = vor.u32 %v7834_v10, %v7039_v35  ;;  %v7101_v35 = vld [vmem:[%s9380_s8 + $0x764] sm:$0xf0] }
 0x4f7   : > { %v5101_v12 = vadd.f32 %v5100_v11, %v5012_v49  ;;  %4964 = vmatmul.bf16.gmra.mxu3 %v6916_v25  ;;  %5053 = vmatmul.bf16.gmra.mxu0 %v6920_v30  ;;  %v7819_v11 = vld [vmem:[%s9380_s8 + $0x670] sm:$0xf0]  ;;  %v6988_v30 = vor.u32 %v7820_v2, %v6987_v40  ;;  %v7041_v2 = vld [vmem:[%s9380_s8 + $0x6ec] sm:$0xf0] }
 0x4f8   : > { %5142 = vmatmul.bf16.gmra.mxu1 %v6924_v46  ;;  %v7827_v40 = vld [vmem:[%s9380_s8 + $0x6b4] sm:$0xf] }
 0x4f9   : > { %5231 = vmatmul.bf16.gmra.mxu2 %v6928_v33  ;;  %v10157_v0 = vadd.f32 %v5189_v20, %v5101_v12  ;;  %v6980_v20 = vor.u32 %v7819_v11, %v6979_v27  ;;  %v7835_v11 = vld [vmem:[%s9380_s8 + $0x6f0] sm:$0xf0] }
 0x4fa   : > { %v4925_v4 = vpop.f32.mrf.mxu3 }
 0x4fb   : > { %v4926_v28 = vadd.f32 %v4925_v4, %v9913_v3  ;;  %v7965_v3 = vld [vmem:[%s9382_s0 + $0x380] sm:$0xff] }
 0x4fc   : > { %v5192_v56 = vpop.f32.mrf.mxu2  ;;  %v5016_v51 = vpop.f32.mrf.mxu0  ;;  %5526 = vmatpush.bf16.msrb.mxu2 %v7965_v3 }
 0x4fd   : > { %v5015_v62 = vadd.f32 %v5014_v41, %v4926_v28  ;;  %v5105_v58 = vpop.f32.mrf.mxu1  ;;  %v6984_v41 = vor.u32 %v7812_v45, %v6981_v13 }
 0x4ff   : > { %v5104_v6 = vadd.f32 %v5103_v15, %v5015_v62  ;;  %v7826_v62 = vld [vmem:[%s9380_s8 + $0x6ac] sm:$0xf] }
 0x501   : > { %v10169_v26 = vadd.f32 %v5192_v56, %v5104_v6  ;;  %v7047_v6 = vld [vmem:[%s9380_s8 + $0x6b8] sm:$0xf] }
 0x502   : > { %v4927_v59 = vpop.f32.mrf.mxu3 }
 0x503   : > { %v4928_v24 = vadd.f32 %v4927_v59, %v9919_v34  ;;  %v7048_v59 = vor.u32 %v7835_v11, %v7047_v6 }
 0x504   : > { %v5194_v42 = vpop.f32.mrf.mxu2  ;;  %v5019_v25 = vpop.f32.mrf.mxu0 }
 0x505   : > { %v5017_v33 = vadd.f32 %v5016_v51, %v4928_v24  ;;  %v5108_v46 = vpop.f32.mrf.mxu1  ;;  %v7044_v24 = vor.u32 %v7827_v40, %v7041_v2 }
 0x507   : > { %v5106_v49 = vadd.f32 %v5105_v58, %v5017_v33  ;;  %4969 = vmatmul.bf16.gmra.mxu3 %v6976_v39  ;;  %5058 = vmatmul.bf16.gmra.mxu0 %v6980_v20  ;;  %v7033_v58 = vld [vmem:[%s9380_s8 + $0x6e4] sm:$0xf0] }
 0x508   : > { %5147 = vmatmul.bf16.gmra.mxu1 %v6984_v41 }
 0x509   : > { %5236 = vmatmul.bf16.gmra.mxu2 %v6988_v30  ;;  %v10175_v34 = vadd.f32 %v5194_v42, %v5106_v49 }
 0x50a   : > { %v4930_v15 = vpop.f32.mrf.mxu3 }
 0x50b   : > { %v4931_v12 = vadd.f32 %v4930_v15, %v9927_v55  ;;  %v7036_v55 = vor.u32 %v7826_v62, %v7033_v58  ;;  %v7850_v62 = vld [vmem:[%s9380_s8 + $0x768] sm:$0xf0] }
 0x50c   : > { %v5197_v48 = vpop.f32.mrf.mxu2  ;;  %v5021_v4 = vpop.f32.mrf.mxu0  ;;  %v7842_v58 = vld [vmem:[%s9380_s8 + $0x72c] sm:$0xf] }
 0x50d   : > { %v5020_v28 = vadd.f32 %v5019_v25, %v4931_v12  ;;  %v5110_v56 = vpop.f32.mrf.mxu1  ;;  %v7841_v12 = vld [vmem:[%s9380_s8 + $0x724] sm:$0xf] }
 0x50f   : > { %v5109_v51 = vadd.f32 %v5108_v46, %v5020_v28  ;;  %v7849_v28 = vld [vmem:[%s9380_s8 + $0x760] sm:$0xf0] }
 0x511   : > { %v10183_v27 = vadd.f32 %v5197_v48, %v5109_v51  ;;  %v7093_v48 = vld [vmem:[%s9380_s8 + $0x75c] sm:$0xf0] }
 0x512   : > { %v4932_v45 = vpop.f32.mrf.mxu3 }
 0x513   : > { %v4933_v13 = vadd.f32 %v4932_v45, %v9933_v7 }
 0x514   : > { %v5199_v3 = vpop.f32.mrf.mxu2  ;;  %v5024_v23 = vpop.f32.mrf.mxu0 }
 0x515   : > { %v5022_v42 = vadd.f32 %v5021_v4, %v4933_v13  ;;  %v5113_v39 = vpop.f32.mrf.mxu1  ;;  %v7099_v4 = vld [vmem:[%s9380_s8 + $0x728] sm:$0xf]  ;;  %v7104_v13 = vor.u32 %v7842_v58, %v7101_v35 }
 0x516   : > { %v7100_v40 = vor.u32 %v7849_v28, %v7099_v4  ;;  %v6217_v4 = vld [vmem:[%s9380_s8 + $0x6c] sm:$0xf0] }
 0x517   : > { %v5111_v20 = vadd.f32 %v5110_v56, %v5022_v42  ;;  %4974 = vmatmul.bf16.gmra.mxu3 %v7036_v55  ;;  %5063 = vmatmul.bf16.gmra.mxu0 %v7040_v5  ;;  %v7107_v56 = vld [vmem:[%s9380_s8 + $0x730] sm:$0xf] }
 0x518   : > { %5152 = vmatmul.bf16.gmra.mxu1 %v7044_v24  ;;  %v7108_v45 = vor.u32 %v7850_v62, %v7107_v56 }
 0x519   : > { %5241 = vmatmul.bf16.gmra.mxu2 %v7048_v59  ;;  %v10189_v7 = vadd.f32 %v5199_v3, %v5111_v20 }
 0x51a   : > { %v4935_v25 = vpop.f32.mrf.mxu3 }
 0x51b   : > { %v4936_v30 = vadd.f32 %v4935_v25, %v9945_v47  ;;  %v7096_v47 = vor.u32 %v7841_v12, %v7093_v48  ;;  %v7627_v12 = vld [vmem:[%s9380_s8 + $0x70] sm:$0xf0] }
 0x51c   : > { %v5202_v41 = vpop.f32.mrf.mxu2  ;;  %v5026_v33 = vpop.f32.mrf.mxu0  ;;  %v7619_v48 = vld [vmem:[%s9380_s8 + $0x34] sm:$0xf] }
 0x51d   : > { %v5025_v46 = vadd.f32 %v5024_v23, %v4936_v30  ;;  %v5115_v49 = vpop.f32.mrf.mxu1  ;;  %v7618_v30 = vld [vmem:[%s9380_s8 + $0x2c] sm:$0xf] }
 0x51f   : > { %v5114_v15 = vadd.f32 %v5113_v39, %v5025_v46  ;;  %v7626_v46 = vld [vmem:[%s9380_s8 + $0x68] sm:$0xf0] }
 0x521   : > { %v10197_v51 = vadd.f32 %v5202_v41, %v5114_v15  ;;  %v6209_v41 = vld [vmem:[%s9380_s8 + $0x64] sm:$0xf0] }
 0x522   : > { %v4937_v10 = vpop.f32.mrf.mxu3 }
 0x523   : > { %v4938_v6 = vadd.f32 %v4937_v10, %v9951_v44 }
 0x524   : > { %v5204_v11 = vpop.f32.mrf.mxu2  ;;  %v5029_v2 = vpop.f32.mrf.mxu0 }
 0x525   : > { %v5027_v3 = vadd.f32 %v5026_v33, %v4938_v6  ;;  %v5118_v55 = vpop.f32.mrf.mxu1  ;;  %v6215_v33 = vld [vmem:[%s9380_s8 + $0x30] sm:$0xf]  ;;  %v6220_v6 = vor.u32 %v7619_v48, %v6217_v4 }
 0x526   : > { %v6216_v58 = vor.u32 %v7626_v46, %v6215_v33  ;;  %v6277_v33 = vld [vmem:[%s9380_s8 + $0xe4] sm:$0xf0] }
 0x527   : > { %v5116_v5 = vadd.f32 %v5115_v49, %v5027_v3  ;;  %4979 = vmatmul.bf16.gmra.mxu3 %v7096_v47  ;;  %5068 = vmatmul.bf16.gmra.mxu0 %v7100_v40  ;;  %v6223_v49 = vld [vmem:[%s9380_s8 + $0x38] sm:$0xf] }
 0x528   : > { %5157 = vmatmul.bf16.gmra.mxu1 %v7104_v13  ;;  %v6224_v10 = vor.u32 %v7627_v12, %v6223_v49 }
 0x529   : > { %5246 = vmatmul.bf16.gmra.mxu2 %v7108_v45  ;;  %v10203_v44 = vadd.f32 %v5204_v11, %v5116_v5 }
 0x52a   : > { %v4940_v23 = vpop.f32.mrf.mxu3 }
 0x52b   : > { %v4941_v59 = vadd.f32 %v4940_v23, %v9959_v50  ;;  %v6212_v50 = vor.u32 %v7618_v30, %v6209_v41  ;;  %v7642_v30 = vld [vmem:[%s9380_s8 + $0xe8] sm:$0xf0] }
 0x52c   : > { %v5207_v24 = vpop.f32.mrf.mxu2  ;;  %v5031_v42 = vpop.f32.mrf.mxu0  ;;  %v7634_v41 = vld [vmem:[%s9380_s8 + $0xac] sm:$0xf] }
 0x52d   : > { %v5030_v39 = vadd.f32 %v5029_v2, %v4941_v59  ;;  %v5120_v20 = vpop.f32.mrf.mxu1  ;;  %v7633_v59 = vld [vmem:[%s9380_s8 + $0xa4] sm:$0xf] }
 0x52f   : > { %v5119_v25 = vadd.f32 %v5118_v55, %v5030_v39  ;;  %v7641_v39 = vld [vmem:[%s9380_s8 + $0xe0] sm:$0xf0] }
 0x531   : > { %v10211_v15 = vadd.f32 %v5207_v24, %v5119_v25  ;;  %v6269_v24 = vld [vmem:[%s9380_s8 + $0xdc] sm:$0xf0] }
 0x532   : > { %v4942_v28 = vpop.f32.mrf.mxu3 }
 0x533   : > { %v4943_v56 = vadd.f32 %v4942_v28, %v9965_v18 }
 0x534   : > { %v5209_v62 = vpop.f32.mrf.mxu2  ;;  %v5034_v35 = vpop.f32.mrf.mxu0 }
 0x535   : > { %v5032_v11 = vadd.f32 %v5031_v42, %v4943_v56  ;;  %v5123_v47 = vpop.f32.mrf.mxu1  ;;  %v6275_v42 = vld [vmem:[%s9380_s8 + $0xa8] sm:$0xf]  ;;  %v6280_v56 = vor.u32 %v7634_v41, %v6277_v33 }
 0x536   : > { %v6276_v48 = vor.u32 %v7641_v39, %v6275_v42  ;;  %v6337_v42 = vld [vmem:[%s9380_s8 + $0x15c] sm:$0xf0] }
 0x537   : > { %v5121_v40 = vadd.f32 %v5120_v20, %v5032_v11  ;;  %5260 = vmatmul.bf16.vlgmr.msrb.gmra.mxu3 %v6212_v50  ;;  %5349 = vmatmul.bf16.vlgmr.msrb.gmra.mxu0 %v6216_v58  ;;  %v6283_v20 = vld [vmem:[%s9380_s8 + $0xb0] sm:$0xf] }
 0x538   : > { %5438 = vmatmul.bf16.vlgmr.msrb.gmra.mxu1 %v6220_v6  ;;  %v6284_v28 = vor.u32 %v7642_v30, %v6283_v20 }
 0x539   : > { %5527 = vmatmul.bf16.vlgmr.msrb.gmra.mxu2 %v6224_v10  ;;  %v10217_v18 = vadd.f32 %v5209_v62, %v5121_v40 }
 0x53a   : > { %v4945_v2 = vpop.f32.mrf.mxu3 }
 0x53b   : > { %v4946_v45 = vadd.f32 %v4945_v2, %v9977_v8  ;;  %v6272_v8 = vor.u32 %v7633_v59, %v6269_v24  ;;  %v7657_v59 = vld [vmem:[%s9380_s8 + $0x160] sm:$0xf0] }
 0x53c   : > { %v5212_v13 = vpop.f32.mrf.mxu2  ;;  %v5036_v3 = vpop.f32.mrf.mxu0  ;;  %v7649_v24 = vld [vmem:[%s9380_s8 + $0x124] sm:$0xf] }
 0x53d   : > { %v5035_v55 = vadd.f32 %v5034_v35, %v4946_v45  ;;  %v5125_v5 = vpop.f32.mrf.mxu1  ;;  %v7648_v45 = vld [vmem:[%s9380_s8 + $0x11c] sm:$0xf] }
 0x53f   : > { %v5124_v23 = vadd.f32 %v5123_v47, %v5035_v55  ;;  %v7656_v55 = vld [vmem:[%s9380_s8 + $0x158] sm:$0xf0] }
 0x541   : > { %v10225_v25 = vadd.f32 %v5212_v13, %v5124_v23  ;;  %v6329_v13 = vld [vmem:[%s9380_s8 + $0x154] sm:$0xf0] }
 0x542   : > { %v4947_v46 = vpop.f32.mrf.mxu3 }
 0x543   : > { %v4948_v49 = vadd.f32 %v4947_v46, %v9983_v1 }
 0x544   : > { %v5214_v12 = vpop.f32.mrf.mxu2  ;;  %v5039_v4 = vpop.f32.mrf.mxu0 }
 0x545   : > { %v5037_v62 = vadd.f32 %v5036_v3, %v4948_v49  ;;  %v5128_v50 = vpop.f32.mrf.mxu1  ;;  %v6335_v3 = vld [vmem:[%s9380_s8 + $0x120] sm:$0xf]  ;;  %v6340_v49 = vor.u32 %v7649_v24, %v6337_v42 }
 0x546   : > { %v6336_v41 = vor.u32 %v7656_v55, %v6335_v3  ;;  %v6397_v3 = vld [vmem:[%s9380_s8 + $0x1d4] sm:$0xf0] }
 0x547   : > { %v5126_v58 = vadd.f32 %v5125_v5, %v5037_v62  ;;  %5265 = vmatmul.bf16.gmra.mxu3 %v6272_v8  ;;  %5354 = vmatmul.bf16.gmra.mxu0 %v6276_v48  ;;  %v6343_v5 = vld [vmem:[%s9380_s8 + $0x128] sm:$0xf] }
 0x548   : > { %5443 = vmatmul.bf16.gmra.mxu1 %v6280_v56  ;;  %v6344_v46 = vor.u32 %v7657_v59, %v6343_v5 }
 0x549   : > { %5532 = vmatmul.bf16.gmra.mxu2 %v6284_v28  ;;  %v10231_v1 = vadd.f32 %v5214_v12, %v5126_v58 }
 0x54a   : > { %v4950_v35 = vpop.f32.mrf.mxu3 }
 0x54b   : > { %v4951_v10 = vadd.f32 %v4950_v35, %v9991_v38  ;;  %v6332_v38 = vor.u32 %v7648_v45, %v6329_v13  ;;  %v7672_v45 = vld [vmem:[%s9380_s8 + $0x1d8] sm:$0xf0] }
 0x54c   : > { %v5217_v6 = vpop.f32.mrf.mxu2  ;;  %v5041_v11 = vpop.f32.mrf.mxu0  ;;  %v7664_v13 = vld [vmem:[%s9380_s8 + $0x19c] sm:$0xf] }
 0x54d   : > { %v5040_v47 = vadd.f32 %v5039_v4, %v4951_v10  ;;  %v5130_v40 = vpop.f32.mrf.mxu1  ;;  %v7663_v10 = vld [vmem:[%s9380_s8 + $0x194] sm:$0xf] }
 0x54f   : > { %v5129_v2 = vadd.f32 %v5128_v50, %v5040_v47  ;;  %v7671_v47 = vld [vmem:[%s9380_s8 + $0x1d0] sm:$0xf0] }
 0x551   : > { %v10239_v23 = vadd.f32 %v5217_v6, %v5129_v2  ;;  %v6389_v6 = vld [vmem:[%s9380_s8 + $0x1cc] sm:$0xf0] }
 0x552   : > { %v4952_v39 = vpop.f32.mrf.mxu3 }
 0x553   : > { %v4953_v20 = vadd.f32 %v4952_v39, %v9997_v36 }
 0x554   : > { %v5219_v30 = vpop.f32.mrf.mxu2  ;;  %v5044_v33 = vpop.f32.mrf.mxu0 }
 0x555   : > { %v5042_v12 = vadd.f32 %v5041_v11, %v4953_v20  ;;  %v5133_v8 = vpop.f32.mrf.mxu1  ;;  %v6395_v11 = vld [vmem:[%s9380_s8 + $0x198] sm:$0xf]  ;;  %v6400_v20 = vor.u32 %v7664_v13, %v6397_v3 }
 0x556   : > { %v6396_v24 = vor.u32 %v7671_v47, %v6395_v11  ;;  %v6457_v11 = vld [vmem:[%s9380_s8 + $0x24c] sm:$0xf0] }
 0x557   : > { %v5131_v48 = vadd.f32 %v5130_v40, %v5042_v12  ;;  %5270 = vmatmul.bf16.gmra.mxu3 %v6332_v38  ;;  %5359 = vmatmul.bf16.gmra.mxu0 %v6336_v41  ;;  %v6403_v40 = vld [vmem:[%s9380_s8 + $0x1a0] sm:$0xf] }
 0x558   : > { %5448 = vmatmul.bf16.gmra.mxu1 %v6340_v49  ;;  %v6404_v39 = vor.u32 %v7672_v45, %v6403_v40 }
 0x559   : > { %5537 = vmatmul.bf16.gmra.mxu2 %v6344_v46  ;;  %v10245_v36 = vadd.f32 %v5219_v30, %v5131_v48 }
 0x55a   : > { %v4955_v4 = vpop.f32.mrf.mxu3 }
 0x55b   : > { %v4956_v28 = vadd.f32 %v4955_v4, %v10009_v14  ;;  %v6392_v14 = vor.u32 %v7663_v10, %v6389_v6  ;;  %v7687_v10 = vld [vmem:[%s9380_s8 + $0x250] sm:$0xf0] }
 0x55c   : > { %v5222_v56 = vpop.f32.mrf.mxu2  ;;  %v5046_v62 = vpop.f32.mrf.mxu0  ;;  %v7679_v6 = vld [vmem:[%s9380_s8 + $0x214] sm:$0xf] }
 0x55d   : > { %v5045_v50 = vadd.f32 %v5044_v33, %v4956_v28  ;;  %v5135_v58 = vpop.f32.mrf.mxu1  ;;  %v7678_v28 = vld [vmem:[%s9380_s8 + $0x20c] sm:$0xf] }
 0x55f   : > { %v5134_v35 = vadd.f32 %v5133_v8, %v5045_v50  ;;  %v7686_v50 = vld [vmem:[%s9380_s8 + $0x248] sm:$0xf0] }
 0x561   : > { %v10253_v2 = vadd.f32 %v5222_v56, %v5134_v35  ;;  %v6449_v56 = vld [vmem:[%s9380_s8 + $0x244] sm:$0xf0] }
 0x562   : > { %v4957_v55 = vpop.f32.mrf.mxu3 }
 0x563   : > { %v4958_v5 = vadd.f32 %v4957_v55, %v10015_v19 }
 0x564   : > { %v5224_v59 = vpop.f32.mrf.mxu2  ;;  %v5049_v42 = vpop.f32.mrf.mxu0 }
 0x565   : > { %v5047_v30 = vadd.f32 %v5046_v62, %v4958_v5  ;;  %v5138_v38 = vpop.f32.mrf.mxu1  ;;  %v6455_v62 = vld [vmem:[%s9380_s8 + $0x210] sm:$0xf]  ;;  %v6460_v5 = vor.u32 %v7679_v6, %v6457_v11 }
 0x566   : > { %v6456_v13 = vor.u32 %v7686_v50, %v6455_v62  ;;  %v6517_v62 = vld [vmem:[%s9380_s8 + $0x2c4] sm:$0xf0] }
 0x567   : > { %v5136_v41 = vadd.f32 %v5135_v58, %v5047_v30  ;;  %5275 = vmatmul.bf16.gmra.mxu3 %v6392_v14  ;;  %5364 = vmatmul.bf16.gmra.mxu0 %v6396_v24  ;;  %v6463_v58 = vld [vmem:[%s9380_s8 + $0x218] sm:$0xf] }
 0x568   : > { %5453 = vmatmul.bf16.gmra.mxu1 %v6400_v20  ;;  %v6464_v55 = vor.u32 %v7687_v10, %v6463_v58 }
 0x569   : > { %5542 = vmatmul.bf16.gmra.mxu2 %v6404_v39  ;;  %v10259_v19 = vadd.f32 %v5224_v59, %v5136_v41 }
 0x56a   : > { %v4960_v33 = vpop.f32.mrf.mxu3 }
 0x56b   : > { %v4961_v46 = vadd.f32 %v4960_v33, %v10023_v21  ;;  %v6452_v21 = vor.u32 %v7678_v28, %v6449_v56  ;;  %v7702_v28 = vld [vmem:[%s9380_s8 + $0x2c8] sm:$0xf0] }
 0x56c   : > { %v5227_v49 = vpop.f32.mrf.mxu2  ;;  %v5051_v12 = vpop.f32.mrf.mxu0  ;;  %v7694_v56 = vld [vmem:[%s9380_s8 + $0x28c] sm:$0xf] }
 0x56d   : > { %v5050_v8 = vadd.f32 %v5049_v42, %v4961_v46  ;;  %v5140_v48 = vpop.f32.mrf.mxu1  ;;  %v7693_v46 = vld [vmem:[%s9380_s8 + $0x284] sm:$0xf] }
 0x56f   : > { %v5139_v4 = vadd.f32 %v5138_v38, %v5050_v8  ;;  %v7701_v8 = vld [vmem:[%s9380_s8 + $0x2c0] sm:$0xf0] }
 0x571   : > { %v10267_v35 = vadd.f32 %v5227_v49, %v5139_v4  ;;  %v6509_v49 = vld [vmem:[%s9380_s8 + $0x2bc] sm:$0xf0] }
 0x572   : > { %v4962_v47 = vpop.f32.mrf.mxu3 }
 0x573   : > { %v4963_v40 = vadd.f32 %v4962_v47, %v10029_v9 }
 0x574   : > { %v5229_v45 = vpop.f32.mrf.mxu2  ;;  %v5054_v3 = vpop.f32.mrf.mxu0 }
 0x575   : > { %v5052_v59 = vadd.f32 %v5051_v12, %v4963_v40  ;;  %v5143_v14 = vpop.f32.mrf.mxu1  ;;  %v6515_v12 = vld [vmem:[%s9380_s8 + $0x288] sm:$0xf]  ;;  %v6520_v40 = vor.u32 %v7694_v56, %v6517_v62 }
 0x576   : > { %v6516_v6 = vor.u32 %v7701_v8, %v6515_v12  ;;  %v6577_v12 = vld [vmem:[%s9380_s8 + $0x33c] sm:$0xf0] }
 0x577   : > { %v5141_v24 = vadd.f32 %v5140_v48, %v5052_v59  ;;  %5280 = vmatmul.bf16.gmra.mxu3 %v6452_v21  ;;  %5369 = vmatmul.bf16.gmra.mxu0 %v6456_v13  ;;  %v6523_v48 = vld [vmem:[%s9380_s8 + $0x290] sm:$0xf] }
 0x578   : > { %5458 = vmatmul.bf16.gmra.mxu1 %v6460_v5  ;;  %v6524_v47 = vor.u32 %v7702_v28, %v6523_v48 }
 0x579   : > { %5547 = vmatmul.bf16.gmra.mxu2 %v6464_v55  ;;  %v10273_v9 = vadd.f32 %v5229_v45, %v5141_v24 }
 0x57a   : > { %v4965_v42 = vpop.f32.mrf.mxu3 }
 0x57b   : > { %v4966_v39 = vadd.f32 %v4965_v42, %v10041_v63  ;;  %v6512_v63 = vor.u32 %v7693_v46, %v6509_v49  ;;  %v7717_v46 = vld [vmem:[%s9380_s8 + $0x340] sm:$0xf0] }
 0x57c   : > { %v5232_v20 = vpop.f32.mrf.mxu2  ;;  %v5056_v30 = vpop.f32.mrf.mxu0  ;;  %v7709_v49 = vld [vmem:[%s9380_s8 + $0x304] sm:$0xf] }
 0x57d   : > { %v5055_v38 = vadd.f32 %v5054_v3, %v4966_v39  ;;  %v5145_v41 = vpop.f32.mrf.mxu1  ;;  %v7708_v39 = vld [vmem:[%s9380_s8 + $0x2fc] sm:$0xf] }
 0x57f   : > { %v5144_v33 = vadd.f32 %v5143_v14, %v5055_v38  ;;  %v7716_v38 = vld [vmem:[%s9380_s8 + $0x338] sm:$0xf0] }
 0x581   : > { %v10281_v4 = vadd.f32 %v5232_v20, %v5144_v33  ;;  %v6569_v20 = vld [vmem:[%s9380_s8 + $0x334] sm:$0xf0] }
 0x582   : > { %v4967_v50 = vpop.f32.mrf.mxu3 }
 0x583   : > { %v4968_v58 = vadd.f32 %v4967_v50, %v10047_v61 }
 0x584   : > { %v5234_v10 = vpop.f32.mrf.mxu2  ;;  %v5059_v11 = vpop.f32.mrf.mxu0 }
 0x585   : > { %v5057_v45 = vadd.f32 %v5056_v30, %v4968_v58  ;;  %v5148_v21 = vpop.f32.mrf.mxu1  ;;  %v6575_v30 = vld [vmem:[%s9380_s8 + $0x300] sm:$0xf]  ;;  %v6580_v58 = vor.u32 %v7709_v49, %v6577_v12 }
 0x586   : > { %v6576_v56 = vor.u32 %v7716_v38, %v6575_v30  ;;  %v6637_v30 = vld [vmem:[%s9380_s8 + $0x3b4] sm:$0xf0] }
 0x587   : > { %v5146_v13 = vadd.f32 %v5145_v41, %v5057_v45  ;;  %5285 = vmatmul.bf16.gmra.mxu3 %v6512_v63  ;;  %5374 = vmatmul.bf16.gmra.mxu0 %v6516_v6  ;;  %v6583_v41 = vld [vmem:[%s9380_s8 + $0x308] sm:$0xf] }
 0x588   : > { %5463 = vmatmul.bf16.gmra.mxu1 %v6520_v40  ;;  %v6584_v50 = vor.u32 %v7717_v46, %v6583_v41 }
 0x589   : > { %5552 = vmatmul.bf16.gmra.mxu2 %v6524_v47  ;;  %v10287_v61 = vadd.f32 %v5234_v10, %v5146_v13 }
 0x58a   : > { %v4970_v3 = vpop.f32.mrf.mxu3 }
 0x58b   : > { %v4971_v55 = vadd.f32 %v4970_v3, %v10055_v60  ;;  %v6572_v60 = vor.u32 %v7708_v39, %v6569_v20  ;;  %v7732_v39 = vld [vmem:[%s9380_s8 + $0x3b8] sm:$0xf0] }
 0x58c   : > { %v5237_v5 = vpop.f32.mrf.mxu2  ;;  %v5061_v59 = vpop.f32.mrf.mxu0  ;;  %v7724_v20 = vld [vmem:[%s9380_s8 + $0x37c] sm:$0xf] }
 0x58d   : > { %v5060_v14 = vadd.f32 %v5059_v11, %v4971_v55  ;;  %v5150_v24 = vpop.f32.mrf.mxu1  ;;  %v7723_v55 = vld [vmem:[%s9380_s8 + $0x374] sm:$0xf] }
 0x58f   : > { %v5149_v42 = vadd.f32 %v5148_v21, %v5060_v14  ;;  %v7731_v14 = vld [vmem:[%s9380_s8 + $0x3b0] sm:$0xf0] }
 0x591   : > { %v10295_v33 = vadd.f32 %v5237_v5, %v5149_v42  ;;  %v6629_v5 = vld [vmem:[%s9380_s8 + $0x3ac] sm:$0xf0] }
 0x592   : > { %v4972_v8 = vpop.f32.mrf.mxu3 }
 0x593   : > { %v4973_v48 = vadd.f32 %v4972_v8, %v10061_v31 }
 0x594   : > { %v5239_v28 = vpop.f32.mrf.mxu2  ;;  %v5064_v62 = vpop.f32.mrf.mxu0 }
 0x595   : > { %v5062_v10 = vadd.f32 %v5061_v59, %v4973_v48  ;;  %v5153_v63 = vpop.f32.mrf.mxu1  ;;  %v6635_v59 = vld [vmem:[%s9380_s8 + $0x378] sm:$0xf]  ;;  %v6640_v48 = vor.u32 %v7724_v20, %v6637_v30 }
 0x596   : > { %v6636_v49 = vor.u32 %v7731_v14, %v6635_v59  ;;  %v6697_v59 = vld [vmem:[%s9380_s8 + $0x42c] sm:$0xf0] }
 0x597   : > { %v5151_v6 = vadd.f32 %v5150_v24, %v5062_v10  ;;  %5290 = vmatmul.bf16.gmra.mxu3 %v6572_v60  ;;  %5379 = vmatmul.bf16.gmra.mxu0 %v6576_v56  ;;  %v6643_v24 = vld [vmem:[%s9380_s8 + $0x380] sm:$0xf] }
 0x598   : > { %5468 = vmatmul.bf16.gmra.mxu1 %v6580_v58  ;;  %v6644_v8 = vor.u32 %v7732_v39, %v6643_v24 }
 0x599   : > { %5557 = vmatmul.bf16.gmra.mxu2 %v6584_v50  ;;  %v10301_v31 = vadd.f32 %v5239_v28, %v5151_v6 }
 0x59a   : > { %v4975_v11 = vpop.f32.mrf.mxu3 }
 0x59b   : > { %v4976_v47 = vadd.f32 %v4975_v11, %v10073_v17  ;;  %v6632_v17 = vor.u32 %v7723_v55, %v6629_v5  ;;  %v7747_v55 = vld [vmem:[%s9380_s8 + $0x430] sm:$0xf0] }
 0x59c   : > { %v5242_v40 = vpop.f32.mrf.mxu2  ;;  %v5066_v45 = vpop.f32.mrf.mxu0  ;;  %v7739_v5 = vld [vmem:[%s9380_s8 + $0x3f4] sm:$0xf] }
 0x59d   : > { %v5065_v21 = vadd.f32 %v5064_v62, %v4976_v47  ;;  %v5155_v13 = vpop.f32.mrf.mxu1  ;;  %v7738_v47 = vld [vmem:[%s9380_s8 + $0x3ec] sm:$0xf] }
 0x59f   : > { %v5154_v3 = vadd.f32 %v5153_v63, %v5065_v21  ;;  %v7746_v21 = vld [vmem:[%s9380_s8 + $0x428] sm:$0xf0] }
 0x5a1   : > { %v10309_v42 = vadd.f32 %v5242_v40, %v5154_v3  ;;  %v6689_v40 = vld [vmem:[%s9380_s8 + $0x424] sm:$0xf0] }
 0x5a2   : > { %v4977_v38 = vpop.f32.mrf.mxu3 }
 0x5a3   : > { %v4978_v41 = vadd.f32 %v4977_v38, %v10079_v16 }
 0x5a4   : > { %v5244_v46 = vpop.f32.mrf.mxu2  ;;  %v5069_v12 = vpop.f32.mrf.mxu0 }
 0x5a5   : > { %v5067_v28 = vadd.f32 %v5066_v45, %v4978_v41  ;;  %v5158_v60 = vpop.f32.mrf.mxu1  ;;  %v6695_v45 = vld [vmem:[%s9380_s8 + $0x3f0] sm:$0xf]  ;;  %v6700_v41 = vor.u32 %v7739_v5, %v6697_v59 }
 0x5a6   : > { %v6696_v20 = vor.u32 %v7746_v21, %v6695_v45  ;;  %v7754_v45 = vld [vmem:[%s9380_s8 + $0x46c] sm:$0xf]  ;;  %v6757_v21 = vld [vmem:[%s9380_s8 + $0x4a4] sm:$0xf0] }
 0x5a7   : > { %v5156_v56 = vadd.f32 %v5155_v13, %v5067_v28  ;;  %5295 = vmatmul.bf16.gmra.mxu3 %v6632_v17  ;;  %5384 = vmatmul.bf16.gmra.mxu0 %v6636_v49  ;;  %v6703_v13 = vld [vmem:[%s9380_s8 + $0x3f8] sm:$0xf] }
 0x5a8   : > { %5473 = vmatmul.bf16.gmra.mxu1 %v6640_v48  ;;  %v6704_v38 = vor.u32 %v7747_v55, %v6703_v13 }
 0x5a9   : > { %5562 = vmatmul.bf16.gmra.mxu2 %v6644_v8  ;;  %v10315_v16 = vadd.f32 %v5244_v46, %v5156_v56 }
 0x5aa   : > { %v4980_v62 = vpop.f32.mrf.mxu3 }
 0x5ab   : > { %v4981_v50 = vadd.f32 %v4980_v62, %v10087_v52  ;;  %v6692_v52 = vor.u32 %v7738_v47, %v6689_v40  ;;  %v1809_v62 = vld [vmem:[%s9384_s1] sm:$0xff]  ;;  %v7762_v40 = vld [vmem:[%s9380_s8 + $0x4a8] sm:$0xf0] }
 0x5ac   : > { %v5247_v58 = vpop.f32.mrf.mxu2  ;;  %v5071_v10 = vpop.f32.mrf.mxu0 }
 0x5ad   : > { %v5070_v63 = vadd.f32 %v5069_v12, %v4981_v50  ;;  %v5160_v6 = vpop.f32.mrf.mxu1 }
 0x5af   : > { %v5159_v11 = vadd.f32 %v5158_v60, %v5070_v63  ;;  %v6755_v63 = vld [vmem:[%s9380_s8 + $0x468] sm:$0xf] }
 0x5b1   : > { %v10323_v3 = vadd.f32 %v5247_v58, %v5159_v11  ;;  %v7753_v58 = vld [vmem:[%s9380_s8 + $0x464] sm:$0xf]  ;;  %v6763_v11 = vld [vmem:[%s9380_s8 + $0x470] sm:$0xf] }
 0x5b2   : > { %v4982_v14 = vpop.f32.mrf.mxu3 }
 0x5b3   : > { %v4983_v24 = vadd.f32 %v4982_v14, %v10093_v54 }
 0x5b4   : > { %v5249_v39 = vpop.f32.mrf.mxu2  ;;  %v5350_v30 = vpop.f32.mrf.mxu0 }
 0x5b5   : > { %v5072_v46 = vadd.f32 %v5071_v10, %v4983_v24  ;;  %v5439_v17 = vpop.f32.mrf.mxu1  ;;  %v6749_v10 = vld [vmem:[%s9380_s8 + $0x49c] sm:$0xf0] }
 0x5b6   : > { %v6752_v59 = vor.u32 %v7753_v58, %v6749_v10  ;;  %v6815_v58 = vld [vmem:[%s9380_s8 + $0x4e0] sm:$0xf]  ;;  %v7776_v10 = vld [vmem:[%s9380_s8 + $0x518] sm:$0xf0] }
 0x5b7   : > { %v5161_v49 = vadd.f32 %v5160_v6, %v5072_v46  ;;  %5300 = vmatmul.bf16.gmra.mxu3 %v6692_v52  ;;  %5389 = vmatmul.bf16.gmra.mxu0 %v6696_v20  ;;  %v7761_v6 = vld [vmem:[%s9380_s8 + $0x4a0] sm:$0xf0]  ;;  %v6760_v52 = vor.u32 %v7754_v45, %v6757_v21 }
 0x5b8   : > { %5478 = vmatmul.bf16.gmra.mxu1 %v6700_v41  ;;  %v6756_v14 = vor.u32 %v7761_v6, %v6755_v63  ;;  %v1810_v41 = vld [vmem:[%s9384_s1 + $0x8] sm:$0xff] }
 0x5b9   : > { %5567 = vmatmul.bf16.gmra.mxu2 %v6704_v38  ;;  %v10329_v54 = vadd.f32 %v5249_v39, %v5161_v49  ;;  %v6764_v39 = vor.u32 %v7762_v40, %v6763_v11  ;;  %v6823_v63 = vld [vmem:[%s9380_s8 + $0x4e8] sm:$0xf]  ;;  %v7777_v11 = vld [vmem:[%s9380_s8 + $0x520] sm:$0xf0]  ;;  %v6817_v40 = vld [vmem:[%s9380_s8 + $0x51c] sm:$0xf0] }
 0x5ba   : > { %v5261_v12 = vpop.f32.mrf.mxu3 }
 0x5bb   : > { %v5262_v8 = vadd.f32 %v5261_v12, %v10105_v29 }
 0x5bc   : > { %v5528_v48 = vpop.f32.mrf.mxu2  ;;  %v5352_v28 = vpop.f32.mrf.mxu0 }
 0x5bd   : > { %v5351_v60 = vadd.f32 %v5350_v30, %v5262_v8  ;;  %v5441_v56 = vpop.f32.mrf.mxu1 }
 0x5bf   : > { %v5440_v50 = vadd.f32 %v5439_v17, %v5351_v60  ;;  %v1811_v60 = vld [vmem:[%s9384_s1 + $0x10] sm:$0xff] }
 0x5c1   : > { %v5529_v47 = vadd.f32 %v5528_v48, %v5440_v50  ;;  %v6809_v50 = vld [vmem:[%s9380_s8 + $0x514] sm:$0xf0] }
 0x5c2   : > { %v5263_v13 = vpop.f32.mrf.mxu3 }
 0x5c3   : > { %v5608_v55 = vadd.f32 %v5529_v47, %v1809_v62  ;;  %v5264_v29 = vadd.f32 %v5263_v13, %v10111_v37  ;;  %v7768_v62 = vld [vmem:[%s9380_s8 + $0x4dc] sm:$0xf]  ;;  %v7769_v47 = vld [vmem:[%s9380_s8 + $0x4e4] sm:$0xf] }
 0x5c4   : > { %v5530_v5 = vpop.f32.mrf.mxu2  ;;  %v5355_v24 = vpop.f32.mrf.mxu0 }
 0x5c5   : > { %5640 = vst [vmem:[%s9384_s1] sm:$0xff] %v5608_v55  ;;  %v5353_v20 = vadd.f32 %v5352_v28, %v5264_v29  ;;  %v5444_v30 = vpop.f32.mrf.mxu1  ;;  %v6812_v55 = vor.u32 %v7768_v62, %v6809_v50  ;;  %v6816_v29 = vor.u32 %v7776_v10, %v6815_v58  ;;  %v6883_v62 = vld [vmem:[%s9380_s8 + $0x560] sm:$0xf]  ;;  %v7792_v58 = vld [vmem:[%s9380_s8 + $0x598] sm:$0xf0] }
 0x5c6   : > { %v7784_v10 = vld [vmem:[%s9380_s8 + $0x55c] sm:$0xf] }
 0x5c7   : > { %v5442_v38 = vadd.f32 %v5441_v56, %v5353_v20  ;;  %5305 = vmatmul.bf16.gmra.mxu3 %v6752_v59  ;;  %5394 = vmatmul.bf16.gmra.mxu0 %v6756_v14  ;;  %v6824_v59 = vor.u32 %v7777_v11, %v6823_v63  ;;  %v6820_v14 = vor.u32 %v7769_v47, %v6817_v40  ;;  %v1812_v20 = vld [vmem:[%s9384_s1 + $0x18] sm:$0xff] }
 0x5c8   : > { %5483 = vmatmul.bf16.gmra.mxu1 %v6760_v52  ;;  %v6877_v63 = vld [vmem:[%s9380_s8 + $0x594] sm:$0xf0] }
 0x5c9   : > { %5572 = vmatmul.bf16.gmra.mxu2 %v6764_v39  ;;  %v5531_v37 = vadd.f32 %v5530_v5, %v5442_v38 }
 0x5ca   : > { %v5266_v46 = vpop.f32.mrf.mxu3 }
 0x5cb   : > { %v5609_v17 = vadd.f32 %v5531_v37, %v1810_v41  ;;  %v5267_v49 = vadd.f32 %v5266_v46, %v10119_v43 }
 0x5cc   : > { %v5533_v12 = vpop.f32.mrf.mxu2  ;;  %v5357_v8 = vpop.f32.mrf.mxu0 }
 0x5cd   : > { %5641 = vst [vmem:[%s9384_s1 + $0x8] sm:$0xff] %v5609_v17  ;;  %v5356_v48 = vadd.f32 %v5355_v24, %v5267_v49  ;;  %v5446_v28 = vpop.f32.mrf.mxu1 }
 0x5cf   : > { %v5445_v56 = vadd.f32 %v5444_v30, %v5356_v48  ;;  %v7783_v48 = vld [vmem:[%s9380_s8 + $0x554] sm:$0xf] }
 0x5d1   : > { %v5534_v6 = vadd.f32 %v5533_v12, %v5445_v56  ;;  %v1813_v12 = vld [vmem:[%s9384_s1 + $0x20] sm:$0xff]  ;;  %v7791_v56 = vld [vmem:[%s9380_s8 + $0x590] sm:$0xf0] }
 0x5d2   : > { %v5268_v43 = vpop.f32.mrf.mxu3 }
 0x5d3   : > { %v5610_v45 = vadd.f32 %v5534_v6, %v1811_v60  ;;  %v5269_v21 = vadd.f32 %v5268_v43, %v10125_v57  ;;  %v6875_v60 = vld [vmem:[%s9380_s8 + $0x558] sm:$0xf] }
 0x5d4   : > { %v5535_v13 = vpop.f32.mrf.mxu2  ;;  %v5360_v5 = vpop.f32.mrf.mxu0  ;;  %v6876_v43 = vor.u32 %v7791_v56, %v6875_v60  ;;  %v6937_v60 = vld [vmem:[%s9380_s8 + $0x60c] sm:$0xf0] }
 0x5d5   : > { %5642 = vst [vmem:[%s9384_s1 + $0x10] sm:$0xff] %v5610_v45  ;;  %v5358_v24 = vadd.f32 %v5357_v8, %v5269_v21  ;;  %v5449_v39 = vpop.f32.mrf.mxu1  ;;  %v6884_v21 = vor.u32 %v7792_v58, %v6883_v62 }
 0x5d7   : > { %v5447_v52 = vadd.f32 %v5446_v28, %v5358_v24  ;;  %5310 = vmatmul.bf16.gmra.mxu3 %v6812_v55  ;;  %5399 = vmatmul.bf16.gmra.mxu0 %v6816_v29  ;;  %v6869_v28 = vld [vmem:[%s9380_s8 + $0x58c] sm:$0xf0] }
 0x5d8   : > { %5488 = vmatmul.bf16.gmra.mxu1 %v6820_v14  ;;  %v6872_v40 = vor.u32 %v7783_v48, %v6869_v28  ;;  %v7807_v48 = vld [vmem:[%s9380_s8 + $0x610] sm:$0xf0] }
 0x5d9   : > { %5577 = vmatmul.bf16.gmra.mxu2 %v6824_v59  ;;  %v5536_v57 = vadd.f32 %v5535_v13, %v5447_v52  ;;  %v6880_v13 = vor.u32 %v7784_v10, %v6877_v63  ;;  %v1814_v59 = vld [vmem:[%s9384_s1 + $0x28] sm:$0xff]  ;;  %v7799_v28 = vld [vmem:[%s9380_s8 + $0x5d4] sm:$0xf] }
 0x5da   : > { %v5271_v30 = vpop.f32.mrf.mxu3 }
 0x5db   : > { %v5611_v38 = vadd.f32 %v5536_v57, %v1812_v20  ;;  %v5272_v41 = vadd.f32 %v5271_v30, %v10137_v53 }
 0x5dc   : > { %v5538_v37 = vpop.f32.mrf.mxu2  ;;  %v5362_v46 = vpop.f32.mrf.mxu0 }
 0x5dd   : > { %5643 = vst [vmem:[%s9384_s1 + $0x18] sm:$0xff] %v5611_v38  ;;  %v5361_v17 = vadd.f32 %v5360_v5, %v5272_v41  ;;  %v5451_v49 = vpop.f32.mrf.mxu1  ;;  %v1815_v38 = vld [vmem:[%s9384_s1 + $0x30] sm:$0xff] }
 0x5df   : > { %v5450_v8 = vadd.f32 %v5449_v39, %v5361_v17  ;;  %v6935_v17 = vld [vmem:[%s9380_s8 + $0x5d0] sm:$0xf] }
 0x5e1   : > { %v5539_v50 = vadd.f32 %v5538_v37, %v5450_v8  ;;  %v7798_v37 = vld [vmem:[%s9380_s8 + $0x5cc] sm:$0xf] }
 0x5e2   : > { %v5273_v53 = vpop.f32.mrf.mxu3 }
 0x5e3   : > { %v5612_v6 = vadd.f32 %v5539_v50, %v1813_v12  ;;  %v5274_v11 = vadd.f32 %v5273_v53, %v10143_v32  ;;  %v6943_v12 = vld [vmem:[%s9380_s8 + $0x5d8] sm:$0xf] }
 0x5e4   : > { %v5540_v47 = vpop.f32.mrf.mxu2  ;;  %v5365_v45 = vpop.f32.mrf.mxu0  ;;  %v6944_v53 = vor.u32 %v7807_v48, %v6943_v12 }
 0x5e5   : > { %5644 = vst [vmem:[%s9384_s1 + $0x20] sm:$0xff] %v5612_v6  ;;  %v5363_v55 = vadd.f32 %v5362_v46, %v5274_v11  ;;  %v5454_v29 = vpop.f32.mrf.mxu1  ;;  %v6929_v46 = vld [vmem:[%s9380_s8 + $0x604] sm:$0xf0]  ;;  %v6940_v6 = vor.u32 %v7799_v28, %v6937_v60 }
 0x5e6   : > { %v6932_v58 = vor.u32 %v7798_v37, %v6929_v46  ;;  %v6997_v37 = vld [vmem:[%s9380_s8 + $0x684] sm:$0xf0] }
 0x5e7   : > { %v5452_v5 = vadd.f32 %v5451_v49, %v5363_v55  ;;  %5315 = vmatmul.bf16.gmra.mxu3 %v6872_v40  ;;  %5404 = vmatmul.bf16.gmra.mxu0 %v6876_v43  ;;  %v7806_v49 = vld [vmem:[%s9380_s8 + $0x608] sm:$0xf0]  ;;  %v1816_v43 = vld [vmem:[%s9384_s1 + $0x38] sm:$0xff] }
 0x5e8   : > { %5493 = vmatmul.bf16.gmra.mxu1 %v6880_v13  ;;  %v6936_v10 = vor.u32 %v7806_v49, %v6935_v17 }
 0x5e9   : > { %5582 = vmatmul.bf16.gmra.mxu2 %v6884_v21  ;;  %v5541_v32 = vadd.f32 %v5540_v47, %v5452_v5 }
 0x5ea   : > { %v5276_v14 = vpop.f32.mrf.mxu3 }
 0x5eb   : > { %v5613_v24 = vadd.f32 %v5541_v32, %v1814_v59  ;;  %v5277_v39 = vadd.f32 %v5276_v14, %v10151_v22  ;;  %v1817_v32 = vld [vmem:[%s9384_s1 + $0x40] sm:$0xff] }
 0x5ec   : > { %v5543_v52 = vpop.f32.mrf.mxu2  ;;  %v5367_v20 = vpop.f32.mrf.mxu0 }
 0x5ed   : > { %5645 = vst [vmem:[%s9384_s1 + $0x28] sm:$0xff] %v5613_v24  ;;  %v5366_v57 = vadd.f32 %v5365_v45, %v5277_v39  ;;  %v5456_v30 = vpop.f32.mrf.mxu1  ;;  %v7813_v24 = vld [vmem:[%s9380_s8 + $0x644] sm:$0xf]  ;;  %v6989_v39 = vld [vmem:[%s9380_s8 + $0x67c] sm:$0xf0] }
 0x5ee   : > { %v6992_v12 = vor.u32 %v7813_v24, %v6989_v39 }
 0x5ef   : > { %v5455_v41 = vadd.f32 %v5454_v29, %v5366_v57  ;;  %v7003_v57 = vld [vmem:[%s9380_s8 + $0x650] sm:$0xf] }
 0x5f1   : > { %v5544_v8 = vadd.f32 %v5543_v52, %v5455_v41  ;;  %v6995_v52 = vld [vmem:[%s9380_s8 + $0x648] sm:$0xf]  ;;  %v7814_v41 = vld [vmem:[%s9380_s8 + $0x64c] sm:$0xf] }
 0x5f2   : > { %v5278_v22 = vpop.f32.mrf.mxu3  ;;  %v7000_v60 = vor.u32 %v7814_v41, %v6997_v37 }
 0x5f3   : > { %v5614_v56 = vadd.f32 %v5544_v8, %v1815_v38  ;;  %v5279_v62 = vadd.f32 %v5278_v22, %v10157_v0  ;;  %v7822_v38 = vld [vmem:[%s9380_s8 + $0x688] sm:$0xf0] }
 0x5f4   : > { %v5545_v50 = vpop.f32.mrf.mxu2  ;;  %v5370_v63 = vpop.f32.mrf.mxu0  ;;  %v7004_v28 = vor.u32 %v7822_v38, %v7003_v57 }
 0x5f5   : > { %5646 = vst [vmem:[%s9384_s1 + $0x30] sm:$0xff] %v5614_v56  ;;  %v5368_v11 = vadd.f32 %v5367_v20, %v5279_v62  ;;  %v5459_v47 = vpop.f32.mrf.mxu1  ;;  %v7821_v20 = vld [vmem:[%s9380_s8 + $0x680] sm:$0xf0] }
 0x5f6   : > { %v6996_v8 = vor.u32 %v7821_v20, %v6995_v52 }
 0x5f7   : > { %v5457_v40 = vadd.f32 %v5456_v30, %v5368_v11  ;;  %5320 = vmatmul.bf16.gmra.mxu3 %v6932_v58  ;;  %5409 = vmatmul.bf16.gmra.mxu0 %v6936_v10 }
 0x5f8   : > { %5498 = vmatmul.bf16.gmra.mxu1 %v6940_v6 }
 0x5f9   : > { %5587 = vmatmul.bf16.gmra.mxu2 %v6944_v53  ;;  %v5546_v0 = vadd.f32 %v5545_v50, %v5457_v40  ;;  %v1818_v50 = vld [vmem:[%s9384_s1 + $0x48] sm:$0xff]  ;;  %v1819_v40 = vld [vmem:[%s9384_s1 + $0x50] sm:$0xff] }
 0x5fa   : > { %v5281_v45 = vpop.f32.mrf.mxu3 }
 0x5fb   : > { %v5615_v21 = vadd.f32 %v5546_v0, %v1816_v43  ;;  %v5282_v13 = vadd.f32 %v5281_v45, %v10169_v26  ;;  %v7828_v0 = vld [vmem:[%s9380_s8 + $0x6bc] sm:$0xf]  ;;  %v7049_v45 = vld [vmem:[%s9380_s8 + $0x6f4] sm:$0xf0] }
 0x5fc   : > { %v5548_v55 = vpop.f32.mrf.mxu2  ;;  %v5372_v29 = vpop.f32.mrf.mxu0  ;;  %v7052_v52 = vor.u32 %v7828_v0, %v7049_v45 }
 0x5fd   : > { %5647 = vst [vmem:[%s9384_s1 + $0x38] sm:$0xff] %v5615_v21  ;;  %v5371_v5 = vadd.f32 %v5370_v63, %v5282_v13  ;;  %v5461_v59 = vpop.f32.mrf.mxu1  ;;  %v7055_v21 = vld [vmem:[%s9380_s8 + $0x6c0] sm:$0xf]  ;;  %v7836_v13 = vld [vmem:[%s9380_s8 + $0x6f8] sm:$0xf0] }
 0x5fe   : > { %v7056_v20 = vor.u32 %v7836_v13, %v7055_v21 }
 0x5ff   : > { %v5460_v14 = vadd.f32 %v5459_v47, %v5371_v5  ;;  %v7837_v5 = vld [vmem:[%s9380_s8 + $0x700] sm:$0xf0] }
 0x601   : > { %v5549_v30 = vadd.f32 %v5548_v55, %v5460_v14  ;;  %v7063_v55 = vld [vmem:[%s9380_s8 + $0x6c8] sm:$0xf] }
 0x602   : > { %v5283_v26 = vpop.f32.mrf.mxu3 }
 0x603   : > { %v5616_v46 = vadd.f32 %v5549_v30, %v1817_v32  ;;  %v5284_v17 = vadd.f32 %v5283_v26, %v10175_v34  ;;  %v7057_v32 = vld [vmem:[%s9380_s8 + $0x6fc] sm:$0xf0]  ;;  %v7064_v30 = vor.u32 %v7837_v5, %v7063_v55 }
 0x604   : > { %v5550_v49 = vpop.f32.mrf.mxu2  ;;  %v5375_v48 = vpop.f32.mrf.mxu0 }
 0x605   : > { %5648 = vst [vmem:[%s9384_s1 + $0x40] sm:$0xff] %v5616_v46  ;;  %v5373_v22 = vadd.f32 %v5372_v29, %v5284_v17  ;;  %v5464_v56 = vpop.f32.mrf.mxu1  ;;  %v1820_v46 = vld [vmem:[%s9384_s1 + $0x58] sm:$0xff] }
 0x607   : > { %v5462_v62 = vadd.f32 %v5461_v59, %v5373_v22  ;;  %5325 = vmatmul.bf16.gmra.mxu3 %v6992_v12  ;;  %5414 = vmatmul.bf16.gmra.mxu0 %v6996_v8  ;;  %v7829_v59 = vld [vmem:[%s9380_s8 + $0x6c4] sm:$0xf] }
 0x608   : > { %5503 = vmatmul.bf16.gmra.mxu1 %v7000_v60  ;;  %v7060_v38 = vor.u32 %v7829_v59, %v7057_v32  ;;  %v1821_v22 = vld [vmem:[%s9384_s1 + $0x60] sm:$0xff]  ;;  %v1822_v32 = vld [vmem:[%s9384_s1 + $0x68] sm:$0xff] }
 0x609   : > { %5592 = vmatmul.bf16.gmra.mxu2 %v7004_v28  ;;  %v5551_v34 = vadd.f32 %v5550_v49, %v5462_v62  ;;  %v7843_v62 = vld [vmem:[%s9380_s8 + $0x734] sm:$0xf] }
 0x60a   : > { %v5286_v58 = vpop.f32.mrf.mxu3 }
 0x60b   : > { %v5617_v10 = vadd.f32 %v5551_v34, %v1818_v50  ;;  %v5287_v63 = vadd.f32 %v5286_v58, %v10183_v27  ;;  %v7109_v50 = vld [vmem:[%s9380_s8 + $0x76c] sm:$0xf0]  ;;  %v7115_v34 = vld [vmem:[%s9380_s8 + $0x738] sm:$0xf]  ;;  %v7851_v58 = vld [vmem:[%s9380_s8 + $0x770] sm:$0xf0] }
 0x60c   : > { %v5553_v53 = vpop.f32.mrf.mxu2  ;;  %v5377_v6 = vpop.f32.mrf.mxu0  ;;  %v7112_v0 = vor.u32 %v7843_v62, %v7109_v50  ;;  %v7116_v45 = vor.u32 %v7851_v58, %v7115_v34  ;;  %v1825_v58 = vld [vmem:[%s9384_s1 + $0x80] sm:$0xff] }
 0x60d   : > { %5649 = vst [vmem:[%s9384_s1 + $0x48] sm:$0xff] %v5617_v10  ;;  %v5376_v11 = vadd.f32 %v5375_v48, %v5287_v63  ;;  %v5466_v47 = vpop.f32.mrf.mxu1  ;;  %v7123_v10 = vld [vmem:[%s9380_s8 + $0x740] sm:$0xf] }
 0x60f   : > { %v5465_v43 = vadd.f32 %v5464_v56, %v5376_v11  ;;  %v7117_v11 = vld [vmem:[%s9380_s8 + $0x774] sm:$0xf0] }
 0x611   : > { %v5554_v29 = vadd.f32 %v5553_v53, %v5465_v43  ;;  %v7852_v53 = vld [vmem:[%s9380_s8 + $0x778] sm:$0xf0] }
 0x612   : > { %v5288_v27 = vpop.f32.mrf.mxu3  ;;  %v7124_v13 = vor.u32 %v7852_v53, %v7123_v10 }
 0x613   : > { %v5618_v14 = vadd.f32 %v5554_v29, %v1819_v40  ;;  %v5289_v24 = vadd.f32 %v5288_v27, %v10189_v7 }
 0x614   : > { %v5555_v39 = vpop.f32.mrf.mxu2  ;;  %v5380_v57 = vpop.f32.mrf.mxu0 }
 0x615   : > { %5650 = vst [vmem:[%s9384_s1 + $0x50] sm:$0xff] %v5618_v14  ;;  %v5378_v41 = vadd.f32 %v5377_v6, %v5289_v24  ;;  %v5469_v37 = vpop.f32.mrf.mxu1  ;;  %v7844_v6 = vld [vmem:[%s9380_s8 + $0x73c] sm:$0xf] }
 0x616   : > { %v7120_v55 = vor.u32 %v7844_v6, %v7117_v11 }
 0x617   : > { %v5467_v26 = vadd.f32 %v5466_v47, %v5378_v41  ;;  %5330 = vmatmul.bf16.gmra.mxu3 %v7052_v52  ;;  %5419 = vmatmul.bf16.gmra.mxu0 %v7056_v20 }
 0x618   : > { %5508 = vmatmul.bf16.gmra.mxu1 %v7060_v38  ;;  %v1823_v38 = vld [vmem:[%s9384_s1 + $0x70] sm:$0xff] }
 0x619   : > { %5597 = vmatmul.bf16.gmra.mxu2 %v7064_v30  ;;  %v5556_v7 = vadd.f32 %v5555_v39, %v5467_v26 }
 0x61a   : > { %v5291_v17 = vpop.f32.mrf.mxu3 }
 0x61b   : > { %v5619_v49 = vadd.f32 %v5556_v7, %v1820_v46  ;;  %v5292_v12 = vadd.f32 %v5291_v17, %v10197_v51 }
 0x61c   : > { %v5558_v8 = vpop.f32.mrf.mxu2  ;;  %v5382_v48 = vpop.f32.mrf.mxu0 }
 0x61d   : > { %5651 = vst [vmem:[%s9384_s1 + $0x58] sm:$0xff] %v5619_v49  ;;  %v5381_v28 = vadd.f32 %v5380_v57, %v5292_v12  ;;  %v5471_v60 = vpop.f32.mrf.mxu1 }
 0x61f   : > { %v5470_v56 = vadd.f32 %v5469_v37, %v5381_v28 }
 0x621   : > { %v5559_v63 = vadd.f32 %v5558_v8, %v5470_v56  ;;  %v1824_v8 = vld [vmem:[%s9384_s1 + $0x78] sm:$0xff] }
 0x622   : > { %v5293_v51 = vpop.f32.mrf.mxu3 }
 0x623   : > { %v5620_v47 = vadd.f32 %v5559_v63, %v1821_v22  ;;  %v5294_v40 = vadd.f32 %v5293_v51, %v10203_v44 }
 0x624   : > { %v5560_v43 = vpop.f32.mrf.mxu2  ;;  %v5385_v21 = vpop.f32.mrf.mxu0 }
 0x625   : > { %5652 = vst [vmem:[%s9384_s1 + $0x60] sm:$0xff] %v5620_v47  ;;  %v5383_v29 = vadd.f32 %v5382_v48, %v5294_v40  ;;  %v5474_v5 = vpop.f32.mrf.mxu1 }
 0x627   : > { %v5472_v59 = vadd.f32 %v5471_v60, %v5383_v29  ;;  %5335 = vmatmul.bf16.gmra.mxu3 %v7112_v0  ;;  %5424 = vmatmul.bf16.gmra.mxu0 %v7116_v45 }
 0x628   : > { %5513 = vmatmul.bf16.gmra.mxu1 %v7120_v55 }
 0x629   : > { %5602 = vmatmul.bf16.gmra.mxu2 %v7124_v13  ;;  %v5561_v27 = vadd.f32 %v5560_v43, %v5472_v59  ;;  %v1826_v43 = vld [vmem:[%s9384_s1 + $0x88] sm:$0xff] }
 0x62a   : > { %v5296_v14 = vpop.f32.mrf.mxu3 }
 0x62b   : > { %v5621_v44 = vadd.f32 %v5561_v27, %v1822_v32  ;;  %v5297_v24 = vadd.f32 %v5296_v14, %v10211_v15  ;;  %v1827_v32 = vld [vmem:[%s9384_s1 + $0x90] sm:$0xff] }
 0x62c   : > { %v5563_v39 = vpop.f32.mrf.mxu2  ;;  %v5387_v52 = vpop.f32.mrf.mxu0 }
 0x62d   : > { %5653 = vst [vmem:[%s9384_s1 + $0x68] sm:$0xff] %v5621_v44  ;;  %v5386_v20 = vadd.f32 %v5385_v21, %v5297_v24  ;;  %v5476_v57 = vpop.f32.mrf.mxu1 }
 0x62f   : > { %v5475_v30 = vadd.f32 %v5474_v5, %v5386_v20 }
 0x631   : > { %v5564_v41 = vadd.f32 %v5563_v39, %v5475_v30  ;;  %v1828_v30 = vld [vmem:[%s9384_s1 + $0x98] sm:$0xff] }
 0x632   : > { %v5298_v37 = vpop.f32.mrf.mxu3 }
 0x633   : > { %v5622_v26 = vadd.f32 %v5564_v41, %v1823_v38  ;;  %v5299_v46 = vadd.f32 %v5298_v37, %v10217_v18 }
 0x634   : > { %v5565_v7 = vpop.f32.mrf.mxu2  ;;  %v5390_v17 = vpop.f32.mrf.mxu0 }
 0x635   : > { %5654 = vst [vmem:[%s9384_s1 + $0x70] sm:$0xff] %v5622_v26  ;;  %v5388_v49 = vadd.f32 %v5387_v52, %v5299_v46  ;;  %v5479_v15 = vpop.f32.mrf.mxu1 }
 0x637   : > { %v5477_v12 = vadd.f32 %v5476_v57, %v5388_v49 }
 0x639   : > { %v5566_v48 = vadd.f32 %v5565_v7, %v5477_v12 }
 0x63a   : > { %v5301_v28 = vpop.f32.mrf.mxu3 }
 0x63b   : > { %v5623_v60 = vadd.f32 %v5566_v48, %v1824_v8  ;;  %v5302_v22 = vadd.f32 %v5301_v28, %v10225_v25 }
 0x63c   : > { %v5568_v56 = vpop.f32.mrf.mxu2  ;;  %v5392_v62 = vpop.f32.mrf.mxu0 }
 0x63d   : > { %5655 = vst [vmem:[%s9384_s1 + $0x78] sm:$0xff] %v5623_v60  ;;  %v5391_v50 = vadd.f32 %v5390_v17, %v5302_v22  ;;  %v5481_v18 = vpop.f32.mrf.mxu1 }
 0x63f   : > { %v5480_v34 = vadd.f32 %v5479_v15, %v5391_v50  ;;  %v1829_v15 = vld [vmem:[%s9384_s1 + $0xa0] sm:$0xff]  ;;  %v1830_v50 = vld [vmem:[%s9384_s1 + $0xa8] sm:$0xff] }
 0x641   : > { %v5569_v10 = vadd.f32 %v5568_v56, %v5480_v34 }
 0x642   : > { %v5303_v63 = vpop.f32.mrf.mxu3 }
 0x643   : > { %v5624_v53 = vadd.f32 %v5569_v10, %v1825_v58  ;;  %v5304_v6 = vadd.f32 %v5303_v63, %v10231_v1 }
 0x644   : > { %v5570_v11 = vpop.f32.mrf.mxu2  ;;  %v5395_v51 = vpop.f32.mrf.mxu0 }
 0x645   : > { %5656 = vst [vmem:[%s9384_s1 + $0x80] sm:$0xff] %v5624_v53  ;;  %v5393_v47 = vadd.f32 %v5392_v62, %v5304_v6  ;;  %v5484_v25 = vpop.f32.mrf.mxu1 }
 0x647   : > { %v5482_v40 = vadd.f32 %v5481_v18, %v5393_v47 }
 0x649   : > { %v5571_v0 = vadd.f32 %v5570_v11, %v5482_v40 }
 0x64a   : > { %v5306_v45 = vpop.f32.mrf.mxu3 }
 0x64b   : > { %v5625_v21 = vadd.f32 %v5571_v0, %v1826_v43  ;;  %v5307_v13 = vadd.f32 %v5306_v45, %v10239_v23 }
 0x64c   : > { %v5573_v55 = vpop.f32.mrf.mxu2  ;;  %v5397_v29 = vpop.f32.mrf.mxu0 }
 0x64d   : > { %5657 = vst [vmem:[%s9384_s1 + $0x88] sm:$0xff] %v5625_v21  ;;  %v5396_v5 = vadd.f32 %v5395_v51, %v5307_v13  ;;  %v5486_v1 = vpop.f32.mrf.mxu1  ;;  %v1831_v51 = vld [vmem:[%s9384_s1 + $0xb0] sm:$0xff] }
 0x64f   : > { %v5485_v59 = vadd.f32 %v5484_v25, %v5396_v5 }
 0x651   : > { %v5574_v27 = vadd.f32 %v5573_v55, %v5485_v59  ;;  %v1832_v55 = vld [vmem:[%s9384_s1 + $0xb8] sm:$0xff] }
 0x652   : > { %v5308_v14 = vpop.f32.mrf.mxu3 }
 0x653   : > { %v5626_v44 = vadd.f32 %v5574_v27, %v1827_v32  ;;  %v5309_v24 = vadd.f32 %v5308_v14, %v10245_v36 }
 0x654   : > { %v5575_v39 = vpop.f32.mrf.mxu2  ;;  %v5400_v52 = vpop.f32.mrf.mxu0 }
 0x655   : > { %5658 = vst [vmem:[%s9384_s1 + $0x90] sm:$0xff] %v5626_v44  ;;  %v5398_v20 = vadd.f32 %v5397_v29, %v5309_v24  ;;  %v5489_v23 = vpop.f32.mrf.mxu1  ;;  %v1833_v24 = vld [vmem:[%s9384_s1 + $0xc0] sm:$0xff] }
 0x657   : > { %v5487_v57 = vadd.f32 %v5486_v1, %v5398_v20 }
 0x659   : > { %v5576_v38 = vadd.f32 %v5575_v39, %v5487_v57 }
 0x65a   : > { %v5311_v41 = vpop.f32.mrf.mxu3 }
 0x65b   : > { %v5627_v37 = vadd.f32 %v5576_v38, %v1828_v30  ;;  %v5312_v26 = vadd.f32 %v5311_v41, %v10253_v2 }
 0x65c   : > { %v5578_v46 = vpop.f32.mrf.mxu2  ;;  %v5402_v7 = vpop.f32.mrf.mxu0 }
 0x65d   : > { %5659 = vst [vmem:[%s9384_s1 + $0x98] sm:$0xff] %v5627_v37  ;;  %v5401_v17 = vadd.f32 %v5400_v52, %v5312_v26  ;;  %v5491_v36 = vpop.f32.mrf.mxu1  ;;  %v1834_v37 = vld [vmem:[%s9384_s1 + $0xc8] sm:$0xff] }
 0x65f   : > { %v5490_v49 = vadd.f32 %v5489_v23, %v5401_v17 }
 0x661   : > { %v5579_v12 = vadd.f32 %v5578_v46, %v5490_v49 }
 0x662   : > { %v5313_v8 = vpop.f32.mrf.mxu3 }
 0x663   : > { %v5628_v48 = vadd.f32 %v5579_v12, %v1829_v15  ;;  %v5314_v28 = vadd.f32 %v5313_v8, %v10259_v19  ;;  %v1835_v8 = vld [vmem:[%s9384_s1 + $0xd0] sm:$0xff] }
 0x664   : > { %v5580_v60 = vpop.f32.mrf.mxu2  ;;  %v5405_v22 = vpop.f32.mrf.mxu0 }
 0x665   : > { %5660 = vst [vmem:[%s9384_s1 + $0xa0] sm:$0xff] %v5628_v48  ;;  %v5403_v56 = vadd.f32 %v5402_v7, %v5314_v28  ;;  %v5494_v2 = vpop.f32.mrf.mxu1 }
 0x667   : > { %v5492_v62 = vadd.f32 %v5491_v36, %v5403_v56 }
 0x669   : > { %v5581_v18 = vadd.f32 %v5580_v60, %v5492_v62 }
 0x66a   : > { %v5316_v34 = vpop.f32.mrf.mxu3 }
 0x66b   : > { %v5629_v58 = vadd.f32 %v5581_v18, %v1830_v50  ;;  %v5317_v10 = vadd.f32 %v5316_v34, %v10267_v35  ;;  %v1836_v50 = vld [vmem:[%s9384_s1 + $0xd8] sm:$0xff] }
 0x66c   : > { %v5583_v63 = vpop.f32.mrf.mxu2  ;;  %v5407_v53 = vpop.f32.mrf.mxu0 }
 0x66d   : > { %5661 = vst [vmem:[%s9384_s1 + $0xa8] sm:$0xff] %v5629_v58  ;;  %v5406_v6 = vadd.f32 %v5405_v22, %v5317_v10  ;;  %v5496_v19 = vpop.f32.mrf.mxu1 }
 0x66f   : > { %v5495_v11 = vadd.f32 %v5494_v2, %v5406_v6 }
 0x671   : > { %v5584_v47 = vadd.f32 %v5583_v63, %v5495_v11 }
 0x672   : > { %v5318_v25 = vpop.f32.mrf.mxu3 }
 0x673   : > { %v5630_v40 = vadd.f32 %v5584_v47, %v1831_v51  ;;  %v5319_v43 = vadd.f32 %v5318_v25, %v10273_v9 }
 0x674   : > { %v5585_v0 = vpop.f32.mrf.mxu2  ;;  %v5410_v45 = vpop.f32.mrf.mxu0 }
 0x675   : > { %5662 = vst [vmem:[%s9384_s1 + $0xb0] sm:$0xff] %v5630_v40  ;;  %v5408_v21 = vadd.f32 %v5407_v53, %v5319_v43  ;;  %v5499_v35 = vpop.f32.mrf.mxu1 }
 0x677   : > { %v5497_v13 = vadd.f32 %v5496_v19, %v5408_v21 }
 0x679   : > { %v5586_v29 = vadd.f32 %v5585_v0, %v5497_v13 }
 0x67a   : > { %v5321_v5 = vpop.f32.mrf.mxu3 }
 0x67b   : > { %v5631_v1 = vadd.f32 %v5586_v29, %v1832_v55  ;;  %v5322_v59 = vadd.f32 %v5321_v5, %v10281_v4 }
 0x67c   : > { %v5588_v32 = vpop.f32.mrf.mxu2  ;;  %v5412_v27 = vpop.f32.mrf.mxu0 }
 0x67d   : > { %5663 = vst [vmem:[%s9384_s1 + $0xb8] sm:$0xff] %v5631_v1  ;;  %v5411_v14 = vadd.f32 %v5410_v45, %v5322_v59  ;;  %v5501_v9 = vpop.f32.mrf.mxu1 }
 0x67f   : > { %v5500_v44 = vadd.f32 %v5499_v35, %v5411_v14 }
 0x681   : > { %v5589_v39 = vadd.f32 %v5588_v32, %v5500_v44 }
 0x682   : > { %v5323_v52 = vpop.f32.mrf.mxu3 }
 0x683   : > { %v5632_v20 = vadd.f32 %v5589_v39, %v1833_v24  ;;  %v5324_v23 = vadd.f32 %v5323_v52, %v10287_v61 }
 0x684   : > { %v5590_v57 = vpop.f32.mrf.mxu2  ;;  %v5415_v30 = vpop.f32.mrf.mxu0 }
 0x685   : > { %5664 = vst [vmem:[%s9384_s1 + $0xc0] sm:$0xff] %v5632_v20  ;;  %v5413_v38 = vadd.f32 %v5412_v27, %v5324_v23  ;;  %v5504_v4 = vpop.f32.mrf.mxu1  ;;  %v1839_v27 = vld [vmem:[%s9384_s1 + $0xf0] sm:$0xff] }
 0x687   : > { %v5502_v41 = vadd.f32 %v5501_v9, %v5413_v38 }
 0x689   : > { %v5591_v26 = vadd.f32 %v5590_v57, %v5502_v41  ;;  %v1840_v57 = vld [vmem:[%s9384_s1 + $0xf8] sm:$0xff] }
 0x68a   : > { %v5326_v46 = vpop.f32.mrf.mxu3 }
 0x68b   : > { %v5633_v7 = vadd.f32 %v5591_v26, %v1834_v37  ;;  %v5327_v17 = vadd.f32 %v5326_v46, %v10295_v33 }
 0x68c   : > { %v5593_v36 = vpop.f32.mrf.mxu2  ;;  %v5417_v49 = vpop.f32.mrf.mxu0 }
 0x68d   : > { %5665 = vst [vmem:[%s9384_s1 + $0xc8] sm:$0xff] %v5633_v7  ;;  %v5416_v15 = vadd.f32 %v5415_v30, %v5327_v17  ;;  %v5506_v61 = vpop.f32.mrf.mxu1 }
 0x68f   : > { %v5505_v12 = vadd.f32 %v5504_v4, %v5416_v15 }
 0x691   : > { %v5594_v48 = vadd.f32 %v5593_v36, %v5505_v12 }
 0x692   : > { %v5328_v28 = vpop.f32.mrf.mxu3 }
 0x693   : > { %v5634_v60 = vadd.f32 %v5594_v48, %v1835_v8  ;;  %v5329_v22 = vadd.f32 %v5328_v28, %v10301_v31  ;;  %v1837_v31 = vld [vmem:[%s9384_s1 + $0xe0] sm:$0xff] }
 0x694   : > { %v5595_v56 = vpop.f32.mrf.mxu2  ;;  %v5420_v62 = vpop.f32.mrf.mxu0 }
 0x695   : > { %5666 = vst [vmem:[%s9384_s1 + $0xd0] sm:$0xff] %v5634_v60  ;;  %v5418_v2 = vadd.f32 %v5417_v49, %v5329_v22  ;;  %v5509_v18 = vpop.f32.mrf.mxu1 }
 0x697   : > { %v5507_v33 = vadd.f32 %v5506_v61, %v5418_v2 }
 0x699   : > { %v5596_v34 = vadd.f32 %v5595_v56, %v5507_v33 }
 0x69a   : > { %v5331_v58 = vpop.f32.mrf.mxu3 }
 0x69b   : > { %v5635_v10 = vadd.f32 %v5596_v34, %v1836_v50  ;;  %v5332_v63 = vadd.f32 %v5331_v58, %v10309_v42  ;;  %v1838_v42 = vld [vmem:[%s9384_s1 + $0xe8] sm:$0xff] }
 0x69c   : > { %v5598_v53 = vpop.f32.mrf.mxu2  ;;  %v5422_v11 = vpop.f32.mrf.mxu0 }
 0x69d   : > { %5667 = vst [vmem:[%s9384_s1 + $0xd8] sm:$0xff] %v5635_v10  ;;  %v5421_v6 = vadd.f32 %v5420_v62, %v5332_v63  ;;  %v5511_v47 = vpop.f32.mrf.mxu1 }
 0x69f   : > { %v5510_v19 = vadd.f32 %v5509_v18, %v5421_v6 }
 0x6a1   : > { %v5599_v51 = vadd.f32 %v5598_v53, %v5510_v19 }
 0x6a2   : > { %v5333_v25 = vpop.f32.mrf.mxu3 }
 0x6a3   : > { %v5636_v40 = vadd.f32 %v5599_v51, %v1837_v31  ;;  %v5334_v43 = vadd.f32 %v5333_v25, %v10315_v16 }
 0x6a4   : > { %v5600_v0 = vpop.f32.mrf.mxu2  ;;  %v5425_v13 = vpop.f32.mrf.mxu0 }
 0x6a5   : > { %5668 = vst [vmem:[%s9384_s1 + $0xe0] sm:$0xff] %v5636_v40  ;;  %v5423_v45 = vadd.f32 %v5422_v11, %v5334_v43  ;;  %v5514_v1 = vpop.f32.mrf.mxu1 }
 0x6a7   : > { %v5512_v21 = vadd.f32 %v5511_v47, %v5423_v45 }
 0x6a9   : > { %v5601_v35 = vadd.f32 %v5600_v0, %v5512_v21 }
 0x6aa   : > { %v5336_v55 = vpop.f32.mrf.mxu3 }
 0x6ab   : > { %v5637_v29 = vadd.f32 %v5601_v35, %v1838_v42  ;;  %v5337_v5 = vadd.f32 %v5336_v55, %v10323_v3 }
 0x6ac   : > { %v5603_v32 = vpop.f32.mrf.mxu2  ;;  %v5427_v39 = vpop.f32.mrf.mxu0 }
 0x6ad   : > { %5669 = vst [vmem:[%s9384_s1 + $0xe8] sm:$0xff] %v5637_v29  ;;  %v5426_v59 = vadd.f32 %v5425_v13, %v5337_v5  ;;  %v5516_v20 = vpop.f32.mrf.mxu1 }
 0x6af   : > { %v5515_v16 = vadd.f32 %v5514_v1, %v5426_v59 }
 0x6b1   : > { %v5604_v14 = vadd.f32 %v5603_v32, %v5515_v16 }
 0x6b2   : > { %v5338_v9 = vpop.f32.mrf.mxu3 }
 0x6b3   : > { %v5638_v44 = vadd.f32 %v5604_v14, %v1839_v27  ;;  %v5339_v24 = vadd.f32 %v5338_v9, %v10329_v54 }
 0x6b4   : > { %v5605_v3 = vpop.f32.mrf.mxu2 }
 0x6b5   : > { %5670 = vst [vmem:[%s9384_s1 + $0xf0] sm:$0xff] %v5638_v44  ;;  %v5428_v52 = vadd.f32 %v5427_v39, %v5339_v24 }
 0x6b7   : > { %v5517_v23 = vadd.f32 %v5516_v20, %v5428_v52 }
 0x6b9   : > { %v5606_v30 = vadd.f32 %v5605_v3, %v5517_v23  ;;  %5675 = sbr.rel (%p7605_p6) target bundleno = 1764 (0x6e4), region = 107 }
 0x6bb   : > { %v5639_v38 = vadd.f32 %v5606_v30, %v1840_v57 }
 0x6bd   : > { %5671 = vst [vmem:[%s9384_s1 + $0xf8] sm:$0xff] %v5639_v38 }
 0x6be   : > { %v5676_v54 = vld [vmem:[%s9384_s1] sm:$0xff]  ;;  %v5677_v41 = vld [vmem:[%s9384_s1 + $0x8] sm:$0xff]  ;;  %v5678_v37 = vld [vmem:[%s9384_s1 + $0x10] sm:$0xff] }
 0x6bf   : > { %v10490_v4 = vld [vmem:[%s1771_s10] ss:$0 sm:$0xff]  ;;  %v5679_v26 = vld [vmem:[%s9384_s1 + $0x18] sm:$0xff]  ;;  %v5681_v15 = vld [vmem:[%s9384_s1 + $0x28] sm:$0xff] }
 0x6c0   : > { %v5712_v46 = vadd.f32 %v10490_v4, %v5676_v54  ;;  %v5713_v7 = vadd.f32 %v10490_v4, %v5677_v41  ;;  %v5714_v17 = vadd.f32 %v10490_v4, %v5678_v37  ;;  %v5715_v36 = vadd.f32 %v10490_v4, %v5679_v26  ;;  %v5680_v49 = vld [vmem:[%s9384_s1 + $0x20] sm:$0xff]  ;;  %v5682_v61 = vld [vmem:[%s9384_s1 + $0x30] sm:$0xff]  ;;  %v5683_v48 = vld [vmem:[%s9384_s1 + $0x38] sm:$0xff] }
 0x6c1   : > { %v5716_v12 = vadd.f32 %v10490_v4, %v5680_v49  ;;  %v5717_v8 = vadd.f32 %v10490_v4, %v5681_v15  ;;  %v5684_v28 = vld [vmem:[%s9384_s1 + $0x40] sm:$0xff]  ;;  %v5718_v2 = vadd.f32 %v10490_v4, %v5682_v61  ;;  %v5685_v62 = vld [vmem:[%s9384_s1 + $0x48] sm:$0xff]  ;;  %v5719_v50 = vadd.f32 %v10490_v4, %v5683_v48  ;;  %v5686_v18 = vld [vmem:[%s9384_s1 + $0x50] sm:$0xff] }
 0x6c2   : > { %v5744_v60 = vmax.f32 %v5712_v46, 0.0  ;;  %v5745_v22 = vmax.f32 %v5713_v7, 0.0  ;;  %v5746_v56 = vmax.f32 %v5714_v17, 0.0  ;;  %v5747_v33 = vmax.f32 %v5715_v36, 0.0  ;;  %v5687_v10 = vld [vmem:[%s9384_s1 + $0x58] sm:$0xff]  ;;  %v5688_v6 = vld [vmem:[%s9384_s1 + $0x60] sm:$0xff] }
 0x6c3   : > { %v5748_v34 = vmax.f32 %v5716_v12, 0.0  ;;  %v5720_v58 = vadd.f32 %v10490_v4, %v5684_v28  ;;  %v5749_v63 = vmax.f32 %v5717_v8, 0.0  ;;  %v5721_v53 = vadd.f32 %v10490_v4, %v5685_v62  ;;  %v5689_v11 = vld [vmem:[%s9384_s1 + $0x68] sm:$0xff]  ;;  %v5690_v25 = vld [vmem:[%s9384_s1 + $0x70] sm:$0xff]  ;;  %v5691_v0 = vld [vmem:[%s9384_s1 + $0x78] sm:$0xff] }
 0x6c4   : > { %5776 = vst [vmem:[%s9384_s1] sm:$0xff] %v5744_v60  ;;  %v5750_v19 = vmax.f32 %v5718_v2, 0.0  ;;  %v5722_v31 = vadd.f32 %v10490_v4, %v5686_v18  ;;  %v5751_v51 = vmax.f32 %v5719_v50, 0.0  ;;  %v5723_v47 = vadd.f32 %v10490_v4, %v5687_v10  ;;  %v5692_v42 = vld [vmem:[%s9384_s1 + $0x80] sm:$0xff]  ;;  %v5693_v55 = vld [vmem:[%s9384_s1 + $0x88] sm:$0xff]  ;;  %v5694_v1 = vld [vmem:[%s9384_s1 + $0x90] sm:$0xff] }
 0x6c5   : > { %5777 = vst [vmem:[%s9384_s1 + $0x8] sm:$0xff] %v5745_v22  ;;  %v5752_v40 = vmax.f32 %v5720_v58, 0.0  ;;  %v5724_v43 = vadd.f32 %v10490_v4, %v5688_v6  ;;  %v5753_v45 = vmax.f32 %v5721_v53, 0.0  ;;  %v5725_v21 = vadd.f32 %v10490_v4, %v5689_v11  ;;  %v5695_v16 = vld [vmem:[%s9384_s1 + $0x98] sm:$0xff]  ;;  %v5696_v9 = vld [vmem:[%s9384_s1 + $0xa0] sm:$0xff]  ;;  %v5697_v39 = vld [vmem:[%s9384_s1 + $0xa8] sm:$0xff] }
 0x6c6   : > { %5778 = vst [vmem:[%s9384_s1 + $0x10] sm:$0xff] %v5746_v56  ;;  %v5754_v35 = vmax.f32 %v5722_v31, 0.0  ;;  %v5726_v13 = vadd.f32 %v10490_v4, %v5690_v25  ;;  %v5755_v29 = vmax.f32 %v5723_v47, 0.0  ;;  %v5727_v5 = vadd.f32 %v10490_v4, %v5691_v0  ;;  %v5698_v23 = vld [vmem:[%s9384_s1 + $0xb0] sm:$0xff]  ;;  %v5699_v30 = vld [vmem:[%s9384_s1 + $0xb8] sm:$0xff]  ;;  %v5700_v41 = vld [vmem:[%s9384_s1 + $0xc0] sm:$0xff] }
 0x6c7   : > { %5779 = vst [vmem:[%s9384_s1 + $0x18] sm:$0xff] %v5747_v33  ;;  %v5756_v59 = vmax.f32 %v5724_v43, 0.0  ;;  %v5728_v32 = vadd.f32 %v10490_v4, %v5692_v42  ;;  %v5757_v27 = vmax.f32 %v5725_v21, 0.0  ;;  %v5729_v14 = vadd.f32 %v10490_v4, %v5693_v55  ;;  %v5701_v46 = vld [vmem:[%s9384_s1 + $0xc8] sm:$0xff]  ;;  %v5702_v36 = vld [vmem:[%s9384_s1 + $0xd0] sm:$0xff]  ;;  %v5703_v61 = vld [vmem:[%s9384_s1 + $0xd8] sm:$0xff] }
 0x6c8   : > { %5780 = vst [vmem:[%s9384_s1 + $0x20] sm:$0xff] %v5748_v34  ;;  %v5758_v44 = vmax.f32 %v5726_v13, 0.0  ;;  %v5730_v24 = vadd.f32 %v10490_v4, %v5694_v1  ;;  %v5759_v52 = vmax.f32 %v5727_v5, 0.0  ;;  %v5731_v20 = vadd.f32 %v10490_v4, %v5695_v16  ;;  %v5704_v48 = vld [vmem:[%s9384_s1 + $0xe0] sm:$0xff]  ;;  %v5705_v22 = vld [vmem:[%s9384_s1 + $0xe8] sm:$0xff]  ;;  %v5706_v62 = vld [vmem:[%s9384_s1 + $0xf0] sm:$0xff] }
 0x6c9   : > { %5781 = vst [vmem:[%s9384_s1 + $0x28] sm:$0xff] %v5749_v63  ;;  %v5760_v57 = vmax.f32 %v5728_v32, 0.0  ;;  %v5732_v3 = vadd.f32 %v10490_v4, %v5696_v9  ;;  %v5761_v38 = vmax.f32 %v5729_v14, 0.0  ;;  %v5733_v54 = vadd.f32 %v10490_v4, %v5697_v39  ;;  %v5707_v18 = vld [vmem:[%s9384_s1 + $0xf8] sm:$0xff] }
 0x6ca   : > { %5782 = vst [vmem:[%s9384_s1 + $0x30] sm:$0xff] %v5750_v19  ;;  %v5762_v37 = vmax.f32 %v5730_v24, 0.0  ;;  %v5734_v26 = vadd.f32 %v10490_v4, %v5698_v23  ;;  %v5763_v7 = vmax.f32 %v5731_v20, 0.0  ;;  %v5735_v17 = vadd.f32 %v10490_v4, %v5699_v30 }
 0x6cb   : > { %5783 = vst [vmem:[%s9384_s1 + $0x38] sm:$0xff] %v5751_v51  ;;  %v5764_v49 = vmax.f32 %v5732_v3, 0.0  ;;  %v5736_v15 = vadd.f32 %v10490_v4, %v5700_v41  ;;  %v5765_v12 = vmax.f32 %v5733_v54, 0.0  ;;  %v5737_v8 = vadd.f32 %v10490_v4, %v5701_v46 }
 0x6cc   : > { %5784 = vst [vmem:[%s9384_s1 + $0x40] sm:$0xff] %v5752_v40  ;;  %v5766_v28 = vmax.f32 %v5734_v26, 0.0  ;;  %v5738_v60 = vadd.f32 %v10490_v4, %v5702_v36  ;;  %v5767_v56 = vmax.f32 %v5735_v17, 0.0  ;;  %v5739_v2 = vadd.f32 %v10490_v4, %v5703_v61 }
 0x6cd   : > { %5785 = vst [vmem:[%s9384_s1 + $0x48] sm:$0xff] %v5753_v45  ;;  %v5768_v33 = vmax.f32 %v5736_v15, 0.0  ;;  %v5740_v50 = vadd.f32 %v10490_v4, %v5704_v48  ;;  %v5769_v34 = vmax.f32 %v5737_v8, 0.0  ;;  %v5741_v58 = vadd.f32 %v10490_v4, %v5705_v22 }
 0x6ce   : > { %5786 = vst [vmem:[%s9384_s1 + $0x50] sm:$0xff] %v5754_v35  ;;  %v5770_v10 = vmax.f32 %v5738_v60, 0.0  ;;  %v5742_v63 = vadd.f32 %v10490_v4, %v5706_v62  ;;  %v5771_v53 = vmax.f32 %v5739_v2, 0.0  ;;  %v5743_v6 = vadd.f32 %v10490_v4, %v5707_v18 }
 0x6cf   : > { %5787 = vst [vmem:[%s9384_s1 + $0x58] sm:$0xff] %v5755_v29  ;;  %v5772_v19 = vmax.f32 %v5740_v50, 0.0  ;;  %v5773_v31 = vmax.f32 %v5741_v58, 0.0 }
 0x6d0   : > { %5788 = vst [vmem:[%s9384_s1 + $0x60] sm:$0xff] %v5756_v59  ;;  %v5774_v11 = vmax.f32 %v5742_v63, 0.0  ;;  %v5775_v51 = vmax.f32 %v5743_v6, 0.0 }
 0x6d1   : > { %5789 = vst [vmem:[%s9384_s1 + $0x68] sm:$0xff] %v5757_v27 }
 0x6d2   : > { %5790 = vst [vmem:[%s9384_s1 + $0x70] sm:$0xff] %v5758_v44 }
 0x6d3   : > { %5791 = vst [vmem:[%s9384_s1 + $0x78] sm:$0xff] %v5759_v52 }
 0x6d4   : > { %5792 = vst [vmem:[%s9384_s1 + $0x80] sm:$0xff] %v5760_v57 }
 0x6d5   : > { %5793 = vst [vmem:[%s9384_s1 + $0x88] sm:$0xff] %v5761_v38 }
 0x6d6   : > { %5794 = vst [vmem:[%s9384_s1 + $0x90] sm:$0xff] %v5762_v37 }
 0x6d7   : > { %5795 = vst [vmem:[%s9384_s1 + $0x98] sm:$0xff] %v5763_v7 }
 0x6d8   : > { %5796 = vst [vmem:[%s9384_s1 + $0xa0] sm:$0xff] %v5764_v49 }
 0x6d9   : > { %5797 = vst [vmem:[%s9384_s1 + $0xa8] sm:$0xff] %v5765_v12 }
 0x6da   : > { %5798 = vst [vmem:[%s9384_s1 + $0xb0] sm:$0xff] %v5766_v28 }
 0x6db   : > { %5799 = vst [vmem:[%s9384_s1 + $0xb8] sm:$0xff] %v5767_v56 }
 0x6dc   : > { %5800 = vst [vmem:[%s9384_s1 + $0xc0] sm:$0xff] %v5768_v33 }
 0x6dd   : > { %5801 = vst [vmem:[%s9384_s1 + $0xc8] sm:$0xff] %v5769_v34 }
 0x6de   : > { %5802 = vst [vmem:[%s9384_s1 + $0xd0] sm:$0xff] %v5770_v10 }
 0x6df   : > { %5803 = vst [vmem:[%s9384_s1 + $0xd8] sm:$0xff] %v5771_v53 }
 0x6e0   : > { %5804 = vst [vmem:[%s9384_s1 + $0xe0] sm:$0xff] %v5772_v19 }
 0x6e1   : > { %5805 = vst [vmem:[%s9384_s1 + $0xe8] sm:$0xff] %v5773_v31 }
 0x6e2   : > { %5806 = vst [vmem:[%s9384_s1 + $0xf0] sm:$0xff] %v5774_v11 }
 0x6e3   : > { %5807 = vst [vmem:[%s9384_s1 + $0xf8] sm:$0xff] %v5775_v51 }
 0x6e4 PF: > { %5814 = sbr.rel (!%p8346_p13) target bundleno = 1806 (0x70e), region = 111  ;;  %s10723_s14 = sld [smem:[#allocation5_spill]] (%p8346_p13)  ;;  %v5910_v4 = vld [vmem:[%s9384_s1] sm:$0xff] (%p8346_p13)  ;;  %v5912_v47 = vld [vmem:[%s9384_s1 + $0x8] sm:$0xff] (%p8346_p13)  ;;  %v5914_v25 = vld [vmem:[%s9384_s1 + $0x10] sm:$0xff] (%p8346_p13) }
 0x6e5   : > { %s10724_s20 = sld [smem:[#allocation10_spill]] (%p8346_p13)  ;;  %v5916_v40 = vld [vmem:[%s9384_s1 + $0x18] sm:$0xff] (%p8346_p13)  ;;  %v5918_v43 = vld [vmem:[%s9384_s1 + $0x20] sm:$0xff] (%p8346_p13)  ;;  %v5920_v0 = vld [vmem:[%s9384_s1 + $0x28] sm:$0xff] (%p8346_p13) }
 0x6e6   : > { %v5922_v45 = vld [vmem:[%s9384_s1 + $0x30] sm:$0xff] (%p8346_p13)  ;;  %v5924_v21 = vld [vmem:[%s9384_s1 + $0x38] sm:$0xff] (%p8346_p13)  ;;  %v5926_v42 = vld [vmem:[%s9384_s1 + $0x40] sm:$0xff] (%p8346_p13) }
 0x6e7   : > { %v5928_v35 = vld [vmem:[%s9384_s1 + $0x48] sm:$0xff] (%p8346_p13)  ;;  %v5930_v13 = vld [vmem:[%s9384_s1 + $0x50] sm:$0xff] (%p8346_p13)  ;;  %v5932_v55 = vld [vmem:[%s9384_s1 + $0x58] sm:$0xff] (%p8346_p13) }
 0x6e8   : > { %v5934_v29 = vld [vmem:[%s9384_s1 + $0x60] sm:$0xff] (%p8346_p13)  ;;  %v5936_v5 = vld [vmem:[%s9384_s1 + $0x68] sm:$0xff] (%p8346_p13)  ;;  %v5938_v1 = vld [vmem:[%s9384_s1 + $0x70] sm:$0xff] (%p8346_p13) }
 0x6e9   : > { %v5940_v59 = vld [vmem:[%s9384_s1 + $0x78] sm:$0xff]  ;;  %v5942_v32 = vld [vmem:[%s9384_s1 + $0x80] sm:$0xff]  ;;  %v5944_v16 = vld [vmem:[%s9384_s1 + $0x88] sm:$0xff] }
 0x6ea   : > { %s7973_s16 = sshll.u32 %s10723_s14, 6  ;;  %v5946_v27 = vld [vmem:[%s9384_s1 + $0x90] sm:$0xff]  ;;  %v5948_v14 = vld [vmem:[%s9384_s1 + $0x98] sm:$0xff]  ;;  %v5950_v9 = vld [vmem:[%s9384_s1 + $0xa0] sm:$0xff] }
 0x6eb   : > { %s5817_s18 = sadd.s32 %s8191_s19, %s7973_s16  ;;  %v5952_v44 = vld [vmem:[%s9384_s1 + $0xa8] sm:$0xff]  ;;  %v5954_v24 = vld [vmem:[%s9384_s1 + $0xb0] sm:$0xff]  ;;  %v5956_v39 = vld [vmem:[%s9384_s1 + $0xb8] sm:$0xff] }
 0x6ec   : > { %s7609_s11 = sshll.u32 %s5817_s18, 3  ;;  %v5958_v52 = vld [vmem:[%s9384_s1 + $0xc0] sm:$0xff]  ;;  %v5960_v20 = vld [vmem:[%s9384_s1 + $0xc8] sm:$0xff]  ;;  %v5962_v23 = vld [vmem:[%s9384_s1 + $0xd0] sm:$0xff] }
 0x6ed   : > { %s10596_s26 = scalar_lea.vmem %s10724_s20, %s7609_s11  ;;  %v5964_v57 = vld [vmem:[%s9384_s1 + $0xd8] sm:$0xff]  ;;  %v5966_v3 = vld [vmem:[%s9384_s1 + $0xe0] sm:$0xff]  ;;  %v5968_v30 = vld [vmem:[%s9384_s1 + $0xe8] sm:$0xff] }
 0x6ee   : > { %5911 = vst [vmem:[%s10596_s26] sm:$0xff] %v5910_v4  ;;  %v5970_v38 = vld [vmem:[%s9384_s1 + $0xf0] sm:$0xff]  ;;  %v5972_v54 = vld [vmem:[%s9384_s1 + $0xf8] sm:$0xff] }
 0x6ef   : > { %5913 = vst [vmem:[%s10596_s26 + $0x10] sm:$0xff] %v5912_v47 }
 0x6f0   : > { %5915 = vst [vmem:[%s10596_s26 + $0x20] sm:$0xff] %v5914_v25 }
 0x6f1   : > { %5917 = vst [vmem:[%s10596_s26 + $0x30] sm:$0xff] %v5916_v40 }
 0x6f2   : > { %5919 = vst [vmem:[%s10596_s26 + $0x40] sm:$0xff] %v5918_v43 }
 0x6f3   : > { %5921 = vst [vmem:[%s10596_s26 + $0x50] sm:$0xff] %v5920_v0 }
 0x6f4   : > { %5923 = vst [vmem:[%s10596_s26 + $0x60] sm:$0xff] %v5922_v45 }
 0x6f5   : > { %5925 = vst [vmem:[%s10596_s26 + $0x70] sm:$0xff] %v5924_v21 }
 0x6f6   : > { %5927 = vst [vmem:[%s10596_s26 + $0x80] sm:$0xff] %v5926_v42 }
 0x6f7   : > { %5929 = vst [vmem:[%s10596_s26 + $0x90] sm:$0xff] %v5928_v35 }
 0x6f8   : > { %5931 = vst [vmem:[%s10596_s26 + $0xa0] sm:$0xff] %v5930_v13 }
 0x6f9   : > { %5933 = vst [vmem:[%s10596_s26 + $0xb0] sm:$0xff] %v5932_v55 }
 0x6fa   : > { %5935 = vst [vmem:[%s10596_s26 + $0xc0] sm:$0xff] %v5934_v29 }
 0x6fb   : > { %5937 = vst [vmem:[%s10596_s26 + $0xd0] sm:$0xff] %v5936_v5 }
 0x6fc   : > { %5939 = vst [vmem:[%s10596_s26 + $0xe0] sm:$0xff] %v5938_v1 }
 0x6fd   : > { %5941 = vst [vmem:[%s10596_s26 + $0xf0] sm:$0xff] %v5940_v59 }
 0x6fe   : > { %5943 = vst [vmem:[%s10596_s26 + $0x100] sm:$0xff] %v5942_v32 }
 0x6ff   : > { %5945 = vst [vmem:[%s10596_s26 + $0x110] sm:$0xff] %v5944_v16 }
 0x700   : > { %5947 = vst [vmem:[%s10596_s26 + $0x120] sm:$0xff] %v5946_v27 }
 0x701   : > { %5949 = vst [vmem:[%s10596_s26 + $0x130] sm:$0xff] %v5948_v14 }
 0x702   : > { %5951 = vst [vmem:[%s10596_s26 + $0x140] sm:$0xff] %v5950_v9 }
 0x703   : > { %5953 = vst [vmem:[%s10596_s26 + $0x150] sm:$0xff] %v5952_v44 }
 0x704   : > { %5955 = vst [vmem:[%s10596_s26 + $0x160] sm:$0xff] %v5954_v24 }
 0x705   : > { %5957 = vst [vmem:[%s10596_s26 + $0x170] sm:$0xff] %v5956_v39 }
 0x706   : > { %5959 = vst [vmem:[%s10596_s26 + $0x180] sm:$0xff] %v5958_v52 }
 0x707   : > { %5961 = vst [vmem:[%s10596_s26 + $0x190] sm:$0xff] %v5960_v20 }
 0x708   : > { %5963 = vst [vmem:[%s10596_s26 + $0x1a0] sm:$0xff] %v5962_v23 }
 0x709   : > { %5965 = vst [vmem:[%s10596_s26 + $0x1b0] sm:$0xff] %v5964_v57 }
 0x70a   : > { %5967 = vst [vmem:[%s10596_s26 + $0x1c0] sm:$0xff] %v5966_v3 }
 0x70b   : > { %5969 = vst [vmem:[%s10596_s26 + $0x1d0] sm:$0xff] %v5968_v30 }
 0x70c   : > { %5971 = vst [vmem:[%s10596_s26 + $0x1e0] sm:$0xff] %v5970_v38 }
 0x70d   : > { %5973 = vst [vmem:[%s10596_s26 + $0x1f0] sm:$0xff] %v5972_v54 }
 0x70e PF: > { %s13_s24 = sadd.s32 1, %s8211_s24   ;;  %s10726_s1 = sld [smem:[#allocation6_spill]] }
 0x70f   : > { %p10661_p7 = scmp.ge.s32.totalorder %s13_s24, 10   ;;  %s10727_s27 = sld [smem:[#allocation7_spill]] }
 0x710   : > { %s10729_s12 = smov %s8167_s13  ;;  %s10730_s13 = smov %s8344_s7 }
 0x711   : > { %s10731_s14 = smov %s8175_s15  ;;  %s10732_s15 = smov %s8331_s9 }
 0x712   : > { %s10733_s16 = smov %s8183_s17  ;;  %s10734_s17 = smov %s8341_s3 }
 0x713   : > { %s10735_s18 = smov %s8199_s21  ;;  %s10736_s19 = smov %s8203_s22 }
 0x714   : > { %s10737_s20 = smov %s8207_s23  ;;  %s10738_s21 = smov %s10726_s1 }
 0x715   : > { %s10739_s22 = smov %s10727_s27  ;;  %s10740_s23 = smov %s10750_s28 }
 0x716   :  { %12 = sbr.rel (!%p10661_p7) target bundleno = 11 (0xb), region = 197 }

// kernel: net_forward.12
= control target key start
LH: loop header
LB: loop body
LE: loop exit
PB: predicated region body
PF: predicated region fallthrough
CT: control target
= control target key end

     0   :  { %s4815_s12 = smov 0   ;;  %s4817_s13 = smov 0   ;;  %s5848_s0 = inlined_call_operand.vmem [shape: bf16[512,1408], index: 0, kind: input, shape index: {}]   ;;  %s5849_s1 = inlined_call_operand.vmem [shape: bf16[1408,128], index: 1, kind: input, shape index: {}]   ;;  %s5850_s2 = inlined_call_operand.vmem [shape: f32[1,128], index: 2, kind: input, shape index: {}]   ;;  %s5851_s3 = inlined_call_operand.vmem [shape: f32[512,128], index: 3, kind: output, shape index: {}]  }
   0x1   :  { %s4819_s14 = smov 0  }
   0x2 LB: > { %s32_s15 = sadd.s32 1, %s4789_s13  ;;  %p3393_p0 = scmp.ge.s32.totalorder %s4793_s14, 1  ;;  %s4793_s14 = sphi %s4819_s14, %s13_s14   ;;  %s4789_s13 = sphi %s4817_s13, %s5853_s13   ;;  %s4785_s12 = sphi %s4815_s12, %s5852_s12  }
   0x3   : > { %p34_p1 = scmp.ge.s32.totalorder %s32_s15, 2  ;;  %p191_p2 = scmp.lt.s32.totalorder %s4793_s14, 3 }
   0x5   : > { %s5855_s15 = smov (%p34_p1, %s32_s15), 0  ;;  %p192_p3 = pnand %p3393_p0, %p191_p2 }
   0x6   : > { %s3394_s7 = sshll.u32 (!%p192_p3), %s4785_s12, 5 }
   0x7   : > { %195 = sbr.rel (%p192_p3) target bundleno = 883 (0x373), region = 32  ;;  %p236_p4 = scmp.lt.s32.totalorder (!%p192_p3), %s3394_s7, 63 }
   0xc   : > { %v4639_v0 = vld [vmem:[%s5849_s1 + $0x38] sm:$0xff]  ;;  %v4638_v3 = vld [vmem:[%s5849_s1 + $0x30] sm:$0xff]  ;;  %v4637_v6 = vld [vmem:[%s5849_s1 + $0x28] sm:$0xff]  ;;  %s5857_s7 = smov (!%p236_p4, %s3394_s7), 63 }
   0xd   : > { %v4841_v1 = vld [vmem:[%s5849_s1 + $0x78] sm:$0xff]  ;;  %2127 = vmatpush.bf16.msra.mxu0 %v4639_v0  ;;  %4720 = vmatpush.bf16.msra.mxu3 %v4639_v0  ;;  %v4856_v4 = vld [vmem:[%s5849_s1 + $0x70] sm:$0xff]  ;;  %v4871_v7 = vld [vmem:[%s5849_s1 + $0x68] sm:$0xff]  ;;  %s4744_s25 = smul.u32 44, %s5857_s7  ;;  %s3397_s18 = sshll.u32 %s5857_s7, 3 }
   0xe   : > { %v4846_v2 = vld [vmem:[%s5849_s1 + $0xb8] sm:$0xff]  ;;  %2216 = vmatpush.bf16.msra.mxu1 %v4841_v1  ;;  %v4861_v5 = vld [vmem:[%s5849_s1 + $0xb0] sm:$0xff]  ;;  %v4876_v8 = vld [vmem:[%s5849_s1 + $0xa8] sm:$0xff]  ;;  %s5695_s22 = scalar_lea.vmem %s5851_s3, %s3397_s18 }
   0xf   : > { %2305 = vmatpush.bf16.msra.mxu2 %v4846_v2  ;;  %v4636_v9 = vld [vmem:[%s5849_s1 + $0x20] sm:$0xff]  ;;  %v4635_v12 = vld [vmem:[%s5849_s1 + $0x18] sm:$0xff]  ;;  %v4634_v15 = vld [vmem:[%s5849_s1 + $0x10] sm:$0xff]  ;;  %s4933_s8 = scalar_lea.vmem %s5848_s0, %s4744_s25 }
  0x10   : > { %v4887_v10 = vld [vmem:[%s5849_s1 + $0x60] sm:$0xff]  ;;  %v4904_v13 = vld [vmem:[%s5849_s1 + $0x58] sm:$0xff]  ;;  %v4920_v16 = vld [vmem:[%s5849_s1 + $0x50] sm:$0xff] }
  0x11   : > { %2128 = vmatpush.bf16.msra.mxu0 %v4638_v3  ;;  %4721 = vmatpush.bf16.msra.mxu3 %v4638_v3  ;;  %v4892_v11 = vld [vmem:[%s5849_s1 + $0xa0] sm:$0xff]  ;;  %v4909_v14 = vld [vmem:[%s5849_s1 + $0x98] sm:$0xff]  ;;  %v4925_v17 = vld [vmem:[%s5849_s1 + $0x90] sm:$0xff] }
  0x12   : > { %2217 = vmatpush.bf16.msra.mxu1 %v4856_v4  ;;  %v4633_v18 = vld [vmem:[%s5849_s1 + $0x8] sm:$0xff]  ;;  %v4632_v21 = vld [vmem:[%s5849_s1] sm:$0xff]  ;;  %v3402_v29 = vld [vmem:[%s4933_s8 + $0x2c] sm:$0xf0] }
  0x13   : > { %2306 = vmatpush.bf16.msra.mxu2 %v4861_v5  ;;  %v4940_v19 = vld [vmem:[%s5849_s1 + $0x48] sm:$0xff]  ;;  %v4953_v22 = vld [vmem:[%s5849_s1 + $0x40] sm:$0xff]  ;;  %v4462_v31 = vld [vmem:[%s4933_s8 + $0x30] sm:$0xf0] }
  0x14   : > { %v4945_v20 = vld [vmem:[%s5849_s1 + $0x88] sm:$0xff]  ;;  %v4958_v23 = vld [vmem:[%s5849_s1 + $0x80] sm:$0xff]  ;;  %v4687_v32 = vld [vmem:[%s5849_s1 + $0x1b8] sm:$0xff] }
  0x15   : > { %2129 = vmatpush.bf16.msra.mxu0 %v4637_v6  ;;  %4722 = vmatpush.bf16.msra.mxu3 %v4637_v6  ;;  %v3400_v24 = vld [vmem:[%s4933_s8] sm:$0xf]  ;;  %v4461_v25 = vld [vmem:[%s4933_s8 + $0x28] sm:$0xf0]  ;;  %v4456_v28 = vld [vmem:[%s4933_s8 + $0x4] sm:$0xf] }
  0x16   : > { %2218 = vmatpush.bf16.msra.mxu1 %v4871_v7  ;;  %v3928_v26 = vld [vmem:[%s4933_s8 + $0x420] sm:$0xf]  ;;  %v4593_v27 = vld [vmem:[%s4933_s8 + $0x448] sm:$0xf0]  ;;  %v3408_v30 = vld [vmem:[%s4933_s8 + $0x8] sm:$0xf]  ;;  %v3401_v33 = vor.u32 %v4461_v25, %v3400_v24  ;;  %v3405_v35 = vor.u32 %v4456_v28, %v3402_v29 }
  0x17   : > { %2307 = vmatpush.bf16.msra.mxu2 %v4876_v8  ;;  %v3929_v34 = vor.u32 %v4593_v27, %v3928_v26  ;;  %v3409_v36 = vor.u32 %v4462_v31, %v3408_v30  ;;  %v4671_v37 = vld [vmem:[%s5849_s1 + $0x138] sm:$0xff]  ;;  %v4686_v39 = vld [vmem:[%s5849_s1 + $0x1b0] sm:$0xff]  ;;  %v4472_v43 = vld [vmem:[%s4933_s8 + $0x80] sm:$0xf0] }
  0x18   : > { %v4679_v38 = vld [vmem:[%s5849_s1 + $0x178] sm:$0xff]  ;;  %v4670_v40 = vld [vmem:[%s5849_s1 + $0x130] sm:$0xff]  ;;  %v4604_v45 = vld [vmem:[%s4933_s8 + $0x4a0] sm:$0xf0] }
  0x19   : > { %2130 = vmatpush.bf16.msra.mxu0 %v4636_v9  ;;  %4723 = vmatpush.bf16.msra.mxu3 %v4636_v9  ;;  %v4678_v41 = vld [vmem:[%s5849_s1 + $0x170] sm:$0xff]  ;;  %v3444_v42 = vld [vmem:[%s4933_s8 + $0x58] sm:$0xf]  ;;  %v4467_v46 = vld [vmem:[%s4933_s8 + $0x5c] sm:$0xf] }
  0x1a   : > { %2219 = vmatpush.bf16.msra.mxu1 %v4887_v10  ;;  %v3972_v44 = vld [vmem:[%s4933_s8 + $0x478] sm:$0xf]  ;;  %v3446_v47 = vld [vmem:[%s4933_s8 + $0x84] sm:$0xf0]  ;;  %v3452_v48 = vld [vmem:[%s4933_s8 + $0x60] sm:$0xf]  ;;  %v3445_v50 = vor.u32 %v4472_v43, %v3444_v42 }
  0x1b   : > { %2308 = vmatpush.bf16.msra.mxu2 %v4892_v11  ;;  %v4473_v49 = vld [vmem:[%s4933_s8 + $0x88] sm:$0xf0]  ;;  %v3973_v51 = vor.u32 %v4604_v45, %v3972_v44  ;;  %v3449_v52 = vor.u32 %v4467_v46, %v3446_v47  ;;  %v3488_v57 = vld [vmem:[%s4933_s8 + $0xb0] sm:$0xf]  ;;  %v4483_v58 = vld [vmem:[%s4933_s8 + $0xd8] sm:$0xf0] }
  0x1c   : > { %v3453_v53 = vor.u32 %v4473_v49, %v3452_v48  ;;  %v4685_v54 = vld [vmem:[%s5849_s1 + $0x1a8] sm:$0xff]  ;;  %v4016_v59 = vld [vmem:[%s4933_s8 + $0x4d0] sm:$0xf]  ;;  %v4615_v60 = vld [vmem:[%s4933_s8 + $0x4f8] sm:$0xf0] }
  0x1d   : > { %2131 = vmatpush.bf16.msra.mxu0 %v4635_v12  ;;  %4724 = vmatpush.bf16.msra.mxu3 %v4635_v12  ;;  %v4669_v55 = vld [vmem:[%s5849_s1 + $0x128] sm:$0xff]  ;;  %v4478_v61 = vld [vmem:[%s4933_s8 + $0xb4] sm:$0xf]  ;;  %v3490_v62 = vld [vmem:[%s4933_s8 + $0xdc] sm:$0xf0]  ;;  %v4017_v3 = vor.u32 %v4615_v60, %v4016_v59 }
  0x1e   : > { %2220 = vmatpush.bf16.msra.mxu1 %v4904_v13  ;;  %v4677_v56 = vld [vmem:[%s5849_s1 + $0x168] sm:$0xff]  ;;  %v3496_v63 = vld [vmem:[%s4933_s8 + $0xb8] sm:$0xf]  ;;  %v4484_v0 = vld [vmem:[%s4933_s8 + $0xe0] sm:$0xf0] }
  0x1f   : > { %2309 = vmatpush.bf16.msra.mxu2 %v4909_v14  ;;  %v3497_v6 = vor.u32 %v4484_v0, %v3496_v63  ;;  %v3532_v9 = vld [vmem:[%s4933_s8 + $0x108] sm:$0xf]  ;;  %v4626_v12 = vld [vmem:[%s4933_s8 + $0x550] sm:$0xf0]  ;;  %v4505_v24 = vld [vmem:[%s4933_s8 + $0x188] sm:$0xf0] }
  0x20   : > { %v4500_v25 = vld [vmem:[%s4933_s8 + $0x164] sm:$0xf]  ;;  %v3930_v27 = vld [vmem:[%s4933_s8 + $0x44c] sm:$0xf0]  ;;  %v3584_v29 = vld [vmem:[%s4933_s8 + $0x168] sm:$0xf] }
  0x21   : > { %2132 = vmatpush.bf16.msra.mxu0 %v4634_v15  ;;  %4725 = vmatpush.bf16.msra.mxu3 %v4634_v15  ;;  %v3534_v15 = vld [vmem:[%s4933_s8 + $0x134] sm:$0xf0]  ;;  %v4588_v26 = vld [vmem:[%s4933_s8 + $0x424] sm:$0xf]  ;;  %v3578_v28 = vld [vmem:[%s4933_s8 + $0x18c] sm:$0xf0] }
  0x22   : > { %2221 = vmatpush.bf16.msra.mxu1 %v4920_v16  ;;  %v4506_v30 = vld [vmem:[%s4933_s8 + $0x190] sm:$0xf0]  ;;  %v4517_v42 = vld [vmem:[%s4933_s8 + $0x1e8] sm:$0xf0]  ;;  %v3664_v47 = vld [vmem:[%s4933_s8 + $0x210] sm:$0xf] }
  0x23   : > { %2310 = vmatpush.bf16.msra.mxu2 %v4925_v17  ;;  %v4527_v48 = vld [vmem:[%s4933_s8 + $0x238] sm:$0xf0]  ;;  %v4522_v49 = vld [vmem:[%s4933_s8 + $0x214] sm:$0xf]  ;;  %v3708_v0 = vld [vmem:[%s4933_s8 + $0x268] sm:$0xf] }
  0x24   : > { %v4682_v59 = vld [vmem:[%s5849_s1 + $0x190] sm:$0xff]  ;;  %v4663_v60 = vld [vmem:[%s5849_s1 + $0xf8] sm:$0xff] }
  0x25   : > { %2133 = vmatpush.bf16.msra.mxu0 %v4633_v18  ;;  %4726 = vmatpush.bf16.msra.mxu3 %v4633_v18  ;;  %v4495_v18 = vld [vmem:[%s4933_s8 + $0x138] sm:$0xf0]  ;;  %v4662_v63 = vld [vmem:[%s5849_s1 + $0xf0] sm:$0xff] }
  0x26   : > { %2222 = vmatpush.bf16.msra.mxu1 %v4940_v19 }
  0x27   : > { %2311 = vmatpush.bf16.msra.mxu2 %v4945_v20 }
  0x29   : > { %2134 = vmatpush.bf16.msra.mxu0 %v4632_v21  ;;  %4727 = vmatpush.bf16.msra.mxu3 %v4632_v21 }
  0x2a   : > { %2223 = vmatpush.bf16.msra.mxu1 %v4953_v22 }
  0x2b   : > { %2312 = vmatpush.bf16.msra.mxu2 %v4958_v23 }
  0x2c   : > { %2135 = vmatmul.bf16.vlgmr.msra.gmra.mxu0 %v3401_v33  ;;  %2195 = vmatmul.bf16.vlgmr.msra.gmra.mxu3 %v3929_v34  ;;  %v3585_v33 = vor.u32 %v4506_v30, %v3584_v29  ;;  %v4675_v34 = vld [vmem:[%s5849_s1 + $0x158] sm:$0xff] }
  0x2d   : > { %4728 = vmatpush.bf16.msrb.mxu3 %v4841_v1  ;;  %2224 = vmatmul.bf16.vlgmr.msra.gmra.mxu1 %v3405_v35  ;;  %v3489_v1 = vor.u32 %v4483_v58, %v3488_v57  ;;  %v3620_v35 = vld [vmem:[%s4933_s8 + $0x1b8] sm:$0xf] }
  0x2e   : > { %2313 = vmatmul.bf16.vlgmr.msra.gmra.mxu2 %v3409_v36  ;;  %2483 = vmatpush.bf16.msrb.mxu0 %v4671_v37  ;;  %v4516_v36 = vld [vmem:[%s4933_s8 + $0x1e0] sm:$0xf0]  ;;  %v4511_v37 = vld [vmem:[%s4933_s8 + $0x1bc] sm:$0xf] }
  0x2f   : > { %2661 = vmatpush.bf16.msrb.mxu2 %v4687_v32  ;;  %2572 = vmatpush.bf16.msrb.mxu1 %v4679_v38  ;;  %v3933_v32 = vor.u32 %v4588_v26, %v3930_v27  ;;  %v4599_v38 = vld [vmem:[%s4933_s8 + $0x47c] sm:$0xf]  ;;  %v3621_v43 = vor.u32 %v4516_v36, %v3620_v35  ;;  %v3760_v26 = vld [vmem:[%s4933_s8 + $0x2c8] sm:$0xf]  ;;  %v4550_v27 = vld [vmem:[%s4933_s8 + $0x2f0] sm:$0xf0] }
  0x31   : > { %4729 = vmatpush.bf16.msrb.mxu3 %v4856_v4  ;;  %v3493_v4 = vor.u32 %v4478_v61, %v3490_v62  ;;  %v4666_v61 = vld [vmem:[%s5849_s1 + $0x110] sm:$0xff] }
  0x32   : > { %2484 = vmatpush.bf16.msrb.mxu0 %v4670_v40  ;;  %v3622_v40 = vld [vmem:[%s4933_s8 + $0x1e4] sm:$0xf0]  ;;  %v4674_v62 = vld [vmem:[%s5849_s1 + $0x150] sm:$0xff] }
  0x33   : > { %2662 = vmatpush.bf16.msrb.mxu2 %v4686_v39  ;;  %2573 = vmatpush.bf16.msrb.mxu1 %v4678_v41  ;;  %v3974_v39 = vld [vmem:[%s4933_s8 + $0x4a4] sm:$0xf0]  ;;  %v3628_v41 = vld [vmem:[%s4933_s8 + $0x1c0] sm:$0xf]  ;;  %v3625_v45 = vor.u32 %v4511_v37, %v3622_v40  ;;  %v3796_v40 = vld [vmem:[%s4933_s8 + $0x318] sm:$0xf] }
  0x34   : > { %v3977_v44 = vor.u32 %v4599_v38, %v3974_v39  ;;  %v3629_v46 = vor.u32 %v4517_v42, %v3628_v41  ;;  %v4658_v39 = vld [vmem:[%s5849_s1 + $0xd0] sm:$0xff]  ;;  %v4560_v41 = vld [vmem:[%s4933_s8 + $0x340] sm:$0xf0]  ;;  %v4555_v42 = vld [vmem:[%s4933_s8 + $0x31c] sm:$0xf] }
  0x35   : > { %4730 = vmatpush.bf16.msrb.mxu3 %v4871_v7  ;;  %v4684_v7 = vld [vmem:[%s5849_s1 + $0x1a0] sm:$0xff] }
  0x36   : > { %2485 = vmatpush.bf16.msrb.mxu0 %v4669_v55  ;;  %v3665_v55 = vor.u32 %v4527_v48, %v3664_v47  ;;  %v4561_v47 = vld [vmem:[%s4933_s8 + $0x348] sm:$0xf0] }
  0x37   : > { %2663 = vmatpush.bf16.msrb.mxu2 %v4685_v54  ;;  %2574 = vmatpush.bf16.msrb.mxu1 %v4677_v56  ;;  %v4528_v54 = vld [vmem:[%s4933_s8 + $0x240] sm:$0xf0] }
  0x39   : > { %4731 = vmatpush.bf16.msrb.mxu3 %v4887_v10  ;;  %v4060_v10 = vld [vmem:[%s4933_s8 + $0x528] sm:$0xf] }
  0x3a   : > { %v4061_v21 = vor.u32 %v4626_v12, %v4060_v10 }
  0x3b   : > { %2664 = vmatpush.bf16.msrb.mxu2 %v4684_v7  ;;  %v3710_v7 = vld [vmem:[%s4933_s8 + $0x294] sm:$0xf0] }
  0x3c   : > { %2140 = vmatmul.bf16.gmra.mxu0 %v3445_v50  ;;  %2200 = vmatmul.bf16.gmra.mxu3 %v3973_v51  ;;  %v4610_v50 = vld [vmem:[%s4933_s8 + $0x4d4] sm:$0xf]  ;;  %v4018_v51 = vld [vmem:[%s4933_s8 + $0x4fc] sm:$0xf0] }
  0x3d   : > { %4732 = vmatpush.bf16.msrb.mxu3 %v4904_v13  ;;  %2229 = vmatmul.bf16.gmra.mxu1 %v3449_v52  ;;  %v4489_v13 = vld [vmem:[%s4933_s8 + $0x10c] sm:$0xf]  ;;  %v3666_v52 = vld [vmem:[%s4933_s8 + $0x23c] sm:$0xf0]  ;;  %v4021_v56 = vor.u32 %v4610_v50, %v4018_v51  ;;  %v3797_v50 = vor.u32 %v4560_v41, %v3796_v40  ;;  %v3886_v40 = vld [vmem:[%s4933_s8 + $0x3f4] sm:$0xf0] }
  0x3e   : > { %2318 = vmatmul.bf16.gmra.mxu2 %v3453_v53  ;;  %v3672_v53 = vld [vmem:[%s4933_s8 + $0x218] sm:$0xf]  ;;  %v3669_v57 = vor.u32 %v4522_v49, %v3666_v52  ;;  %v3892_v41 = vld [vmem:[%s4933_s8 + $0x3d0] sm:$0xf] }
  0x3f   : > { %v3673_v58 = vor.u32 %v4528_v54, %v3672_v53 }
  0x41   : > { %4733 = vmatpush.bf16.msrb.mxu3 %v4920_v16  ;;  %v3540_v16 = vld [vmem:[%s4933_s8 + $0x110] sm:$0xf] }
  0x45   : > { %4734 = vmatpush.bf16.msrb.mxu3 %v4940_v19 }
  0x49   : > { %4735 = vmatpush.bf16.msrb.mxu3 %v4953_v22  ;;  %v3537_v22 = vor.u32 %v4489_v13, %v3534_v15 }
  0x4c   : > { %2145 = vmatmul.bf16.gmra.mxu0 %v3489_v1  ;;  %2205 = vmatmul.bf16.gmra.mxu3 %v4017_v3  ;;  %v4538_v1 = vld [vmem:[%s4933_s8 + $0x290] sm:$0xf0]  ;;  %v4533_v3 = vld [vmem:[%s4933_s8 + $0x26c] sm:$0xf] }
  0x4d   : > { %4736 = vmatpush.bf16.msra.mxu3 %v4846_v2  ;;  %2234 = vmatmul.bf16.gmra.mxu1 %v3493_v4  ;;  %v4494_v2 = vld [vmem:[%s4933_s8 + $0x130] sm:$0xf0]  ;;  %v4621_v4 = vld [vmem:[%s4933_s8 + $0x52c] sm:$0xf]  ;;  %v3709_v10 = vor.u32 %v4538_v1, %v3708_v0  ;;  %v3713_v13 = vor.u32 %v4533_v3, %v3710_v7  ;;  %v3840_v7 = vld [vmem:[%s4933_s8 + $0x370] sm:$0xf] }
  0x4e   : > { %2323 = vmatmul.bf16.gmra.mxu2 %v3497_v6  ;;  %v3533_v19 = vor.u32 %v4494_v2, %v3532_v9  ;;  %v4062_v6 = vld [vmem:[%s4933_s8 + $0x554] sm:$0xf0]  ;;  %v3716_v9 = vld [vmem:[%s4933_s8 + $0x270] sm:$0xf]  ;;  %v4539_v2 = vld [vmem:[%s4933_s8 + $0x298] sm:$0xf0] }
  0x4f   : > { %v4065_v12 = vor.u32 %v4621_v4, %v4062_v6  ;;  %v3717_v15 = vor.u32 %v4539_v2, %v3716_v9  ;;  %v4656_v6 = vld [vmem:[%s5849_s1 + $0xc0] sm:$0xff]  ;;  %v4571_v9 = vld [vmem:[%s4933_s8 + $0x398] sm:$0xf0]  ;;  %v4566_v2 = vld [vmem:[%s4933_s8 + $0x374] sm:$0xf] }
  0x51   : > { %4737 = vmatpush.bf16.msra.mxu3 %v4861_v5  ;;  %v3541_v5 = vor.u32 %v4495_v18, %v3540_v16  ;;  %v4661_v16 = vld [vmem:[%s5849_s1 + $0xe8] sm:$0xff] }
  0x52   : > { %v4681_v18 = vld [vmem:[%s5849_s1 + $0x188] sm:$0xff] }
  0x55   : > { %4738 = vmatpush.bf16.msra.mxu3 %v4876_v8  ;;  %v4668_v8 = vld [vmem:[%s5849_s1 + $0x120] sm:$0xff] }
  0x56   : > { %2486 = vmatpush.bf16.msrb.mxu0 %v4668_v8  ;;  %v4673_v8 = vld [vmem:[%s5849_s1 + $0x148] sm:$0xff] }
  0x59   : > { %4739 = vmatpush.bf16.msra.mxu3 %v4892_v11  ;;  %v4676_v11 = vld [vmem:[%s5849_s1 + $0x160] sm:$0xff] }
  0x5a   : > { %2575 = vmatpush.bf16.msrb.mxu1 %v4676_v11  ;;  %v4544_v11 = vld [vmem:[%s4933_s8 + $0x2c4] sm:$0xf] }
  0x5c   : > { %2150 = vmatmul.bf16.gmra.mxu0 %v3533_v19  ;;  %2210 = vmatmul.bf16.gmra.mxu3 %v4061_v21  ;;  %v4660_v19 = vld [vmem:[%s5849_s1 + $0xe0] sm:$0xff]  ;;  %v4665_v21 = vld [vmem:[%s5849_s1 + $0x108] sm:$0xff] }
  0x5d   : > { %4740 = vmatpush.bf16.msra.mxu3 %v4909_v14  ;;  %2239 = vmatmul.bf16.gmra.mxu1 %v3537_v22  ;;  %v3576_v14 = vld [vmem:[%s4933_s8 + $0x160] sm:$0xf] }
  0x5e   : > { %2328 = vmatmul.bf16.gmra.mxu2 %v3541_v5  ;;  %v3577_v31 = vor.u32 %v4505_v24, %v3576_v14  ;;  %2576 = vmatpush.bf16.msrb.mxu1 %v4675_v34  ;;  %v3752_v22 = vld [vmem:[%s4933_s8 + $0x2c0] sm:$0xf]  ;;  %v4549_v5 = vld [vmem:[%s4933_s8 + $0x2e8] sm:$0xf0]  ;;  %v3936_v14 = vld [vmem:[%s4933_s8 + $0x428] sm:$0xf] }
  0x5f   : > { %v4594_v24 = vld [vmem:[%s4933_s8 + $0x450] sm:$0xf0] }
  0x60   : > { %v3937_v29 = vor.u32 %v4594_v24, %v3936_v14 }
  0x61   : > { %4741 = vmatpush.bf16.msra.mxu3 %v4925_v17  ;;  %v3581_v17 = vor.u32 %v4500_v25, %v3578_v28  ;;  %v3754_v25 = vld [vmem:[%s4933_s8 + $0x2ec] sm:$0xf0]  ;;  %v3753_v28 = vor.u32 %v4549_v5, %v3752_v22 }
  0x62   : > { %2577 = vmatpush.bf16.msrb.mxu1 %v4674_v62 }
  0x65   : > { %4742 = vmatpush.bf16.msra.mxu3 %v4945_v20  ;;  %v4683_v20 = vld [vmem:[%s5849_s1 + $0x198] sm:$0xff] }
  0x66   : > { %2665 = vmatpush.bf16.msrb.mxu2 %v4683_v20  ;;  %2578 = vmatpush.bf16.msrb.mxu1 %v4673_v8  ;;  %v4659_v20 = vld [vmem:[%s5849_s1 + $0xd8] sm:$0xff] }
  0x69   : > { %4743 = vmatpush.bf16.msra.mxu3 %v4958_v23  ;;  %v4667_v23 = vld [vmem:[%s5849_s1 + $0x118] sm:$0xff] }
  0x6a   : > { %2487 = vmatpush.bf16.msrb.mxu0 %v4667_v23  ;;  %2666 = vmatpush.bf16.msrb.mxu2 %v4682_v59  ;;  %v4657_v59 = vld [vmem:[%s5849_s1 + $0xc8] sm:$0xff] }
  0x6c   : > { %2155 = vmatmul.bf16.gmra.mxu0 %v3577_v31  ;;  %2284 = vmatmul.bf16.vlgmr.msrb.gmra.mxu3 %v3933_v32  ;;  %v3757_v31 = vor.u32 %v4544_v11, %v3754_v25  ;;  %v3761_v32 = vor.u32 %v4550_v27, %v3760_v26  ;;  %v4695_v26 = vld [vmem:[%s5849_s1 + $0x1f8] sm:$0xff] }
  0x6d   : > { %2244 = vmatmul.bf16.gmra.mxu1 %v3581_v17  ;;  %2394 = vmatpush.bf16.msrb.mxu3 %v4663_v60  ;;  %v4664_v60 = vld [vmem:[%s5849_s1 + $0x100] sm:$0xff] }
  0x6e   : > { %2333 = vmatmul.bf16.gmra.mxu2 %v3585_v33  ;;  %2488 = vmatpush.bf16.msrb.mxu0 %v4666_v61  ;;  %v4672_v61 = vld [vmem:[%s5849_s1 + $0x140] sm:$0xff] }
  0x6f   : > { %2667 = vmatpush.bf16.msrb.mxu2 %v4681_v18  ;;  %2579 = vmatpush.bf16.msrb.mxu1 %v4672_v61  ;;  %v4457_v61 = vld [vmem:[%s4933_s8 + $0xc] sm:$0xf] }
  0x71   : > { %2395 = vmatpush.bf16.msrb.mxu3 %v4662_v63 }
  0x72   : > { %2489 = vmatpush.bf16.msrb.mxu0 %v4665_v21  ;;  %v3841_v21 = vor.u32 %v4571_v9, %v3840_v7  ;;  %v4458_v7 = vld [vmem:[%s4933_s8 + $0x14] sm:$0xf]  ;;  %v3418_v9 = vld [vmem:[%s4933_s8 + $0x3c] sm:$0xf0] }
  0x75   : > { %2396 = vmatpush.bf16.msrb.mxu3 %v4661_v16  ;;  %v4572_v16 = vld [vmem:[%s4933_s8 + $0x3a0] sm:$0xf0] }
  0x76   : > { %2490 = vmatpush.bf16.msrb.mxu0 %v4664_v60 }
  0x79   : > { %2397 = vmatpush.bf16.msrb.mxu3 %v4660_v19 }
  0x7c   : > { %2160 = vmatmul.bf16.gmra.mxu0 %v3621_v43  ;;  %2289 = vmatmul.bf16.gmra.mxu3 %v3977_v44  ;;  %v3980_v43 = vld [vmem:[%s4933_s8 + $0x480] sm:$0xf]  ;;  %v4605_v44 = vld [vmem:[%s4933_s8 + $0x4a8] sm:$0xf0] }
  0x7d   : > { %2249 = vmatmul.bf16.gmra.mxu1 %v3625_v45  ;;  %2398 = vmatpush.bf16.msrb.mxu3 %v4659_v20  ;;  %v3798_v45 = vld [vmem:[%s4933_s8 + $0x344] sm:$0xf0]  ;;  %v3981_v51 = vor.u32 %v4605_v44, %v3980_v43  ;;  %v4711_v20 = vld [vmem:[%s5849_s1 + $0x278] sm:$0xff] }
  0x7e   : > { %2338 = vmatmul.bf16.gmra.mxu2 %v3629_v46  ;;  %v3804_v46 = vld [vmem:[%s4933_s8 + $0x320] sm:$0xf]  ;;  %v3801_v54 = vor.u32 %v4555_v42, %v3798_v45  ;;  %v4583_v42 = vld [vmem:[%s4933_s8 + $0x3f8] sm:$0xf0]  ;;  %2928 = vmatpush.bf16.msra.mxu1 %v4711_v20  ;;  %v3454_v20 = vld [vmem:[%s4933_s8 + $0x8c] sm:$0xf0] }
  0x81   : > { %2399 = vmatpush.bf16.msrb.mxu3 %v4658_v39  ;;  %v4627_v39 = vld [vmem:[%s4933_s8 + $0x558] sm:$0xf0] }
  0x85   : > { %2400 = vmatpush.bf16.msrb.mxu3 %v4657_v59 }
  0x89   : > { %2401 = vmatpush.bf16.msrb.mxu3 %v4656_v6  ;;  %v4464_v6 = vld [vmem:[%s4933_s8 + $0x40] sm:$0xf0] }
  0x8c   : > { %2165 = vmatmul.bf16.gmra.mxu0 %v3665_v55  ;;  %2294 = vmatmul.bf16.gmra.mxu3 %v4021_v56  ;;  %v3805_v55 = vor.u32 %v4561_v47, %v3804_v46 }
  0x8d   : > { %2254 = vmatmul.bf16.gmra.mxu1 %v3669_v57 }
  0x8e   : > { %2343 = vmatmul.bf16.gmra.mxu2 %v3673_v58  ;;  %v4680_v58 = vld [vmem:[%s5849_s1 + $0x180] sm:$0xff] }
  0x8f   : > { %2668 = vmatpush.bf16.msrb.mxu2 %v4680_v58 }
  0x9c   : > { %2170 = vmatmul.bf16.gmra.mxu0 %v3709_v10  ;;  %2299 = vmatmul.bf16.gmra.mxu3 %v4065_v12  ;;  %v4024_v10 = vld [vmem:[%s4933_s8 + $0x4d8] sm:$0xf]  ;;  %v4616_v12 = vld [vmem:[%s4933_s8 + $0x500] sm:$0xf0] }
  0x9d   : > { %2259 = vmatmul.bf16.gmra.mxu1 %v3713_v13  ;;  %v3842_v13 = vld [vmem:[%s4933_s8 + $0x39c] sm:$0xf0]  ;;  %v4025_v22 = vor.u32 %v4616_v12, %v4024_v10 }
  0x9e   : > { %2348 = vmatmul.bf16.gmra.mxu2 %v3717_v15  ;;  %v3848_v15 = vld [vmem:[%s4933_s8 + $0x378] sm:$0xf]  ;;  %v3845_v11 = vor.u32 %v4566_v2, %v3842_v13 }
  0x9f   : > { %v3849_v14 = vor.u32 %v4572_v16, %v3848_v15 }
  0xa9   : > { %v2136_v30 = vpop.f32.mrf.mxu0 }
  0xaa   : > { %v2225_v17 = vpop.f32.mrf.mxu1 }
  0xab   : > { %v2226_v33 = vadd.f32 %v2225_v17, %v2136_v30  ;;  %v4719_v17 = vld [vmem:[%s5849_s1 + $0x2b8] sm:$0xff] }
  0xac   : > { %2175 = vmatmul.bf16.gmra.mxu0 %v3753_v28  ;;  %2373 = vmatmul.bf16.vlgmr.msra.gmra.mxu3 %v3937_v29 }
  0xad   : > { %2264 = vmatmul.bf16.gmra.mxu1 %v3757_v31  ;;  %2750 = vmatpush.bf16.msra.mxu3 %v4695_v26 }
  0xae   : > { %2353 = vmatmul.bf16.gmra.mxu2 %v3761_v32 }
  0xaf   : > { %v5130_v23 = vpop.f32.mrf.mxu3  ;;  %3017 = vmatpush.bf16.msra.mxu2 %v4719_v17  ;;  %v4702_v17 = vld [vmem:[%s5849_s1 + $0x230] sm:$0xff] }
  0xb1   : > { %v2314_v34 = vpop.f32.mrf.mxu2  ;;  %v2138_v36 = vpop.f32.mrf.mxu0 }
  0xb2   : > { %v5132_v35 = vadd.f32 %v2314_v34, %v2226_v33  ;;  %v2227_v37 = vpop.f32.mrf.mxu1  ;;  %v4703_v33 = vld [vmem:[%s5849_s1 + $0x238] sm:$0xff]  ;;  %v3884_v34 = vld [vmem:[%s4933_s8 + $0x3c8] sm:$0xf] }
  0xb3   : > { %v2228_v38 = vadd.f32 %v2227_v37, %v2138_v36  ;;  %v4582_v36 = vld [vmem:[%s4933_s8 + $0x3f0] sm:$0xf0]  ;;  %v4577_v37 = vld [vmem:[%s4933_s8 + $0x3cc] sm:$0xf]  ;;  %2839 = vmatpush.bf16.msra.mxu0 %v4703_v33  ;;  %v4468_v33 = vld [vmem:[%s4933_s8 + $0x64] sm:$0xf] }
  0xb4   : > { %v3885_v45 = vor.u32 %v4582_v36, %v3884_v34  ;;  %v3460_v34 = vld [vmem:[%s4933_s8 + $0x68] sm:$0xf]  ;;  %v4474_v36 = vld [vmem:[%s4933_s8 + $0x90] sm:$0xf0] }
  0xb7   : > { %v5145_v48 = vpop.f32.mrf.mxu3  ;;  %2840 = vmatpush.bf16.msra.mxu0 %v4702_v17 }
  0xb9   : > { %v2316_v49 = vpop.f32.mrf.mxu2  ;;  %v2141_v53 = vpop.f32.mrf.mxu0 }
  0xba   : > { %v5147_v52 = vadd.f32 %v2316_v49, %v2228_v38  ;;  %v2230_v56 = vpop.f32.mrf.mxu1  ;;  %v4068_v38 = vld [vmem:[%s4933_s8 + $0x530] sm:$0xf] }
  0xbb   : > { %v2231_v57 = vadd.f32 %v2230_v56, %v2141_v53  ;;  %v4069_v46 = vor.u32 %v4627_v39, %v4068_v38  ;;  %v4475_v38 = vld [vmem:[%s4933_s8 + $0x98] sm:$0xf0]  ;;  %v4469_v39 = vld [vmem:[%s4933_s8 + $0x6c] sm:$0xf] }
  0xbc   : > { %2180 = vmatmul.bf16.gmra.mxu0 %v3797_v50  ;;  %2378 = vmatmul.bf16.gmra.mxu3 %v3981_v51  ;;  %v3889_v50 = vor.u32 %v4577_v37, %v3886_v40  ;;  %v3893_v51 = vor.u32 %v4583_v42, %v3892_v41  ;;  %v3468_v37 = vld [vmem:[%s4933_s8 + $0x70] sm:$0xf]  ;;  %v3462_v40 = vld [vmem:[%s4933_s8 + $0x94] sm:$0xf0] }
  0xbd   : > { %2269 = vmatmul.bf16.gmra.mxu1 %v3801_v54 }
  0xbe   : > { %2358 = vmatmul.bf16.gmra.mxu2 %v3805_v55 }
  0xbf   : > { %v5161_v62 = vpop.f32.mrf.mxu3 }
  0xc1   : > { %v2319_v63 = vpop.f32.mrf.mxu2  ;;  %v2143_v1 = vpop.f32.mrf.mxu0 }
  0xc2   : > { %v5163_v0 = vadd.f32 %v2319_v63, %v2231_v57  ;;  %v2232_v3 = vpop.f32.mrf.mxu1  ;;  %v3410_v63 = vld [vmem:[%s4933_s8 + $0x34] sm:$0xf0] }
  0xc3   : > { %v2233_v4 = vadd.f32 %v2232_v3, %v2143_v1  ;;  %v3416_v1 = vld [vmem:[%s4933_s8 + $0x10] sm:$0xf]  ;;  %v4463_v3 = vld [vmem:[%s4933_s8 + $0x38] sm:$0xf0]  ;;  %v3413_v12 = vor.u32 %v4457_v61, %v3410_v63 }
  0xc4   : > { %v3417_v13 = vor.u32 %v4463_v3, %v3416_v1  ;;  %v4479_v3 = vld [vmem:[%s4933_s8 + $0xbc] sm:$0xf] }
  0xc7   : > { %v5176_v18 = vpop.f32.mrf.mxu3 }
  0xc9   : > { %v2321_v19 = vpop.f32.mrf.mxu2  ;;  %v2146_v8 = vpop.f32.mrf.mxu0 }
  0xca   : > { %v5178_v5 = vadd.f32 %v2321_v19, %v2233_v4  ;;  %v2235_v24 = vpop.f32.mrf.mxu1  ;;  %v3424_v4 = vld [vmem:[%s4933_s8 + $0x18] sm:$0xf] }
  0xcb   : > { %v2236_v25 = vadd.f32 %v2235_v24, %v2146_v8  ;;  %v3425_v19 = vor.u32 %v4464_v6, %v3424_v4  ;;  %v3498_v4 = vld [vmem:[%s4933_s8 + $0xe4] sm:$0xf0]  ;;  %v3504_v6 = vld [vmem:[%s4933_s8 + $0xc0] sm:$0xf] }
  0xcc   : > { %2185 = vmatmul.bf16.gmra.mxu0 %v3841_v21  ;;  %2383 = vmatmul.bf16.gmra.mxu3 %v4025_v22  ;;  %v3421_v21 = vor.u32 %v4458_v7, %v3418_v9  ;;  %v4485_v7 = vld [vmem:[%s4933_s8 + $0xe8] sm:$0xf0]  ;;  %v3512_v9 = vld [vmem:[%s4933_s8 + $0xc8] sm:$0xf] }
  0xcd   : > { %2274 = vmatmul.bf16.gmra.mxu1 %v3845_v11  ;;  %v4694_v11 = vld [vmem:[%s5849_s1 + $0x1f0] sm:$0xff] }
  0xce   : > { %2363 = vmatmul.bf16.gmra.mxu2 %v3849_v14  ;;  %2751 = vmatpush.bf16.msra.mxu3 %v4694_v11 }
  0xcf   : > { %v5183_v27 = vpop.f32.mrf.mxu3 }
  0xd1   : > { %v2324_v28 = vpop.f32.mrf.mxu2  ;;  %v2148_v30 = vpop.f32.mrf.mxu0 }
  0xd2   : > { %v5185_v29 = vadd.f32 %v2324_v28, %v2236_v25  ;;  %v2237_v31 = vpop.f32.mrf.mxu1 }
  0xd3   : > { %v2238_v32 = vadd.f32 %v2237_v31, %v2148_v30 }
  0xd7   : > { %v5204_v43 = vpop.f32.mrf.mxu3 }
  0xd9   : > { %v2326_v44 = vpop.f32.mrf.mxu2  ;;  %v2151_v49 = vpop.f32.mrf.mxu0 }
  0xda   : > { %v5206_v47 = vadd.f32 %v2326_v44, %v2238_v32  ;;  %v2240_v53 = vpop.f32.mrf.mxu1  ;;  %v4718_v32 = vld [vmem:[%s5849_s1 + $0x2b0] sm:$0xff] }
  0xdb   : > { %v2241_v54 = vadd.f32 %v2240_v53, %v2151_v49  ;;  %3018 = vmatpush.bf16.msra.mxu2 %v4718_v32  ;;  %v3465_v53 = vor.u32 %v4469_v39, %v3462_v40  ;;  %v3542_v39 = vld [vmem:[%s4933_s8 + $0x13c] sm:$0xf0]  ;;  %v3548_v40 = vld [vmem:[%s4933_s8 + $0x118] sm:$0xf] }
  0xdc   : > { %2190 = vmatmul.bf16.gmra.mxu0 %v3885_v45  ;;  %2388 = vmatmul.bf16.gmra.mxu3 %v4069_v46  ;;  %v3457_v45 = vor.u32 %v4468_v33, %v3454_v20  ;;  %v3461_v46 = vor.u32 %v4474_v36, %v3460_v34  ;;  %v4717_v36 = vld [vmem:[%s5849_s1 + $0x2a8] sm:$0xff] }
  0xdd   : > { %2279 = vmatmul.bf16.gmra.mxu1 %v3889_v50 }
  0xde   : > { %2368 = vmatmul.bf16.gmra.mxu2 %v3893_v51  ;;  %v3469_v51 = vor.u32 %v4475_v38, %v3468_v37  ;;  %v4701_v37 = vld [vmem:[%s5849_s1 + $0x228] sm:$0xff]  ;;  %v4490_v38 = vld [vmem:[%s4933_s8 + $0x114] sm:$0xf] }
  0xdf   : > { %v5208_v55 = vpop.f32.mrf.mxu3  ;;  %3019 = vmatpush.bf16.msra.mxu2 %v4717_v36  ;;  %2841 = vmatpush.bf16.msra.mxu0 %v4701_v37 }
  0xe1   : > { %v2329_v56 = vpop.f32.mrf.mxu2  ;;  %v2153_v58 = vpop.f32.mrf.mxu0 }
  0xe2   : > { %v5210_v57 = vadd.f32 %v2329_v56, %v2241_v54  ;;  %v2242_v59 = vpop.f32.mrf.mxu1 }
  0xe3   : > { %v2243_v60 = vadd.f32 %v2242_v59, %v2153_v58 }
  0xe7   : > { %v5220_v2 = vpop.f32.mrf.mxu3 }
  0xe9   : > { %v2331_v10 = vpop.f32.mrf.mxu2  ;;  %v2156_v16 = vpop.f32.mrf.mxu0 }
  0xea   : > { %v5222_v15 = vadd.f32 %v2331_v10, %v2243_v60  ;;  %v2245_v22 = vpop.f32.mrf.mxu1  ;;  %v4486_v10 = vld [vmem:[%s4933_s8 + $0xf0] sm:$0xf0] }
  0xeb   : > { %v2246_v8 = vadd.f32 %v2245_v22, %v2156_v16  ;;  %v3505_v22 = vor.u32 %v4485_v7, %v3504_v6 }
  0xec   : > { %2402 = vmatmul.bf16.vlgmr.msrb.gmra.mxu3 %v3413_v12  ;;  %2491 = vmatmul.bf16.vlgmr.msrb.gmra.mxu0 %v3417_v13  ;;  %v4480_v12 = vld [vmem:[%s4933_s8 + $0xc4] sm:$0xf]  ;;  %v3506_v13 = vld [vmem:[%s4933_s8 + $0xec] sm:$0xf0] }
  0xed   : > { %2580 = vmatmul.bf16.vlgmr.msrb.gmra.mxu1 %v3421_v21  ;;  %v3501_v21 = vor.u32 %v4479_v3, %v3498_v4 }
  0xee   : > { %2669 = vmatmul.bf16.vlgmr.msrb.gmra.mxu2 %v3425_v19 }
  0xef   : > { %v2285_v14 = vpop.f32.mrf.mxu3 }
  0xf0   : > { %v5228_v24 = vadd.f32 %v2285_v14, %v5130_v23  ;;  %v4710_v23 = vld [vmem:[%s5849_s1 + $0x270] sm:$0xff]  ;;  %v3513_v14 = vor.u32 %v4486_v10, %v3512_v9 }
  0xf1   : > { %v2334_v25 = vpop.f32.mrf.mxu2  ;;  %v2158_v28 = vpop.f32.mrf.mxu0  ;;  %2929 = vmatpush.bf16.msra.mxu1 %v4710_v23 }
  0xf2   : > { %v5230_v26 = vadd.f32 %v2334_v25, %v2246_v8  ;;  %v2247_v30 = vpop.f32.mrf.mxu1  ;;  %v3509_v25 = vor.u32 %v4480_v12, %v3506_v13 }
  0xf3   : > { %v2248_v31 = vadd.f32 %v2247_v30, %v2158_v28 }
  0xf7   : > { %v2287_v41 = vpop.f32.mrf.mxu3 }
  0xf8   : > { %v5250_v42 = vadd.f32 %v2287_v41, %v5145_v48  ;;  %v4496_v41 = vld [vmem:[%s4933_s8 + $0x140] sm:$0xf0] }
  0xf9   : > { %v2336_v44 = vpop.f32.mrf.mxu2  ;;  %v2161_v50 = vpop.f32.mrf.mxu0 }
  0xfa   : > { %v5252_v49 = vadd.f32 %v2336_v44, %v2248_v31  ;;  %v2250_v54 = vpop.f32.mrf.mxu1  ;;  %v3556_v44 = vld [vmem:[%s4933_s8 + $0x120] sm:$0xf] }
  0xfb   : > { %v2251_v56 = vadd.f32 %v2250_v54, %v2161_v50  ;;  %v3550_v50 = vld [vmem:[%s4933_s8 + $0x144] sm:$0xf0] }
  0xfc   : > { %2407 = vmatmul.bf16.gmra.mxu3 %v3457_v45  ;;  %2496 = vmatmul.bf16.gmra.mxu0 %v3461_v46  ;;  %v4497_v45 = vld [vmem:[%s4933_s8 + $0x148] sm:$0xf0]  ;;  %v4491_v46 = vld [vmem:[%s4933_s8 + $0x11c] sm:$0xf] }
  0xfd   : > { %2585 = vmatmul.bf16.gmra.mxu1 %v3465_v53 }
  0xfe   : > { %2674 = vmatmul.bf16.gmra.mxu2 %v3469_v51 }
  0xff   : > { %v2290_v48 = vpop.f32.mrf.mxu3 }
 0x100   : > { %v5255_v58 = vadd.f32 %v2290_v48, %v5161_v62  ;;  %v3549_v48 = vor.u32 %v4496_v41, %v3548_v40 }
 0x101   : > { %v2339_v59 = vpop.f32.mrf.mxu2  ;;  %v2163_v61 = vpop.f32.mrf.mxu0 }
 0x102   : > { %v5257_v60 = vadd.f32 %v2339_v59, %v2251_v56  ;;  %v2252_v63 = vpop.f32.mrf.mxu1  ;;  %v3545_v56 = vor.u32 %v4490_v38, %v3542_v39 }
 0x103   : > { %v2253_v1 = vadd.f32 %v2252_v63, %v2163_v61  ;;  %v3557_v63 = vor.u32 %v4497_v45, %v3556_v44 }
 0x107   : > { %v2292_v16 = vpop.f32.mrf.mxu3 }
 0x108   : > { %v5268_v19 = vadd.f32 %v2292_v16, %v5176_v18  ;;  %v4693_v18 = vld [vmem:[%s5849_s1 + $0x1e8] sm:$0xff] }
 0x109   : > { %v2341_v62 = vpop.f32.mrf.mxu2  ;;  %v2166_v11 = vpop.f32.mrf.mxu0  ;;  %2752 = vmatpush.bf16.msra.mxu3 %v4693_v18  ;;  %v4501_v16 = vld [vmem:[%s4933_s8 + $0x16c] sm:$0xf] }
 0x10a   : > { %v5270_v8 = vadd.f32 %v2341_v62, %v2253_v1  ;;  %v2255_v28 = vpop.f32.mrf.mxu1  ;;  %v3553_v1 = vor.u32 %v4491_v46, %v3550_v50  ;;  %v3586_v62 = vld [vmem:[%s4933_s8 + $0x194] sm:$0xf0]  ;;  %v4716_v50 = vld [vmem:[%s5849_s1 + $0x2a0] sm:$0xff] }
 0x10b   : > { %v2256_v30 = vadd.f32 %v2255_v28, %v2166_v11  ;;  %v3600_v11 = vld [vmem:[%s4933_s8 + $0x178] sm:$0xf]  ;;  %v3594_v28 = vld [vmem:[%s4933_s8 + $0x19c] sm:$0xf0]  ;;  %3020 = vmatpush.bf16.msra.mxu2 %v4716_v50 }
 0x10c   : > { %2412 = vmatmul.bf16.gmra.mxu3 %v3501_v21  ;;  %2501 = vmatmul.bf16.gmra.mxu0 %v3505_v22  ;;  %v3592_v21 = vld [vmem:[%s4933_s8 + $0x170] sm:$0xf]  ;;  %v4507_v22 = vld [vmem:[%s4933_s8 + $0x198] sm:$0xf0] }
 0x10d   : > { %2590 = vmatmul.bf16.gmra.mxu1 %v3509_v25  ;;  %v4502_v25 = vld [vmem:[%s4933_s8 + $0x174] sm:$0xf] }
 0x10e   : > { %2679 = vmatmul.bf16.gmra.mxu2 %v3513_v14  ;;  %v4508_v14 = vld [vmem:[%s4933_s8 + $0x1a0] sm:$0xf0]  ;;  %v3597_v36 = vor.u32 %v4502_v25, %v3594_v28 }
 0x10f   : > { %v2295_v31 = vpop.f32.mrf.mxu3 }
 0x110   : > { %v5276_v32 = vadd.f32 %v2295_v31, %v5183_v27  ;;  %v4709_v27 = vld [vmem:[%s5849_s1 + $0x268] sm:$0xff]  ;;  %v3589_v31 = vor.u32 %v4501_v16, %v3586_v62 }
 0x111   : > { %v2344_v17 = vpop.f32.mrf.mxu2  ;;  %v2168_v33 = vpop.f32.mrf.mxu0  ;;  %2930 = vmatpush.bf16.msra.mxu1 %v4709_v27 }
 0x112   : > { %v5278_v23 = vadd.f32 %v2344_v17, %v2256_v30  ;;  %v2257_v20 = vpop.f32.mrf.mxu1  ;;  %v3593_v17 = vor.u32 %v4507_v22, %v3592_v21 }
 0x113   : > { %v2258_v34 = vadd.f32 %v2257_v20, %v2168_v33 }
 0x117   : > { %v2297_v51 = vpop.f32.mrf.mxu3 }
 0x118   : > { %v5298_v53 = vadd.f32 %v2297_v51, %v5204_v43  ;;  %v4700_v51 = vld [vmem:[%s5849_s1 + $0x220] sm:$0xff] }
 0x119   : > { %v2346_v54 = vpop.f32.mrf.mxu2  ;;  %v2171_v61 = vpop.f32.mrf.mxu0  ;;  %2842 = vmatpush.bf16.msra.mxu0 %v4700_v51 }
 0x11a   : > { %v5300_v59 = vadd.f32 %v2346_v54, %v2258_v34  ;;  %v2260_v3 = vpop.f32.mrf.mxu1  ;;  %v3601_v34 = vor.u32 %v4508_v14, %v3600_v11  ;;  %v4512_v54 = vld [vmem:[%s4933_s8 + $0x1c4] sm:$0xf] }
 0x11b   : > { %v2261_v4 = vadd.f32 %v2260_v3, %v2171_v61  ;;  %v4518_v61 = vld [vmem:[%s4933_s8 + $0x1f0] sm:$0xf0]  ;;  %v4513_v3 = vld [vmem:[%s4933_s8 + $0x1cc] sm:$0xf] }
 0x11c   : > { %2417 = vmatmul.bf16.gmra.mxu3 %v3545_v56  ;;  %2506 = vmatmul.bf16.gmra.mxu0 %v3549_v48  ;;  %v3630_v56 = vld [vmem:[%s4933_s8 + $0x1ec] sm:$0xf0]  ;;  %v3636_v48 = vld [vmem:[%s4933_s8 + $0x1c8] sm:$0xf] }
 0x11d   : > { %2595 = vmatmul.bf16.gmra.mxu1 %v3553_v1  ;;  %v4519_v1 = vld [vmem:[%s4933_s8 + $0x1f8] sm:$0xf0] }
 0x11e   : > { %2684 = vmatmul.bf16.gmra.mxu2 %v3557_v63  ;;  %v3644_v63 = vld [vmem:[%s4933_s8 + $0x1d0] sm:$0xf] }
 0x11f   : > { %v2300_v43 = vpop.f32.mrf.mxu3  ;;  %v3645_v21 = vor.u32 %v4519_v1, %v3644_v63 }
 0x120   : > { %v5303_v6 = vadd.f32 %v2300_v43, %v5208_v55 }
 0x121   : > { %v2349_v7 = vpop.f32.mrf.mxu2  ;;  %v2173_v10 = vpop.f32.mrf.mxu0 }
 0x122   : > { %v5305_v9 = vadd.f32 %v2349_v7, %v2261_v4  ;;  %v2262_v12 = vpop.f32.mrf.mxu1  ;;  %v3638_v4 = vld [vmem:[%s4933_s8 + $0x1f4] sm:$0xf0] }
 0x123   : > { %v2263_v13 = vadd.f32 %v2262_v12, %v2173_v10  ;;  %v3633_v12 = vor.u32 %v4512_v54, %v3630_v56  ;;  %v3641_v22 = vor.u32 %v4513_v3, %v3638_v4 }
 0x127   : > { %v2302_v30 = vpop.f32.mrf.mxu3 }
 0x128   : > { %v5316_v18 = vadd.f32 %v2302_v30, %v5220_v2  ;;  %v4692_v2 = vld [vmem:[%s5849_s1 + $0x1e0] sm:$0xff] }
 0x129   : > { %v2351_v55 = vpop.f32.mrf.mxu2  ;;  %v2176_v20 = vpop.f32.mrf.mxu0  ;;  %2753 = vmatpush.bf16.msra.mxu3 %v4692_v2  ;;  %v4530_v2 = vld [vmem:[%s4933_s8 + $0x250] sm:$0xf0] }
 0x12a   : > { %v5318_v33 = vadd.f32 %v2351_v55, %v2263_v13  ;;  %v2265_v37 = vpop.f32.mrf.mxu1  ;;  %v3637_v13 = vor.u32 %v4518_v61, %v3636_v48 }
 0x12b   : > { %v2266_v27 = vadd.f32 %v2265_v37, %v2176_v20  ;;  %v4523_v20 = vld [vmem:[%s4933_s8 + $0x21c] sm:$0xf]  ;;  %v4529_v37 = vld [vmem:[%s4933_s8 + $0x248] sm:$0xf0] }
 0x12c   : > { %2422 = vmatmul.bf16.gmra.mxu3 %v3589_v31  ;;  %2511 = vmatmul.bf16.gmra.mxu0 %v3593_v17 }
 0x12d   : > { %2600 = vmatmul.bf16.gmra.mxu1 %v3597_v36  ;;  %v3680_v36 = vld [vmem:[%s4933_s8 + $0x220] sm:$0xf] }
 0x12e   : > { %2689 = vmatmul.bf16.gmra.mxu2 %v3601_v34  ;;  %v3674_v34 = vld [vmem:[%s4933_s8 + $0x244] sm:$0xf0]  ;;  %v3681_v50 = vor.u32 %v4529_v37, %v3680_v36 }
 0x12f   : > { %v2374_v38 = vpop.f32.mrf.mxu3 }
 0x130   : > { %v5324_v40 = vadd.f32 %v2374_v38, %v5228_v24  ;;  %v4708_v24 = vld [vmem:[%s5849_s1 + $0x260] sm:$0xff] }
 0x131   : > { %v2354_v39 = vpop.f32.mrf.mxu2  ;;  %v2178_v44 = vpop.f32.mrf.mxu0  ;;  %2931 = vmatpush.bf16.msra.mxu1 %v4708_v24  ;;  %v4524_v38 = vld [vmem:[%s4933_s8 + $0x224] sm:$0xf] }
 0x132   : > { %v5326_v41 = vadd.f32 %v2354_v39, %v2266_v27  ;;  %v2267_v45 = vpop.f32.mrf.mxu1  ;;  %v3688_v27 = vld [vmem:[%s4933_s8 + $0x228] sm:$0xf]  ;;  %v3682_v39 = vld [vmem:[%s4933_s8 + $0x24c] sm:$0xf0] }
 0x133   : > { %v2268_v46 = vadd.f32 %v2267_v45, %v2178_v44  ;;  %v3689_v54 = vor.u32 %v4530_v2, %v3688_v27  ;;  %v3685_v56 = vor.u32 %v4524_v38, %v3682_v39 }
 0x137   : > { %v2376_v43 = vpop.f32.mrf.mxu3 }
 0x138   : > { %v5346_v10 = vadd.f32 %v2376_v43, %v5250_v42 }
 0x139   : > { %v2356_v7 = vpop.f32.mrf.mxu2  ;;  %v2181_v62 = vpop.f32.mrf.mxu0 }
 0x13a   : > { %v5348_v16 = vadd.f32 %v2356_v7, %v2268_v46  ;;  %v2270_v11 = vpop.f32.mrf.mxu1 }
 0x13b   : > { %v2271_v14 = vadd.f32 %v2270_v11, %v2181_v62  ;;  %v3718_v62 = vld [vmem:[%s4933_s8 + $0x29c] sm:$0xf0] }
 0x13c   : > { %2427 = vmatmul.bf16.gmra.mxu3 %v3633_v12  ;;  %2516 = vmatmul.bf16.gmra.mxu0 %v3637_v13  ;;  %v4534_v13 = vld [vmem:[%s4933_s8 + $0x274] sm:$0xf]  ;;  %v3732_v11 = vld [vmem:[%s4933_s8 + $0x280] sm:$0xf] }
 0x13d   : > { %2605 = vmatmul.bf16.gmra.mxu1 %v3641_v22  ;;  %v4540_v22 = vld [vmem:[%s4933_s8 + $0x2a0] sm:$0xf0]  ;;  %v3721_v36 = vor.u32 %v4534_v13, %v3718_v62  ;;  %v3770_v13 = vld [vmem:[%s4933_s8 + $0x2fc] sm:$0xf0] }
 0x13e   : > { %2694 = vmatmul.bf16.gmra.mxu2 %v3645_v21  ;;  %v3724_v21 = vld [vmem:[%s4933_s8 + $0x278] sm:$0xf] }
 0x13f   : > { %v2379_v42 = vpop.f32.mrf.mxu3  ;;  %v3725_v37 = vor.u32 %v4540_v22, %v3724_v21 }
 0x140   : > { %v5351_v28 = vadd.f32 %v2379_v42, %v5255_v58  ;;  %v3677_v58 = vor.u32 %v4523_v20, %v3674_v34  ;;  %v4535_v42 = vld [vmem:[%s4933_s8 + $0x27c] sm:$0xf] }
 0x141   : > { %v2359_v25 = vpop.f32.mrf.mxu2  ;;  %v2183_v55 = vpop.f32.mrf.mxu0 }
 0x142   : > { %v5353_v30 = vadd.f32 %v2359_v25, %v2271_v14  ;;  %v2272_v31 = vpop.f32.mrf.mxu1  ;;  %v4541_v14 = vld [vmem:[%s4933_s8 + $0x2a8] sm:$0xf0]  ;;  %v3726_v25 = vld [vmem:[%s4933_s8 + $0x2a4] sm:$0xf0] }
 0x143   : > { %v2273_v17 = vadd.f32 %v2272_v31, %v2183_v55  ;;  %v4715_v55 = vld [vmem:[%s5849_s1 + $0x298] sm:$0xff]  ;;  %v3733_v38 = vor.u32 %v4541_v14, %v3732_v11  ;;  %v3729_v39 = vor.u32 %v4535_v42, %v3726_v25 }
 0x144   : > { %v4707_v31 = vld [vmem:[%s5849_s1 + $0x258] sm:$0xff]  ;;  %3021 = vmatpush.bf16.msra.mxu2 %v4715_v55 }
 0x145   : > { %2932 = vmatpush.bf16.msra.mxu1 %v4707_v31 }
 0x147   : > { %v2381_v44 = vpop.f32.mrf.mxu3 }
 0x148   : > { %v5364_v46 = vadd.f32 %v2381_v44, %v5268_v19  ;;  %v4691_v19 = vld [vmem:[%s5849_s1 + $0x1d8] sm:$0xff] }
 0x149   : > { %v2361_v45 = vpop.f32.mrf.mxu2  ;;  %v2186_v24 = vpop.f32.mrf.mxu0  ;;  %2754 = vmatpush.bf16.msra.mxu3 %v4691_v19  ;;  %v3762_v19 = vld [vmem:[%s4933_s8 + $0x2f4] sm:$0xf0] }
 0x14a   : > { %v5366_v51 = vadd.f32 %v2361_v45, %v2273_v17  ;;  %v2275_v48 = vpop.f32.mrf.mxu1 }
 0x14b   : > { %v2276_v61 = vadd.f32 %v2275_v48, %v2186_v24 }
 0x14c   : > { %2432 = vmatmul.bf16.gmra.mxu3 %v3677_v58  ;;  %2521 = vmatmul.bf16.gmra.mxu0 %v3681_v50 }
 0x14d   : > { %2610 = vmatmul.bf16.gmra.mxu1 %v3685_v56 }
 0x14e   : > { %2699 = vmatmul.bf16.gmra.mxu2 %v3689_v54 }
 0x14f   : > { %v2384_v63 = vpop.f32.mrf.mxu3 }
 0x150   : > { %v5372_v3 = vadd.f32 %v2384_v63, %v5276_v32  ;;  %v4699_v32 = vld [vmem:[%s5849_s1 + $0x218] sm:$0xff]  ;;  %v3768_v63 = vld [vmem:[%s4933_s8 + $0x2d0] sm:$0xf] }
 0x151   : > { %v2364_v1 = vpop.f32.mrf.mxu2  ;;  %v2188_v43 = vpop.f32.mrf.mxu0  ;;  %2843 = vmatpush.bf16.msra.mxu0 %v4699_v32 }
 0x152   : > { %v5374_v4 = vadd.f32 %v2364_v1, %v2276_v61  ;;  %v2277_v7 = vpop.f32.mrf.mxu1  ;;  %v4545_v61 = vld [vmem:[%s4933_s8 + $0x2cc] sm:$0xf]  ;;  %v4551_v1 = vld [vmem:[%s4933_s8 + $0x2f8] sm:$0xf0] }
 0x153   : > { %v2278_v12 = vadd.f32 %v2277_v7, %v2188_v43  ;;  %v3776_v43 = vld [vmem:[%s4933_s8 + $0x2d8] sm:$0xf]  ;;  %v4552_v7 = vld [vmem:[%s4933_s8 + $0x300] sm:$0xf0]  ;;  %v3769_v11 = vor.u32 %v4551_v1, %v3768_v63  ;;  %v4706_v63 = vld [vmem:[%s5849_s1 + $0x250] sm:$0xff] }
 0x154   : > { %v3777_v25 = vor.u32 %v4552_v7, %v3776_v43  ;;  %2933 = vmatpush.bf16.msra.mxu1 %v4706_v63 }
 0x157   : > { %v2386_v17 = vpop.f32.mrf.mxu3 }
 0x158   : > { %v5394_v34 = vadd.f32 %v2386_v17, %v5298_v53 }
 0x159   : > { %v2366_v20 = vpop.f32.mrf.mxu2  ;;  %v2191_v2 = vpop.f32.mrf.mxu0 }
 0x15a   : > { %v5396_v27 = vadd.f32 %v2366_v20, %v2278_v12  ;;  %v2280_v44 = vpop.f32.mrf.mxu1  ;;  %v4546_v12 = vld [vmem:[%s4933_s8 + $0x2d4] sm:$0xf] }
 0x15b   : > { %v2281_v45 = vadd.f32 %v2280_v44, %v2191_v2  ;;  %v3773_v55 = vor.u32 %v4546_v12, %v3770_v13 }
 0x15c   : > { %2437 = vmatmul.bf16.gmra.mxu3 %v3721_v36  ;;  %2526 = vmatmul.bf16.gmra.mxu0 %v3725_v37 }
 0x15d   : > { %2615 = vmatmul.bf16.gmra.mxu1 %v3729_v39  ;;  %v3806_v39 = vld [vmem:[%s4933_s8 + $0x34c] sm:$0xf0] }
 0x15e   : > { %2704 = vmatmul.bf16.gmra.mxu2 %v3733_v38  ;;  %v4556_v38 = vld [vmem:[%s4933_s8 + $0x324] sm:$0xf] }
 0x15f   : > { %v2389_v53 = vpop.f32.mrf.mxu3  ;;  %v3809_v12 = vor.u32 %v4556_v38, %v3806_v39  ;;  %v3856_v38 = vld [vmem:[%s4933_s8 + $0x380] sm:$0xf]  ;;  %v4573_v39 = vld [vmem:[%s4933_s8 + $0x3a8] sm:$0xf0] }
 0x160   : > { %v5399_v50 = vadd.f32 %v2389_v53, %v5303_v6  ;;  %v3765_v6 = vor.u32 %v4545_v61, %v3762_v19  ;;  %v4562_v53 = vld [vmem:[%s4933_s8 + $0x350] sm:$0xf0] }
 0x161   : > { %v2369_v58 = vpop.f32.mrf.mxu2  ;;  %v2193_v54 = vpop.f32.mrf.mxu0  ;;  %v4698_v19 = vld [vmem:[%s5849_s1 + $0x210] sm:$0xff] }
 0x162   : > { %v5401_v24 = vadd.f32 %v2369_v58, %v2281_v45  ;;  %v2282_v56 = vpop.f32.mrf.mxu1  ;;  %v3812_v45 = vld [vmem:[%s4933_s8 + $0x328] sm:$0xf]  ;;  %v3820_v58 = vld [vmem:[%s4933_s8 + $0x330] sm:$0xf]  ;;  %2844 = vmatpush.bf16.msra.mxu0 %v4698_v19  ;;  %v3857_v19 = vor.u32 %v4573_v39, %v3856_v38 }
 0x163   : > { %v2283_v48 = vadd.f32 %v2282_v56, %v2193_v54  ;;  %v4563_v54 = vld [vmem:[%s4933_s8 + $0x358] sm:$0xf0]  ;;  %v4557_v56 = vld [vmem:[%s4933_s8 + $0x32c] sm:$0xf]  ;;  %v3813_v13 = vor.u32 %v4562_v53, %v3812_v45  ;;  %v4574_v53 = vld [vmem:[%s4933_s8 + $0x3b0] sm:$0xf0] }
 0x164   : > { %v3902_v38 = vld [vmem:[%s4933_s8 + $0x404] sm:$0xf0] }
 0x167   : > { %v2391_v62 = vpop.f32.mrf.mxu3 }
 0x168   : > { %v5412_v22 = vadd.f32 %v2391_v62, %v5316_v18  ;;  %v4690_v18 = vld [vmem:[%s5849_s1 + $0x1d0] sm:$0xff] }
 0x169   : > { %v2371_v21 = vpop.f32.mrf.mxu2  ;;  %v2492_v42 = vpop.f32.mrf.mxu0  ;;  %2755 = vmatpush.bf16.msra.mxu3 %v4690_v18 }
 0x16a   : > { %v5414_v14 = vadd.f32 %v2371_v21, %v2283_v48  ;;  %v2581_v32 = vpop.f32.mrf.mxu1  ;;  %v3814_v48 = vld [vmem:[%s4933_s8 + $0x354] sm:$0xf0]  ;;  %v3821_v21 = vor.u32 %v4563_v54, %v3820_v58  ;;  %v4568_v58 = vld [vmem:[%s4933_s8 + $0x384] sm:$0xf]  ;;  %v3858_v54 = vld [vmem:[%s4933_s8 + $0x3ac] sm:$0xf0] }
 0x16c   : > { %2442 = vmatmul.bf16.gmra.mxu3 %v3765_v6  ;;  %2531 = vmatmul.bf16.gmra.mxu0 %v3769_v11  ;;  %v3817_v6 = vor.u32 %v4557_v56, %v3814_v48 }
 0x16d   : > { %2620 = vmatmul.bf16.gmra.mxu1 %v3773_v55 }
 0x16e   : > { %2709 = vmatmul.bf16.gmra.mxu2 %v3777_v25 }
 0x16f   : > { %v2403_v31 = vpop.f32.mrf.mxu3 }
 0x170   : > { %v2404_v17 = vadd.f32 %v2403_v31, %v5132_v35  ;;  %v4714_v35 = vld [vmem:[%s5849_s1 + $0x290] sm:$0xff] }
 0x171   : > { %v2670_v20 = vpop.f32.mrf.mxu2  ;;  %v2494_v36 = vpop.f32.mrf.mxu0  ;;  %3022 = vmatpush.bf16.msra.mxu2 %v4714_v35 }
 0x172   : > { %v2493_v37 = vadd.f32 %v2492_v42, %v2404_v17  ;;  %v2583_v2 = vpop.f32.mrf.mxu1 }
 0x174   : > { %v2582_v44 = vadd.f32 %v2581_v32, %v2493_v37  ;;  %v4567_v37 = vld [vmem:[%s4933_s8 + $0x37c] sm:$0xf] }
 0x176   : > { %v5428_v61 = vadd.f32 %v2670_v20, %v2582_v44  ;;  %v3864_v44 = vld [vmem:[%s4933_s8 + $0x388] sm:$0xf] }
 0x177   : > { %v2405_v1 = vpop.f32.mrf.mxu3 }
 0x178   : > { %v2406_v43 = vadd.f32 %v2405_v1, %v5147_v52  ;;  %v3865_v1 = vor.u32 %v4574_v53, %v3864_v44  ;;  %v4697_v44 = vld [vmem:[%s5849_s1 + $0x208] sm:$0xff] }
 0x179   : > { %v2672_v7 = vpop.f32.mrf.mxu2  ;;  %v2497_v62 = vpop.f32.mrf.mxu0  ;;  %v4705_v53 = vld [vmem:[%s5849_s1 + $0x248] sm:$0xff]  ;;  %2845 = vmatpush.bf16.msra.mxu0 %v4697_v44 }
 0x17a   : > { %v2495_v11 = vadd.f32 %v2494_v36, %v2406_v43  ;;  %v2586_v42 = vpop.f32.mrf.mxu1  ;;  %v3861_v43 = vor.u32 %v4568_v58, %v3858_v54  ;;  %2934 = vmatpush.bf16.msra.mxu1 %v4705_v53 }
 0x17c   : > { %v2584_v25 = vadd.f32 %v2583_v2, %v2495_v11  ;;  %2447 = vmatmul.bf16.gmra.mxu3 %v3809_v12  ;;  %2536 = vmatmul.bf16.gmra.mxu0 %v3813_v13  ;;  %v3850_v2 = vld [vmem:[%s4933_s8 + $0x3a4] sm:$0xf0] }
 0x17d   : > { %2625 = vmatmul.bf16.gmra.mxu1 %v3817_v6 }
 0x17e   : > { %2714 = vmatmul.bf16.gmra.mxu2 %v3821_v21  ;;  %v5440_v52 = vadd.f32 %v2672_v7, %v2584_v25 }
 0x17f   : > { %v2408_v55 = vpop.f32.mrf.mxu3 }
 0x180   : > { %v2409_v32 = vadd.f32 %v2408_v55, %v5163_v0  ;;  %v3853_v0 = vor.u32 %v4567_v37, %v3850_v2  ;;  %v4585_v37 = vld [vmem:[%s4933_s8 + $0x408] sm:$0xf0]  ;;  %v4579_v2 = vld [vmem:[%s4933_s8 + $0x3dc] sm:$0xf] }
 0x181   : > { %v2675_v18 = vpop.f32.mrf.mxu2  ;;  %v2499_v31 = vpop.f32.mrf.mxu0 }
 0x182   : > { %v2498_v17 = vadd.f32 %v2497_v62, %v2409_v32  ;;  %v2588_v20 = vpop.f32.mrf.mxu1  ;;  %v4689_v62 = vld [vmem:[%s5849_s1 + $0x1c8] sm:$0xff]  ;;  %v4578_v32 = vld [vmem:[%s4933_s8 + $0x3d4] sm:$0xf] }
 0x183   : > { %2756 = vmatpush.bf16.msra.mxu3 %v4689_v62 }
 0x184   : > { %v2587_v36 = vadd.f32 %v2586_v42, %v2498_v17  ;;  %v3900_v17 = vld [vmem:[%s4933_s8 + $0x3d8] sm:$0xf] }
 0x186   : > { %v5448_v45 = vadd.f32 %v2675_v18, %v2587_v36  ;;  %v3894_v18 = vld [vmem:[%s4933_s8 + $0x3fc] sm:$0xf0] }
 0x187   : > { %v2410_v56 = vpop.f32.mrf.mxu3  ;;  %v3908_v36 = vld [vmem:[%s4933_s8 + $0x3e0] sm:$0xf] }
 0x188   : > { %v2411_v48 = vadd.f32 %v2410_v56, %v5178_v5 }
 0x189   : > { %v2677_v35 = vpop.f32.mrf.mxu2  ;;  %v2502_v63 = vpop.f32.mrf.mxu0 }
 0x18a   : > { %v2500_v7 = vadd.f32 %v2499_v31, %v2411_v48  ;;  %v2591_v12 = vpop.f32.mrf.mxu1  ;;  %v3897_v48 = vor.u32 %v4578_v32, %v3894_v18  ;;  %v3944_v32 = vld [vmem:[%s4933_s8 + $0x430] sm:$0xf]  ;;  %v4595_v18 = vld [vmem:[%s4933_s8 + $0x458] sm:$0xf0] }
 0x18b   : > { %v3945_v44 = vor.u32 %v4595_v18, %v3944_v32  ;;  %v3990_v32 = vld [vmem:[%s4933_s8 + $0x4b4] sm:$0xf0] }
 0x18c   : > { %v2589_v13 = vadd.f32 %v2588_v20, %v2500_v7  ;;  %2452 = vmatmul.bf16.gmra.mxu3 %v3853_v0  ;;  %2541 = vmatmul.bf16.gmra.mxu0 %v3857_v19  ;;  %v4584_v20 = vld [vmem:[%s4933_s8 + $0x400] sm:$0xf0]  ;;  %v3909_v19 = vor.u32 %v4585_v37, %v3908_v36  ;;  %v4590_v36 = vld [vmem:[%s4933_s8 + $0x434] sm:$0xf]  ;;  %v3946_v37 = vld [vmem:[%s4933_s8 + $0x45c] sm:$0xf0] }
 0x18d   : > { %2630 = vmatmul.bf16.gmra.mxu1 %v3861_v43 }
 0x18e   : > { %2719 = vmatmul.bf16.gmra.mxu2 %v3865_v1  ;;  %v5454_v5 = vadd.f32 %v2677_v35, %v2589_v13  ;;  %v3901_v35 = vor.u32 %v4584_v20, %v3900_v17  ;;  %v4596_v20 = vld [vmem:[%s4933_s8 + $0x460] sm:$0xf0] }
 0x18f   : > { %v2413_v21 = vpop.f32.mrf.mxu3 }
 0x190   : > { %v2414_v6 = vadd.f32 %v2413_v21, %v5185_v29  ;;  %v4713_v29 = vld [vmem:[%s5849_s1 + $0x288] sm:$0xff] }
 0x191   : > { %v2680_v11 = vpop.f32.mrf.mxu2  ;;  %v2504_v42 = vpop.f32.mrf.mxu0  ;;  %3023 = vmatpush.bf16.msra.mxu2 %v4713_v29 }
 0x192   : > { %v2503_v25 = vadd.f32 %v2502_v63, %v2414_v6  ;;  %v2593_v55 = vpop.f32.mrf.mxu1  ;;  %v3905_v63 = vor.u32 %v4579_v2, %v3902_v38 }
 0x194   : > { %v2592_v31 = vadd.f32 %v2591_v12, %v2503_v25  ;;  %v4589_v25 = vld [vmem:[%s4933_s8 + $0x42c] sm:$0xf] }
 0x196   : > { %v5468_v39 = vadd.f32 %v2680_v11, %v2592_v31  ;;  %v3952_v31 = vld [vmem:[%s4933_s8 + $0x438] sm:$0xf] }
 0x197   : > { %v2415_v58 = vpop.f32.mrf.mxu3 }
 0x198   : > { %v2416_v54 = vadd.f32 %v2415_v58, %v5206_v47  ;;  %v3953_v58 = vor.u32 %v4596_v20, %v3952_v31  ;;  %v4696_v31 = vld [vmem:[%s5849_s1 + $0x200] sm:$0xff] }
 0x199   : > { %v2682_v56 = vpop.f32.mrf.mxu2  ;;  %v2507_v0 = vpop.f32.mrf.mxu0  ;;  %v4704_v20 = vld [vmem:[%s5849_s1 + $0x240] sm:$0xff]  ;;  %2846 = vmatpush.bf16.msra.mxu0 %v4696_v31 }
 0x19a   : > { %v2505_v1 = vadd.f32 %v2504_v42, %v2416_v54  ;;  %v2596_v43 = vpop.f32.mrf.mxu1  ;;  %v3949_v54 = vor.u32 %v4590_v36, %v3946_v37  ;;  %2935 = vmatpush.bf16.msra.mxu1 %v4704_v20 }
 0x19c   : > { %v2594_v7 = vadd.f32 %v2593_v55, %v2505_v1  ;;  %2457 = vmatmul.bf16.gmra.mxu3 %v3897_v48  ;;  %2546 = vmatmul.bf16.gmra.mxu0 %v3901_v35  ;;  %v3938_v55 = vld [vmem:[%s4933_s8 + $0x454] sm:$0xf0] }
 0x19d   : > { %2635 = vmatmul.bf16.gmra.mxu1 %v3905_v63 }
 0x19e   : > { %2724 = vmatmul.bf16.gmra.mxu2 %v3909_v19  ;;  %v5480_v47 = vadd.f32 %v2682_v56, %v2594_v7 }
 0x19f   : > { %v2418_v12 = vpop.f32.mrf.mxu3 }
 0x1a0   : > { %v2419_v13 = vadd.f32 %v2418_v12, %v5210_v57  ;;  %v3941_v57 = vor.u32 %v4589_v25, %v3938_v55  ;;  %v4607_v25 = vld [vmem:[%s4933_s8 + $0x4b8] sm:$0xf0]  ;;  %v4601_v55 = vld [vmem:[%s4933_s8 + $0x48c] sm:$0xf] }
 0x1a1   : > { %v2685_v62 = vpop.f32.mrf.mxu2  ;;  %v2509_v21 = vpop.f32.mrf.mxu0 }
 0x1a2   : > { %v2508_v6 = vadd.f32 %v2507_v0, %v2419_v13  ;;  %v2598_v11 = vpop.f32.mrf.mxu1  ;;  %v4688_v0 = vld [vmem:[%s5849_s1 + $0x1c0] sm:$0xff] }
 0x1a3   : > { %2757 = vmatpush.bf16.msra.mxu3 %v4688_v0  ;;  %v4600_v13 = vld [vmem:[%s4933_s8 + $0x484] sm:$0xf] }
 0x1a4   : > { %v2597_v42 = vadd.f32 %v2596_v43, %v2508_v6  ;;  %v3988_v6 = vld [vmem:[%s4933_s8 + $0x488] sm:$0xf] }
 0x1a6   : > { %v5488_v17 = vadd.f32 %v2685_v62, %v2597_v42  ;;  %v3982_v62 = vld [vmem:[%s4933_s8 + $0x4ac] sm:$0xf0] }
 0x1a7   : > { %v2420_v2 = vpop.f32.mrf.mxu3  ;;  %v3996_v42 = vld [vmem:[%s4933_s8 + $0x490] sm:$0xf] }
 0x1a8   : > { %v2421_v38 = vadd.f32 %v2420_v2, %v5222_v15 }
 0x1a9   : > { %v2687_v29 = vpop.f32.mrf.mxu2  ;;  %v2512_v53 = vpop.f32.mrf.mxu0 }
 0x1aa   : > { %v2510_v56 = vadd.f32 %v2509_v21, %v2421_v38  ;;  %v2601_v48 = vpop.f32.mrf.mxu1  ;;  %v3985_v38 = vor.u32 %v4600_v13, %v3982_v62  ;;  %v4032_v13 = vld [vmem:[%s4933_s8 + $0x4e0] sm:$0xf]  ;;  %v4617_v62 = vld [vmem:[%s4933_s8 + $0x508] sm:$0xf0] }
 0x1ab   : > { %v4033_v31 = vor.u32 %v4617_v62, %v4032_v13  ;;  %v4078_v13 = vld [vmem:[%s4933_s8 + $0x564] sm:$0xf0] }
 0x1ac   : > { %v2599_v35 = vadd.f32 %v2598_v11, %v2510_v56  ;;  %2462 = vmatmul.bf16.gmra.mxu3 %v3941_v57  ;;  %2551 = vmatmul.bf16.gmra.mxu0 %v3945_v44  ;;  %v4606_v11 = vld [vmem:[%s4933_s8 + $0x4b0] sm:$0xf0]  ;;  %v3997_v44 = vor.u32 %v4607_v25, %v3996_v42  ;;  %v4612_v42 = vld [vmem:[%s4933_s8 + $0x4e4] sm:$0xf]  ;;  %v4034_v25 = vld [vmem:[%s4933_s8 + $0x50c] sm:$0xf0] }
 0x1ad   : > { %2640 = vmatmul.bf16.gmra.mxu1 %v3949_v54 }
 0x1ae   : > { %2729 = vmatmul.bf16.gmra.mxu2 %v3953_v58  ;;  %v5494_v15 = vadd.f32 %v2687_v29, %v2599_v35  ;;  %v3989_v29 = vor.u32 %v4606_v11, %v3988_v6  ;;  %v4618_v11 = vld [vmem:[%s4933_s8 + $0x510] sm:$0xf0] }
 0x1af   : > { %v2423_v19 = vpop.f32.mrf.mxu3 }
 0x1b0   : > { %v2424_v63 = vadd.f32 %v2423_v19, %v5230_v26  ;;  %v4712_v26 = vld [vmem:[%s5849_s1 + $0x280] sm:$0xff] }
 0x1b1   : > { %v2690_v1 = vpop.f32.mrf.mxu2  ;;  %v2514_v43 = vpop.f32.mrf.mxu0  ;;  %3024 = vmatpush.bf16.msra.mxu2 %v4712_v26 }
 0x1b2   : > { %v2513_v7 = vadd.f32 %v2512_v53, %v2424_v63  ;;  %v2603_v12 = vpop.f32.mrf.mxu1  ;;  %v3993_v53 = vor.u32 %v4601_v55, %v3990_v32 }
 0x1b4   : > { %v2602_v21 = vadd.f32 %v2601_v48, %v2513_v7  ;;  %v4611_v7 = vld [vmem:[%s4933_s8 + $0x4dc] sm:$0xf] }
 0x1b6   : > { %v5508_v18 = vadd.f32 %v2690_v1, %v2602_v21  ;;  %v4040_v21 = vld [vmem:[%s4933_s8 + $0x4e8] sm:$0xf] }
 0x1b7   : > { %v2425_v36 = vpop.f32.mrf.mxu3 }
 0x1b8   : > { %v2426_v37 = vadd.f32 %v2425_v36, %v5252_v49  ;;  %v4041_v36 = vor.u32 %v4618_v11, %v4040_v21 }
 0x1b9   : > { %v2692_v2 = vpop.f32.mrf.mxu2  ;;  %v2517_v57 = vpop.f32.mrf.mxu0 }
 0x1ba   : > { %v2515_v58 = vadd.f32 %v2514_v43, %v2426_v37  ;;  %v2606_v54 = vpop.f32.mrf.mxu1  ;;  %v4037_v37 = vor.u32 %v4612_v42, %v4034_v25 }
 0x1bc   : > { %v2604_v56 = vadd.f32 %v2603_v12, %v2515_v58  ;;  %2467 = vmatmul.bf16.gmra.mxu3 %v3985_v38  ;;  %2556 = vmatmul.bf16.gmra.mxu0 %v3989_v29  ;;  %v4026_v12 = vld [vmem:[%s4933_s8 + $0x504] sm:$0xf0] }
 0x1bd   : > { %2645 = vmatmul.bf16.gmra.mxu1 %v3993_v53 }
 0x1be   : > { %2734 = vmatmul.bf16.gmra.mxu2 %v3997_v44  ;;  %v5520_v49 = vadd.f32 %v2692_v2, %v2604_v56 }
 0x1bf   : > { %v2428_v48 = vpop.f32.mrf.mxu3 }
 0x1c0   : > { %v2429_v35 = vadd.f32 %v2428_v48, %v5257_v60  ;;  %v4029_v60 = vor.u32 %v4611_v7, %v4026_v12  ;;  %v4629_v7 = vld [vmem:[%s4933_s8 + $0x568] sm:$0xf0]  ;;  %v4623_v12 = vld [vmem:[%s4933_s8 + $0x53c] sm:$0xf] }
 0x1c1   : > { %v2695_v0 = vpop.f32.mrf.mxu2  ;;  %v2519_v19 = vpop.f32.mrf.mxu0 }
 0x1c2   : > { %v2518_v63 = vadd.f32 %v2517_v57, %v2429_v35  ;;  %v2608_v1 = vpop.f32.mrf.mxu1  ;;  %v4622_v35 = vld [vmem:[%s4933_s8 + $0x534] sm:$0xf] }
 0x1c4   : > { %v2607_v43 = vadd.f32 %v2606_v54, %v2518_v63  ;;  %v4628_v63 = vld [vmem:[%s4933_s8 + $0x560] sm:$0xf0] }
 0x1c6   : > { %v5528_v6 = vadd.f32 %v2695_v0, %v2607_v43  ;;  %v4070_v0 = vld [vmem:[%s4933_s8 + $0x55c] sm:$0xf0] }
 0x1c7   : > { %v2430_v55 = vpop.f32.mrf.mxu3 }
 0x1c8   : > { %v2431_v32 = vadd.f32 %v2430_v55, %v5270_v8 }
 0x1c9   : > { %v2697_v26 = vpop.f32.mrf.mxu2  ;;  %v2522_v20 = vpop.f32.mrf.mxu0 }
 0x1ca   : > { %v2520_v2 = vadd.f32 %v2519_v19, %v2431_v32  ;;  %v2611_v38 = vpop.f32.mrf.mxu1  ;;  %v4076_v19 = vld [vmem:[%s4933_s8 + $0x538] sm:$0xf]  ;;  %v4081_v32 = vor.u32 %v4623_v12, %v4078_v13 }
 0x1cb   : > { %v4077_v42 = vor.u32 %v4628_v63, %v4076_v19  ;;  %v3434_v19 = vld [vmem:[%s4933_s8 + $0x4c] sm:$0xf0] }
 0x1cc   : > { %v2609_v29 = vadd.f32 %v2608_v1, %v2520_v2  ;;  %2472 = vmatmul.bf16.gmra.mxu3 %v4029_v60  ;;  %2561 = vmatmul.bf16.gmra.mxu0 %v4033_v31  ;;  %v4084_v1 = vld [vmem:[%s4933_s8 + $0x540] sm:$0xf] }
 0x1cd   : > { %2650 = vmatmul.bf16.gmra.mxu1 %v4037_v37  ;;  %v4085_v55 = vor.u32 %v4629_v7, %v4084_v1 }
 0x1ce   : > { %2739 = vmatmul.bf16.gmra.mxu2 %v4041_v36  ;;  %v5534_v8 = vadd.f32 %v2697_v26, %v2609_v29 }
 0x1cf   : > { %v2433_v57 = vpop.f32.mrf.mxu3 }
 0x1d0   : > { %v2434_v44 = vadd.f32 %v2433_v57, %v5278_v23  ;;  %v4073_v23 = vor.u32 %v4622_v35, %v4070_v0  ;;  %v4466_v35 = vld [vmem:[%s4933_s8 + $0x50] sm:$0xf0]  ;;  %v4460_v0 = vld [vmem:[%s4933_s8 + $0x24] sm:$0xf] }
 0x1d1   : > { %v2700_v53 = vpop.f32.mrf.mxu2  ;;  %v2524_v58 = vpop.f32.mrf.mxu0 }
 0x1d2   : > { %v2523_v54 = vadd.f32 %v2522_v20, %v2434_v44  ;;  %v2613_v56 = vpop.f32.mrf.mxu1  ;;  %v4459_v44 = vld [vmem:[%s4933_s8 + $0x1c] sm:$0xf] }
 0x1d4   : > { %v2612_v48 = vadd.f32 %v2611_v38, %v2523_v54  ;;  %v4465_v54 = vld [vmem:[%s4933_s8 + $0x48] sm:$0xf0] }
 0x1d6   : > { %v5542_v43 = vadd.f32 %v2700_v53, %v2612_v48  ;;  %v3426_v53 = vld [vmem:[%s4933_s8 + $0x44] sm:$0xf0] }
 0x1d7   : > { %v2435_v62 = vpop.f32.mrf.mxu3 }
 0x1d8   : > { %v2436_v21 = vadd.f32 %v2435_v62, %v5300_v59 }
 0x1d9   : > { %v2702_v11 = vpop.f32.mrf.mxu2  ;;  %v2527_v25 = vpop.f32.mrf.mxu0 }
 0x1da   : > { %v2525_v26 = vadd.f32 %v2524_v58, %v2436_v21  ;;  %v2616_v60 = vpop.f32.mrf.mxu1  ;;  %v3432_v58 = vld [vmem:[%s4933_s8 + $0x20] sm:$0xf]  ;;  %v3437_v21 = vor.u32 %v4460_v0, %v3434_v19 }
 0x1db   : > { %v3433_v12 = vor.u32 %v4465_v54, %v3432_v58  ;;  %v3478_v58 = vld [vmem:[%s4933_s8 + $0xa4] sm:$0xf0] }
 0x1dc   : > { %v2614_v31 = vadd.f32 %v2613_v56, %v2525_v26  ;;  %2477 = vmatmul.bf16.gmra.mxu3 %v4073_v23  ;;  %2566 = vmatmul.bf16.gmra.mxu0 %v4077_v42  ;;  %v3440_v56 = vld [vmem:[%s4933_s8 + $0x28] sm:$0xf] }
 0x1dd   : > { %2655 = vmatmul.bf16.gmra.mxu1 %v4081_v32  ;;  %v3441_v62 = vor.u32 %v4466_v35, %v3440_v56 }
 0x1de   : > { %2744 = vmatmul.bf16.gmra.mxu2 %v4085_v55  ;;  %v5548_v59 = vadd.f32 %v2702_v11, %v2614_v31 }
 0x1df   : > { %v2438_v20 = vpop.f32.mrf.mxu3 }
 0x1e0   : > { %v2439_v36 = vadd.f32 %v2438_v20, %v5305_v9  ;;  %v3429_v9 = vor.u32 %v4459_v44, %v3426_v53  ;;  %v4477_v44 = vld [vmem:[%s4933_s8 + $0xa8] sm:$0xf0]  ;;  %v4471_v53 = vld [vmem:[%s4933_s8 + $0x7c] sm:$0xf] }
 0x1e1   : > { %v2705_v37 = vpop.f32.mrf.mxu2  ;;  %v2529_v2 = vpop.f32.mrf.mxu0 }
 0x1e2   : > { %v2528_v38 = vadd.f32 %v2527_v25, %v2439_v36  ;;  %v2618_v29 = vpop.f32.mrf.mxu1  ;;  %v4470_v36 = vld [vmem:[%s4933_s8 + $0x74] sm:$0xf] }
 0x1e4   : > { %v2617_v57 = vadd.f32 %v2616_v60, %v2528_v38  ;;  %v4476_v38 = vld [vmem:[%s4933_s8 + $0xa0] sm:$0xf0] }
 0x1e6   : > { %v5556_v48 = vadd.f32 %v2705_v37, %v2617_v57  ;;  %v3470_v37 = vld [vmem:[%s4933_s8 + $0x9c] sm:$0xf0] }
 0x1e7   : > { %v2440_v63 = vpop.f32.mrf.mxu3 }
 0x1e8   : > { %v2441_v1 = vadd.f32 %v2440_v63, %v5318_v33 }
 0x1e9   : > { %v2707_v7 = vpop.f32.mrf.mxu2  ;;  %v2532_v13 = vpop.f32.mrf.mxu0 }
 0x1ea   : > { %v2530_v11 = vadd.f32 %v2529_v2, %v2441_v1  ;;  %v2621_v23 = vpop.f32.mrf.mxu1  ;;  %v3476_v2 = vld [vmem:[%s4933_s8 + $0x78] sm:$0xf]  ;;  %v3481_v1 = vor.u32 %v4471_v53, %v3478_v58 }
 0x1eb   : > { %v3477_v0 = vor.u32 %v4476_v38, %v3476_v2  ;;  %v3522_v2 = vld [vmem:[%s4933_s8 + $0xfc] sm:$0xf0] }
 0x1ec   : > { %v2619_v42 = vadd.f32 %v2618_v29, %v2530_v11  ;;  %2758 = vmatmul.bf16.vlgmr.msra.gmra.mxu3 %v3429_v9  ;;  %2847 = vmatmul.bf16.vlgmr.msra.gmra.mxu0 %v3433_v12  ;;  %v3484_v29 = vld [vmem:[%s4933_s8 + $0x80] sm:$0xf] }
 0x1ed   : > { %2936 = vmatmul.bf16.vlgmr.msra.gmra.mxu1 %v3437_v21  ;;  %v3485_v63 = vor.u32 %v4477_v44, %v3484_v29 }
 0x1ee   : > { %3025 = vmatmul.bf16.vlgmr.msra.gmra.mxu2 %v3441_v62  ;;  %v5562_v33 = vadd.f32 %v2707_v7, %v2619_v42 }
 0x1ef   : > { %v2443_v25 = vpop.f32.mrf.mxu3 }
 0x1f0   : > { %v2444_v55 = vadd.f32 %v2443_v25, %v5326_v41  ;;  %v3473_v41 = vor.u32 %v4470_v36, %v3470_v37  ;;  %v4488_v36 = vld [vmem:[%s4933_s8 + $0x100] sm:$0xf0]  ;;  %v4482_v37 = vld [vmem:[%s4933_s8 + $0xd4] sm:$0xf] }
 0x1f1   : > { %v2710_v32 = vpop.f32.mrf.mxu2  ;;  %v2534_v26 = vpop.f32.mrf.mxu0 }
 0x1f2   : > { %v2533_v60 = vadd.f32 %v2532_v13, %v2444_v55  ;;  %v2623_v31 = vpop.f32.mrf.mxu1  ;;  %v4481_v55 = vld [vmem:[%s4933_s8 + $0xcc] sm:$0xf] }
 0x1f4   : > { %v2622_v20 = vadd.f32 %v2621_v23, %v2533_v60  ;;  %v4487_v60 = vld [vmem:[%s4933_s8 + $0xf8] sm:$0xf0] }
 0x1f6   : > { %v5570_v57 = vadd.f32 %v2710_v32, %v2622_v20  ;;  %v3514_v32 = vld [vmem:[%s4933_s8 + $0xf4] sm:$0xf0] }
 0x1f7   : > { %v2445_v54 = vpop.f32.mrf.mxu3 }
 0x1f8   : > { %v2446_v56 = vadd.f32 %v2445_v54, %v5348_v16 }
 0x1f9   : > { %v2712_v35 = vpop.f32.mrf.mxu2  ;;  %v2537_v19 = vpop.f32.mrf.mxu0 }
 0x1fa   : > { %v2535_v7 = vadd.f32 %v2534_v26, %v2446_v56  ;;  %v2626_v9 = vpop.f32.mrf.mxu1  ;;  %v3520_v26 = vld [vmem:[%s4933_s8 + $0xd0] sm:$0xf]  ;;  %v3525_v56 = vor.u32 %v4482_v37, %v3522_v2 }
 0x1fb   : > { %v3521_v53 = vor.u32 %v4487_v60, %v3520_v26  ;;  %v3566_v26 = vld [vmem:[%s4933_s8 + $0x154] sm:$0xf0] }
 0x1fc   : > { %v2624_v12 = vadd.f32 %v2623_v31, %v2535_v7  ;;  %2763 = vmatmul.bf16.gmra.mxu3 %v3473_v41  ;;  %2852 = vmatmul.bf16.gmra.mxu0 %v3477_v0  ;;  %v3528_v31 = vld [vmem:[%s4933_s8 + $0xd8] sm:$0xf] }
 0x1fd   : > { %2941 = vmatmul.bf16.gmra.mxu1 %v3481_v1  ;;  %v3529_v54 = vor.u32 %v4488_v36, %v3528_v31 }
 0x1fe   : > { %3030 = vmatmul.bf16.gmra.mxu2 %v3485_v63  ;;  %v5576_v16 = vadd.f32 %v2712_v35, %v2624_v12 }
 0x1ff   : > { %v2448_v13 = vpop.f32.mrf.mxu3 }
 0x200   : > { %v2449_v62 = vadd.f32 %v2448_v13, %v5353_v30  ;;  %v3517_v30 = vor.u32 %v4481_v55, %v3514_v32  ;;  %v4499_v55 = vld [vmem:[%s4933_s8 + $0x158] sm:$0xf0]  ;;  %v4493_v32 = vld [vmem:[%s4933_s8 + $0x12c] sm:$0xf] }
 0x201   : > { %v2715_v21 = vpop.f32.mrf.mxu2  ;;  %v2539_v11 = vpop.f32.mrf.mxu0 }
 0x202   : > { %v2538_v23 = vadd.f32 %v2537_v19, %v2449_v62  ;;  %v2628_v42 = vpop.f32.mrf.mxu1  ;;  %v4492_v62 = vld [vmem:[%s4933_s8 + $0x124] sm:$0xf] }
 0x204   : > { %v2627_v25 = vadd.f32 %v2626_v9, %v2538_v23  ;;  %v4498_v23 = vld [vmem:[%s4933_s8 + $0x150] sm:$0xf0] }
 0x206   : > { %v5584_v20 = vadd.f32 %v2715_v21, %v2627_v25  ;;  %v3558_v21 = vld [vmem:[%s4933_s8 + $0x14c] sm:$0xf0] }
 0x207   : > { %v2450_v38 = vpop.f32.mrf.mxu3 }
 0x208   : > { %v2451_v29 = vadd.f32 %v2450_v38, %v5366_v51 }
 0x209   : > { %v2717_v44 = vpop.f32.mrf.mxu2  ;;  %v2542_v58 = vpop.f32.mrf.mxu0 }
 0x20a   : > { %v2540_v35 = vadd.f32 %v2539_v11, %v2451_v29  ;;  %v2631_v41 = vpop.f32.mrf.mxu1  ;;  %v3564_v11 = vld [vmem:[%s4933_s8 + $0x128] sm:$0xf]  ;;  %v3569_v29 = vor.u32 %v4493_v32, %v3566_v26 }
 0x20b   : > { %v3565_v37 = vor.u32 %v4498_v23, %v3564_v11  ;;  %v3610_v11 = vld [vmem:[%s4933_s8 + $0x1ac] sm:$0xf0] }
 0x20c   : > { %v2629_v0 = vadd.f32 %v2628_v42, %v2540_v35  ;;  %2768 = vmatmul.bf16.gmra.mxu3 %v3517_v30  ;;  %2857 = vmatmul.bf16.gmra.mxu0 %v3521_v53  ;;  %v3572_v42 = vld [vmem:[%s4933_s8 + $0x130] sm:$0xf] }
 0x20d   : > { %2946 = vmatmul.bf16.gmra.mxu1 %v3525_v56  ;;  %v3573_v38 = vor.u32 %v4499_v55, %v3572_v42 }
 0x20e   : > { %3035 = vmatmul.bf16.gmra.mxu2 %v3529_v54  ;;  %v5590_v51 = vadd.f32 %v2717_v44, %v2629_v0 }
 0x20f   : > { %v2453_v19 = vpop.f32.mrf.mxu3 }
 0x210   : > { %v2454_v63 = vadd.f32 %v2453_v19, %v5374_v4  ;;  %v3561_v4 = vor.u32 %v4492_v62, %v3558_v21  ;;  %v4510_v62 = vld [vmem:[%s4933_s8 + $0x1b0] sm:$0xf0]  ;;  %v4504_v21 = vld [vmem:[%s4933_s8 + $0x184] sm:$0xf] }
 0x211   : > { %v2720_v1 = vpop.f32.mrf.mxu2  ;;  %v2544_v7 = vpop.f32.mrf.mxu0 }
 0x212   : > { %v2543_v9 = vadd.f32 %v2542_v58, %v2454_v63  ;;  %v2633_v12 = vpop.f32.mrf.mxu1  ;;  %v4503_v63 = vld [vmem:[%s4933_s8 + $0x17c] sm:$0xf] }
 0x214   : > { %v2632_v13 = vadd.f32 %v2631_v41, %v2543_v9  ;;  %v4509_v9 = vld [vmem:[%s4933_s8 + $0x1a8] sm:$0xf0] }
 0x216   : > { %v5598_v25 = vadd.f32 %v2720_v1, %v2632_v13  ;;  %v3602_v1 = vld [vmem:[%s4933_s8 + $0x1a4] sm:$0xf0] }
 0x217   : > { %v2455_v60 = vpop.f32.mrf.mxu3 }
 0x218   : > { %v2456_v31 = vadd.f32 %v2455_v60, %v5396_v27 }
 0x219   : > { %v2722_v36 = vpop.f32.mrf.mxu2  ;;  %v2547_v2 = vpop.f32.mrf.mxu0 }
 0x21a   : > { %v2545_v44 = vadd.f32 %v2544_v7, %v2456_v31  ;;  %v2636_v30 = vpop.f32.mrf.mxu1  ;;  %v3608_v7 = vld [vmem:[%s4933_s8 + $0x180] sm:$0xf]  ;;  %v3613_v31 = vor.u32 %v4504_v21, %v3610_v11 }
 0x21b   : > { %v3609_v32 = vor.u32 %v4509_v9, %v3608_v7  ;;  %v3654_v7 = vld [vmem:[%s4933_s8 + $0x204] sm:$0xf0] }
 0x21c   : > { %v2634_v53 = vadd.f32 %v2633_v12, %v2545_v44  ;;  %2773 = vmatmul.bf16.gmra.mxu3 %v3561_v4  ;;  %2862 = vmatmul.bf16.gmra.mxu0 %v3565_v37  ;;  %v3616_v12 = vld [vmem:[%s4933_s8 + $0x188] sm:$0xf] }
 0x21d   : > { %2951 = vmatmul.bf16.gmra.mxu1 %v3569_v29  ;;  %v3617_v60 = vor.u32 %v4510_v62, %v3616_v12 }
 0x21e   : > { %3040 = vmatmul.bf16.gmra.mxu2 %v3573_v38  ;;  %v5604_v27 = vadd.f32 %v2722_v36, %v2634_v53 }
 0x21f   : > { %v2458_v58 = vpop.f32.mrf.mxu3 }
 0x220   : > { %v2459_v54 = vadd.f32 %v2458_v58, %v5401_v24  ;;  %v3605_v24 = vor.u32 %v4503_v63, %v3602_v1  ;;  %v4521_v63 = vld [vmem:[%s4933_s8 + $0x208] sm:$0xf0]  ;;  %v4515_v1 = vld [vmem:[%s4933_s8 + $0x1dc] sm:$0xf] }
 0x221   : > { %v2725_v56 = vpop.f32.mrf.mxu2  ;;  %v2549_v35 = vpop.f32.mrf.mxu0 }
 0x222   : > { %v2548_v41 = vadd.f32 %v2547_v2, %v2459_v54  ;;  %v2638_v0 = vpop.f32.mrf.mxu1  ;;  %v4514_v54 = vld [vmem:[%s4933_s8 + $0x1d4] sm:$0xf] }
 0x224   : > { %v2637_v19 = vadd.f32 %v2636_v30, %v2548_v41  ;;  %v4520_v41 = vld [vmem:[%s4933_s8 + $0x200] sm:$0xf0] }
 0x226   : > { %v5612_v13 = vadd.f32 %v2725_v56, %v2637_v19  ;;  %v3646_v56 = vld [vmem:[%s4933_s8 + $0x1fc] sm:$0xf0] }
 0x227   : > { %v2460_v23 = vpop.f32.mrf.mxu3 }
 0x228   : > { %v2461_v42 = vadd.f32 %v2460_v23, %v5414_v14 }
 0x229   : > { %v2727_v55 = vpop.f32.mrf.mxu2  ;;  %v2552_v26 = vpop.f32.mrf.mxu0 }
 0x22a   : > { %v2550_v36 = vadd.f32 %v2549_v35, %v2461_v42  ;;  %v2641_v4 = vpop.f32.mrf.mxu1  ;;  %v3652_v35 = vld [vmem:[%s4933_s8 + $0x1d8] sm:$0xf]  ;;  %v3657_v42 = vor.u32 %v4515_v1, %v3654_v7 }
 0x22b   : > { %v3653_v21 = vor.u32 %v4520_v41, %v3652_v35  ;;  %v3698_v35 = vld [vmem:[%s4933_s8 + $0x25c] sm:$0xf0] }
 0x22c   : > { %v2639_v37 = vadd.f32 %v2638_v0, %v2550_v36  ;;  %2778 = vmatmul.bf16.gmra.mxu3 %v3605_v24  ;;  %2867 = vmatmul.bf16.gmra.mxu0 %v3609_v32  ;;  %v3660_v0 = vld [vmem:[%s4933_s8 + $0x1e0] sm:$0xf] }
 0x22d   : > { %2956 = vmatmul.bf16.gmra.mxu1 %v3613_v31  ;;  %v3661_v23 = vor.u32 %v4521_v63, %v3660_v0 }
 0x22e   : > { %3045 = vmatmul.bf16.gmra.mxu2 %v3617_v60  ;;  %v5618_v14 = vadd.f32 %v2727_v55, %v2639_v37 }
 0x22f   : > { %v2463_v2 = vpop.f32.mrf.mxu3 }
 0x230   : > { %v2464_v38 = vadd.f32 %v2463_v2, %v5324_v40  ;;  %v3649_v40 = vor.u32 %v4514_v54, %v3646_v56  ;;  %v4532_v54 = vld [vmem:[%s4933_s8 + $0x260] sm:$0xf0]  ;;  %v4526_v56 = vld [vmem:[%s4933_s8 + $0x234] sm:$0xf] }
 0x231   : > { %v2730_v29 = vpop.f32.mrf.mxu2  ;;  %v2554_v44 = vpop.f32.mrf.mxu0 }
 0x232   : > { %v2553_v30 = vadd.f32 %v2552_v26, %v2464_v38  ;;  %v2643_v53 = vpop.f32.mrf.mxu1  ;;  %v4525_v38 = vld [vmem:[%s4933_s8 + $0x22c] sm:$0xf] }
 0x234   : > { %v2642_v58 = vadd.f32 %v2641_v4, %v2553_v30  ;;  %v4531_v30 = vld [vmem:[%s4933_s8 + $0x258] sm:$0xf0] }
 0x236   : > { %v5626_v19 = vadd.f32 %v2730_v29, %v2642_v58  ;;  %v3690_v29 = vld [vmem:[%s4933_s8 + $0x254] sm:$0xf0] }
 0x237   : > { %v2465_v9 = vpop.f32.mrf.mxu3 }
 0x238   : > { %v2466_v12 = vadd.f32 %v2465_v9, %v5346_v10 }
 0x239   : > { %v2732_v62 = vpop.f32.mrf.mxu2  ;;  %v2557_v11 = vpop.f32.mrf.mxu0 }
 0x23a   : > { %v2555_v55 = vadd.f32 %v2554_v44, %v2466_v12  ;;  %v2646_v24 = vpop.f32.mrf.mxu1  ;;  %v3696_v44 = vld [vmem:[%s4933_s8 + $0x230] sm:$0xf]  ;;  %v3701_v12 = vor.u32 %v4526_v56, %v3698_v35 }
 0x23b   : > { %v3697_v1 = vor.u32 %v4531_v30, %v3696_v44  ;;  %v3742_v44 = vld [vmem:[%s4933_s8 + $0x2b4] sm:$0xf0] }
 0x23c   : > { %v2644_v32 = vadd.f32 %v2643_v53, %v2555_v55  ;;  %2783 = vmatmul.bf16.gmra.mxu3 %v3649_v40  ;;  %2872 = vmatmul.bf16.gmra.mxu0 %v3653_v21  ;;  %v3704_v53 = vld [vmem:[%s4933_s8 + $0x238] sm:$0xf] }
 0x23d   : > { %2961 = vmatmul.bf16.gmra.mxu1 %v3657_v42  ;;  %v3705_v9 = vor.u32 %v4532_v54, %v3704_v53 }
 0x23e   : > { %3050 = vmatmul.bf16.gmra.mxu2 %v3661_v23  ;;  %v5632_v10 = vadd.f32 %v2732_v62, %v2644_v32 }
 0x23f   : > { %v2468_v26 = vpop.f32.mrf.mxu3 }
 0x240   : > { %v2469_v60 = vadd.f32 %v2468_v26, %v5351_v28  ;;  %v3693_v28 = vor.u32 %v4525_v38, %v3690_v29  ;;  %v4543_v38 = vld [vmem:[%s4933_s8 + $0x2b8] sm:$0xf0]  ;;  %v4537_v29 = vld [vmem:[%s4933_s8 + $0x28c] sm:$0xf] }
 0x241   : > { %v2735_v31 = vpop.f32.mrf.mxu2  ;;  %v2559_v36 = vpop.f32.mrf.mxu0 }
 0x242   : > { %v2558_v4 = vadd.f32 %v2557_v11, %v2469_v60  ;;  %v2648_v37 = vpop.f32.mrf.mxu1  ;;  %v4536_v60 = vld [vmem:[%s4933_s8 + $0x284] sm:$0xf] }
 0x244   : > { %v2647_v2 = vadd.f32 %v2646_v24, %v2558_v4  ;;  %v4542_v4 = vld [vmem:[%s4933_s8 + $0x2b0] sm:$0xf0] }
 0x246   : > { %v5640_v58 = vadd.f32 %v2735_v31, %v2647_v2  ;;  %v3734_v31 = vld [vmem:[%s4933_s8 + $0x2ac] sm:$0xf0] }
 0x247   : > { %v2470_v41 = vpop.f32.mrf.mxu3 }
 0x248   : > { %v2471_v0 = vadd.f32 %v2470_v41, %v5364_v46 }
 0x249   : > { %v2737_v63 = vpop.f32.mrf.mxu2  ;;  %v2562_v7 = vpop.f32.mrf.mxu0 }
 0x24a   : > { %v2560_v62 = vadd.f32 %v2559_v36, %v2471_v0  ;;  %v2651_v40 = vpop.f32.mrf.mxu1  ;;  %v3740_v36 = vld [vmem:[%s4933_s8 + $0x288] sm:$0xf]  ;;  %v3745_v0 = vor.u32 %v4537_v29, %v3742_v44 }
 0x24b   : > { %v3741_v56 = vor.u32 %v4542_v4, %v3740_v36  ;;  %v3786_v36 = vld [vmem:[%s4933_s8 + $0x30c] sm:$0xf0] }
 0x24c   : > { %v2649_v21 = vadd.f32 %v2648_v37, %v2560_v62  ;;  %2788 = vmatmul.bf16.gmra.mxu3 %v3693_v28  ;;  %2877 = vmatmul.bf16.gmra.mxu0 %v3697_v1  ;;  %v3748_v37 = vld [vmem:[%s4933_s8 + $0x290] sm:$0xf] }
 0x24d   : > { %2966 = vmatmul.bf16.gmra.mxu1 %v3701_v12  ;;  %v3749_v41 = vor.u32 %v4543_v38, %v3748_v37 }
 0x24e   : > { %3055 = vmatmul.bf16.gmra.mxu2 %v3705_v9  ;;  %v5646_v46 = vadd.f32 %v2737_v63, %v2649_v21 }
 0x24f   : > { %v2473_v11 = vpop.f32.mrf.mxu3 }
 0x250   : > { %v2474_v23 = vadd.f32 %v2473_v11, %v5372_v3  ;;  %v3737_v3 = vor.u32 %v4536_v60, %v3734_v31  ;;  %v4554_v60 = vld [vmem:[%s4933_s8 + $0x310] sm:$0xf0]  ;;  %v4548_v31 = vld [vmem:[%s4933_s8 + $0x2e4] sm:$0xf] }
 0x251   : > { %v2740_v42 = vpop.f32.mrf.mxu2  ;;  %v2564_v55 = vpop.f32.mrf.mxu0 }
 0x252   : > { %v2563_v24 = vadd.f32 %v2562_v7, %v2474_v23  ;;  %v2653_v32 = vpop.f32.mrf.mxu1  ;;  %v4547_v23 = vld [vmem:[%s4933_s8 + $0x2dc] sm:$0xf] }
 0x254   : > { %v2652_v26 = vadd.f32 %v2651_v40, %v2563_v24  ;;  %v4553_v24 = vld [vmem:[%s4933_s8 + $0x308] sm:$0xf0] }
 0x256   : > { %v5654_v2 = vadd.f32 %v2740_v42, %v2652_v26  ;;  %v3778_v42 = vld [vmem:[%s4933_s8 + $0x304] sm:$0xf0] }
 0x257   : > { %v2475_v30 = vpop.f32.mrf.mxu3 }
 0x258   : > { %v2476_v53 = vadd.f32 %v2475_v30, %v5394_v34 }
 0x259   : > { %v2742_v54 = vpop.f32.mrf.mxu2  ;;  %v2567_v35 = vpop.f32.mrf.mxu0 }
 0x25a   : > { %v2565_v63 = vadd.f32 %v2564_v55, %v2476_v53  ;;  %v2656_v28 = vpop.f32.mrf.mxu1  ;;  %v3784_v55 = vld [vmem:[%s4933_s8 + $0x2e0] sm:$0xf]  ;;  %v3789_v53 = vor.u32 %v4548_v31, %v3786_v36 }
 0x25b   : > { %v3785_v29 = vor.u32 %v4553_v24, %v3784_v55  ;;  %v3830_v55 = vld [vmem:[%s4933_s8 + $0x364] sm:$0xf0] }
 0x25c   : > { %v2654_v1 = vadd.f32 %v2653_v32, %v2565_v63  ;;  %2793 = vmatmul.bf16.gmra.mxu3 %v3737_v3  ;;  %2882 = vmatmul.bf16.gmra.mxu0 %v3741_v56  ;;  %v3792_v32 = vld [vmem:[%s4933_s8 + $0x2e8] sm:$0xf] }
 0x25d   : > { %2971 = vmatmul.bf16.gmra.mxu1 %v3745_v0  ;;  %v3793_v30 = vor.u32 %v4554_v60, %v3792_v32 }
 0x25e   : > { %3060 = vmatmul.bf16.gmra.mxu2 %v3749_v41  ;;  %v5660_v34 = vadd.f32 %v2742_v54, %v2654_v1 }
 0x25f   : > { %v2478_v7 = vpop.f32.mrf.mxu3 }
 0x260   : > { %v2479_v9 = vadd.f32 %v2478_v7, %v5399_v50  ;;  %v3781_v50 = vor.u32 %v4547_v23, %v3778_v42  ;;  %v4565_v42 = vld [vmem:[%s4933_s8 + $0x368] sm:$0xf0] }
 0x261   : > { %v2745_v12 = vpop.f32.mrf.mxu2  ;;  %v2569_v62 = vpop.f32.mrf.mxu0 }
 0x262   : > { %v2568_v40 = vadd.f32 %v2567_v35, %v2479_v9  ;;  %v2658_v21 = vpop.f32.mrf.mxu1  ;;  %v5681_v9 = vld [vmem:[%s5850_s2] ss:$0 sm:$0xff] }
 0x264   : > { %v2657_v11 = vadd.f32 %v2656_v28, %v2568_v40  ;;  %v3828_v40 = vld [vmem:[%s4933_s8 + $0x338] sm:$0xf] }
 0x266   : > { %v5668_v26 = vadd.f32 %v2745_v12, %v2657_v11  ;;  %v4558_v12 = vld [vmem:[%s4933_s8 + $0x334] sm:$0xf]  ;;  %v3836_v11 = vld [vmem:[%s4933_s8 + $0x340] sm:$0xf] }
 0x267   : > { %v2480_v4 = vpop.f32.mrf.mxu3 }
 0x268   : > { %v2481_v37 = vadd.f32 %v2480_v4, %v5412_v22 }
 0x269   : > { %v2747_v38 = vpop.f32.mrf.mxu2  ;;  %v2848_v44 = vpop.f32.mrf.mxu0 }
 0x26a   : > { %v2570_v54 = vadd.f32 %v2569_v62, %v2481_v37  ;;  %v2937_v3 = vpop.f32.mrf.mxu1  ;;  %v3822_v62 = vld [vmem:[%s4933_s8 + $0x35c] sm:$0xf0]  ;;  %v3837_v37 = vor.u32 %v4565_v42, %v3836_v11  ;;  %v4570_v11 = vld [vmem:[%s4933_s8 + $0x394] sm:$0xf] }
 0x26b   : > { %v3825_v31 = vor.u32 %v4558_v12, %v3822_v62  ;;  %v4575_v12 = vld [vmem:[%s4933_s8 + $0x3b8] sm:$0xf0]  ;;  %v3880_v62 = vld [vmem:[%s4933_s8 + $0x398] sm:$0xf] }
 0x26c   : > { %v2659_v56 = vadd.f32 %v2658_v21, %v2570_v54  ;;  %2798 = vmatmul.bf16.gmra.mxu3 %v3781_v50  ;;  %2887 = vmatmul.bf16.gmra.mxu0 %v3785_v29  ;;  %v4564_v21 = vld [vmem:[%s4933_s8 + $0x360] sm:$0xf0] }
 0x26d   : > { %2976 = vmatmul.bf16.gmra.mxu1 %v3789_v53  ;;  %v3829_v36 = vor.u32 %v4564_v21, %v3828_v40  ;;  %v4576_v21 = vld [vmem:[%s4933_s8 + $0x3c0] sm:$0xf0] }
 0x26e   : > { %3065 = vmatmul.bf16.gmra.mxu2 %v3793_v30  ;;  %v5674_v22 = vadd.f32 %v2747_v38, %v2659_v56 }
 0x26f   : > { %v2759_v35 = vpop.f32.mrf.mxu3 }
 0x270   : > { %v2760_v41 = vadd.f32 %v2759_v35, %v5428_v61  ;;  %v4559_v61 = vld [vmem:[%s4933_s8 + $0x33c] sm:$0xf] }
 0x271   : > { %v3026_v0 = vpop.f32.mrf.mxu2  ;;  %v2850_v63 = vpop.f32.mrf.mxu0  ;;  %v3833_v38 = vor.u32 %v4559_v61, %v3830_v55 }
 0x272   : > { %v2849_v28 = vadd.f32 %v2848_v44, %v2760_v41  ;;  %v2939_v1 = vpop.f32.mrf.mxu1 }
 0x274   : > { %v2938_v7 = vadd.f32 %v2937_v3, %v2849_v28  ;;  %v4569_v28 = vld [vmem:[%s4933_s8 + $0x38c] sm:$0xf] }
 0x276   : > { %v3027_v23 = vadd.f32 %v3026_v0, %v2938_v7  ;;  %v3872_v7 = vld [vmem:[%s4933_s8 + $0x390] sm:$0xf] }
 0x277   : > { %v2761_v24 = vpop.f32.mrf.mxu3 }
 0x278   : > { %v2762_v32 = vadd.f32 %v2761_v24, %v5440_v52  ;;  %v3209_v50 = vadd.f32 %v5681_v9, %v3027_v23  ;;  %v3874_v23 = vld [vmem:[%s4933_s8 + $0x3bc] sm:$0xf0]  ;;  %v3873_v24 = vor.u32 %v4575_v12, %v3872_v7  ;;  %v4581_v7 = vld [vmem:[%s4933_s8 + $0x3ec] sm:$0xf]  ;;  %v3918_v12 = vld [vmem:[%s4933_s8 + $0x414] sm:$0xf0] }
 0x279   : > { %v3028_v60 = vpop.f32.mrf.mxu2  ;;  %v2853_v4 = vpop.f32.mrf.mxu0 }
 0x27a   : > { %v2851_v29 = vadd.f32 %v2850_v63, %v2762_v32  ;;  %v2942_v44 = vpop.f32.mrf.mxu1  ;;  %3241 = vst [vmem:[%s5695_s22] sm:$0xff] %v3209_v50 }
 0x27c   : > { %v2940_v52 = vadd.f32 %v2939_v1, %v2851_v29  ;;  %2803 = vmatmul.bf16.gmra.mxu3 %v3825_v31  ;;  %2892 = vmatmul.bf16.gmra.mxu0 %v3829_v36  ;;  %v3866_v1 = vld [vmem:[%s4933_s8 + $0x3b4] sm:$0xf0]  ;;  %v3877_v31 = vor.u32 %v4570_v11, %v3874_v23 }
 0x27d   : > { %2981 = vmatmul.bf16.gmra.mxu1 %v3833_v38  ;;  %v3869_v55 = vor.u32 %v4569_v28, %v3866_v1  ;;  %v4587_v1 = vld [vmem:[%s4933_s8 + $0x418] sm:$0xf0] }
 0x27e   : > { %3070 = vmatmul.bf16.gmra.mxu2 %v3837_v37  ;;  %v3029_v30 = vadd.f32 %v3028_v60, %v2940_v52  ;;  %v3881_v60 = vor.u32 %v4576_v21, %v3880_v62 }
 0x27f   : > { %v2764_v53 = vpop.f32.mrf.mxu3 }
 0x280   : > { %v2765_v54 = vadd.f32 %v2764_v53, %v5448_v45  ;;  %v3210_v35 = vadd.f32 %v5681_v9, %v3029_v30 }
 0x281   : > { %v3031_v3 = vpop.f32.mrf.mxu2  ;;  %v2855_v56 = vpop.f32.mrf.mxu0 }
 0x282   : > { %v2854_v41 = vadd.f32 %v2853_v4, %v2765_v54  ;;  %v2944_v0 = vpop.f32.mrf.mxu1  ;;  %3242 = vst [vmem:[%s5695_s22 + $0x8] sm:$0xff] %v3210_v35  ;;  %v3910_v35 = vld [vmem:[%s4933_s8 + $0x40c] sm:$0xf0] }
 0x284   : > { %v2943_v63 = vadd.f32 %v2942_v44, %v2854_v41  ;;  %v3916_v41 = vld [vmem:[%s4933_s8 + $0x3e8] sm:$0xf] }
 0x286   : > { %v3032_v40 = vadd.f32 %v3031_v3, %v2943_v63  ;;  %v3924_v63 = vld [vmem:[%s4933_s8 + $0x3f0] sm:$0xf] }
 0x287   : > { %v2766_v45 = vpop.f32.mrf.mxu3 }
 0x288   : > { %v2767_v42 = vadd.f32 %v2766_v45, %v5454_v5  ;;  %v3211_v36 = vadd.f32 %v5681_v9, %v3032_v40  ;;  %v3925_v45 = vor.u32 %v4587_v1, %v3924_v63 }
 0x289   : > { %v3033_v61 = vpop.f32.mrf.mxu2  ;;  %v2858_v32 = vpop.f32.mrf.mxu0 }
 0x28a   : > { %v2856_v4 = vadd.f32 %v2855_v56, %v2767_v42  ;;  %v2947_v37 = vpop.f32.mrf.mxu1  ;;  %3243 = vst [vmem:[%s5695_s22 + $0x10] sm:$0xff] %v3211_v36  ;;  %v4580_v56 = vld [vmem:[%s4933_s8 + $0x3e4] sm:$0xf]  ;;  %v3921_v42 = vor.u32 %v4581_v7, %v3918_v12 }
 0x28b   : > { %v3913_v21 = vor.u32 %v4580_v56, %v3910_v35  ;;  %v4592_v56 = vld [vmem:[%s4933_s8 + $0x444] sm:$0xf]  ;;  %v3962_v35 = vld [vmem:[%s4933_s8 + $0x46c] sm:$0xf0] }
 0x28c   : > { %v2945_v38 = vadd.f32 %v2944_v0, %v2856_v4  ;;  %2808 = vmatmul.bf16.gmra.mxu3 %v3869_v55  ;;  %2897 = vmatmul.bf16.gmra.mxu0 %v3873_v24  ;;  %v4586_v0 = vld [vmem:[%s4933_s8 + $0x410] sm:$0xf0]  ;;  %v3965_v12 = vor.u32 %v4592_v56, %v3962_v35 }
 0x28d   : > { %2986 = vmatmul.bf16.gmra.mxu1 %v3877_v31  ;;  %v3917_v11 = vor.u32 %v4586_v0, %v3916_v41 }
 0x28e   : > { %3075 = vmatmul.bf16.gmra.mxu2 %v3881_v60  ;;  %v3034_v5 = vadd.f32 %v3033_v61, %v2945_v38 }
 0x28f   : > { %v2769_v50 = vpop.f32.mrf.mxu3 }
 0x290   : > { %v2770_v29 = vadd.f32 %v2769_v50, %v5468_v39  ;;  %v3212_v30 = vadd.f32 %v5681_v9, %v3034_v5 }
 0x291   : > { %v3036_v44 = vpop.f32.mrf.mxu2  ;;  %v2860_v52 = vpop.f32.mrf.mxu0 }
 0x292   : > { %v2859_v53 = vadd.f32 %v2858_v32, %v2770_v29  ;;  %v2949_v54 = vpop.f32.mrf.mxu1  ;;  %3244 = vst [vmem:[%s5695_s22 + $0x18] sm:$0xff] %v3212_v30  ;;  %v4591_v29 = vld [vmem:[%s4933_s8 + $0x43c] sm:$0xf]  ;;  %v4597_v30 = vld [vmem:[%s4933_s8 + $0x468] sm:$0xf0] }
 0x294   : > { %v2948_v3 = vadd.f32 %v2947_v37, %v2859_v53  ;;  %v3968_v53 = vld [vmem:[%s4933_s8 + $0x448] sm:$0xf] }
 0x296   : > { %v3037_v28 = vadd.f32 %v3036_v44, %v2948_v3  ;;  %v3954_v44 = vld [vmem:[%s4933_s8 + $0x464] sm:$0xf0]  ;;  %v4598_v3 = vld [vmem:[%s4933_s8 + $0x470] sm:$0xf0] }
 0x297   : > { %v2771_v39 = vpop.f32.mrf.mxu3  ;;  %v3957_v63 = vor.u32 %v4591_v29, %v3954_v44  ;;  %v3969_v7 = vor.u32 %v4598_v3, %v3968_v53 }
 0x298   : > { %v2772_v62 = vadd.f32 %v2771_v39, %v5480_v47  ;;  %v3213_v61 = vadd.f32 %v5681_v9, %v3037_v28 }
 0x299   : > { %v3038_v40 = vpop.f32.mrf.mxu2  ;;  %v2863_v23 = vpop.f32.mrf.mxu0 }
 0x29a   : > { %v2861_v55 = vadd.f32 %v2860_v52, %v2772_v62  ;;  %v2952_v24 = vpop.f32.mrf.mxu1  ;;  %3245 = vst [vmem:[%s5695_s22 + $0x20] sm:$0xff] %v3213_v61  ;;  %v3960_v52 = vld [vmem:[%s4933_s8 + $0x440] sm:$0xf] }
 0x29b   : > { %v3961_v28 = vor.u32 %v4597_v30, %v3960_v52 }
 0x29c   : > { %v2950_v32 = vadd.f32 %v2949_v54, %v2861_v55  ;;  %2813 = vmatmul.bf16.gmra.mxu3 %v3913_v21  ;;  %2902 = vmatmul.bf16.gmra.mxu0 %v3917_v11 }
 0x29d   : > { %2991 = vmatmul.bf16.gmra.mxu1 %v3921_v42 }
 0x29e   : > { %3080 = vmatmul.bf16.gmra.mxu2 %v3925_v45  ;;  %v3039_v47 = vadd.f32 %v3038_v40, %v2950_v32 }
 0x29f   : > { %v2774_v60 = vpop.f32.mrf.mxu3 }
 0x2a0   : > { %v2775_v31 = vadd.f32 %v2774_v60, %v5488_v17  ;;  %v3214_v37 = vadd.f32 %v5681_v9, %v3039_v47  ;;  %v4602_v47 = vld [vmem:[%s4933_s8 + $0x494] sm:$0xf]  ;;  %v3998_v60 = vld [vmem:[%s4933_s8 + $0x4bc] sm:$0xf0] }
 0x2a1   : > { %v3041_v36 = vpop.f32.mrf.mxu2  ;;  %v2865_v4 = vpop.f32.mrf.mxu0  ;;  %v4001_v52 = vor.u32 %v4602_v47, %v3998_v60 }
 0x2a2   : > { %v2864_v38 = vadd.f32 %v2863_v23, %v2775_v31  ;;  %v2954_v5 = vpop.f32.mrf.mxu1  ;;  %3246 = vst [vmem:[%s5695_s22 + $0x28] sm:$0xff] %v3214_v37  ;;  %v4004_v31 = vld [vmem:[%s4933_s8 + $0x498] sm:$0xf] }
 0x2a4   : > { %v2953_v50 = vadd.f32 %v2952_v24, %v2864_v38  ;;  %v4609_v38 = vld [vmem:[%s4933_s8 + $0x4c8] sm:$0xf0] }
 0x2a6   : > { %v3042_v54 = vadd.f32 %v3041_v36, %v2953_v50  ;;  %v4608_v36 = vld [vmem:[%s4933_s8 + $0x4c0] sm:$0xf0]  ;;  %v4006_v50 = vld [vmem:[%s4933_s8 + $0x4c4] sm:$0xf0] }
 0x2a7   : > { %v2776_v17 = vpop.f32.mrf.mxu3  ;;  %v4005_v30 = vor.u32 %v4608_v36, %v4004_v31 }
 0x2a8   : > { %v2777_v41 = vadd.f32 %v2776_v17, %v5494_v15  ;;  %v3215_v39 = vadd.f32 %v5681_v9, %v3042_v54 }
 0x2a9   : > { %v3043_v0 = vpop.f32.mrf.mxu2  ;;  %v2868_v1 = vpop.f32.mrf.mxu0 }
 0x2aa   : > { %v2866_v62 = vadd.f32 %v2865_v4, %v2777_v41  ;;  %v2957_v40 = vpop.f32.mrf.mxu1  ;;  %3247 = vst [vmem:[%s5695_s22 + $0x30] sm:$0xff] %v3215_v39  ;;  %v4012_v4 = vld [vmem:[%s4933_s8 + $0x4a0] sm:$0xf] }
 0x2ab   : > { %v4013_v54 = vor.u32 %v4609_v38, %v4012_v4 }
 0x2ac   : > { %v2955_v21 = vadd.f32 %v2954_v5, %v2866_v62  ;;  %2818 = vmatmul.bf16.gmra.mxu3 %v3957_v63  ;;  %2907 = vmatmul.bf16.gmra.mxu0 %v3961_v28  ;;  %v4603_v5 = vld [vmem:[%s4933_s8 + $0x49c] sm:$0xf] }
 0x2ad   : > { %2996 = vmatmul.bf16.gmra.mxu1 %v3965_v12  ;;  %v4009_v3 = vor.u32 %v4603_v5, %v4006_v50 }
 0x2ae   : > { %3085 = vmatmul.bf16.gmra.mxu2 %v3969_v7  ;;  %v3044_v15 = vadd.f32 %v3043_v0, %v2955_v21  ;;  %v4042_v21 = vld [vmem:[%s4933_s8 + $0x514] sm:$0xf0] }
 0x2af   : > { %v2779_v11 = vpop.f32.mrf.mxu3 }
 0x2b0   : > { %v2780_v23 = vadd.f32 %v2779_v11, %v5508_v18  ;;  %v3216_v61 = vadd.f32 %v5681_v9, %v3044_v15  ;;  %v4048_v15 = vld [vmem:[%s4933_s8 + $0x4f0] sm:$0xf]  ;;  %v4619_v11 = vld [vmem:[%s4933_s8 + $0x518] sm:$0xf0] }
 0x2b1   : > { %v3046_v45 = vpop.f32.mrf.mxu2  ;;  %v2870_v42 = vpop.f32.mrf.mxu0  ;;  %v4049_v60 = vor.u32 %v4619_v11, %v4048_v15 }
 0x2b2   : > { %v2869_v55 = vadd.f32 %v2868_v1, %v2780_v23  ;;  %v2959_v24 = vpop.f32.mrf.mxu1  ;;  %3248 = vst [vmem:[%s5695_s22 + $0x38] sm:$0xff] %v3216_v61  ;;  %v4056_v23 = vld [vmem:[%s4933_s8 + $0x4f8] sm:$0xf]  ;;  %v4614_v61 = vld [vmem:[%s4933_s8 + $0x4f4] sm:$0xf] }
 0x2b4   : > { %v2958_v32 = vadd.f32 %v2957_v40, %v2869_v55  ;;  %v4613_v40 = vld [vmem:[%s4933_s8 + $0x4ec] sm:$0xf]  ;;  %v4050_v55 = vld [vmem:[%s4933_s8 + $0x51c] sm:$0xf0] }
 0x2b5   : > { %v4045_v47 = vor.u32 %v4613_v40, %v4042_v21  ;;  %v4053_v4 = vor.u32 %v4614_v61, %v4050_v55 }
 0x2b6   : > { %v3047_v37 = vadd.f32 %v3046_v45, %v2958_v32 }
 0x2b7   : > { %v2781_v18 = vpop.f32.mrf.mxu3 }
 0x2b8   : > { %v2782_v29 = vadd.f32 %v2781_v18, %v5520_v49  ;;  %v3217_v56 = vadd.f32 %v5681_v9, %v3047_v37 }
 0x2b9   : > { %v3048_v44 = vpop.f32.mrf.mxu2  ;;  %v2873_v53 = vpop.f32.mrf.mxu0 }
 0x2ba   : > { %v2871_v35 = vadd.f32 %v2870_v42, %v2782_v29  ;;  %v2962_v17 = vpop.f32.mrf.mxu1  ;;  %3249 = vst [vmem:[%s5695_s22 + $0x40] sm:$0xff] %v3217_v56  ;;  %v4620_v42 = vld [vmem:[%s4933_s8 + $0x520] sm:$0xf0] }
 0x2bb   : > { %v4057_v36 = vor.u32 %v4620_v42, %v4056_v23  ;;  %v4624_v56 = vld [vmem:[%s4933_s8 + $0x544] sm:$0xf] }
 0x2bc   : > { %v2960_v41 = vadd.f32 %v2959_v24, %v2871_v35  ;;  %2823 = vmatmul.bf16.gmra.mxu3 %v4001_v52  ;;  %2912 = vmatmul.bf16.gmra.mxu0 %v4005_v30  ;;  %v4086_v35 = vld [vmem:[%s4933_s8 + $0x56c] sm:$0xf0] }
 0x2bd   : > { %3001 = vmatmul.bf16.gmra.mxu1 %v4009_v3 }
 0x2be   : > { %3090 = vmatmul.bf16.gmra.mxu2 %v4013_v54  ;;  %v3049_v49 = vadd.f32 %v3048_v44, %v2960_v41  ;;  %v4630_v41 = vld [vmem:[%s4933_s8 + $0x570] sm:$0xf0] }
 0x2bf   : > { %v2784_v0 = vpop.f32.mrf.mxu3 }
 0x2c0   : > { %v2785_v63 = vadd.f32 %v2784_v0, %v5528_v6  ;;  %v3218_v7 = vadd.f32 %v5681_v9, %v3049_v49  ;;  %v4100_v49 = vld [vmem:[%s4933_s8 + $0x550] sm:$0xf] }
 0x2c1   : > { %v3051_v28 = vpop.f32.mrf.mxu2  ;;  %v2875_v1 = vpop.f32.mrf.mxu0 }
 0x2c2   : > { %v2874_v12 = vadd.f32 %v2873_v53, %v2785_v63  ;;  %v2964_v39 = vpop.f32.mrf.mxu1  ;;  %3250 = vst [vmem:[%s5695_s22 + $0x48] sm:$0xff] %v3218_v7  ;;  %v4631_v63 = vld [vmem:[%s4933_s8 + $0x578] sm:$0xf0] }
 0x2c3   : > { %v4101_v21 = vor.u32 %v4631_v63, %v4100_v49 }
 0x2c4   : > { %v2963_v62 = vadd.f32 %v2962_v17, %v2874_v12  ;;  %v4092_v17 = vld [vmem:[%s4933_s8 + $0x548] sm:$0xf] }
 0x2c6   : > { %v3052_v45 = vadd.f32 %v3051_v28, %v2963_v62  ;;  %v4625_v28 = vld [vmem:[%s4933_s8 + $0x54c] sm:$0xf]  ;;  %v4093_v62 = vor.u32 %v4630_v41, %v4092_v17 }
 0x2c7   : > { %v2786_v6 = vpop.f32.mrf.mxu3 }
 0x2c8   : > { %v2787_v24 = vadd.f32 %v2786_v6, %v5534_v8  ;;  %v3219_v37 = vadd.f32 %v5681_v9, %v3052_v45 }
 0x2c9   : > { %v3053_v32 = vpop.f32.mrf.mxu2  ;;  %v2878_v31 = vpop.f32.mrf.mxu0 }
 0x2ca   : > { %v2876_v38 = vadd.f32 %v2875_v1, %v2787_v24  ;;  %v2967_v5 = vpop.f32.mrf.mxu1  ;;  %3251 = vst [vmem:[%s5695_s22 + $0x50] sm:$0xff] %v3219_v37  ;;  %v4094_v1 = vld [vmem:[%s4933_s8 + $0x574] sm:$0xf0] }
 0x2cb   : > { %v4097_v15 = vor.u32 %v4625_v28, %v4094_v1 }
 0x2cc   : > { %v2965_v50 = vadd.f32 %v2964_v39, %v2876_v38  ;;  %2828 = vmatmul.bf16.gmra.mxu3 %v4045_v47  ;;  %2917 = vmatmul.bf16.gmra.mxu0 %v4049_v60  ;;  %v4089_v39 = vor.u32 %v4624_v56, %v4086_v35 }
 0x2cd   : > { %3006 = vmatmul.bf16.gmra.mxu1 %v4053_v4 }
 0x2ce   : > { %3095 = vmatmul.bf16.gmra.mxu2 %v4057_v36  ;;  %v3054_v8 = vadd.f32 %v3053_v32, %v2965_v50 }
 0x2cf   : > { %v2789_v18 = vpop.f32.mrf.mxu3 }
 0x2d0   : > { %v2790_v29 = vadd.f32 %v2789_v18, %v5542_v43  ;;  %v3220_v30 = vadd.f32 %v5681_v9, %v3054_v8 }
 0x2d1   : > { %v3056_v44 = vpop.f32.mrf.mxu2  ;;  %v2880_v52 = vpop.f32.mrf.mxu0 }
 0x2d2   : > { %v2879_v53 = vadd.f32 %v2878_v31, %v2790_v29  ;;  %v2969_v54 = vpop.f32.mrf.mxu1  ;;  %3252 = vst [vmem:[%s5695_s22 + $0x58] sm:$0xff] %v3220_v30 }
 0x2d4   : > { %v2968_v3 = vadd.f32 %v2967_v5, %v2879_v53 }
 0x2d6   : > { %v3057_v0 = vadd.f32 %v3056_v44, %v2968_v3 }
 0x2d7   : > { %v2791_v43 = vpop.f32.mrf.mxu3 }
 0x2d8   : > { %v2792_v7 = vadd.f32 %v2791_v43, %v5548_v59  ;;  %v3221_v11 = vadd.f32 %v5681_v9, %v3057_v0 }
 0x2d9   : > { %v3058_v12 = vpop.f32.mrf.mxu2  ;;  %v2883_v40 = vpop.f32.mrf.mxu0 }
 0x2da   : > { %v2881_v23 = vadd.f32 %v2880_v52, %v2792_v7  ;;  %v2972_v45 = vpop.f32.mrf.mxu1  ;;  %3253 = vst [vmem:[%s5695_s22 + $0x60] sm:$0xff] %v3221_v11 }
 0x2dc   : > { %v2970_v42 = vadd.f32 %v2969_v54, %v2881_v23  ;;  %2833 = vmatmul.bf16.gmra.mxu3 %v4089_v39  ;;  %2922 = vmatmul.bf16.gmra.mxu0 %v4093_v62 }
 0x2dd   : > { %3011 = vmatmul.bf16.gmra.mxu1 %v4097_v15 }
 0x2de   : > { %3100 = vmatmul.bf16.gmra.mxu2 %v4101_v21  ;;  %v3059_v61 = vadd.f32 %v3058_v12, %v2970_v42 }
 0x2df   : > { %v2794_v55 = vpop.f32.mrf.mxu3 }
 0x2e0   : > { %v2795_v59 = vadd.f32 %v2794_v55, %v5556_v48  ;;  %v3222_v32 = vadd.f32 %v5681_v9, %v3059_v61 }
 0x2e1   : > { %v3061_v6 = vpop.f32.mrf.mxu2  ;;  %v2885_v24 = vpop.f32.mrf.mxu0 }
 0x2e2   : > { %v2884_v47 = vadd.f32 %v2883_v40, %v2795_v59  ;;  %v2974_v60 = vpop.f32.mrf.mxu1  ;;  %3254 = vst [vmem:[%s5695_s22 + $0x68] sm:$0xff] %v3222_v32 }
 0x2e4   : > { %v2973_v31 = vadd.f32 %v2972_v45, %v2884_v47 }
 0x2e6   : > { %v3062_v36 = vadd.f32 %v3061_v6, %v2973_v31 }
 0x2e7   : > { %v2796_v4 = vpop.f32.mrf.mxu3 }
 0x2e8   : > { %v2797_v37 = vadd.f32 %v2796_v4, %v5562_v33  ;;  %v3223_v50 = vadd.f32 %v5681_v9, %v3062_v36 }
 0x2e9   : > { %v3063_v38 = vpop.f32.mrf.mxu2  ;;  %v2888_v5 = vpop.f32.mrf.mxu0 }
 0x2ea   : > { %v2886_v8 = vadd.f32 %v2885_v24, %v2797_v37  ;;  %v2977_v48 = vpop.f32.mrf.mxu1  ;;  %3255 = vst [vmem:[%s5695_s22 + $0x70] sm:$0xff] %v3223_v50 }
 0x2ec   : > { %v2975_v18 = vadd.f32 %v2974_v60, %v2886_v8 }
 0x2ee   : > { %v3064_v29 = vadd.f32 %v3063_v38, %v2975_v18 }
 0x2ef   : > { %v2799_v44 = vpop.f32.mrf.mxu3 }
 0x2f0   : > { %v2800_v52 = vadd.f32 %v2799_v44, %v5570_v57  ;;  %v3224_v54 = vadd.f32 %v5681_v9, %v3064_v29 }
 0x2f1   : > { %v3066_v30 = vpop.f32.mrf.mxu2  ;;  %v2890_v53 = vpop.f32.mrf.mxu0 }
 0x2f2   : > { %v2889_v3 = vadd.f32 %v2888_v5, %v2800_v52  ;;  %v2979_v33 = vpop.f32.mrf.mxu1  ;;  %3256 = vst [vmem:[%s5695_s22 + $0x78] sm:$0xff] %v3224_v54 }
 0x2f4   : > { %v2978_v56 = vadd.f32 %v2977_v48, %v2889_v3 }
 0x2f6   : > { %v3067_v35 = vadd.f32 %v3066_v30, %v2978_v56 }
 0x2f7   : > { %v2801_v17 = vpop.f32.mrf.mxu3 }
 0x2f8   : > { %v2802_v41 = vadd.f32 %v2801_v17, %v5576_v16  ;;  %v3225_v63 = vadd.f32 %v5681_v9, %v3067_v35 }
 0x2f9   : > { %v3068_v49 = vpop.f32.mrf.mxu2  ;;  %v2893_v0 = vpop.f32.mrf.mxu0 }
 0x2fa   : > { %v2891_v28 = vadd.f32 %v2890_v53, %v2802_v41  ;;  %v2982_v57 = vpop.f32.mrf.mxu1  ;;  %3257 = vst [vmem:[%s5695_s22 + $0x80] sm:$0xff] %v3225_v63 }
 0x2fc   : > { %v2980_v1 = vadd.f32 %v2979_v33, %v2891_v28 }
 0x2fe   : > { %v3069_v43 = vadd.f32 %v3068_v49, %v2980_v1 }
 0x2ff   : > { %v2804_v7 = vpop.f32.mrf.mxu3 }
 0x300   : > { %v2805_v12 = vadd.f32 %v2804_v7, %v5584_v20  ;;  %v3226_v40 = vadd.f32 %v5681_v9, %v3069_v43 }
 0x301   : > { %v3071_v39 = vpop.f32.mrf.mxu2  ;;  %v2895_v62 = vpop.f32.mrf.mxu0 }
 0x302   : > { %v2894_v21 = vadd.f32 %v2893_v0, %v2805_v12  ;;  %v2984_v16 = vpop.f32.mrf.mxu1  ;;  %3258 = vst [vmem:[%s5695_s22 + $0x88] sm:$0xff] %v3226_v40 }
 0x304   : > { %v2983_v15 = vadd.f32 %v2982_v57, %v2894_v21 }
 0x306   : > { %v3072_v11 = vadd.f32 %v3071_v39, %v2983_v15 }
 0x307   : > { %v2806_v23 = vpop.f32.mrf.mxu3 }
 0x308   : > { %v2807_v45 = vadd.f32 %v2806_v23, %v5590_v51  ;;  %v3227_v55 = vadd.f32 %v5681_v9, %v3072_v11 }
 0x309   : > { %v3073_v42 = vpop.f32.mrf.mxu2  ;;  %v2898_v61 = vpop.f32.mrf.mxu0 }
 0x30a   : > { %v2896_v59 = vadd.f32 %v2895_v62, %v2807_v45  ;;  %v2987_v20 = vpop.f32.mrf.mxu1  ;;  %3259 = vst [vmem:[%s5695_s22 + $0x90] sm:$0xff] %v3227_v55 }
 0x30c   : > { %v2985_v6 = vadd.f32 %v2984_v16, %v2896_v59 }
 0x30e   : > { %v3074_v24 = vadd.f32 %v3073_v42, %v2985_v6 }
 0x30f   : > { %v2809_v32 = vpop.f32.mrf.mxu3 }
 0x310   : > { %v2810_v47 = vadd.f32 %v2809_v32, %v5598_v25  ;;  %v3228_v36 = vadd.f32 %v5681_v9, %v3074_v24 }
 0x311   : > { %v3076_v60 = vpop.f32.mrf.mxu2  ;;  %v2900_v31 = vpop.f32.mrf.mxu0 }
 0x312   : > { %v2899_v4 = vadd.f32 %v2898_v61, %v2810_v47  ;;  %v2989_v51 = vpop.f32.mrf.mxu1  ;;  %3260 = vst [vmem:[%s5695_s22 + $0x98] sm:$0xff] %v3228_v36 }
 0x314   : > { %v2988_v37 = vadd.f32 %v2987_v20, %v2899_v4 }
 0x316   : > { %v3077_v38 = vadd.f32 %v3076_v60, %v2988_v37 }
 0x317   : > { %v2811_v5 = vpop.f32.mrf.mxu3 }
 0x318   : > { %v2812_v50 = vadd.f32 %v2811_v5, %v5604_v27  ;;  %v3229_v18 = vadd.f32 %v5681_v9, %v3077_v38 }
 0x319   : > { %v3078_v8 = vpop.f32.mrf.mxu2  ;;  %v2903_v48 = vpop.f32.mrf.mxu0 }
 0x31a   : > { %v2901_v29 = vadd.f32 %v2900_v31, %v2812_v50  ;;  %v2992_v25 = vpop.f32.mrf.mxu1  ;;  %3261 = vst [vmem:[%s5695_s22 + $0xa0] sm:$0xff] %v3229_v18 }
 0x31c   : > { %v2990_v44 = vadd.f32 %v2989_v51, %v2901_v29 }
 0x31e   : > { %v3079_v52 = vadd.f32 %v3078_v8, %v2990_v44 }
 0x31f   : > { %v2814_v30 = vpop.f32.mrf.mxu3 }
 0x320   : > { %v2815_v53 = vadd.f32 %v2814_v30, %v5612_v13  ;;  %v3230_v33 = vadd.f32 %v5681_v9, %v3079_v52 }
 0x321   : > { %v3081_v54 = vpop.f32.mrf.mxu2  ;;  %v2905_v3 = vpop.f32.mrf.mxu0 }
 0x322   : > { %v2904_v56 = vadd.f32 %v2903_v48, %v2815_v53  ;;  %v2994_v27 = vpop.f32.mrf.mxu1  ;;  %3262 = vst [vmem:[%s5695_s22 + $0xa8] sm:$0xff] %v3230_v33 }
 0x324   : > { %v2993_v35 = vadd.f32 %v2992_v25, %v2904_v56 }
 0x326   : > { %v3082_v17 = vadd.f32 %v3081_v54, %v2993_v35 }
 0x327   : > { %v2816_v41 = vpop.f32.mrf.mxu3 }
 0x328   : > { %v2817_v49 = vadd.f32 %v2816_v41, %v5618_v14  ;;  %v3231_v28 = vadd.f32 %v5681_v9, %v3082_v17 }
 0x329   : > { %v3083_v0 = vpop.f32.mrf.mxu2  ;;  %v2908_v63 = vpop.f32.mrf.mxu0 }
 0x32a   : > { %v2906_v57 = vadd.f32 %v2905_v3, %v2817_v49  ;;  %v2997_v13 = vpop.f32.mrf.mxu1  ;;  %3263 = vst [vmem:[%s5695_s22 + $0xb0] sm:$0xff] %v3231_v28 }
 0x32c   : > { %v2995_v1 = vadd.f32 %v2994_v27, %v2906_v57 }
 0x32e   : > { %v3084_v43 = vadd.f32 %v3083_v0, %v2995_v1 }
 0x32f   : > { %v2819_v7 = vpop.f32.mrf.mxu3 }
 0x330   : > { %v2820_v12 = vadd.f32 %v2819_v7, %v5626_v19  ;;  %v3232_v40 = vadd.f32 %v5681_v9, %v3084_v43 }
 0x331   : > { %v3086_v39 = vpop.f32.mrf.mxu2  ;;  %v2910_v62 = vpop.f32.mrf.mxu0 }
 0x332   : > { %v2909_v21 = vadd.f32 %v2908_v63, %v2820_v12  ;;  %v2999_v14 = vpop.f32.mrf.mxu1  ;;  %3264 = vst [vmem:[%s5695_s22 + $0xb8] sm:$0xff] %v3232_v40 }
 0x334   : > { %v2998_v16 = vadd.f32 %v2997_v13, %v2909_v21 }
 0x336   : > { %v3087_v15 = vadd.f32 %v3086_v39, %v2998_v16 }
 0x337   : > { %v2821_v11 = vpop.f32.mrf.mxu3 }
 0x338   : > { %v2822_v23 = vadd.f32 %v2821_v11, %v5632_v10  ;;  %v3233_v61 = vadd.f32 %v5681_v9, %v3087_v15 }
 0x339   : > { %v3088_v45 = vpop.f32.mrf.mxu2  ;;  %v2913_v42 = vpop.f32.mrf.mxu0 }
 0x33a   : > { %v2911_v55 = vadd.f32 %v2910_v62, %v2822_v23  ;;  %v3002_v19 = vpop.f32.mrf.mxu1  ;;  %3265 = vst [vmem:[%s5695_s22 + $0xc0] sm:$0xff] %v3233_v61 }
 0x33c   : > { %v3000_v59 = vadd.f32 %v2999_v14, %v2911_v55 }
 0x33e   : > { %v3089_v20 = vadd.f32 %v3088_v45, %v3000_v59 }
 0x33f   : > { %v2824_v6 = vpop.f32.mrf.mxu3 }
 0x340   : > { %v2825_v24 = vadd.f32 %v2824_v6, %v5640_v58  ;;  %v3234_v60 = vadd.f32 %v5681_v9, %v3089_v20 }
 0x341   : > { %v3091_v32 = vpop.f32.mrf.mxu2  ;;  %v2915_v47 = vpop.f32.mrf.mxu0 }
 0x342   : > { %v2914_v31 = vadd.f32 %v2913_v42, %v2825_v24  ;;  %v3004_v10 = vpop.f32.mrf.mxu1  ;;  %3266 = vst [vmem:[%s5695_s22 + $0xc8] sm:$0xff] %v3234_v60 }
 0x344   : > { %v3003_v36 = vadd.f32 %v3002_v19, %v2914_v31 }
 0x346   : > { %v3092_v4 = vadd.f32 %v3091_v32, %v3003_v36 }
 0x347   : > { %v2826_v51 = vpop.f32.mrf.mxu3 }
 0x348   : > { %v2827_v37 = vadd.f32 %v2826_v51, %v5646_v46  ;;  %v3235_v5 = vadd.f32 %v5681_v9, %v3092_v4 }
 0x349   : > { %v3093_v38 = vpop.f32.mrf.mxu2  ;;  %v2918_v8 = vpop.f32.mrf.mxu0 }
 0x34a   : > { %v2916_v50 = vadd.f32 %v2915_v47, %v2827_v37  ;;  %3267 = vst [vmem:[%s5695_s22 + $0xd0] sm:$0xff] %v3235_v5  ;;  %v3007_v48 = vpop.f32.mrf.mxu1 }
 0x34c   : > { %v3005_v58 = vadd.f32 %v3004_v10, %v2916_v50 }
 0x34e   : > { %v3094_v18 = vadd.f32 %v3093_v38, %v3005_v58 }
 0x34f   : > { %v2829_v29 = vpop.f32.mrf.mxu3 }
 0x350   : > { %v2830_v25 = vadd.f32 %v2829_v29, %v5654_v2  ;;  %v3236_v52 = vadd.f32 %v5681_v9, %v3094_v18 }
 0x351   : > { %v3096_v44 = vpop.f32.mrf.mxu2  ;;  %v2920_v46 = vpop.f32.mrf.mxu0 }
 0x352   : > { %v2919_v30 = vadd.f32 %v2918_v8, %v2830_v25  ;;  %3268 = vst [vmem:[%s5695_s22 + $0xd8] sm:$0xff] %v3236_v52  ;;  %v3009_v3 = vpop.f32.mrf.mxu1 }
 0x354   : > { %v3008_v53 = vadd.f32 %v3007_v48, %v2919_v30 }
 0x356   : > { %v3097_v54 = vadd.f32 %v3096_v44, %v3008_v53 }
 0x357   : > { %v2831_v33 = vpop.f32.mrf.mxu3 }
 0x358   : > { %v2832_v56 = vadd.f32 %v2831_v33, %v5660_v34  ;;  %v3237_v35 = vadd.f32 %v5681_v9, %v3097_v54 }
 0x359   : > { %v3098_v27 = vpop.f32.mrf.mxu2  ;;  %v2923_v49 = vpop.f32.mrf.mxu0 }
 0x35a   : > { %v2921_v17 = vadd.f32 %v2920_v46, %v2832_v56  ;;  %3269 = vst [vmem:[%s5695_s22 + $0xe0] sm:$0xff] %v3237_v35  ;;  %v3012_v28 = vpop.f32.mrf.mxu1 }
 0x35c   : > { %v3010_v41 = vadd.f32 %v3009_v3, %v2921_v17 }
 0x35e   : > { %v3099_v2 = vadd.f32 %v3098_v27, %v3010_v41 }
 0x35f   : > { %v2834_v0 = vpop.f32.mrf.mxu3 }
 0x360   : > { %v2835_v63 = vadd.f32 %v2834_v0, %v5668_v26  ;;  %v3238_v57 = vadd.f32 %v5681_v9, %v3099_v2 }
 0x361   : > { %v3101_v1 = vpop.f32.mrf.mxu2  ;;  %v2925_v39 = vpop.f32.mrf.mxu0 }
 0x362   : > { %v2924_v13 = vadd.f32 %v2923_v49, %v2835_v63  ;;  %3270 = vst [vmem:[%s5695_s22 + $0xe8] sm:$0xff] %v3238_v57  ;;  %v3014_v21 = vpop.f32.mrf.mxu1 }
 0x364   : > { %v3013_v34 = vadd.f32 %v3012_v28, %v2924_v13 }
 0x366   : > { %v3102_v43 = vadd.f32 %v3101_v1, %v3013_v34 }
 0x367   : > { %v2836_v7 = vpop.f32.mrf.mxu3 }
 0x368   : > { %v2837_v12 = vadd.f32 %v2836_v7, %v5674_v22  ;;  %v3239_v62 = vadd.f32 %v5681_v9, %v3102_v43 }
 0x369   : > { %v3103_v26 = vpop.f32.mrf.mxu2 }
 0x36a   : > { %v2926_v40 = vadd.f32 %v2925_v39, %v2837_v12  ;;  %3271 = vst [vmem:[%s5695_s22 + $0xf0] sm:$0xff] %v3239_v62 }
 0x36c   : > { %v3015_v14 = vadd.f32 %v3014_v21, %v2926_v40 }
 0x36e   : > { %v3104_v16 = vadd.f32 %v3103_v26, %v3015_v14 }
 0x370   : > { %v3240_v15 = vadd.f32 %v5681_v9, %v3104_v16 }
 0x372   : > { %3272 = vst [vmem:[%s5695_s22 + $0xf8] sm:$0xff] %v3240_v15 }
 0x373 PF: > { %s13_s14 = sadd.s32 1, %s4793_s14   ;;  %s5852_s12 = smov %s4789_s13 }
 0x374   : > { %p10_p5 = scmp.ge.s32.totalorder %s13_s14, 4   ;;  %s5853_s13 = smov %s5855_s15 }
 0x376   :  { %12 = sbr.rel (!%p10_p5) target bundleno = 2 (0x2), region = 76 }

</bundles_post_ra>
